<compile_context>
chip_gen: v7x
topology: tpu7x:2x2x1
jax: 0.10.0
libtpu: 0.0.40
codegen_flags: <defaults>
</compile_context>

<pallas_src>
import jax
import jax.numpy as jnp
from jax.experimental import pallas as pl
from jax.experimental.pallas import tpu as pltpu

# --- model hyper-parameters (small, but consistent with the module) ----------
BATCH = 1            # batch_size = 1 in the original script
SEQ_LEN = 8          # sl
IMG_H = IMG_W = 20   # per-frame spatial size (scaled down from the original)
HIDDEN = 32          # args.hidden
NUM_LAYERS = 2       # args.layers
NUM_CLASSES = 3
LSTM_INPUT = 84      # fc2 output size (args.canbus == False, add_dim == 0)

T = BATCH * SEQ_LEN  # frames; x.unsqueeze(0) => one LSTM sequence of batch 1

# conv geometry (valid 5x5 convs, 2x2/2 max-pools)
C1_OUT_HW = IMG_H - 4          # 16
P1_HW = C1_OUT_HW // 2         # 8
C2_OUT_HW = P1_HW - 4          # 4
P2_HW = C2_OUT_HW // 2         # 2
FLAT = 32 * P2_HW * P2_HW      # 128 flattened conv feature

K1 = 5 * 5 * 3                 # 75  conv1 im2col depth
K1P = 128                      # padded to a full lane tile
K2 = 5 * 5 * 16                # 400 conv2 im2col depth
K2P = 512                      # padded to a multiple of 128

FC1_OUT = 120
GATES = 4 * HIDDEN             # 128
LANES = 128

assert GATES == 128 and FLAT == 128, "padding scheme assumes H=32 and 2x2x32 flatten"


def _full_spec(shape):
    """Whole-array block, resident in VMEM for the single grid step."""
    return pl.BlockSpec(shape, lambda i: (0,) * len(shape))


# =============================================================================
# Kernel A: conv1 + bias + ReLU + 2x2 max-pool (block-diagonal im2col matmul)
# =============================================================================
def _conv1_pool_kernel(p_ref, w_ref, b_ref, o_ref):
    """p_ref: (4, T*P1_HW, P1_HW*K1P) one im2col slab per pooling quadrant,
              rows = (frame, out_row), lanes = (out_col, patch_feature).
       w_ref: (P1_HW*K1P, P1_HW*16)   block-diagonal conv1 weight (one block/out_col).
       b_ref: (1, P1_HW*16)           conv1 bias tiled over out_col blocks.
       o_ref: (T*P1_HW, P1_HW*16)     pooled activation, lane-dense (128 lanes)."""
    w = w_ref[...]                           # hoisted: invariant across quadrants
    m = None
    for q in range(4):                       # max over the 2x2 pooling window
        y = jnp.dot(p_ref[q], w, preferred_element_type=jnp.float32)
        m = y if m is None else jnp.maximum(m, y)
    o_ref[...] = jnp.maximum(m + b_ref[...], 0.0)   # relu(max(.)+b) == max(relu(.+b))


def conv1_pool(p1, w1b, b1b):
    rows, cols = T * P1_HW, P1_HW * 16
    return pl.pallas_call(
        _conv1_pool_kernel,
        out_shape=jax.ShapeDtypeStruct((rows, cols), jnp.float32),
        grid=(1,),
        in_specs=[_full_spec(p1.shape), _full_spec(w1b.shape), _full_spec(b1b.shape)],
        out_specs=_full_spec((rows, cols)),
        compiler_params=pltpu.CompilerParams(
            dimension_semantics=("arbitrary",),
            vmem_limit_bytes=16 * 1024 * 1024),
    )(p1, w1b, b1b)


# =============================================================================
# Kernel B: conv2+relu+pool+flatten + fc1 + fc2 + LSTM(2 layers) + fused fc3/fc4
# =============================================================================
def _fused_head_kernel(p2_ref, w2_ref, b2_ref,
                       fc1w_ref, fc1b_ref, fc2w_ref, fc2b_ref,
                       wih0_ref, whh0_ref, b0_ref,
                       wih1_ref, whh1_ref, b1_ref,
                       w34_ref, b34_ref,
                       o_ref, hseq_ref):
    H = HIDDEN

    # --- conv2 + relu + 2x2 pool + flatten -> (T, 128) lane-dense slab -------
    # p2_ref: (4, T, 4*K2P) one slab per pooling quadrant, lanes=(pool_pos, k)
    # w2_ref: (4*K2P, 128)  block-diagonal conv2 weight (one block per pool_pos)
    w2 = w2_ref[...]                         # hoisted: invariant across quadrants
    m = None
    for q in range(4):
        y = jnp.dot(p2_ref[q], w2, preferred_element_type=jnp.float32)
        m = y if m is None else jnp.maximum(m, y)
    flat = jnp.maximum(m + b2_ref[...], 0.0)                       # (T, 128)

    # --- fc1 + relu, fc2 + relu (out dims zero-padded to 128 lanes) ----------
    f1 = jnp.maximum(
        jnp.dot(flat, fc1w_ref[...], preferred_element_type=jnp.float32)
        + fc1b_ref[...], 0.0)                                      # (T, 128)
    f2 = jnp.maximum(
        jnp.dot(f1, fc2w_ref[...], preferred_element_type=jnp.float32)
        + fc2b_ref[...], 0.0)                                      # (T, 128)

    # --- LSTM (PyTorch gate order i,f,g,o; b = b_ih + b_hh) ------------------
    # Input projection hoisted out of the time loop; recurrence unrolled with
    # h/c as values and the h-sequence kept in a VMEM scratch.
    def lstm_layer(gx, whh):
        h = jnp.zeros((1, H), jnp.float32)
        c = jnp.zeros((1, H), jnp.float32)
        for t in range(T):
            g = gx[t:t + 1, :] + jnp.dot(h, whh, preferred_element_type=jnp.float32)
            i_g = jax.nn.sigmoid(g[:, 0 * H:1 * H])
            f_g = jax.nn.sigmoid(g[:, 1 * H:2 * H])
            g_c = jnp.tanh(g[:, 2 * H:3 * H])
            o_g = jax.nn.sigmoid(g[:, 3 * H:4 * H])
            c = f_g * c + i_g * g_c
            h = o_g * jnp.tanh(c)
            hseq_ref[t:t + 1, :] = h

    gx0 = jnp.dot(f2, wih0_ref[...], preferred_element_type=jnp.float32) + b0_ref[...]
    lstm_layer(gx0, whh0_ref[...])
    h0seq = hseq_ref[...]                                          # (T, H)
    gx1 = jnp.dot(h0seq, wih1_ref[...], preferred_element_type=jnp.float32) + b1_ref[...]
    lstm_layer(gx1, whh1_ref[...])
    h1seq = hseq_ref[...]                                          # (T, H)

    # --- fused fc3/fc4, zero-padded to a single lane-dense (T, 128) store ----
    o_ref[...] = (jnp.dot(h1seq, w34_ref[...], preferred_element_type=jnp.float32)
                  + b34_ref[...])


def fused_head(p2, kp):
    names = ["w2b", "b2b", "fc1w", "fc1b", "fc2w", "fc2b",
             "wih0", "whh0", "b0", "wih1", "whh1", "b1", "w34", "b34"]
    ops = [p2] + [kp[n] for n in names]
    return pl.pallas_call(
        _fused_head_kernel,
        out_shape=jax.ShapeDtypeStruct((T, LANES), jnp.float32),
        grid=(1,),
        in_specs=[_full_spec(o.shape) for o in ops],
        out_specs=_full_spec((T, LANES)),
        scratch_shapes=[pltpu.VMEM((T, HIDDEN), jnp.float32)],
        compiler_params=pltpu.CompilerParams(
            dimension_semantics=("arbitrary",),
            vmem_limit_bytes=16 * 1024 * 1024),
    )(*ops)


# =============================================================================
# Wrapper glue (XLA): NCHW->NHWC, im2col patch gathers between the two kernels
# =============================================================================
def _conv1_patches(xf):
    """xf: (T, H, W, 3) NHWC -> (4, T*P1_HW, P1_HW*K1P) quadrant patch slabs."""
    n = xf.shape[0]
    pats = jnp.stack([xf[:, kh:kh + C1_OUT_HW, kw:kw + C1_OUT_HW, :]
                      for kh in range(5) for kw in range(5)], axis=3)
    pats = pats.reshape(n, C1_OUT_HW, C1_OUT_HW, K1)           # k order = (kh,kw,ci)
    pats = pats.reshape(n, P1_HW, 2, P1_HW, 2, K1)             # (n, oh, di, ow, dj, k)
    pats = pats.transpose(2, 4, 0, 1, 3, 5)                    # (di, dj, n, oh, ow, k)
    pats = jnp.pad(pats, ((0, 0),) * 5 + ((0, K1P - K1),))     # K-pad 75 -> 128
    return pats.reshape(4, n * P1_HW, P1_HW * K1P)


def _conv2_patches(pool1):
    """pool1: (T, 8, 8, 16) -> (4, T, 4*K2P) quadrant patch slabs."""
    n = pool1.shape[0]
    pats = jnp.stack([pool1[:, kh:kh + C2_OUT_HW, kw:kw + C2_OUT_HW, :]
                      for kh in range(5) for kw in range(5)], axis=3)
    pats = pats.reshape(n, C2_OUT_HW, C2_OUT_HW, K2)
    pats = pats.reshape(n, P2_HW, 2, P2_HW, 2, K2)             # (n, a, di, b, dj, k)
    pats = pats.transpose(2, 4, 0, 1, 3, 5)                    # (di, dj, n, a, b, k)
    pats = jnp.pad(pats, ((0, 0),) * 5 + ((0, K2P - K2),))     # K-pad 400 -> 512
    return pats.reshape(4, n, P2_HW * P2_HW * K2P)


@jax.jit
def cnn_to_lstm_forward(kp, x):
    """x: (B, SL, C, H, W) float32 (PyTorch NCHW per frame) -> (out1, out2)."""
    b, sl, c, h, w = x.shape
    xf = x.reshape(b * sl, c, h, w).transpose(0, 2, 3, 1)      # NCHW -> NHWC
    p1 = _conv1_patches(xf)                                    # im2col glue
    pooled1 = conv1_pool(p1, kp["w1b"], kp["b1b"])             # kernel A
    pooled1 = pooled1.reshape(b * sl, P1_HW, P1_HW, 16)
    p2 = _conv2_patches(pooled1)                               # im2col glue
    out = fused_head(p2, kp)                                   # kernel B, (T, 128)
    # TODO(synk): args.canbus branch (concat of canbus features d) is the
    # disabled path in the reference config; only the d=None path is built.
    return out[:, 0:NUM_CLASSES], out[:, NUM_CLASSES:2 * NUM_CLASSES]


# =============================================================================
# Parameters: logical shapes + packing into padded / fused kernel operands
# =============================================================================
def init_params(key):
    """Deterministic synthetic parameters (uniform, fan-in scaled)."""
    def u(k, shape, fan_in):
        s = 1.0 / jnp.sqrt(jnp.float32(fan_in))
        return jax.random.uniform(k, shape, jnp.float32, -s, s)

    ks = list(jax.random.split(key, 22))
    p = {}
    p["conv1_w"] = u(ks[0], (5, 5, 3, 16), 5 * 5 * 3)
    p["conv1_b"] = u(ks[1], (16,), 5 * 5 * 3)
    p["conv2_w"] = u(ks[2], (5, 5, 16, 32), 5 * 5 * 16)
    p["conv2_b"] = u(ks[3], (32,), 5 * 5 * 16)
    p["fc1_w"] = u(ks[4], (FLAT, FC1_OUT), FLAT)
    p["fc1_b"] = u(ks[5], (FC1_OUT,), FLAT)
    p["fc2_w"] = u(ks[6], (FC1_OUT, LSTM_INPUT), FC1_OUT)
    p["fc2_b"] = u(ks[7], (LSTM_INPUT,), FC1_OUT)
    kidx = 8
    for layer in range(NUM_LAYERS):
        in_sz = LSTM_INPUT if layer == 0 else HIDDEN
        p[f"lstm_wih_{layer}"] = u(ks[kidx + 0], (in_sz, GATES), HIDDEN)
        p[f"lstm_whh_{layer}"] = u(ks[kidx + 1], (HIDDEN, GATES), HIDDEN)
        p[f"lstm_b_{layer}"] = u(ks[kidx + 2], (GATES,), HIDDEN)   # b_ih + b_hh fused
        kidx += 3
    p["fc3_w"] = u(ks[kidx + 0], (HIDDEN, NUM_CLASSES), HIDDEN)
    p["fc3_b"] = u(ks[kidx + 1], (NUM_CLASSES,), HIDDEN)
    p["fc4_w"] = u(ks[kidx + 2], (HIDDEN, NUM_CLASSES), HIDDEN)
    p["fc4_b"] = u(ks[kidx + 3], (NUM_CLASSES,), HIDDEN)
    return p


def _block_diag(w, n):
    k, c = w.shape
    out = jnp.zeros((n * k, n * c), w.dtype)
    for i in range(n):
        out = out.at[i * k:(i + 1) * k, i * c:(i + 1) * c].set(w)
    return out


def pack_params(p):
    """Pad / fuse the logical parameters into lane-aligned kernel operands."""
    kp = {}
    w1f = jnp.pad(p["conv1_w"].reshape(K1, 16), ((0, K1P - K1), (0, 0)))
    kp["w1b"] = _block_diag(w1f, P1_HW)                               # (1024, 128)
    kp["b1b"] = jnp.tile(p["conv1_b"], P1_HW).reshape(1, P1_HW * 16)
    w2f = jnp.pad(p["conv2_w"].reshape(K2, 32), ((0, K2P - K2), (0, 0)))
    kp["w2b"] = _block_diag(w2f, P2_HW * P2_HW)                       # (2048, 128)
    kp["b2b"] = jnp.tile(p["conv2_b"], P2_HW * P2_HW).reshape(1, LANES)
    kp["fc1w"] = jnp.pad(p["fc1_w"], ((0, 0), (0, LANES - FC1_OUT)))
    kp["fc1b"] = jnp.pad(p["fc1_b"], (0, LANES - FC1_OUT)).reshape(1, LANES)
    kp["fc2w"] = jnp.pad(p["fc2_w"], ((0, LANES - FC1_OUT), (0, LANES - LSTM_INPUT)))
    kp["fc2b"] = jnp.pad(p["fc2_b"], (0, LANES - LSTM_INPUT)).reshape(1, LANES)
    kp["wih0"] = jnp.pad(p["lstm_wih_0"], ((0, LANES - LSTM_INPUT), (0, 0)))
    kp["whh0"] = p["lstm_whh_0"]
    kp["b0"] = p["lstm_b_0"].reshape(1, GATES)
    kp["wih1"] = p["lstm_wih_1"]
    kp["whh1"] = p["lstm_whh_1"]
    kp["b1"] = p["lstm_b_1"].reshape(1, GATES)
    w34 = jnp.concatenate([p["fc3_w"], p["fc4_w"]], axis=1)           # (H, 6)
    kp["w34"] = jnp.pad(w34, ((0, 0), (0, LANES - 2 * NUM_CLASSES)))
    b34 = jnp.concatenate([p["fc3_b"], p["fc4_b"]])
    kp["b34"] = jnp.pad(b34, (0, LANES - 2 * NUM_CLASSES)).reshape(1, LANES)
    return kp


# =============================================================================
# Pure-JAX reference (same operator graph & layout conventions) for checking
# =============================================================================
def reference_forward(p, x):
    b, sl, c, h, w = x.shape
    xf = x.reshape(b * sl, c, h, w).transpose(0, 2, 3, 1)

    def conv_relu(t, wgt, bias):
        y = jax.lax.conv_general_dilated(
            t, wgt, window_strides=(1, 1), padding="VALID",
            dimension_numbers=("NHWC", "HWIO", "NHWC"))
        return jax.nn.relu(y + bias)

    def pool(t):
        return jax.lax.reduce_window(t, -jnp.inf, jax.lax.max,
                                     (1, 2, 2, 1), (1, 2, 2, 1), "VALID")

    t1 = pool(conv_relu(xf, p["conv1_w"], p["conv1_b"]))
    t2 = pool(conv_relu(t1, p["conv2_w"], p["conv2_b"]))
    flat = t2.reshape(b * sl, -1)
    f1 = jax.nn.relu(flat @ p["fc1_w"] + p["fc1_b"])
    f2 = jax.nn.relu(f1 @ p["fc2_w"] + p["fc2_b"])

    seq = f2
    for layer in range(NUM_LAYERS):
        wih = p[f"lstm_wih_{layer}"]
        whh = p[f"lstm_whh_{layer}"]
        bias = p[f"lstm_b_{layer}"]

        def step(carry, xt, wih=wih, whh=whh, bias=bias):
            hh, cc = carry
            g = xt @ wih + hh @ whh + bias
            i_g = jax.nn.sigmoid(g[0 * HIDDEN:1 * HIDDEN])
            f_g = jax.nn.sigmoid(g[1 * HIDDEN:2 * HIDDEN])
            g_g = jnp.tanh(g[2 * HIDDEN:3 * HIDDEN])
            o_g = jax.nn.sigmoid(g[3 * HIDDEN:4 * HIDDEN])
            cc = f_g * cc + i_g * g_g
            hh = o_g * jnp.tanh(cc)
            return (hh, cc), hh

        _, seq = jax.lax.scan(step, (jnp.zeros(HIDDEN), jnp.zeros(HIDDEN)), seq)
    return seq @ p["fc3_w"] + p["fc3_b"], seq @ p["fc4_w"] + p["fc4_b"]


if __name__ == "__main__":
    key = jax.random.PRNGKey(0)
    kx, kparam = jax.random.split(key)
    x = jax.random.normal(kx, (BATCH, SEQ_LEN, 3, IMG_H, IMG_W), jnp.float32)
    params = init_params(kparam)
    kparams = pack_params(params)

    out1, out2 = cnn_to_lstm_forward(kparams, x)
    jax.block_until_ready((out1, out2))

    assert out1.shape == (BATCH * SEQ_LEN, NUM_CLASSES)
    assert out2.shape == (BATCH * SEQ_LEN, NUM_CLASSES)

    ref1, ref2 = reference_forward(params, x)
    assert jnp.allclose(out1, ref1, atol=1e-2, rtol=1e-2), float(jnp.max(jnp.abs(out1 - ref1)))
    assert jnp.allclose(out2, ref2, atol=1e-2, rtol=1e-2), float(jnp.max(jnp.abs(out2 - ref2)))
    print("KERNEL_OK")
</pallas_src>

<mosaic_0001>
module attributes {stable_mosaic.version = 11 : i64} {
  func.func @_conv1_pool_kernel(%arg0: i32, %arg1: memref<4x64x1024xf32, #tpu.memory_space<vmem>>, %arg2: memref<1024x128xf32, #tpu.memory_space<vmem>>, %arg3: memref<1x128xf32, #tpu.memory_space<vmem>>, %arg4: memref<64x128xf32, #tpu.memory_space<vmem>>) attributes {dimension_semantics = [#tpu.dimension_semantics<arbitrary>], iteration_bounds = array<i64: 1>, scalar_prefetch = 0 : i64, scratch_operands = 0 : i64, tpu.core_type = #tpu.core_type<tc>, window_params = [{pipeline_mode = #tpu.pipeline_mode<synchronous>, transform_indices = @transform_0, window_bounds = array<i64: 4, 64, 1024>}, {pipeline_mode = #tpu.pipeline_mode<synchronous>, transform_indices = @transform_1, window_bounds = array<i64: 1024, 128>}, {pipeline_mode = #tpu.pipeline_mode<synchronous>, transform_indices = @transform_2, window_bounds = array<i64: 1, 128>}, {pipeline_mode = #tpu.pipeline_mode<synchronous>, transform_indices = @transform_3, window_bounds = array<i64: 64, 128>}]} {
    %c0 = arith.constant 0 : index
    %c0_0 = arith.constant 0 : index
    %0 = vector.load %arg2[%c0, %c0_0] : memref<1024x128xf32, #tpu.memory_space<vmem>>, vector<1024x128xf32>
    %c0_1 = arith.constant 0 : index
    %c0_2 = arith.constant 0 : index
    %c0_3 = arith.constant 0 : index
    %1 = vector.load %arg1[%c0_1, %c0_2, %c0_3] : memref<4x64x1024xf32, #tpu.memory_space<vmem>>, vector<1x64x1024xf32>
    %2 = vector.shape_cast %1 : vector<1x64x1024xf32> to vector<64x1024xf32>
    %cst = arith.constant dense<0.000000e+00> : vector<64x128xf32>
    %3 = tpu.matmul %2, %0, %cst {dimension_numbers = #tpu.dot_dimension_numbers<[1], [0], [0], [1], [0, 0, 1, 1], [], []>} : vector<64x1024xf32>, vector<1024x128xf32>, vector<64x128xf32> -> vector<64x128xf32>
    %c1 = arith.constant 1 : index
    %c0_4 = arith.constant 0 : index
    %c0_5 = arith.constant 0 : index
    %4 = vector.load %arg1[%c1, %c0_4, %c0_5] : memref<4x64x1024xf32, #tpu.memory_space<vmem>>, vector<1x64x1024xf32>
    %5 = vector.shape_cast %4 : vector<1x64x1024xf32> to vector<64x1024xf32>
    %cst_6 = arith.constant dense<0.000000e+00> : vector<64x128xf32>
    %6 = tpu.matmul %5, %0, %cst_6 {dimension_numbers = #tpu.dot_dimension_numbers<[1], [0], [0], [1], [0, 0, 1, 1], [], []>} : vector<64x1024xf32>, vector<1024x128xf32>, vector<64x128xf32> -> vector<64x128xf32>
    %7 = arith.maximumf %3, %6 : vector<64x128xf32>
    %c2 = arith.constant 2 : index
    %c0_7 = arith.constant 0 : index
    %c0_8 = arith.constant 0 : index
    %8 = vector.load %arg1[%c2, %c0_7, %c0_8] : memref<4x64x1024xf32, #tpu.memory_space<vmem>>, vector<1x64x1024xf32>
    %9 = vector.shape_cast %8 : vector<1x64x1024xf32> to vector<64x1024xf32>
    %cst_9 = arith.constant dense<0.000000e+00> : vector<64x128xf32>
    %10 = tpu.matmul %9, %0, %cst_9 {dimension_numbers = #tpu.dot_dimension_numbers<[1], [0], [0], [1], [0, 0, 1, 1], [], []>} : vector<64x1024xf32>, vector<1024x128xf32>, vector<64x128xf32> -> vector<64x128xf32>
    %11 = arith.maximumf %7, %10 : vector<64x128xf32>
    %c3 = arith.constant 3 : index
    %c0_10 = arith.constant 0 : index
    %c0_11 = arith.constant 0 : index
    %12 = vector.load %arg1[%c3, %c0_10, %c0_11] : memref<4x64x1024xf32, #tpu.memory_space<vmem>>, vector<1x64x1024xf32>
    %13 = vector.shape_cast %12 : vector<1x64x1024xf32> to vector<64x1024xf32>
    %cst_12 = arith.constant dense<0.000000e+00> : vector<64x128xf32>
    %14 = tpu.matmul %13, %0, %cst_12 {dimension_numbers = #tpu.dot_dimension_numbers<[1], [0], [0], [1], [0, 0, 1, 1], [], []>} : vector<64x1024xf32>, vector<1024x128xf32>, vector<64x128xf32> -> vector<64x128xf32>
    %15 = arith.maximumf %11, %14 : vector<64x128xf32>
    %c0_13 = arith.constant 0 : index
    %c0_14 = arith.constant 0 : index
    %16 = vector.load %arg3[%c0_13, %c0_14] : memref<1x128xf32, #tpu.memory_space<vmem>>, vector<1x128xf32>
    %17 = vector.broadcast %16 : vector<1x128xf32> to vector<64x128xf32>
    %18 = arith.addf %15, %17 : vector<64x128xf32>
    %cst_15 = arith.constant 0.000000e+00 : f32
    %19 = vector.broadcast %cst_15 : f32 to vector<64x128xf32>
    %20 = arith.maximumf %18, %19 : vector<64x128xf32>
    %c0_16 = arith.constant 0 : index
    %c0_17 = arith.constant 0 : index
    %21 = vector.load %arg4[%c0_16, %c0_17] : memref<64x128xf32, #tpu.memory_space<vmem>>, vector<64x128xf32>
    tpu.vector_store %arg4[%c0_16, %c0_17], %20 {strides = array<i32>} : memref<64x128xf32, #tpu.memory_space<vmem>>, vector<64x128xf32>,
    return
  }
  func.func @transform_0(%arg0: i32) -> (i32, i32, i32) {
    %c0_i32 = arith.constant 0 : i32
    %c0_i32_0 = arith.constant 0 : i32
    %c0_i32_1 = arith.constant 0 : i32
    %c0_i32_2 = arith.constant 0 : i32
    return %c0_i32, %c0_i32_0, %c0_i32_1 : i32, i32, i32
  }
  func.func @transform_1(%arg0: i32) -> (i32, i32) {
    %c0_i32 = arith.constant 0 : i32
    %c0_i32_0 = arith.constant 0 : i32
    %c0_i32_1 = arith.constant 0 : i32
    return %c0_i32, %c0_i32_0 : i32, i32
  }
  func.func @transform_2(%arg0: i32) -> (i32, i32) {
    %c0_i32 = arith.constant 0 : i32
    %c0_i32_0 = arith.constant 0 : i32
    %c0_i32_1 = arith.constant 0 : i32
    return %c0_i32, %c0_i32_0 : i32, i32
  }
  func.func @transform_3(%arg0: i32) -> (i32, i32) {
    %c0_i32 = arith.constant 0 : i32
    %c0_i32_0 = arith.constant 0 : i32
    %c0_i32_1 = arith.constant 0 : i32
    return %c0_i32, %c0_i32_0 : i32, i32
  }
}

module attributes {stable_mosaic.version = 11 : i64} {
  func.func @_fused_head_kernel(%arg0: i32, %arg1: memref<4x8x2048xf32, #tpu.memory_space<vmem>>, %arg2: memref<2048x128xf32, #tpu.memory_space<vmem>>, %arg3: memref<1x128xf32, #tpu.memory_space<vmem>>, %arg4: memref<128x128xf32, #tpu.memory_space<vmem>>, %arg5: memref<1x128xf32, #tpu.memory_space<vmem>>, %arg6: memref<128x128xf32, #tpu.memory_space<vmem>>, %arg7: memref<1x128xf32, #tpu.memory_space<vmem>>, %arg8: memref<128x128xf32, #tpu.memory_space<vmem>>, %arg9: memref<32x128xf32, #tpu.memory_space<vmem>>, %arg10: memref<1x128xf32, #tpu.memory_space<vmem>>, %arg11: memref<32x128xf32, #tpu.memory_space<vmem>>, %arg12: memref<32x128xf32, #tpu.memory_space<vmem>>, %arg13: memref<1x128xf32, #tpu.memory_space<vmem>>, %arg14: memref<32x128xf32, #tpu.memory_space<vmem>>, %arg15: memref<1x128xf32, #tpu.memory_space<vmem>>, %arg16: memref<8x128xf32, #tpu.memory_space<vmem>>, %arg17: memref<8x32xf32, #tpu.memory_space<vmem>>) attributes {dimension_semantics = [#tpu.dimension_semantics<arbitrary>], iteration_bounds = array<i64: 1>, scalar_prefetch = 0 : i64, scratch_operands = 1 : i64, tpu.core_type = #tpu.core_type<tc>, window_params = [{pipeline_mode = #tpu.pipeline_mode<synchronous>, transform_indices = @transform_0, window_bounds = array<i64: 4, 8, 2048>}, {pipeline_mode = #tpu.pipeline_mode<synchronous>, transform_indices = @transform_1, window_bounds = array<i64: 2048, 128>}, {pipeline_mode = #tpu.pipeline_mode<synchronous>, transform_indices = @transform_2, window_bounds = array<i64: 1, 128>}, {pipeline_mode = #tpu.pipeline_mode<synchronous>, transform_indices = @transform_3, window_bounds = array<i64: 128, 128>}, {pipeline_mode = #tpu.pipeline_mode<synchronous>, transform_indices = @transform_4, window_bounds = array<i64: 1, 128>}, {pipeline_mode = #tpu.pipeline_mode<synchronous>, transform_indices = @transform_5, window_bounds = array<i64: 128, 128>}, {pipeline_mode = #tpu.pipeline_mode<synchronous>, transform_indices = @transform_6, window_bounds = array<i64: 1, 128>}, {pipeline_mode = #tpu.pipeline_mode<synchronous>, transform_indices = @transform_7, window_bounds = array<i64: 128, 128>}, {pipeline_mode = #tpu.pipeline_mode<synchronous>, transform_indices = @transform_8, window_bounds = array<i64: 32, 128>}, {pipeline_mode = #tpu.pipeline_mode<synchronous>, transform_indices = @transform_9, window_bounds = array<i64: 1, 128>}, {pipeline_mode = #tpu.pipeline_mode<synchronous>, transform_indices = @transform_10, window_bounds = array<i64: 32, 128>}, {pipeline_mode = #tpu.pipeline_mode<synchronous>, transform_indices = @transform_11, window_bounds = array<i64: 32, 128>}, {pipeline_mode = #tpu.pipeline_mode<synchronous>, transform_indices = @transform_12, window_bounds = array<i64: 1, 128>}, {pipeline_mode = #tpu.pipeline_mode<synchronous>, transform_indices = @transform_13, window_bounds = array<i64: 32, 128>}, {pipeline_mode = #tpu.pipeline_mode<synchronous>, transform_indices = @transform_14, window_bounds = array<i64: 1, 128>}, {pipeline_mode = #tpu.pipeline_mode<synchronous>, transform_indices = @transform_15, window_bounds = array<i64: 8, 128>}]} {
    %c0 = arith.constant 0 : index
    %c0_0 = arith.constant 0 : index
    %0 = vector.load %arg2[%c0, %c0_0] : memref<2048x128xf32, #tpu.memory_space<vmem>>, vector<2048x128xf32>
    %c0_1 = arith.constant 0 : index
    %c0_2 = arith.constant 0 : index
    %c0_3 = arith.constant 0 : index
    %1 = vector.load %arg1[%c0_1, %c0_2, %c0_3] : memref<4x8x2048xf32, #tpu.memory_space<vmem>>, vector<1x8x2048xf32>
    %2 = vector.shape_cast %1 : vector<1x8x2048xf32> to vector<8x2048xf32>
    %cst = arith.constant dense<0.000000e+00> : vector<8x128xf32>
    %3 = tpu.matmul %2, %0, %cst {dimension_numbers = #tpu.dot_dimension_numbers<[1], [0], [0], [1], [0, 0, 1, 1], [], []>} : vector<8x2048xf32>, vector<2048x128xf32>, vector<8x128xf32> -> vector<8x128xf32>
    %c1 = arith.constant 1 : index
    %c0_4 = arith.constant 0 : index
    %c0_5 = arith.constant 0 : index
    %4 = vector.load %arg1[%c1, %c0_4, %c0_5] : memref<4x8x2048xf32, #tpu.memory_space<vmem>>, vector<1x8x2048xf32>
    %5 = vector.shape_cast %4 : vector<1x8x2048xf32> to vector<8x2048xf32>
    %cst_6 = arith.constant dense<0.000000e+00> : vector<8x128xf32>
    %6 = tpu.matmul %5, %0, %cst_6 {dimension_numbers = #tpu.dot_dimension_numbers<[1], [0], [0], [1], [0, 0, 1, 1], [], []>} : vector<8x2048xf32>, vector<2048x128xf32>, vector<8x128xf32> -> vector<8x128xf32>
    %7 = arith.maximumf %3, %6 : vector<8x128xf32>
    %c2 = arith.constant 2 : index
    %c0_7 = arith.constant 0 : index
    %c0_8 = arith.constant 0 : index
    %8 = vector.load %arg1[%c2, %c0_7, %c0_8] : memref<4x8x2048xf32, #tpu.memory_space<vmem>>, vector<1x8x2048xf32>
    %9 = vector.shape_cast %8 : vector<1x8x2048xf32> to vector<8x2048xf32>
    %cst_9 = arith.constant dense<0.000000e+00> : vector<8x128xf32>
    %10 = tpu.matmul %9, %0, %cst_9 {dimension_numbers = #tpu.dot_dimension_numbers<[1], [0], [0], [1], [0, 0, 1, 1], [], []>} : vector<8x2048xf32>, vector<2048x128xf32>, vector<8x128xf32> -> vector<8x128xf32>
    %11 = arith.maximumf %7, %10 : vector<8x128xf32>
    %c3 = arith.constant 3 : index
    %c0_10 = arith.constant 0 : index
    %c0_11 = arith.constant 0 : index
    %12 = vector.load %arg1[%c3, %c0_10, %c0_11] : memref<4x8x2048xf32, #tpu.memory_space<vmem>>, vector<1x8x2048xf32>
    %13 = vector.shape_cast %12 : vector<1x8x2048xf32> to vector<8x2048xf32>
    %cst_12 = arith.constant dense<0.000000e+00> : vector<8x128xf32>
    %14 = tpu.matmul %13, %0, %cst_12 {dimension_numbers = #tpu.dot_dimension_numbers<[1], [0], [0], [1], [0, 0, 1, 1], [], []>} : vector<8x2048xf32>, vector<2048x128xf32>, vector<8x128xf32> -> vector<8x128xf32>
    %15 = arith.maximumf %11, %14 : vector<8x128xf32>
    %c0_13 = arith.constant 0 : index
    %c0_14 = arith.constant 0 : index
    %16 = vector.load %arg3[%c0_13, %c0_14] : memref<1x128xf32, #tpu.memory_space<vmem>>, vector<1x128xf32>
    %17 = vector.broadcast %16 : vector<1x128xf32> to vector<8x128xf32>
    %18 = arith.addf %15, %17 : vector<8x128xf32>
    %cst_15 = arith.constant 0.000000e+00 : f32
    %19 = vector.broadcast %cst_15 : f32 to vector<8x128xf32>
    %20 = arith.maximumf %18, %19 : vector<8x128xf32>
    %c0_16 = arith.constant 0 : index
    %c0_17 = arith.constant 0 : index
    %21 = vector.load %arg4[%c0_16, %c0_17] : memref<128x128xf32, #tpu.memory_space<vmem>>, vector<128x128xf32>
    %cst_18 = arith.constant dense<0.000000e+00> : vector<8x128xf32>
    %22 = tpu.matmul %20, %21, %cst_18 {dimension_numbers = #tpu.dot_dimension_numbers<[1], [0], [0], [1], [0, 0, 1, 1], [], []>} : vector<8x128xf32>, vector<128x128xf32>, vector<8x128xf32> -> vector<8x128xf32>
    %c0_19 = arith.constant 0 : index
    %c0_20 = arith.constant 0 : index
    %23 = vector.load %arg5[%c0_19, %c0_20] : memref<1x128xf32, #tpu.memory_space<vmem>>, vector<1x128xf32>
    %24 = vector.broadcast %23 : vector<1x128xf32> to vector<8x128xf32>
    %25 = arith.addf %22, %24 : vector<8x128xf32>
    %cst_21 = arith.constant 0.000000e+00 : f32
    %26 = vector.broadcast %cst_21 : f32 to vector<8x128xf32>
    %27 = arith.maximumf %25, %26 : vector<8x128xf32>
    %c0_22 = arith.constant 0 : index
    %c0_23 = arith.constant 0 : index
    %28 = vector.load %arg6[%c0_22, %c0_23] : memref<128x128xf32, #tpu.memory_space<vmem>>, vector<128x128xf32>
    %cst_24 = arith.constant dense<0.000000e+00> : vector<8x128xf32>
    %29 = tpu.matmul %27, %28, %cst_24 {dimension_numbers = #tpu.dot_dimension_numbers<[1], [0], [0], [1], [0, 0, 1, 1], [], []>} : vector<8x128xf32>, vector<128x128xf32>, vector<8x128xf32> -> vector<8x128xf32>
    %c0_25 = arith.constant 0 : index
    %c0_26 = arith.constant 0 : index
    %30 = vector.load %arg7[%c0_25, %c0_26] : memref<1x128xf32, #tpu.memory_space<vmem>>, vector<1x128xf32>
    %31 = vector.broadcast %30 : vector<1x128xf32> to vector<8x128xf32>
    %32 = arith.addf %29, %31 : vector<8x128xf32>
    %cst_27 = arith.constant 0.000000e+00 : f32
    %33 = vector.broadcast %cst_27 : f32 to vector<8x128xf32>
    %34 = arith.maximumf %32, %33 : vector<8x128xf32>
    %c0_28 = arith.constant 0 : index
    %c0_29 = arith.constant 0 : index
    %35 = vector.load %arg8[%c0_28, %c0_29] : memref<128x128xf32, #tpu.memory_space<vmem>>, vector<128x128xf32>
    %cst_30 = arith.constant dense<0.000000e+00> : vector<8x128xf32>
    %36 = tpu.matmul %34, %35, %cst_30 {dimension_numbers = #tpu.dot_dimension_numbers<[1], [0], [0], [1], [0, 0, 1, 1], [], []>} : vector<8x128xf32>, vector<128x128xf32>, vector<8x128xf32> -> vector<8x128xf32>
    %c0_31 = arith.constant 0 : index
    %c0_32 = arith.constant 0 : index
    %37 = vector.load %arg10[%c0_31, %c0_32] : memref<1x128xf32, #tpu.memory_space<vmem>>, vector<1x128xf32>
    %38 = vector.broadcast %37 : vector<1x128xf32> to vector<8x128xf32>
    %39 = arith.addf %36, %38 : vector<8x128xf32>
    %c0_33 = arith.constant 0 : index
    %c0_34 = arith.constant 0 : index
    %40 = vector.load %arg9[%c0_33, %c0_34] : memref<32x128xf32, #tpu.memory_space<vmem>>, vector<32x128xf32>
    %cst_35 = arith.constant 0.000000e+00 : f32
    %41 = vector.broadcast %cst_35 : f32 to vector<1x32xf32>
    %cst_36 = arith.constant 0.000000e+00 : f32
    %42 = vector.broadcast %cst_36 : f32 to vector<1x32xf32>
    %43 = vector.extract_strided_slice %39 {offsets = [0, 0], sizes = [1, 128], strides = [1, 1]} : vector<8x128xf32> to vector<1x128xf32>
    %cst_37 = arith.constant dense<0.000000e+00> : vector<1x128xf32>
    %44 = tpu.matmul %41, %40, %cst_37 {dimension_numbers = #tpu.dot_dimension_numbers<[1], [0], [0], [1], [0, 0, 1, 1], [], []>} : vector<1x32xf32>, vector<32x128xf32>, vector<1x128xf32> -> vector<1x128xf32>
    %45 = arith.addf %43, %44 : vector<1x128xf32>
    %46 = vector.extract_strided_slice %45 {offsets = [0, 0], sizes = [1, 32], strides = [1, 1]} : vector<1x128xf32> to vector<1x32xf32>
    %47 = arith.negf %46 : vector<1x32xf32>
    %48 = math.exp %47 : vector<1x32xf32>
    %cst_38 = arith.constant 1.000000e+00 : f32
    %49 = vector.broadcast %cst_38 : f32 to vector<1x32xf32>
    %50 = arith.addf %49, %48 : vector<1x32xf32>
    %51 = arith.divf %49, %50 : vector<1x32xf32>
    %52 = vector.extract_strided_slice %45 {offsets = [0, 32], sizes = [1, 32], strides = [1, 1]} : vector<1x128xf32> to vector<1x32xf32>
    %53 = arith.negf %52 : vector<1x32xf32>
    %54 = math.exp %53 : vector<1x32xf32>
    %cst_39 = arith.constant 1.000000e+00 : f32
    %55 = vector.broadcast %cst_39 : f32 to vector<1x32xf32>
    %56 = arith.addf %55, %54 : vector<1x32xf32>
    %57 = arith.divf %55, %56 : vector<1x32xf32>
    %58 = vector.extract_strided_slice %45 {offsets = [0, 64], sizes = [1, 32], strides = [1, 1]} : vector<1x128xf32> to vector<1x32xf32>
    %59 = math.tanh %58 : vector<1x32xf32>
    %60 = vector.extract_strided_slice %45 {offsets = [0, 96], sizes = [1, 32], strides = [1, 1]} : vector<1x128xf32> to vector<1x32xf32>
    %61 = arith.negf %60 : vector<1x32xf32>
    %62 = math.exp %61 : vector<1x32xf32>
    %cst_40 = arith.constant 1.000000e+00 : f32
    %63 = vector.broadcast %cst_40 : f32 to vector<1x32xf32>
    %64 = arith.addf %63, %62 : vector<1x32xf32>
    %65 = arith.divf %63, %64 : vector<1x32xf32>
    %66 = arith.mulf %57, %42 : vector<1x32xf32>
    %67 = arith.mulf %51, %59 : vector<1x32xf32>
    %68 = arith.addf %66, %67 : vector<1x32xf32>
    %69 = math.tanh %68 : vector<1x32xf32>
    %70 = arith.mulf %65, %69 : vector<1x32xf32>
    %c0_41 = arith.constant 0 : index
    %c0_42 = arith.constant 0 : index
    %71 = vector.load %arg17[%c0_41, %c0_42] : memref<8x32xf32, #tpu.memory_space<vmem>>, vector<1x32xf32>
    tpu.vector_store %arg17[%c0_41, %c0_42], %70 {strides = array<i32>} : memref<8x32xf32, #tpu.memory_space<vmem>>, vector<1x32xf32>,
    %72 = vector.extract_strided_slice %39 {offsets = [1, 0], sizes = [1, 128], strides = [1, 1]} : vector<8x128xf32> to vector<1x128xf32>
    %cst_43 = arith.constant dense<0.000000e+00> : vector<1x128xf32>
    %73 = tpu.matmul %70, %40, %cst_43 {dimension_numbers = #tpu.dot_dimension_numbers<[1], [0], [0], [1], [0, 0, 1, 1], [], []>} : vector<1x32xf32>, vector<32x128xf32>, vector<1x128xf32> -> vector<1x128xf32>
    %74 = arith.addf %72, %73 : vector<1x128xf32>
    %75 = vector.extract_strided_slice %74 {offsets = [0, 0], sizes = [1, 32], strides = [1, 1]} : vector<1x128xf32> to vector<1x32xf32>
    %76 = arith.negf %75 : vector<1x32xf32>
    %77 = math.exp %76 : vector<1x32xf32>
    %cst_44 = arith.constant 1.000000e+00 : f32
    %78 = vector.broadcast %cst_44 : f32 to vector<1x32xf32>
    %79 = arith.addf %78, %77 : vector<1x32xf32>
    %80 = arith.divf %78, %79 : vector<1x32xf32>
    %81 = vector.extract_strided_slice %74 {offsets = [0, 32], sizes = [1, 32], strides = [1, 1]} : vector<1x128xf32> to vector<1x32xf32>
    %82 = arith.negf %81 : vector<1x32xf32>
    %83 = math.exp %82 : vector<1x32xf32>
    %cst_45 = arith.constant 1.000000e+00 : f32
    %84 = vector.broadcast %cst_45 : f32 to vector<1x32xf32>
    %85 = arith.addf %84, %83 : vector<1x32xf32>
    %86 = arith.divf %84, %85 : vector<1x32xf32>
    %87 = vector.extract_strided_slice %74 {offsets = [0, 64], sizes = [1, 32], strides = [1, 1]} : vector<1x128xf32> to vector<1x32xf32>
    %88 = math.tanh %87 : vector<1x32xf32>
    %89 = vector.extract_strided_slice %74 {offsets = [0, 96], sizes = [1, 32], strides = [1, 1]} : vector<1x128xf32> to vector<1x32xf32>
    %90 = arith.negf %89 : vector<1x32xf32>
    %91 = math.exp %90 : vector<1x32xf32>
    %cst_46 = arith.constant 1.000000e+00 : f32
    %92 = vector.broadcast %cst_46 : f32 to vector<1x32xf32>
    %93 = arith.addf %92, %91 : vector<1x32xf32>
    %94 = arith.divf %92, %93 : vector<1x32xf32>
    %95 = arith.mulf %86, %68 : vector<1x32xf32>
    %96 = arith.mulf %80, %88 : vector<1x32xf32>
    %97 = arith.addf %95, %96 : vector<1x32xf32>
    %98 = math.tanh %97 : vector<1x32xf32>
    %99 = arith.mulf %94, %98 : vector<1x32xf32>
    %c1_47 = arith.constant 1 : index
    %c0_48 = arith.constant 0 : index
    %100 = vector.load %arg17[%c1_47, %c0_48] : memref<8x32xf32, #tpu.memory_space<vmem>>, vector<1x32xf32>
    tpu.vector_store %arg17[%c1_47, %c0_48], %99 {strides = array<i32>} : memref<8x32xf32, #tpu.memory_space<vmem>>, vector<1x32xf32>,
    %101 = vector.extract_strided_slice %39 {offsets = [2, 0], sizes = [1, 128], strides = [1, 1]} : vector<8x128xf32> to vector<1x128xf32>
    %cst_49 = arith.constant dense<0.000000e+00> : vector<1x128xf32>
    %102 = tpu.matmul %99, %40, %cst_49 {dimension_numbers = #tpu.dot_dimension_numbers<[1], [0], [0], [1], [0, 0, 1, 1], [], []>} : vector<1x32xf32>, vector<32x128xf32>, vector<1x128xf32> -> vector<1x128xf32>
    %103 = arith.addf %101, %102 : vector<1x128xf32>
    %104 = vector.extract_strided_slice %103 {offsets = [0, 0], sizes = [1, 32], strides = [1, 1]} : vector<1x128xf32> to vector<1x32xf32>
    %105 = arith.negf %104 : vector<1x32xf32>
    %106 = math.exp %105 : vector<1x32xf32>
    %cst_50 = arith.constant 1.000000e+00 : f32
    %107 = vector.broadcast %cst_50 : f32 to vector<1x32xf32>
    %108 = arith.addf %107, %106 : vector<1x32xf32>
    %109 = arith.divf %107, %108 : vector<1x32xf32>
    %110 = vector.extract_strided_slice %103 {offsets = [0, 32], sizes = [1, 32], strides = [1, 1]} : vector<1x128xf32> to vector<1x32xf32>
    %111 = arith.negf %110 : vector<1x32xf32>
    %112 = math.exp %111 : vector<1x32xf32>
    %cst_51 = arith.constant 1.000000e+00 : f32
    %113 = vector.broadcast %cst_51 : f32 to vector<1x32xf32>
    %114 = arith.addf %113, %112 : vector<1x32xf32>
    %115 = arith.divf %113, %114 : vector<1x32xf32>
    %116 = vector.extract_strided_slice %103 {offsets = [0, 64], sizes = [1, 32], strides = [1, 1]} : vector<1x128xf32> to vector<1x32xf32>
    %117 = math.tanh %116 : vector<1x32xf32>
    %118 = vector.extract_strided_slice %103 {offsets = [0, 96], sizes = [1, 32], strides = [1, 1]} : vector<1x128xf32> to vector<1x32xf32>
    %119 = arith.negf %118 : vector<1x32xf32>
    %120 = math.exp %119 : vector<1x32xf32>
    %cst_52 = arith.constant 1.000000e+00 : f32
    %121 = vector.broadcast %cst_52 : f32 to vector<1x32xf32>
    %122 = arith.addf %121, %120 : vector<1x32xf32>
    %123 = arith.divf %121, %122 : vector<1x32xf32>
    %124 = arith.mulf %115, %97 : vector<1x32xf32>
    %125 = arith.mulf %109, %117 : vector<1x32xf32>
    %126 = arith.addf %124, %125 : vector<1x32xf32>
    %127 = math.tanh %126 : vector<1x32xf32>
    %128 = arith.mulf %123, %127 : vector<1x32xf32>
    %c2_53 = arith.constant 2 : index
    %c0_54 = arith.constant 0 : index
    %129 = vector.load %arg17[%c2_53, %c0_54] : memref<8x32xf32, #tpu.memory_space<vmem>>, vector<1x32xf32>
    tpu.vector_store %arg17[%c2_53, %c0_54], %128 {strides = array<i32>} : memref<8x32xf32, #tpu.memory_space<vmem>>, vector<1x32xf32>,
    %130 = vector.extract_strided_slice %39 {offsets = [3, 0], sizes = [1, 128], strides = [1, 1]} : vector<8x128xf32> to vector<1x128xf32>
    %cst_55 = arith.constant dense<0.000000e+00> : vector<1x128xf32>
    %131 = tpu.matmul %128, %40, %cst_55 {dimension_numbers = #tpu.dot_dimension_numbers<[1], [0], [0], [1], [0, 0, 1, 1], [], []>} : vector<1x32xf32>, vector<32x128xf32>, vector<1x128xf32> -> vector<1x128xf32>
    %132 = arith.addf %130, %131 : vector<1x128xf32>
    %133 = vector.extract_strided_slice %132 {offsets = [0, 0], sizes = [1, 32], strides = [1, 1]} : vector<1x128xf32> to vector<1x32xf32>
    %134 = arith.negf %133 : vector<1x32xf32>
    %135 = math.exp %134 : vector<1x32xf32>
    %cst_56 = arith.constant 1.000000e+00 : f32
    %136 = vector.broadcast %cst_56 : f32 to vector<1x32xf32>
    %137 = arith.addf %136, %135 : vector<1x32xf32>
    %138 = arith.divf %136, %137 : vector<1x32xf32>
    %139 = vector.extract_strided_slice %132 {offsets = [0, 32], sizes = [1, 32], strides = [1, 1]} : vector<1x128xf32> to vector<1x32xf32>
    %140 = arith.negf %139 : vector<1x32xf32>
    %141 = math.exp %140 : vector<1x32xf32>
    %cst_57 = arith.constant 1.000000e+00 : f32
    %142 = vector.broadcast %cst_57 : f32 to vector<1x32xf32>
    %143 = arith.addf %142, %141 : vector<1x32xf32>
    %144 = arith.divf %142, %143 : vector<1x32xf32>
    %145 = vector.extract_strided_slice %132 {offsets = [0, 64], sizes = [1, 32], strides = [1, 1]} : vector<1x128xf32> to vector<1x32xf32>
    %146 = math.tanh %145 : vector<1x32xf32>
    %147 = vector.extract_strided_slice %132 {offsets = [0, 96], sizes = [1, 32], strides = [1, 1]} : vector<1x128xf32> to vector<1x32xf32>
    %148 = arith.negf %147 : vector<1x32xf32>
    %149 = math.exp %148 : vector<1x32xf32>
    %cst_58 = arith.constant 1.000000e+00 : f32
    %150 = vector.broadcast %cst_58 : f32 to vector<1x32xf32>
    %151 = arith.addf %150, %149 : vector<1x32xf32>
    %152 = arith.divf %150, %151 : vector<1x32xf32>
    %153 = arith.mulf %144, %126 : vector<1x32xf32>
    %154 = arith.mulf %138, %146 : vector<1x32xf32>
    %155 = arith.addf %153, %154 : vector<1x32xf32>
    %156 = math.tanh %155 : vector<1x32xf32>
    %157 = arith.mulf %152, %156 : vector<1x32xf32>
    %c3_59 = arith.constant 3 : index
    %c0_60 = arith.constant 0 : index
    %158 = vector.load %arg17[%c3_59, %c0_60] : memref<8x32xf32, #tpu.memory_space<vmem>>, vector<1x32xf32>
    tpu.vector_store %arg17[%c3_59, %c0_60], %157 {strides = array<i32>} : memref<8x32xf32, #tpu.memory_space<vmem>>, vector<1x32xf32>,
    %159 = vector.extract_strided_slice %39 {offsets = [4, 0], sizes = [1, 128], strides = [1, 1]} : vector<8x128xf32> to vector<1x128xf32>
    %cst_61 = arith.constant dense<0.000000e+00> : vector<1x128xf32>
    %160 = tpu.matmul %157, %40, %cst_61 {dimension_numbers = #tpu.dot_dimension_numbers<[1], [0], [0], [1], [0, 0, 1, 1], [], []>} : vector<1x32xf32>, vector<32x128xf32>, vector<1x128xf32> -> vector<1x128xf32>
    %161 = arith.addf %159, %160 : vector<1x128xf32>
    %162 = vector.extract_strided_slice %161 {offsets = [0, 0], sizes = [1, 32], strides = [1, 1]} : vector<1x128xf32> to vector<1x32xf32>
    %163 = arith.negf %162 : vector<1x32xf32>
    %164 = math.exp %163 : vector<1x32xf32>
    %cst_62 = arith.constant 1.000000e+00 : f32
    %165 = vector.broadcast %cst_62 : f32 to vector<1x32xf32>
    %166 = arith.addf %165, %164 : vector<1x32xf32>
    %167 = arith.divf %165, %166 : vector<1x32xf32>
    %168 = vector.extract_strided_slice %161 {offsets = [0, 32], sizes = [1, 32], strides = [1, 1]} : vector<1x128xf32> to vector<1x32xf32>
    %169 = arith.negf %168 : vector<1x32xf32>
    %170 = math.exp %169 : vector<1x32xf32>
    %cst_63 = arith.constant 1.000000e+00 : f32
    %171 = vector.broadcast %cst_63 : f32 to vector<1x32xf32>
    %172 = arith.addf %171, %170 : vector<1x32xf32>
    %173 = arith.divf %171, %172 : vector<1x32xf32>
    %174 = vector.extract_strided_slice %161 {offsets = [0, 64], sizes = [1, 32], strides = [1, 1]} : vector<1x128xf32> to vector<1x32xf32>
    %175 = math.tanh %174 : vector<1x32xf32>
    %176 = vector.extract_strided_slice %161 {offsets = [0, 96], sizes = [1, 32], strides = [1, 1]} : vector<1x128xf32> to vector<1x32xf32>
    %177 = arith.negf %176 : vector<1x32xf32>
    %178 = math.exp %177 : vector<1x32xf32>
    %cst_64 = arith.constant 1.000000e+00 : f32
    %179 = vector.broadcast %cst_64 : f32 to vector<1x32xf32>
    %180 = arith.addf %179, %178 : vector<1x32xf32>
    %181 = arith.divf %179, %180 : vector<1x32xf32>
    %182 = arith.mulf %173, %155 : vector<1x32xf32>
    %183 = arith.mulf %167, %175 : vector<1x32xf32>
    %184 = arith.addf %182, %183 : vector<1x32xf32>
    %185 = math.tanh %184 : vector<1x32xf32>
    %186 = arith.mulf %181, %185 : vector<1x32xf32>
    %c4 = arith.constant 4 : index
    %c0_65 = arith.constant 0 : index
    %187 = vector.load %arg17[%c4, %c0_65] : memref<8x32xf32, #tpu.memory_space<vmem>>, vector<1x32xf32>
    tpu.vector_store %arg17[%c4, %c0_65], %186 {strides = array<i32>} : memref<8x32xf32, #tpu.memory_space<vmem>>, vector<1x32xf32>,
    %188 = vector.extract_strided_slice %39 {offsets = [5, 0], sizes = [1, 128], strides = [1, 1]} : vector<8x128xf32> to vector<1x128xf32>
    %cst_66 = arith.constant dense<0.000000e+00> : vector<1x128xf32>
    %189 = tpu.matmul %186, %40, %cst_66 {dimension_numbers = #tpu.dot_dimension_numbers<[1], [0], [0], [1], [0, 0, 1, 1], [], []>} : vector<1x32xf32>, vector<32x128xf32>, vector<1x128xf32> -> vector<1x128xf32>
    %190 = arith.addf %188, %189 : vector<1x128xf32>
    %191 = vector.extract_strided_slice %190 {offsets = [0, 0], sizes = [1, 32], strides = [1, 1]} : vector<1x128xf32> to vector<1x32xf32>
    %192 = arith.negf %191 : vector<1x32xf32>
    %193 = math.exp %192 : vector<1x32xf32>
    %cst_67 = arith.constant 1.000000e+00 : f32
    %194 = vector.broadcast %cst_67 : f32 to vector<1x32xf32>
    %195 = arith.addf %194, %193 : vector<1x32xf32>
    %196 = arith.divf %194, %195 : vector<1x32xf32>
    %197 = vector.extract_strided_slice %190 {offsets = [0, 32], sizes = [1, 32], strides = [1, 1]} : vector<1x128xf32> to vector<1x32xf32>
    %198 = arith.negf %197 : vector<1x32xf32>
    %199 = math.exp %198 : vector<1x32xf32>
    %cst_68 = arith.constant 1.000000e+00 : f32
    %200 = vector.broadcast %cst_68 : f32 to vector<1x32xf32>
    %201 = arith.addf %200, %199 : vector<1x32xf32>
    %202 = arith.divf %200, %201 : vector<1x32xf32>
    %203 = vector.extract_strided_slice %190 {offsets = [0, 64], sizes = [1, 32], strides = [1, 1]} : vector<1x128xf32> to vector<1x32xf32>
    %204 = math.tanh %203 : vector<1x32xf32>
    %205 = vector.extract_strided_slice %190 {offsets = [0, 96], sizes = [1, 32], strides = [1, 1]} : vector<1x128xf32> to vector<1x32xf32>
    %206 = arith.negf %205 : vector<1x32xf32>
    %207 = math.exp %206 : vector<1x32xf32>
    %cst_69 = arith.constant 1.000000e+00 : f32
    %208 = vector.broadcast %cst_69 : f32 to vector<1x32xf32>
    %209 = arith.addf %208, %207 : vector<1x32xf32>
    %210 = arith.divf %208, %209 : vector<1x32xf32>
    %211 = arith.mulf %202, %184 : vector<1x32xf32>
    %212 = arith.mulf %196, %204 : vector<1x32xf32>
    %213 = arith.addf %211, %212 : vector<1x32xf32>
    %214 = math.tanh %213 : vector<1x32xf32>
    %215 = arith.mulf %210, %214 : vector<1x32xf32>
    %c5 = arith.constant 5 : index
    %c0_70 = arith.constant 0 : index
    %216 = vector.load %arg17[%c5, %c0_70] : memref<8x32xf32, #tpu.memory_space<vmem>>, vector<1x32xf32>
    tpu.vector_store %arg17[%c5, %c0_70], %215 {strides = array<i32>} : memref<8x32xf32, #tpu.memory_space<vmem>>, vector<1x32xf32>,
    %217 = vector.extract_strided_slice %39 {offsets = [6, 0], sizes = [1, 128], strides = [1, 1]} : vector<8x128xf32> to vector<1x128xf32>
    %cst_71 = arith.constant dense<0.000000e+00> : vector<1x128xf32>
    %218 = tpu.matmul %215, %40, %cst_71 {dimension_numbers = #tpu.dot_dimension_numbers<[1], [0], [0], [1], [0, 0, 1, 1], [], []>} : vector<1x32xf32>, vector<32x128xf32>, vector<1x128xf32> -> vector<1x128xf32>
    %219 = arith.addf %217, %218 : vector<1x128xf32>
    %220 = vector.extract_strided_slice %219 {offsets = [0, 0], sizes = [1, 32], strides = [1, 1]} : vector<1x128xf32> to vector<1x32xf32>
    %221 = arith.negf %220 : vector<1x32xf32>
    %222 = math.exp %221 : vector<1x32xf32>
    %cst_72 = arith.constant 1.000000e+00 : f32
    %223 = vector.broadcast %cst_72 : f32 to vector<1x32xf32>
    %224 = arith.addf %223, %222 : vector<1x32xf32>
    %225 = arith.divf %223, %224 : vector<1x32xf32>
    %226 = vector.extract_strided_slice %219 {offsets = [0, 32], sizes = [1, 32], strides = [1, 1]} : vector<1x128xf32> to vector<1x32xf32>
    %227 = arith.negf %226 : vector<1x32xf32>
    %228 = math.exp %227 : vector<1x32xf32>
    %cst_73 = arith.constant 1.000000e+00 : f32
    %229 = vector.broadcast %cst_73 : f32 to vector<1x32xf32>
    %230 = arith.addf %229, %228 : vector<1x32xf32>
    %231 = arith.divf %229, %230 : vector<1x32xf32>
    %232 = vector.extract_strided_slice %219 {offsets = [0, 64], sizes = [1, 32], strides = [1, 1]} : vector<1x128xf32> to vector<1x32xf32>
    %233 = math.tanh %232 : vector<1x32xf32>
    %234 = vector.extract_strided_slice %219 {offsets = [0, 96], sizes = [1, 32], strides = [1, 1]} : vector<1x128xf32> to vector<1x32xf32>
    %235 = arith.negf %234 : vector<1x32xf32>
    %236 = math.exp %235 : vector<1x32xf32>
    %cst_74 = arith.constant 1.000000e+00 : f32
    %237 = vector.broadcast %cst_74 : f32 to vector<1x32xf32>
    %238 = arith.addf %237, %236 : vector<1x32xf32>
    %239 = arith.divf %237, %238 : vector<1x32xf32>
    %240 = arith.mulf %231, %213 : vector<1x32xf32>
    %241 = arith.mulf %225, %233 : vector<1x32xf32>
    %242 = arith.addf %240, %241 : vector<1x32xf32>
    %243 = math.tanh %242 : vector<1x32xf32>
    %244 = arith.mulf %239, %243 : vector<1x32xf32>
    %c6 = arith.constant 6 : index
    %c0_75 = arith.constant 0 : index
    %245 = vector.load %arg17[%c6, %c0_75] : memref<8x32xf32, #tpu.memory_space<vmem>>, vector<1x32xf32>
    tpu.vector_store %arg17[%c6, %c0_75], %244 {strides = array<i32>} : memref<8x32xf32, #tpu.memory_space<vmem>>, vector<1x32xf32>,
    %246 = vector.extract_strided_slice %39 {offsets = [7, 0], sizes = [1, 128], strides = [1, 1]} : vector<8x128xf32> to vector<1x128xf32>
    %cst_76 = arith.constant dense<0.000000e+00> : vector<1x128xf32>
    %247 = tpu.matmul %244, %40, %cst_76 {dimension_numbers = #tpu.dot_dimension_numbers<[1], [0], [0], [1], [0, 0, 1, 1], [], []>} : vector<1x32xf32>, vector<32x128xf32>, vector<1x128xf32> -> vector<1x128xf32>
    %248 = arith.addf %246, %247 : vector<1x128xf32>
    %249 = vector.extract_strided_slice %248 {offsets = [0, 0], sizes = [1, 32], strides = [1, 1]} : vector<1x128xf32> to vector<1x32xf32>
    %250 = arith.negf %249 : vector<1x32xf32>
    %251 = math.exp %250 : vector<1x32xf32>
    %cst_77 = arith.constant 1.000000e+00 : f32
    %252 = vector.broadcast %cst_77 : f32 to vector<1x32xf32>
    %253 = arith.addf %252, %251 : vector<1x32xf32>
    %254 = arith.divf %252, %253 : vector<1x32xf32>
    %255 = vector.extract_strided_slice %248 {offsets = [0, 32], sizes = [1, 32], strides = [1, 1]} : vector<1x128xf32> to vector<1x32xf32>
    %256 = arith.negf %255 : vector<1x32xf32>
    %257 = math.exp %256 : vector<1x32xf32>
    %cst_78 = arith.constant 1.000000e+00 : f32
    %258 = vector.broadcast %cst_78 : f32 to vector<1x32xf32>
    %259 = arith.addf %258, %257 : vector<1x32xf32>
    %260 = arith.divf %258, %259 : vector<1x32xf32>
    %261 = vector.extract_strided_slice %248 {offsets = [0, 64], sizes = [1, 32], strides = [1, 1]} : vector<1x128xf32> to vector<1x32xf32>
    %262 = math.tanh %261 : vector<1x32xf32>
    %263 = vector.extract_strided_slice %248 {offsets = [0, 96], sizes = [1, 32], strides = [1, 1]} : vector<1x128xf32> to vector<1x32xf32>
    %264 = arith.negf %263 : vector<1x32xf32>
    %265 = math.exp %264 : vector<1x32xf32>
    %cst_79 = arith.constant 1.000000e+00 : f32
    %266 = vector.broadcast %cst_79 : f32 to vector<1x32xf32>
    %267 = arith.addf %266, %265 : vector<1x32xf32>
    %268 = arith.divf %266, %267 : vector<1x32xf32>
    %269 = arith.mulf %260, %242 : vector<1x32xf32>
    %270 = arith.mulf %254, %262 : vector<1x32xf32>
    %271 = arith.addf %269, %270 : vector<1x32xf32>
    %272 = math.tanh %271 : vector<1x32xf32>
    %273 = arith.mulf %268, %272 : vector<1x32xf32>
    %c7 = arith.constant 7 : index
    %c0_80 = arith.constant 0 : index
    %274 = vector.load %arg17[%c7, %c0_80] : memref<8x32xf32, #tpu.memory_space<vmem>>, vector<1x32xf32>
    tpu.vector_store %arg17[%c7, %c0_80], %273 {strides = array<i32>} : memref<8x32xf32, #tpu.memory_space<vmem>>, vector<1x32xf32>,
    %c0_81 = arith.constant 0 : index
    %c0_82 = arith.constant 0 : index
    %275 = vector.load %arg17[%c0_81, %c0_82] : memref<8x32xf32, #tpu.memory_space<vmem>>, vector<8x32xf32>
    %c0_83 = arith.constant 0 : index
    %c0_84 = arith.constant 0 : index
    %276 = vector.load %arg11[%c0_83, %c0_84] : memref<32x128xf32, #tpu.memory_space<vmem>>, vector<32x128xf32>
    %cst_85 = arith.constant dense<0.000000e+00> : vector<8x128xf32>
    %277 = tpu.matmul %275, %276, %cst_85 {dimension_numbers = #tpu.dot_dimension_numbers<[1], [0], [0], [1], [0, 0, 1, 1], [], []>} : vector<8x32xf32>, vector<32x128xf32>, vector<8x128xf32> -> vector<8x128xf32>
    %c0_86 = arith.constant 0 : index
    %c0_87 = arith.constant 0 : index
    %278 = vector.load %arg13[%c0_86, %c0_87] : memref<1x128xf32, #tpu.memory_space<vmem>>, vector<1x128xf32>
    %279 = vector.broadcast %278 : vector<1x128xf32> to vector<8x128xf32>
    %280 = arith.addf %277, %279 : vector<8x128xf32>
    %c0_88 = arith.constant 0 : index
    %c0_89 = arith.constant 0 : index
    %281 = vector.load %arg12[%c0_88, %c0_89] : memref<32x128xf32, #tpu.memory_space<vmem>>, vector<32x128xf32>
    %cst_90 = arith.constant 0.000000e+00 : f32
    %282 = vector.broadcast %cst_90 : f32 to vector<1x32xf32>
    %cst_91 = arith.constant 0.000000e+00 : f32
    %283 = vector.broadcast %cst_91 : f32 to vector<1x32xf32>
    %284 = vector.extract_strided_slice %280 {offsets = [0, 0], sizes = [1, 128], strides = [1, 1]} : vector<8x128xf32> to vector<1x128xf32>
    %cst_92 = arith.constant dense<0.000000e+00> : vector<1x128xf32>
    %285 = tpu.matmul %282, %281, %cst_92 {dimension_numbers = #tpu.dot_dimension_numbers<[1], [0], [0], [1], [0, 0, 1, 1], [], []>} : vector<1x32xf32>, vector<32x128xf32>, vector<1x128xf32> -> vector<1x128xf32>
    %286 = arith.addf %284, %285 : vector<1x128xf32>
    %287 = vector.extract_strided_slice %286 {offsets = [0, 0], sizes = [1, 32], strides = [1, 1]} : vector<1x128xf32> to vector<1x32xf32>
    %288 = arith.negf %287 : vector<1x32xf32>
    %289 = math.exp %288 : vector<1x32xf32>
    %cst_93 = arith.constant 1.000000e+00 : f32
    %290 = vector.broadcast %cst_93 : f32 to vector<1x32xf32>
    %291 = arith.addf %290, %289 : vector<1x32xf32>
    %292 = arith.divf %290, %291 : vector<1x32xf32>
    %293 = vector.extract_strided_slice %286 {offsets = [0, 32], sizes = [1, 32], strides = [1, 1]} : vector<1x128xf32> to vector<1x32xf32>
    %294 = arith.negf %293 : vector<1x32xf32>
    %295 = math.exp %294 : vector<1x32xf32>
    %cst_94 = arith.constant 1.000000e+00 : f32
    %296 = vector.broadcast %cst_94 : f32 to vector<1x32xf32>
    %297 = arith.addf %296, %295 : vector<1x32xf32>
    %298 = arith.divf %296, %297 : vector<1x32xf32>
    %299 = vector.extract_strided_slice %286 {offsets = [0, 64], sizes = [1, 32], strides = [1, 1]} : vector<1x128xf32> to vector<1x32xf32>
    %300 = math.tanh %299 : vector<1x32xf32>
    %301 = vector.extract_strided_slice %286 {offsets = [0, 96], sizes = [1, 32], strides = [1, 1]} : vector<1x128xf32> to vector<1x32xf32>
    %302 = arith.negf %301 : vector<1x32xf32>
    %303 = math.exp %302 : vector<1x32xf32>
    %cst_95 = arith.constant 1.000000e+00 : f32
    %304 = vector.broadcast %cst_95 : f32 to vector<1x32xf32>
    %305 = arith.addf %304, %303 : vector<1x32xf32>
    %306 = arith.divf %304, %305 : vector<1x32xf32>
    %307 = arith.mulf %298, %283 : vector<1x32xf32>
    %308 = arith.mulf %292, %300 : vector<1x32xf32>
    %309 = arith.addf %307, %308 : vector<1x32xf32>
    %310 = math.tanh %309 : vector<1x32xf32>
    %311 = arith.mulf %306, %310 : vector<1x32xf32>
    %c0_96 = arith.constant 0 : index
    %c0_97 = arith.constant 0 : index
    %312 = vector.load %arg17[%c0_96, %c0_97] : memref<8x32xf32, #tpu.memory_space<vmem>>, vector<1x32xf32>
    tpu.vector_store %arg17[%c0_96, %c0_97], %311 {strides = array<i32>} : memref<8x32xf32, #tpu.memory_space<vmem>>, vector<1x32xf32>,
    %313 = vector.extract_strided_slice %280 {offsets = [1, 0], sizes = [1, 128], strides = [1, 1]} : vector<8x128xf32> to vector<1x128xf32>
    %cst_98 = arith.constant dense<0.000000e+00> : vector<1x128xf32>
    %314 = tpu.matmul %311, %281, %cst_98 {dimension_numbers = #tpu.dot_dimension_numbers<[1], [0], [0], [1], [0, 0, 1, 1], [], []>} : vector<1x32xf32>, vector<32x128xf32>, vector<1x128xf32> -> vector<1x128xf32>
    %315 = arith.addf %313, %314 : vector<1x128xf32>
    %316 = vector.extract_strided_slice %315 {offsets = [0, 0], sizes = [1, 32], strides = [1, 1]} : vector<1x128xf32> to vector<1x32xf32>
    %317 = arith.negf %316 : vector<1x32xf32>
    %318 = math.exp %317 : vector<1x32xf32>
    %cst_99 = arith.constant 1.000000e+00 : f32
    %319 = vector.broadcast %cst_99 : f32 to vector<1x32xf32>
    %320 = arith.addf %319, %318 : vector<1x32xf32>
    %321 = arith.divf %319, %320 : vector<1x32xf32>
    %322 = vector.extract_strided_slice %315 {offsets = [0, 32], sizes = [1, 32], strides = [1, 1]} : vector<1x128xf32> to vector<1x32xf32>
    %323 = arith.negf %322 : vector<1x32xf32>
    %324 = math.exp %323 : vector<1x32xf32>
    %cst_100 = arith.constant 1.000000e+00 : f32
    %325 = vector.broadcast %cst_100 : f32 to vector<1x32xf32>
    %326 = arith.addf %325, %324 : vector<1x32xf32>
    %327 = arith.divf %325, %326 : vector<1x32xf32>
    %328 = vector.extract_strided_slice %315 {offsets = [0, 64], sizes = [1, 32], strides = [1, 1]} : vector<1x128xf32> to vector<1x32xf32>
    %329 = math.tanh %328 : vector<1x32xf32>
    %330 = vector.extract_strided_slice %315 {offsets = [0, 96], sizes = [1, 32], strides = [1, 1]} : vector<1x128xf32> to vector<1x32xf32>
    %331 = arith.negf %330 : vector<1x32xf32>
    %332 = math.exp %331 : vector<1x32xf32>
    %cst_101 = arith.constant 1.000000e+00 : f32
    %333 = vector.broadcast %cst_101 : f32 to vector<1x32xf32>
    %334 = arith.addf %333, %332 : vector<1x32xf32>
    %335 = arith.divf %333, %334 : vector<1x32xf32>
    %336 = arith.mulf %327, %309 : vector<1x32xf32>
    %337 = arith.mulf %321, %329 : vector<1x32xf32>
    %338 = arith.addf %336, %337 : vector<1x32xf32>
    %339 = math.tanh %338 : vector<1x32xf32>
    %340 = arith.mulf %335, %339 : vector<1x32xf32>
    %c1_102 = arith.constant 1 : index
    %c0_103 = arith.constant 0 : index
    %341 = vector.load %arg17[%c1_102, %c0_103] : memref<8x32xf32, #tpu.memory_space<vmem>>, vector<1x32xf32>
    tpu.vector_store %arg17[%c1_102, %c0_103], %340 {strides = array<i32>} : memref<8x32xf32, #tpu.memory_space<vmem>>, vector<1x32xf32>,
    %342 = vector.extract_strided_slice %280 {offsets = [2, 0], sizes = [1, 128], strides = [1, 1]} : vector<8x128xf32> to vector<1x128xf32>
    %cst_104 = arith.constant dense<0.000000e+00> : vector<1x128xf32>
    %343 = tpu.matmul %340, %281, %cst_104 {dimension_numbers = #tpu.dot_dimension_numbers<[1], [0], [0], [1], [0, 0, 1, 1], [], []>} : vector<1x32xf32>, vector<32x128xf32>, vector<1x128xf32> -> vector<1x128xf32>
    %344 = arith.addf %342, %343 : vector<1x128xf32>
    %345 = vector.extract_strided_slice %344 {offsets = [0, 0], sizes = [1, 32], strides = [1, 1]} : vector<1x128xf32> to vector<1x32xf32>
    %346 = arith.negf %345 : vector<1x32xf32>
    %347 = math.exp %346 : vector<1x32xf32>
    %cst_105 = arith.constant 1.000000e+00 : f32
    %348 = vector.broadcast %cst_105 : f32 to vector<1x32xf32>
    %349 = arith.addf %348, %347 : vector<1x32xf32>
    %350 = arith.divf %348, %349 : vector<1x32xf32>
    %351 = vector.extract_strided_slice %344 {offsets = [0, 32], sizes = [1, 32], strides = [1, 1]} : vector<1x128xf32> to vector<1x32xf32>
    %352 = arith.negf %351 : vector<1x32xf32>
    %353 = math.exp %352 : vector<1x32xf32>
    %cst_106 = arith.constant 1.000000e+00 : f32
    %354 = vector.broadcast %cst_106 : f32 to vector<1x32xf32>
    %355 = arith.addf %354, %353 : vector<1x32xf32>
    %356 = arith.divf %354, %355 : vector<1x32xf32>
    %357 = vector.extract_strided_slice %344 {offsets = [0, 64], sizes = [1, 32], strides = [1, 1]} : vector<1x128xf32> to vector<1x32xf32>
    %358 = math.tanh %357 : vector<1x32xf32>
    %359 = vector.extract_strided_slice %344 {offsets = [0, 96], sizes = [1, 32], strides = [1, 1]} : vector<1x128xf32> to vector<1x32xf32>
    %360 = arith.negf %359 : vector<1x32xf32>
    %361 = math.exp %360 : vector<1x32xf32>
    %cst_107 = arith.constant 1.000000e+00 : f32
    %362 = vector.broadcast %cst_107 : f32 to vector<1x32xf32>
    %363 = arith.addf %362, %361 : vector<1x32xf32>
    %364 = arith.divf %362, %363 : vector<1x32xf32>
    %365 = arith.mulf %356, %338 : vector<1x32xf32>
    %366 = arith.mulf %350, %358 : vector<1x32xf32>
    %367 = arith.addf %365, %366 : vector<1x32xf32>
    %368 = math.tanh %367 : vector<1x32xf32>
    %369 = arith.mulf %364, %368 : vector<1x32xf32>
    %c2_108 = arith.constant 2 : index
    %c0_109 = arith.constant 0 : index
    %370 = vector.load %arg17[%c2_108, %c0_109] : memref<8x32xf32, #tpu.memory_space<vmem>>, vector<1x32xf32>
    tpu.vector_store %arg17[%c2_108, %c0_109], %369 {strides = array<i32>} : memref<8x32xf32, #tpu.memory_space<vmem>>, vector<1x32xf32>,
    %371 = vector.extract_strided_slice %280 {offsets = [3, 0], sizes = [1, 128], strides = [1, 1]} : vector<8x128xf32> to vector<1x128xf32>
    %cst_110 = arith.constant dense<0.000000e+00> : vector<1x128xf32>
    %372 = tpu.matmul %369, %281, %cst_110 {dimension_numbers = #tpu.dot_dimension_numbers<[1], [0], [0], [1], [0, 0, 1, 1], [], []>} : vector<1x32xf32>, vector<32x128xf32>, vector<1x128xf32> -> vector<1x128xf32>
    %373 = arith.addf %371, %372 : vector<1x128xf32>
    %374 = vector.extract_strided_slice %373 {offsets = [0, 0], sizes = [1, 32], strides = [1, 1]} : vector<1x128xf32> to vector<1x32xf32>
    %375 = arith.negf %374 : vector<1x32xf32>
    %376 = math.exp %375 : vector<1x32xf32>
    %cst_111 = arith.constant 1.000000e+00 : f32
    %377 = vector.broadcast %cst_111 : f32 to vector<1x32xf32>
    %378 = arith.addf %377, %376 : vector<1x32xf32>
    %379 = arith.divf %377, %378 : vector<1x32xf32>
    %380 = vector.extract_strided_slice %373 {offsets = [0, 32], sizes = [1, 32], strides = [1, 1]} : vector<1x128xf32> to vector<1x32xf32>
    %381 = arith.negf %380 : vector<1x32xf32>
    %382 = math.exp %381 : vector<1x32xf32>
    %cst_112 = arith.constant 1.000000e+00 : f32
    %383 = vector.broadcast %cst_112 : f32 to vector<1x32xf32>
    %384 = arith.addf %383, %382 : vector<1x32xf32>
    %385 = arith.divf %383, %384 : vector<1x32xf32>
    %386 = vector.extract_strided_slice %373 {offsets = [0, 64], sizes = [1, 32], strides = [1, 1]} : vector<1x128xf32> to vector<1x32xf32>
    %387 = math.tanh %386 : vector<1x32xf32>
    %388 = vector.extract_strided_slice %373 {offsets = [0, 96], sizes = [1, 32], strides = [1, 1]} : vector<1x128xf32> to vector<1x32xf32>
    %389 = arith.negf %388 : vector<1x32xf32>
    %390 = math.exp %389 : vector<1x32xf32>
    %cst_113 = arith.constant 1.000000e+00 : f32
    %391 = vector.broadcast %cst_113 : f32 to vector<1x32xf32>
    %392 = arith.addf %391, %390 : vector<1x32xf32>
    %393 = arith.divf %391, %392 : vector<1x32xf32>
    %394 = arith.mulf %385, %367 : vector<1x32xf32>
    %395 = arith.mulf %379, %387 : vector<1x32xf32>
    %396 = arith.addf %394, %395 : vector<1x32xf32>
    %397 = math.tanh %396 : vector<1x32xf32>
    %398 = arith.mulf %393, %397 : vector<1x32xf32>
    %c3_114 = arith.constant 3 : index
    %c0_115 = arith.constant 0 : index
    %399 = vector.load %arg17[%c3_114, %c0_115] : memref<8x32xf32, #tpu.memory_space<vmem>>, vector<1x32xf32>
    tpu.vector_store %arg17[%c3_114, %c0_115], %398 {strides = array<i32>} : memref<8x32xf32, #tpu.memory_space<vmem>>, vector<1x32xf32>,
    %400 = vector.extract_strided_slice %280 {offsets = [4, 0], sizes = [1, 128], strides = [1, 1]} : vector<8x128xf32> to vector<1x128xf32>
    %cst_116 = arith.constant dense<0.000000e+00> : vector<1x128xf32>
    %401 = tpu.matmul %398, %281, %cst_116 {dimension_numbers = #tpu.dot_dimension_numbers<[1], [0], [0], [1], [0, 0, 1, 1], [], []>} : vector<1x32xf32>, vector<32x128xf32>, vector<1x128xf32> -> vector<1x128xf32>
    %402 = arith.addf %400, %401 : vector<1x128xf32>
    %403 = vector.extract_strided_slice %402 {offsets = [0, 0], sizes = [1, 32], strides = [1, 1]} : vector<1x128xf32> to vector<1x32xf32>
    %404 = arith.negf %403 : vector<1x32xf32>
    %405 = math.exp %404 : vector<1x32xf32>
    %cst_117 = arith.constant 1.000000e+00 : f32
    %406 = vector.broadcast %cst_117 : f32 to vector<1x32xf32>
    %407 = arith.addf %406, %405 : vector<1x32xf32>
    %408 = arith.divf %406, %407 : vector<1x32xf32>
    %409 = vector.extract_strided_slice %402 {offsets = [0, 32], sizes = [1, 32], strides = [1, 1]} : vector<1x128xf32> to vector<1x32xf32>
    %410 = arith.negf %409 : vector<1x32xf32>
    %411 = math.exp %410 : vector<1x32xf32>
    %cst_118 = arith.constant 1.000000e+00 : f32
    %412 = vector.broadcast %cst_118 : f32 to vector<1x32xf32>
    %413 = arith.addf %412, %411 : vector<1x32xf32>
    %414 = arith.divf %412, %413 : vector<1x32xf32>
    %415 = vector.extract_strided_slice %402 {offsets = [0, 64], sizes = [1, 32], strides = [1, 1]} : vector<1x128xf32> to vector<1x32xf32>
    %416 = math.tanh %415 : vector<1x32xf32>
    %417 = vector.extract_strided_slice %402 {offsets = [0, 96], sizes = [1, 32], strides = [1, 1]} : vector<1x128xf32> to vector<1x32xf32>
    %418 = arith.negf %417 : vector<1x32xf32>
    %419 = math.exp %418 : vector<1x32xf32>
    %cst_119 = arith.constant 1.000000e+00 : f32
    %420 = vector.broadcast %cst_119 : f32 to vector<1x32xf32>
    %421 = arith.addf %420, %419 : vector<1x32xf32>
    %422 = arith.divf %420, %421 : vector<1x32xf32>
    %423 = arith.mulf %414, %396 : vector<1x32xf32>
    %424 = arith.mulf %408, %416 : vector<1x32xf32>
    %425 = arith.addf %423, %424 : vector<1x32xf32>
    %426 = math.tanh %425 : vector<1x32xf32>
    %427 = arith.mulf %422, %426 : vector<1x32xf32>
    %c4_120 = arith.constant 4 : index
    %c0_121 = arith.constant 0 : index
    %428 = vector.load %arg17[%c4_120, %c0_121] : memref<8x32xf32, #tpu.memory_space<vmem>>, vector<1x32xf32>
    tpu.vector_store %arg17[%c4_120, %c0_121], %427 {strides = array<i32>} : memref<8x32xf32, #tpu.memory_space<vmem>>, vector<1x32xf32>,
    %429 = vector.extract_strided_slice %280 {offsets = [5, 0], sizes = [1, 128], strides = [1, 1]} : vector<8x128xf32> to vector<1x128xf32>
    %cst_122 = arith.constant dense<0.000000e+00> : vector<1x128xf32>
    %430 = tpu.matmul %427, %281, %cst_122 {dimension_numbers = #tpu.dot_dimension_numbers<[1], [0], [0], [1], [0, 0, 1, 1], [], []>} : vector<1x32xf32>, vector<32x128xf32>, vector<1x128xf32> -> vector<1x128xf32>
    %431 = arith.addf %429, %430 : vector<1x128xf32>
    %432 = vector.extract_strided_slice %431 {offsets = [0, 0], sizes = [1, 32], strides = [1, 1]} : vector<1x128xf32> to vector<1x32xf32>
    %433 = arith.negf %432 : vector<1x32xf32>
    %434 = math.exp %433 : vector<1x32xf32>
    %cst_123 = arith.constant 1.000000e+00 : f32
    %435 = vector.broadcast %cst_123 : f32 to vector<1x32xf32>
    %436 = arith.addf %435, %434 : vector<1x32xf32>
    %437 = arith.divf %435, %436 : vector<1x32xf32>
    %438 = vector.extract_strided_slice %431 {offsets = [0, 32], sizes = [1, 32], strides = [1, 1]} : vector<1x128xf32> to vector<1x32xf32>
    %439 = arith.negf %438 : vector<1x32xf32>
    %440 = math.exp %439 : vector<1x32xf32>
    %cst_124 = arith.constant 1.000000e+00 : f32
    %441 = vector.broadcast %cst_124 : f32 to vector<1x32xf32>
    %442 = arith.addf %441, %440 : vector<1x32xf32>
    %443 = arith.divf %441, %442 : vector<1x32xf32>
    %444 = vector.extract_strided_slice %431 {offsets = [0, 64], sizes = [1, 32], strides = [1, 1]} : vector<1x128xf32> to vector<1x32xf32>
    %445 = math.tanh %444 : vector<1x32xf32>
    %446 = vector.extract_strided_slice %431 {offsets = [0, 96], sizes = [1, 32], strides = [1, 1]} : vector<1x128xf32> to vector<1x32xf32>
    %447 = arith.negf %446 : vector<1x32xf32>
    %448 = math.exp %447 : vector<1x32xf32>
    %cst_125 = arith.constant 1.000000e+00 : f32
    %449 = vector.broadcast %cst_125 : f32 to vector<1x32xf32>
    %450 = arith.addf %449, %448 : vector<1x32xf32>
    %451 = arith.divf %449, %450 : vector<1x32xf32>
    %452 = arith.mulf %443, %425 : vector<1x32xf32>
    %453 = arith.mulf %437, %445 : vector<1x32xf32>
    %454 = arith.addf %452, %453 : vector<1x32xf32>
    %455 = math.tanh %454 : vector<1x32xf32>
    %456 = arith.mulf %451, %455 : vector<1x32xf32>
    %c5_126 = arith.constant 5 : index
    %c0_127 = arith.constant 0 : index
    %457 = vector.load %arg17[%c5_126, %c0_127] : memref<8x32xf32, #tpu.memory_space<vmem>>, vector<1x32xf32>
    tpu.vector_store %arg17[%c5_126, %c0_127], %456 {strides = array<i32>} : memref<8x32xf32, #tpu.memory_space<vmem>>, vector<1x32xf32>,
    %458 = vector.extract_strided_slice %280 {offsets = [6, 0], sizes = [1, 128], strides = [1, 1]} : vector<8x128xf32> to vector<1x128xf32>
    %cst_128 = arith.constant dense<0.000000e+00> : vector<1x128xf32>
    %459 = tpu.matmul %456, %281, %cst_128 {dimension_numbers = #tpu.dot_dimension_numbers<[1], [0], [0], [1], [0, 0, 1, 1], [], []>} : vector<1x32xf32>, vector<32x128xf32>, vector<1x128xf32> -> vector<1x128xf32>
    %460 = arith.addf %458, %459 : vector<1x128xf32>
    %461 = vector.extract_strided_slice %460 {offsets = [0, 0], sizes = [1, 32], strides = [1, 1]} : vector<1x128xf32> to vector<1x32xf32>
    %462 = arith.negf %461 : vector<1x32xf32>
    %463 = math.exp %462 : vector<1x32xf32>
    %cst_129 = arith.constant 1.000000e+00 : f32
    %464 = vector.broadcast %cst_129 : f32 to vector<1x32xf32>
    %465 = arith.addf %464, %463 : vector<1x32xf32>
    %466 = arith.divf %464, %465 : vector<1x32xf32>
    %467 = vector.extract_strided_slice %460 {offsets = [0, 32], sizes = [1, 32], strides = [1, 1]} : vector<1x128xf32> to vector<1x32xf32>
    %468 = arith.negf %467 : vector<1x32xf32>
    %469 = math.exp %468 : vector<1x32xf32>
    %cst_130 = arith.constant 1.000000e+00 : f32
    %470 = vector.broadcast %cst_130 : f32 to vector<1x32xf32>
    %471 = arith.addf %470, %469 : vector<1x32xf32>
    %472 = arith.divf %470, %471 : vector<1x32xf32>
    %473 = vector.extract_strided_slice %460 {offsets = [0, 64], sizes = [1, 32], strides = [1, 1]} : vector<1x128xf32> to vector<1x32xf32>
    %474 = math.tanh %473 : vector<1x32xf32>
    %475 = vector.extract_strided_slice %460 {offsets = [0, 96], sizes = [1, 32], strides = [1, 1]} : vector<1x128xf32> to vector<1x32xf32>
    %476 = arith.negf %475 : vector<1x32xf32>
    %477 = math.exp %476 : vector<1x32xf32>
    %cst_131 = arith.constant 1.000000e+00 : f32
    %478 = vector.broadcast %cst_131 : f32 to vector<1x32xf32>
    %479 = arith.addf %478, %477 : vector<1x32xf32>
    %480 = arith.divf %478, %479 : vector<1x32xf32>
    %481 = arith.mulf %472, %454 : vector<1x32xf32>
    %482 = arith.mulf %466, %474 : vector<1x32xf32>
    %483 = arith.addf %481, %482 : vector<1x32xf32>
    %484 = math.tanh %483 : vector<1x32xf32>
    %485 = arith.mulf %480, %484 : vector<1x32xf32>
    %c6_132 = arith.constant 6 : index
    %c0_133 = arith.constant 0 : index
    %486 = vector.load %arg17[%c6_132, %c0_133] : memref<8x32xf32, #tpu.memory_space<vmem>>, vector<1x32xf32>
    tpu.vector_store %arg17[%c6_132, %c0_133], %485 {strides = array<i32>} : memref<8x32xf32, #tpu.memory_space<vmem>>, vector<1x32xf32>,
    %487 = vector.extract_strided_slice %280 {offsets = [7, 0], sizes = [1, 128], strides = [1, 1]} : vector<8x128xf32> to vector<1x128xf32>
    %cst_134 = arith.constant dense<0.000000e+00> : vector<1x128xf32>
    %488 = tpu.matmul %485, %281, %cst_134 {dimension_numbers = #tpu.dot_dimension_numbers<[1], [0], [0], [1], [0, 0, 1, 1], [], []>} : vector<1x32xf32>, vector<32x128xf32>, vector<1x128xf32> -> vector<1x128xf32>
    %489 = arith.addf %487, %488 : vector<1x128xf32>
    %490 = vector.extract_strided_slice %489 {offsets = [0, 0], sizes = [1, 32], strides = [1, 1]} : vector<1x128xf32> to vector<1x32xf32>
    %491 = arith.negf %490 : vector<1x32xf32>
    %492 = math.exp %491 : vector<1x32xf32>
    %cst_135 = arith.constant 1.000000e+00 : f32
    %493 = vector.broadcast %cst_135 : f32 to vector<1x32xf32>
    %494 = arith.addf %493, %492 : vector<1x32xf32>
    %495 = arith.divf %493, %494 : vector<1x32xf32>
    %496 = vector.extract_strided_slice %489 {offsets = [0, 32], sizes = [1, 32], strides = [1, 1]} : vector<1x128xf32> to vector<1x32xf32>
    %497 = arith.negf %496 : vector<1x32xf32>
    %498 = math.exp %497 : vector<1x32xf32>
    %cst_136 = arith.constant 1.000000e+00 : f32
    %499 = vector.broadcast %cst_136 : f32 to vector<1x32xf32>
    %500 = arith.addf %499, %498 : vector<1x32xf32>
    %501 = arith.divf %499, %500 : vector<1x32xf32>
    %502 = vector.extract_strided_slice %489 {offsets = [0, 64], sizes = [1, 32], strides = [1, 1]} : vector<1x128xf32> to vector<1x32xf32>
    %503 = math.tanh %502 : vector<1x32xf32>
    %504 = vector.extract_strided_slice %489 {offsets = [0, 96], sizes = [1, 32], strides = [1, 1]} : vector<1x128xf32> to vector<1x32xf32>
    %505 = arith.negf %504 : vector<1x32xf32>
    %506 = math.exp %505 : vector<1x32xf32>
    %cst_137 = arith.constant 1.000000e+00 : f32
    %507 = vector.broadcast %cst_137 : f32 to vector<1x32xf32>
    %508 = arith.addf %507, %506 : vector<1x32xf32>
    %509 = arith.divf %507, %508 : vector<1x32xf32>
    %510 = arith.mulf %501, %483 : vector<1x32xf32>
    %511 = arith.mulf %495, %503 : vector<1x32xf32>
    %512 = arith.addf %510, %511 : vector<1x32xf32>
    %513 = math.tanh %512 : vector<1x32xf32>
    %514 = arith.mulf %509, %513 : vector<1x32xf32>
    %c7_138 = arith.constant 7 : index
    %c0_139 = arith.constant 0 : index
    %515 = vector.load %arg17[%c7_138, %c0_139] : memref<8x32xf32, #tpu.memory_space<vmem>>, vector<1x32xf32>
    tpu.vector_store %arg17[%c7_138, %c0_139], %514 {strides = array<i32>} : memref<8x32xf32, #tpu.memory_space<vmem>>, vector<1x32xf32>,
    %c0_140 = arith.constant 0 : index
    %c0_141 = arith.constant 0 : index
    %516 = vector.load %arg17[%c0_140, %c0_141] : memref<8x32xf32, #tpu.memory_space<vmem>>, vector<8x32xf32>
    %c0_142 = arith.constant 0 : index
    %c0_143 = arith.constant 0 : index
    %517 = vector.load %arg14[%c0_142, %c0_143] : memref<32x128xf32, #tpu.memory_space<vmem>>, vector<32x128xf32>
    %cst_144 = arith.constant dense<0.000000e+00> : vector<8x128xf32>
    %518 = tpu.matmul %516, %517, %cst_144 {dimension_numbers = #tpu.dot_dimension_numbers<[1], [0], [0], [1], [0, 0, 1, 1], [], []>} : vector<8x32xf32>, vector<32x128xf32>, vector<8x128xf32> -> vector<8x128xf32>
    %c0_145 = arith.constant 0 : index
    %c0_146 = arith.constant 0 : index
    %519 = vector.load %arg15[%c0_145, %c0_146] : memref<1x128xf32, #tpu.memory_space<vmem>>, vector<1x128xf32>
    %520 = vector.broadcast %519 : vector<1x128xf32> to vector<8x128xf32>
    %521 = arith.addf %518, %520 : vector<8x128xf32>
    %c0_147 = arith.constant 0 : index
    %c0_148 = arith.constant 0 : index
    %522 = vector.load %arg16[%c0_147, %c0_148] : memref<8x128xf32, #tpu.memory_space<vmem>>, vector<8x128xf32>
    tpu.vector_store %arg16[%c0_147, %c0_148], %521 {strides = array<i32>} : memref<8x128xf32, #tpu.memory_space<vmem>>, vector<8x128xf32>,
    return
  }
  func.func @transform_0(%arg0: i32) -> (i32, i32, i32) {
    %c0_i32 = arith.constant 0 : i32
    %c0_i32_0 = arith.constant 0 : i32
    %c0_i32_1 = arith.constant 0 : i32
    %c0_i32_2 = arith.constant 0 : i32
    return %c0_i32, %c0_i32_0, %c0_i32_1 : i32, i32, i32
  }
  func.func @transform_1(%arg0: i32) -> (i32, i32) {
    %c0_i32 = arith.constant 0 : i32
    %c0_i32_0 = arith.constant 0 : i32
    %c0_i32_1 = arith.constant 0 : i32
    return %c0_i32, %c0_i32_0 : i32, i32
  }
  func.func @transform_2(%arg0: i32) -> (i32, i32) {
    %c0_i32 = arith.constant 0 : i32
    %c0_i32_0 = arith.constant 0 : i32
    %c0_i32_1 = arith.constant 0 : i32
    return %c0_i32, %c0_i32_0 : i32, i32
  }
  func.func @transform_3(%arg0: i32) -> (i32, i32) {
    %c0_i32 = arith.constant 0 : i32
    %c0_i32_0 = arith.constant 0 : i32
    %c0_i32_1 = arith.constant 0 : i32
    return %c0_i32, %c0_i32_0 : i32, i32
  }
  func.func @transform_4(%arg0: i32) -> (i32, i32) {
    %c0_i32 = arith.constant 0 : i32
    %c0_i32_0 = arith.constant 0 : i32
    %c0_i32_1 = arith.constant 0 : i32
    return %c0_i32, %c0_i32_0 : i32, i32
  }
  func.func @transform_5(%arg0: i32) -> (i32, i32) {
    %c0_i32 = arith.constant 0 : i32
    %c0_i32_0 = arith.constant 0 : i32
    %c0_i32_1 = arith.constant 0 : i32
    return %c0_i32, %c0_i32_0 : i32, i32
  }
  func.func @transform_6(%arg0: i32) -> (i32, i32) {
    %c0_i32 = arith.constant 0 : i32
    %c0_i32_0 = arith.constant 0 : i32
    %c0_i32_1 = arith.constant 0 : i32
    return %c0_i32, %c0_i32_0 : i32, i32
  }
  func.func @transform_7(%arg0: i32) -> (i32, i32) {
    %c0_i32 = arith.constant 0 : i32
    %c0_i32_0 = arith.constant 0 : i32
    %c0_i32_1 = arith.constant 0 : i32
    return %c0_i32, %c0_i32_0 : i32, i32
  }
  func.func @transform_8(%arg0: i32) -> (i32, i32) {
    %c0_i32 = arith.constant 0 : i32
    %c0_i32_0 = arith.constant 0 : i32
    %c0_i32_1 = arith.constant 0 : i32
    return %c0_i32, %c0_i32_0 : i32, i32
  }
  func.func @transform_9(%arg0: i32) -> (i32, i32) {
    %c0_i32 = arith.constant 0 : i32
    %c0_i32_0 = arith.constant 0 : i32
    %c0_i32_1 = arith.constant 0 : i32
    return %c0_i32, %c0_i32_0 : i32, i32
  }
  func.func @transform_10(%arg0: i32) -> (i32, i32) {
    %c0_i32 = arith.constant 0 : i32
    %c0_i32_0 = arith.constant 0 : i32
    %c0_i32_1 = arith.constant 0 : i32
    return %c0_i32, %c0_i32_0 : i32, i32
  }
  func.func @transform_11(%arg0: i32) -> (i32, i32) {
    %c0_i32 = arith.constant 0 : i32
    %c0_i32_0 = arith.constant 0 : i32
    %c0_i32_1 = arith.constant 0 : i32
    return %c0_i32, %c0_i32_0 : i32, i32
  }
  func.func @transform_12(%arg0: i32) -> (i32, i32) {
    %c0_i32 = arith.constant 0 : i32
    %c0_i32_0 = arith.constant 0 : i32
    %c0_i32_1 = arith.constant 0 : i32
    return %c0_i32, %c0_i32_0 : i32, i32
  }
  func.func @transform_13(%arg0: i32) -> (i32, i32) {
    %c0_i32 = arith.constant 0 : i32
    %c0_i32_0 = arith.constant 0 : i32
    %c0_i32_1 = arith.constant 0 : i32
    return %c0_i32, %c0_i32_0 : i32, i32
  }
  func.func @transform_14(%arg0: i32) -> (i32, i32) {
    %c0_i32 = arith.constant 0 : i32
    %c0_i32_0 = arith.constant 0 : i32
    %c0_i32_1 = arith.constant 0 : i32
    return %c0_i32, %c0_i32_0 : i32, i32
  }
  func.func @transform_15(%arg0: i32) -> (i32, i32) {
    %c0_i32 = arith.constant 0 : i32
    %c0_i32_0 = arith.constant 0 : i32
    %c0_i32_1 = arith.constant 0 : i32
    return %c0_i32, %c0_i32_0 : i32, i32
  }
}

</mosaic_0001>

<bundles_post_ra>
// kernel: cnn_to_lstm_forward.2
= control target key start
LH: loop header
LB: loop body
LE: loop exit
PB: predicated region body
PF: predicated region fallthrough
CT: control target
= control target key end

     0   :  { %s5496_s1 = inlined_call_operand.vmem [shape: f32[1024,128], index: 1, kind: input, shape index: {}]   ;;  %s5497_s0 = inlined_call_operand.vmem [shape: f32[4,64,1024], index: 0, kind: input, shape index: {}]   ;;  %s5498_s2 = inlined_call_operand.vmem [shape: f32[1,128], index: 2, kind: input, shape index: {}]   ;;  %s5499_s3 = inlined_call_operand.vmem [shape: f32[64,128], index: 3, kind: output, shape index: {}]  }
   0x1   :  { %v30_v0 = vld [vmem:[%s5496_s1 + $0x80] sm:$0xff]  ;;  %v31_v1 = vld [vmem:[%s5496_s1 + $0x88] sm:$0xff]  ;;  %v32_v11 = vld [vmem:[%s5496_s1 + $0x90] sm:$0xff] }
   0x2   :  { %v62_v2 = vld [vmem:[%s5496_s1 + $0x180] sm:$0xff]  ;;  %v3770_v3 = vpack.c.bf16 %v31_v1, %v30_v0  ;;  %v63_v4 = vld [vmem:[%s5496_s1 + $0x188] sm:$0xff]  ;;  %v33_v13 = vld [vmem:[%s5496_s1 + $0x98] sm:$0xff] }
   0x3   :  { %v14_v5 = vld [vmem:[%s5496_s1] sm:$0xff]  ;;  %v15_v6 = vld [vmem:[%s5496_s1 + $0x8] sm:$0xff]  ;;  %v3781_v7 = vpack.c.bf16 %v63_v4, %v62_v2  ;;  %v64_v14 = vld [vmem:[%s5496_s1 + $0x190] sm:$0xff]  ;;  %v3808_v16 = vpack.c.bf16 %v33_v13, %v32_v11 }
   0x4   :  { %v3783_v8 = vpack.c.bf16 %v15_v6, %v14_v5  ;;  %v46_v9 = vld [vmem:[%s5496_s1 + $0x100] sm:$0xff]  ;;  %v47_v10 = vld [vmem:[%s5496_s1 + $0x108] sm:$0xff]  ;;  %3230 = vmatprep.subr.bf16.mxu0 %v3770_v3  ;;  %v65_v15 = vld [vmem:[%s5496_s1 + $0x198] sm:$0xff] }
   0x5   :  { %v3795_v12 = vpack.c.bf16 %v47_v10, %v46_v9  ;;  %3262 = vmatprep.subr.bf16.mxu1 %v3781_v7  ;;  %v3810_v17 = vpack.c.bf16 %v65_v15, %v64_v14  ;;  %v16_v18 = vld [vmem:[%s5496_s1 + $0x10] sm:$0xff]  ;;  %v17_v19 = vld [vmem:[%s5496_s1 + $0x18] sm:$0xff]  ;;  %v34_v23 = vld [vmem:[%s5496_s1 + $0xa0] sm:$0xff] }
   0x6   :  { %3232 = vmatpush3.bf16.msra.mxu0 %v3783_v8  ;;  %v48_v20 = vld [vmem:[%s5496_s1 + $0x110] sm:$0xff]  ;;  %v3822_v21 = vpack.c.bf16 %v17_v19, %v16_v18  ;;  %v49_v22 = vld [vmem:[%s5496_s1 + $0x118] sm:$0xff]  ;;  %v35_v24 = vld [vmem:[%s5496_s1 + $0xa8] sm:$0xff] }
   0x7   :  { %3264 = vmatpush3.bf16.msra.mxu1 %v3795_v12  ;;  %3234 = vmatprep.subr.bf16.mxu0 %v3808_v16  ;;  %v3835_v25 = vpack.c.bf16 %v49_v22, %v48_v20  ;;  %v3837_v26 = vpack.c.bf16 %v35_v24, %v34_v23  ;;  %v66_v27 = vld [vmem:[%s5496_s1 + $0x1a0] sm:$0xff]  ;;  %v67_v28 = vld [vmem:[%s5496_s1 + $0x1a8] sm:$0xff]  ;;  %v36_v35 = vld [vmem:[%s5496_s1 + $0xb0] sm:$0xff] }
   0x8   :  { %3266 = vmatprep.subr.bf16.mxu1 %v3810_v17  ;;  %v18_v29 = vld [vmem:[%s5496_s1 + $0x20] sm:$0xff]  ;;  %v3848_v30 = vpack.c.bf16 %v67_v28, %v66_v27  ;;  %v19_v31 = vld [vmem:[%s5496_s1 + $0x28] sm:$0xff]  ;;  %v37_v36 = vld [vmem:[%s5496_s1 + $0xb8] sm:$0xff] }
   0x9   :  { %v50_v32 = vld [vmem:[%s5496_s1 + $0x120] sm:$0xff]  ;;  %v51_v33 = vld [vmem:[%s5496_s1 + $0x128] sm:$0xff]  ;;  %v3860_v34 = vpack.c.bf16 %v19_v31, %v18_v29  ;;  %v68_v37 = vld [vmem:[%s5496_s1 + $0x1b0] sm:$0xff]  ;;  %v3875_v39 = vpack.c.bf16 %v37_v36, %v36_v35 }
   0xa   :  { %3236 = vmatpush3.bf16.msra.mxu0 %v3822_v21  ;;  %v3873_v38 = vpack.c.bf16 %v51_v33, %v50_v32  ;;  %v69_v40 = vld [vmem:[%s5496_s1 + $0x1b8] sm:$0xff]  ;;  %v20_v41 = vld [vmem:[%s5496_s1 + $0x30] sm:$0xff]  ;;  %v38_v46 = vld [vmem:[%s5496_s1 + $0xc0] sm:$0xff] }
   0xb   :  { %3268 = vmatpush3.bf16.msra.mxu1 %v3835_v25  ;;  %3238 = vmatprep.subr.bf16.mxu0 %v3837_v26  ;;  %v21_v42 = vld [vmem:[%s5496_s1 + $0x38] sm:$0xff]  ;;  %v3887_v43 = vpack.c.bf16 %v69_v40, %v68_v37  ;;  %v52_v44 = vld [vmem:[%s5496_s1 + $0x130] sm:$0xff]  ;;  %v39_v47 = vld [vmem:[%s5496_s1 + $0xc8] sm:$0xff] }
   0xc   :  { %3270 = vmatprep.subr.bf16.mxu1 %v3848_v30  ;;  %v53_v45 = vld [vmem:[%s5496_s1 + $0x138] sm:$0xff]  ;;  %v70_v48 = vld [vmem:[%s5496_s1 + $0x1c0] sm:$0xff]  ;;  %v71_v49 = vld [vmem:[%s5496_s1 + $0x1c8] sm:$0xff]  ;;  %v3908_v50 = vpack.c.bf16 %v21_v42, %v20_v41  ;;  %v3914_v52 = vpack.c.bf16 %v39_v47, %v38_v46 }
   0xd   :  { %v3912_v51 = vpack.c.bf16 %v53_v45, %v52_v44  ;;  %v22_v53 = vld [vmem:[%s5496_s1 + $0x40] sm:$0xff]  ;;  %v23_v54 = vld [vmem:[%s5496_s1 + $0x48] sm:$0xff]  ;;  %v3926_v56 = vpack.c.bf16 %v71_v49, %v70_v48  ;;  %v40_v58 = vld [vmem:[%s5496_s1 + $0xd0] sm:$0xff] }
   0xe   :  { %3240 = vmatpush3.bf16.msra.mxu0 %v3860_v34  ;;  %v54_v55 = vld [vmem:[%s5496_s1 + $0x140] sm:$0xff]  ;;  %v55_v57 = vld [vmem:[%s5496_s1 + $0x148] sm:$0xff]  ;;  %v41_v59 = vld [vmem:[%s5496_s1 + $0xd8] sm:$0xff]  ;;  %v3944_v62 = vpack.c.bf16 %v23_v54, %v22_v53 }
   0xf   :  { %3272 = vmatpush3.bf16.msra.mxu1 %v3873_v38  ;;  %3242 = vmatprep.subr.bf16.mxu0 %v3875_v39  ;;  %v72_v60 = vld [vmem:[%s5496_s1 + $0x1d0] sm:$0xff]  ;;  %v73_v61 = vld [vmem:[%s5496_s1 + $0x1d8] sm:$0xff]  ;;  %v3948_v63 = vpack.c.bf16 %v55_v57, %v54_v55  ;;  %v3950_v0 = vpack.c.bf16 %v41_v59, %v40_v58  ;;  %v42_v9 = vld [vmem:[%s5496_s1 + $0xe0] sm:$0xff] }
  0x10   :  { %3274 = vmatprep.subr.bf16.mxu1 %v3887_v43  ;;  %v24_v1 = vld [vmem:[%s5496_s1 + $0x50] sm:$0xff]  ;;  %v25_v2 = vld [vmem:[%s5496_s1 + $0x58] sm:$0xff]  ;;  %v3962_v5 = vpack.c.bf16 %v73_v61, %v72_v60  ;;  %v43_v10 = vld [vmem:[%s5496_s1 + $0xe8] sm:$0xff] }
  0x11   :  { %v56_v4 = vld [vmem:[%s5496_s1 + $0x150] sm:$0xff]  ;;  %v57_v6 = vld [vmem:[%s5496_s1 + $0x158] sm:$0xff]  ;;  %v74_v11 = vld [vmem:[%s5496_s1 + $0x1e0] sm:$0xff]  ;;  %v3980_v14 = vpack.c.bf16 %v25_v2, %v24_v1  ;;  %v3992_v20 = vpack.c.bf16 %v43_v10, %v42_v9 }
  0x12   :  { %3244 = vmatpush3.bf16.msra.mxu0 %v3908_v50  ;;  %v75_v13 = vld [vmem:[%s5496_s1 + $0x1e8] sm:$0xff]  ;;  %v26_v15 = vld [vmem:[%s5496_s1 + $0x60] sm:$0xff]  ;;  %v3990_v19 = vpack.c.bf16 %v57_v6, %v56_v4  ;;  %v145_v24 = vld [vmem:[%s5497_s0 + $0x18] sm:$0xff] }
  0x13   :  { %3276 = vmatpush3.bf16.msra.mxu1 %v3912_v51  ;;  %3246 = vmatprep.subr.bf16.mxu0 %v3914_v52  ;;  %v27_v18 = vld [vmem:[%s5496_s1 + $0x68] sm:$0xff]  ;;  %v58_v22 = vld [vmem:[%s5496_s1 + $0x160] sm:$0xff]  ;;  %v4004_v27 = vpack.c.bf16 %v75_v13, %v74_v11  ;;  %v44_v29 = vld [vmem:[%s5496_s1 + $0xf0] sm:$0xff] }
  0x14   :  { %3278 = vmatprep.subr.bf16.mxu1 %v3926_v56  ;;  %v143_v23 = vld [vmem:[%s5497_s0 + $0x8] sm:$0xff]  ;;  %v45_v31 = vld [vmem:[%s5496_s1 + $0xf8] sm:$0xff]  ;;  %v76_v32 = vld [vmem:[%s5496_s1 + $0x1f0] sm:$0xff]  ;;  %375 = vmatprep.mubr.f32.mxu1 %v145_v24  ;;  %v4022_v35 = vpack.c.bf16 %v27_v18, %v26_v15 }
  0x15   :  { %v59_v28 = vld [vmem:[%s5496_s1 + $0x168] sm:$0xff]  ;;  %270 = vmatprep.mubr.f32.mxu0 %v143_v23  ;;  %v77_v33 = vld [vmem:[%s5496_s1 + $0x1f8] sm:$0xff]  ;;  %v4028_v37 = vpack.c.bf16 %v45_v31, %v44_v29  ;;  %v28_v40 = vld [vmem:[%s5496_s1 + $0x70] sm:$0xff] }
  0x16   :  { %3248 = vmatpush3.bf16.msra.mxu0 %v3944_v62  ;;  %v4026_v36 = vpack.c.bf16 %v59_v28, %v58_v22  ;;  %v29_v41 = vld [vmem:[%s5496_s1 + $0x78] sm:$0xff]  ;;  %v60_v42 = vld [vmem:[%s5496_s1 + $0x170] sm:$0xff]  ;;  %v4040_v44 = vpack.c.bf16 %v77_v33, %v76_v32  ;;  %v94_v46 = vld [vmem:[%s5496_s1 + $0x280] sm:$0xff] }
  0x17   :  { %3280 = vmatpush3.bf16.msra.mxu1 %v3948_v63  ;;  %3250 = vmatprep.subr.bf16.mxu0 %v3950_v0  ;;  %v61_v45 = vld [vmem:[%s5496_s1 + $0x178] sm:$0xff]  ;;  %v95_v47 = vld [vmem:[%s5496_s1 + $0x288] sm:$0xff]  ;;  %v126_v48 = vld [vmem:[%s5496_s1 + $0x380] sm:$0xff]  ;;  %v4058_v53 = vpack.c.bf16 %v29_v41, %v28_v40 }
  0x18   :  { %3282 = vmatprep.subr.bf16.mxu1 %v3962_v5  ;;  %v127_v49 = vld [vmem:[%s5496_s1 + $0x388] sm:$0xff]  ;;  %v4062_v54 = vpack.c.bf16 %v61_v45, %v60_v42  ;;  %v4064_v55 = vpack.c.bf16 %v95_v47, %v94_v46  ;;  %v78_v57 = vld [vmem:[%s5496_s1 + $0x200] sm:$0xff]  ;;  %v96_v1 = vld [vmem:[%s5496_s1 + $0x290] sm:$0xff] }
  0x19   :  { %v79_v58 = vld [vmem:[%s5496_s1 + $0x208] sm:$0xff]  ;;  %v4073_v59 = vpack.c.bf16 %v127_v49, %v126_v48  ;;  %v110_v60 = vld [vmem:[%s5496_s1 + $0x300] sm:$0xff]  ;;  %v97_v2 = vld [vmem:[%s5496_s1 + $0x298] sm:$0xff] }
  0x1a   :  { %3252 = vmatpush3.bf16.msra.mxu0 %v3980_v14  ;;  %v111_v61 = vld [vmem:[%s5496_s1 + $0x308] sm:$0xff]  ;;  %v142_v4 = vld [vmem:[%s5497_s0] sm:$0xff]  ;;  %v4091_v6 = vpack.c.bf16 %v79_v58, %v78_v57  ;;  %v128_v9 = vld [vmem:[%s5496_s1 + $0x390] sm:$0xff]  ;;  %v4116_v23 = vpack.c.bf16 %v97_v2, %v96_v1 }
  0x1b   :  { %3284 = vmatpush3.bf16.msra.mxu1 %v3990_v19  ;;  %3254 = vmatprep.subr.bf16.mxu0 %v3992_v20  ;;  %v129_v10 = vld [vmem:[%s5496_s1 + $0x398] sm:$0xff]  ;;  %v144_v11 = vld [vmem:[%s5497_s0 + $0x10] sm:$0xff]  ;;  %v4104_v13 = vpack.c.bf16 %v111_v61, %v110_v60  ;;  %v151_v22 = vld [vmem:[%s5497_s0 + $0x48] sm:$0xff] }
  0x1c   :  { %3286 = vmatprep.subr.bf16.mxu1 %v4004_v27  ;;  %v80_v15 = vld [vmem:[%s5496_s1 + $0x210] sm:$0xff]  ;;  %v81_v18 = vld [vmem:[%s5496_s1 + $0x218] sm:$0xff]  ;;  %v4127_v31 = vpack.c.bf16 %v129_v10, %v128_v9  ;;  %v98_v32 = vld [vmem:[%s5496_s1 + $0x2a0] sm:$0xff] }
  0x1d   :  { %v112_v24 = vld [vmem:[%s5496_s1 + $0x310] sm:$0xff]  ;;  %v113_v28 = vld [vmem:[%s5496_s1 + $0x318] sm:$0xff]  ;;  %v99_v33 = vld [vmem:[%s5496_s1 + $0x2a8] sm:$0xff]  ;;  %v4139_v41 = vpack.c.bf16 %v81_v18, %v80_v15 }
  0x1e   :  { %3256 = vmatpush3.bf16.msra.mxu0 %v4022_v35  ;;  %v153_v29 = vld [vmem:[%s5497_s0 + $0x58] sm:$0xff]  ;;  %v150_v40 = vld [vmem:[%s5497_s0 + $0x40] sm:$0xff]  ;;  %v131_v45 = vld [vmem:[%s5496_s1 + $0x3a8] sm:$0xff]  ;;  %v4151_v47 = vpack.c.bf16 %v113_v28, %v112_v24  ;;  %v4163_v58 = vpack.c.bf16 %v99_v33, %v98_v32 }
  0x1f   :  { %3288 = vmatpush3.bf16.msra.mxu1 %v4026_v36  ;;  %3258 = vmatprep.subr.bf16.mxu0 %v4028_v37  ;;  %v130_v42 = vld [vmem:[%s5496_s1 + $0x3a0] sm:$0xff]  ;;  %v152_v46 = vld [vmem:[%s5497_s0 + $0x50] sm:$0xff]  ;;  %v83_v49 = vld [vmem:[%s5496_s1 + $0x228] sm:$0xff] }
  0x20   :  { %3290 = vmatprep.subr.bf16.mxu1 %v4040_v44  ;;  %v82_v48 = vld [vmem:[%s5496_s1 + $0x220] sm:$0xff]  ;;  %v159_v57 = vld [vmem:[%s5497_s0 + $0x88] sm:$0xff]  ;;  %v161_v1 = vld [vmem:[%s5497_s0 + $0x98] sm:$0xff]  ;;  %v4175_v2 = vpack.c.bf16 %v131_v45, %v130_v42 }
  0x21   :  { %v114_v60 = vld [vmem:[%s5496_s1 + $0x320] sm:$0xff]  ;;  %v115_v61 = vld [vmem:[%s5496_s1 + $0x328] sm:$0xff]  ;;  %v101_v9 = vld [vmem:[%s5496_s1 + $0x2b8] sm:$0xff] }
  0x22   :  { %3260 = vmatpush3.bf16.msra.mxu0 %v4058_v53  ;;  %v158_v10 = vld [vmem:[%s5497_s0 + $0x80] sm:$0xff]  ;;  %v132_v15 = vld [vmem:[%s5496_s1 + $0x3b0] sm:$0xff]  ;;  %v133_v18 = vld [vmem:[%s5496_s1 + $0x3b8] sm:$0xff]  ;;  %v4199_v24 = vpack.c.bf16 %v115_v61, %v114_v60 }
  0x23   :  { %3292 = vmatpush3.bf16.msra.mxu1 %v4062_v54  ;;  %3294 = vmatprep.subr.bf16.mxu0 %v4064_v55  ;;  %v84_v28 = vld [vmem:[%s5496_s1 + $0x230] sm:$0xff]  ;;  %v167_v32 = vld [vmem:[%s5497_s0 + $0xc8] sm:$0xff]  ;;  %v117_v42 = vld [vmem:[%s5496_s1 + $0x338] sm:$0xff] }
  0x24   :  { %3326 = vmatprep.subr.bf16.mxu1 %v4073_v59  ;;  %v169_v45 = vld [vmem:[%s5497_s0 + $0xd8] sm:$0xff]  ;;  %v134_v61 = vld [vmem:[%s5496_s1 + $0x3c0] sm:$0xff] }
  0x25   :  { %271 = vmatmul.mubr.f32.vlgmr.msra.gmra.mrb[0].mxu0 %v142_v4  ;;  %v100_v4 = vld [vmem:[%s5496_s1 + $0x2b0] sm:$0xff] }
  0x26   :  { %376 = vmatmul.mubr.f32.vlgmr.msra.gmra.mrb[0].mxu1 %v144_v11  ;;  %3296 = vmatpush3.bf16.msra.mxu0 %v4091_v6  ;;  %v4187_v11 = vpack.c.bf16 %v83_v49, %v82_v48  ;;  %v4211_v33 = vpack.c.bf16 %v101_v9, %v100_v4  ;;  %v102_v48 = vld [vmem:[%s5496_s1 + $0x2c0] sm:$0xff]  ;;  %v103_v49 = vld [vmem:[%s5496_s1 + $0x2c8] sm:$0xff]  ;;  %v168_v4 = vld [vmem:[%s5497_s0 + $0xd0] sm:$0xff] }
  0x27   :  { %3328 = vmatpush3.bf16.msra.mxu1 %v4104_v13  ;;  %275 = vmatprep.mubr.f32.mxu0 %v151_v22  ;;  %v160_v22 = vld [vmem:[%s5497_s0 + $0x90] sm:$0xff] }
  0x28   :  { %380 = vmatprep.mubr.f32.mxu1 %v153_v29  ;;  %3298 = vmatprep.subr.bf16.mxu0 %v4116_v23  ;;  %v85_v29 = vld [vmem:[%s5496_s1 + $0x238] sm:$0xff] }
  0x29   :  { %276 = vmatmul.mubr.f32.gmra.mrb[2].mxu0 %v150_v40  ;;  %3330 = vmatprep.subr.bf16.mxu1 %v4127_v31  ;;  %v116_v40 = vld [vmem:[%s5496_s1 + $0x330] sm:$0xff]  ;;  %v4235_v60 = vpack.c.bf16 %v85_v29, %v84_v28  ;;  %v118_v28 = vld [vmem:[%s5496_s1 + $0x340] sm:$0xff]  ;;  %v119_v29 = vld [vmem:[%s5496_s1 + $0x348] sm:$0xff] }
  0x2a   :  { %381 = vmatmul.mubr.f32.gmra.mrb[2].mxu1 %v152_v46  ;;  %3300 = vmatpush3.bf16.msra.mxu0 %v4139_v41  ;;  %v4223_v46 = vpack.c.bf16 %v133_v18, %v132_v15  ;;  %v4247_v9 = vpack.c.bf16 %v117_v42, %v116_v40  ;;  %v87_v15 = vld [vmem:[%s5496_s1 + $0x248] sm:$0xff]  ;;  %v104_v42 = vld [vmem:[%s5496_s1 + $0x2d0] sm:$0xff] }
  0x2b   :  { %3332 = vmatpush3.bf16.msra.mxu1 %v4151_v47  ;;  %280 = vmatprep.mubr.f32.mxu0 %v159_v57  ;;  %v166_v57 = vld [vmem:[%s5497_s0 + $0xc0] sm:$0xff]  ;;  %5525 = vst [vmem:[#allocation2_spill] sm:$0xff] %v4235_v60  ;;  %v175_v18 = vld [vmem:[%s5497_s0 + $0x108] sm:$0xff] }
  0x2c   :  { %385 = vmatprep.mubr.f32.mxu1 %v161_v1  ;;  %3302 = vmatprep.subr.bf16.mxu0 %v4163_v58  ;;  %v135_v1 = vld [vmem:[%s5496_s1 + $0x3c8] sm:$0xff]  ;;  %5526 = vst [vmem:[#allocation3_spill] sm:$0xff] %v4247_v9 }
  0x2d   :  { %281 = vmatmul.mubr.f32.gmra.mrb[4].mxu0 %v158_v10  ;;  %3334 = vmatprep.subr.bf16.mxu1 %v4175_v2  ;;  %v86_v10 = vld [vmem:[%s5496_s1 + $0x240] sm:$0xff]  ;;  %v4271_v40 = vpack.c.bf16 %v135_v1, %v134_v61  ;;  %v137_v61 = vld [vmem:[%s5496_s1 + $0x3d8] sm:$0xff]  ;;  %v176_v1 = vld [vmem:[%s5497_s0 + $0x110] sm:$0xff] }
  0x2e   :  { %386 = vmatmul.mubr.f32.gmra.mrb[4].mxu1 %v160_v22  ;;  %3304 = vmatpush3.bf16.msra.mxu0 %v4187_v11  ;;  %v4259_v22 = vpack.c.bf16 %v103_v49, %v102_v48  ;;  %v174_v48 = vld [vmem:[%s5497_s0 + $0x100] sm:$0xff]  ;;  %v4283_v49 = vpack.c.bf16 %v87_v15, %v86_v10  ;;  %v88_v10 = vld [vmem:[%s5496_s1 + $0x250] sm:$0xff]  ;;  %v89_v15 = vld [vmem:[%s5496_s1 + $0x258] sm:$0xff] }
  0x2f   :  { %3336 = vmatpush3.bf16.msra.mxu1 %v4199_v24  ;;  %285 = vmatprep.mubr.f32.mxu0 %v167_v32  ;;  %v177_v32 = vld [vmem:[%s5497_s0 + $0x118] sm:$0xff]  ;;  %5528 = vst [vmem:[#allocation5_spill] sm:$0xff] %v4271_v40 }
  0x30   :  { %390 = vmatprep.mubr.f32.mxu1 %v169_v45  ;;  %3306 = vmatprep.subr.bf16.mxu0 %v4211_v33  ;;  %5527 = vst [vmem:[#allocation4_spill] sm:$0xff] %v4259_v22  ;;  %v105_v45 = vld [vmem:[%s5496_s1 + $0x2d8] sm:$0xff]  ;;  %5529 = vst [vmem:[#allocation6_spill] sm:$0xff] %v4283_v49 }
  0x31   :  { %286 = vmatmul.mubr.f32.gmra.mrb[6].mxu0 %v166_v57  ;;  %3338 = vmatprep.subr.bf16.mxu1 %v4223_v46  ;;  %v136_v57 = vld [vmem:[%s5496_s1 + $0x3d0] sm:$0xff] }
  0x32   :  { %391 = vmatmul.mubr.f32.gmra.mrb[6].mxu1 %v168_v4  ;;  %3308 = vmatpush3.bf16.msra.mxu0 %v4235_v60  ;;  %v4295_v4 = vpack.c.bf16 %v119_v29, %v118_v28  ;;  %v120_v28 = vld [vmem:[%s5496_s1 + $0x350] sm:$0xff]  ;;  %v121_v29 = vld [vmem:[%s5496_s1 + $0x358] sm:$0xff] }
  0x33   :  { %3340 = vmatpush3.bf16.msra.mxu1 %v4247_v9  ;;  %290 = vmatprep.mubr.f32.mxu0 %v175_v18  ;;  %v183_v18 = vld [vmem:[%s5497_s0 + $0x148] sm:$0xff]  ;;  %v4307_v9 = vpack.c.bf16 %v105_v45, %v104_v42  ;;  %v106_v42 = vld [vmem:[%s5496_s1 + $0x2e0] sm:$0xff] }
  0x34   :  { %5530 = vst [vmem:[#allocation7_spill] sm:$0xff] %v4295_v4  ;;  %395 = vmatprep.mubr.f32.mxu1 %v177_v32  ;;  %3310 = vmatprep.subr.bf16.mxu0 %v4259_v22  ;;  %v185_v32 = vld [vmem:[%s5497_s0 + $0x158] sm:$0xff]  ;;  %v4319_v22 = vpack.c.bf16 %v137_v61, %v136_v57  ;;  %v107_v45 = vld [vmem:[%s5496_s1 + $0x2e8] sm:$0xff]  ;;  %v138_v57 = vld [vmem:[%s5496_s1 + $0x3e0] sm:$0xff] }
  0x35   :  { %5531 = vst [vmem:[#allocation8_spill] sm:$0xff] %v4307_v9  ;;  %291 = vmatmul.mubr.f32.gmra.mrb[8].mxu0 %v174_v48  ;;  %3342 = vmatprep.subr.bf16.mxu1 %v4271_v40  ;;  %v182_v48 = vld [vmem:[%s5497_s0 + $0x140] sm:$0xff]  ;;  %v4331_v40 = vpack.c.bf16 %v89_v15, %v88_v10  ;;  %v139_v61 = vld [vmem:[%s5496_s1 + $0x3e8] sm:$0xff] }
  0x36   :  { %5532 = vst [vmem:[#allocation9_spill] sm:$0xff] %v4319_v22  ;;  %396 = vmatmul.mubr.f32.gmra.mrb[8].mxu1 %v176_v1  ;;  %3312 = vmatpush3.bf16.msra.mxu0 %v4283_v49  ;;  %v184_v1 = vld [vmem:[%s5497_s0 + $0x150] sm:$0xff]  ;;  %v4343_v49 = vpack.c.bf16 %v121_v29, %v120_v28  ;;  %v90_v10 = vld [vmem:[%s5496_s1 + $0x260] sm:$0xff]  ;;  %v91_v15 = vld [vmem:[%s5496_s1 + $0x268] sm:$0xff] }
  0x37   :  { %5533 = vst [vmem:[#allocation10_spill] sm:$0xff] %v4331_v40  ;;  %3344 = vmatpush3.bf16.msra.mxu1 %v4295_v4  ;;  %295 = vmatprep.mubr.f32.mxu0 %v183_v18  ;;  %v191_v18 = vld [vmem:[%s5497_s0 + $0x188] sm:$0xff]  ;;  %v4355_v4 = vpack.c.bf16 %v107_v45, %v106_v42  ;;  %v122_v28 = vld [vmem:[%s5496_s1 + $0x360] sm:$0xff]  ;;  %v108_v42 = vld [vmem:[%s5496_s1 + $0x2f0] sm:$0xff] }
  0x38   :  { %5534 = vst [vmem:[#allocation11_spill] sm:$0xff] %v4343_v49  ;;  %400 = vmatprep.mubr.f32.mxu1 %v185_v32  ;;  %3314 = vmatprep.subr.bf16.mxu0 %v4307_v9  ;;  %v123_v29 = vld [vmem:[%s5496_s1 + $0x368] sm:$0xff]  ;;  %v193_v32 = vld [vmem:[%s5497_s0 + $0x198] sm:$0xff]  ;;  %v4367_v9 = vpack.c.bf16 %v139_v61, %v138_v57  ;;  %v140_v57 = vld [vmem:[%s5496_s1 + $0x3f0] sm:$0xff] }
  0x39   :  { %5535 = vst [vmem:[#allocation12_spill] sm:$0xff] %v4355_v4  ;;  %296 = vmatmul.mubr.f32.gmra.mrb[10].mxu0 %v182_v48  ;;  %3346 = vmatprep.subr.bf16.mxu1 %v4319_v22  ;;  %v109_v45 = vld [vmem:[%s5496_s1 + $0x2f8] sm:$0xff]  ;;  %v190_v48 = vld [vmem:[%s5497_s0 + $0x180] sm:$0xff]  ;;  %v4379_v22 = vpack.c.bf16 %v91_v15, %v90_v10  ;;  %v92_v10 = vld [vmem:[%s5496_s1 + $0x270] sm:$0xff] }
  0x3a   :  { %5536 = vst [vmem:[#allocation13_spill] sm:$0xff] %v4367_v9  ;;  %401 = vmatmul.mubr.f32.gmra.mrb[10].mxu1 %v184_v1  ;;  %3316 = vmatpush3.bf16.msra.mxu0 %v4331_v40  ;;  %v141_v61 = vld [vmem:[%s5496_s1 + $0x3f8] sm:$0xff]  ;;  %v192_v1 = vld [vmem:[%s5497_s0 + $0x190] sm:$0xff]  ;;  %v4391_v40 = vpack.c.bf16 %v123_v29, %v122_v28 }
  0x3b   :  { %3348 = vmatpush3.bf16.msra.mxu1 %v4343_v49  ;;  %300 = vmatprep.mubr.f32.mxu0 %v191_v18  ;;  %v93_v15 = vld [vmem:[%s5496_s1 + $0x278] sm:$0xff]  ;;  %v199_v18 = vld [vmem:[%s5497_s0 + $0x1c8] sm:$0xff]  ;;  %v4403_v49 = vpack.c.bf16 %v109_v45, %v108_v42  ;;  %v124_v28 = vld [vmem:[%s5496_s1 + $0x370] sm:$0xff] }
  0x3c   :  { %405 = vmatprep.mubr.f32.mxu1 %v193_v32  ;;  %3318 = vmatprep.subr.bf16.mxu0 %v4355_v4  ;;  %v125_v29 = vld [vmem:[%s5496_s1 + $0x378] sm:$0xff]  ;;  %v4415_v4 = vpack.c.bf16 %v141_v61, %v140_v57  ;;  %v198_v42 = vld [vmem:[%s5497_s0 + $0x1c0] sm:$0xff]  ;;  %v4421_v45 = vpack.c.bf16 %v93_v15, %v92_v10  ;;  %v147_v57 = vld [vmem:[%s5497_s0 + $0x28] sm:$0xff] }
  0x3d   :  { %301 = vmatmul.mubr.f32.gmra.mrb[12].mxu0 %v190_v48  ;;  %3350 = vmatprep.subr.bf16.mxu1 %v4367_v9  ;;  %v201_v32 = vld [vmem:[%s5497_s0 + $0x1d8] sm:$0xff]  ;;  %v200_v48 = vld [vmem:[%s5497_s0 + $0x1d0] sm:$0xff]  ;;  %v4427_v9 = vpack.c.bf16 %v125_v29, %v124_v28  ;;  %v155_v15 = vld [vmem:[%s5497_s0 + $0x68] sm:$0xff] }
  0x3e   :  { %406 = vmatmul.mubr.f32.gmra.mrb[12].mxu1 %v192_v1  ;;  %3320 = vmatpush3.bf16.msra.mxu0 %v4379_v22  ;;  %v149_v61 = vld [vmem:[%s5497_s0 + $0x38] sm:$0xff]  ;;  %v146_v1 = vld [vmem:[%s5497_s0 + $0x20] sm:$0xff]  ;;  %v148_v10 = vld [vmem:[%s5497_s0 + $0x30] sm:$0xff] }
  0x3f   :  { %3352 = vmatpush3.bf16.msra.mxu1 %v4391_v40  ;;  %305 = vmatprep.mubr.f32.mxu0 %v199_v18  ;;  %v157_v18 = vld [vmem:[%s5497_s0 + $0x78] sm:$0xff]  ;;  %v154_v28 = vld [vmem:[%s5497_s0 + $0x60] sm:$0xff]  ;;  %v156_v29 = vld [vmem:[%s5497_s0 + $0x70] sm:$0xff] }
  0x40   :  { %410 = vmatprep.mubr.f32.mxu1 %v201_v32  ;;  %3322 = vmatprep.subr.bf16.mxu0 %v4403_v49  ;;  %v163_v32 = vld [vmem:[%s5497_s0 + $0xa8] sm:$0xff] }
  0x41   :  { %306 = vmatmul.mubr.f32.gmra.mrb[14].mxu0 %v198_v42  ;;  %3354 = vmatprep.subr.bf16.mxu1 %v4415_v4  ;;  %v165_v42 = vld [vmem:[%s5497_s0 + $0xb8] sm:$0xff] }
  0x42   :  { %411 = vmatmul.mubr.f32.gmra.mrb[14].mxu1 %v200_v48  ;;  %3324 = vmatpush3.bf16.msra.mxu0 %v4421_v45  ;;  %v162_v48 = vld [vmem:[%s5497_s0 + $0xa0] sm:$0xff] }
  0x43   :  { %3356 = vmatpush3.bf16.msra.mxu1 %v4427_v9  ;;  %480 = vmatprep.mubr.f32.mxu0 %v147_v57  ;;  %v164_v57 = vld [vmem:[%s5497_s0 + $0xb0] sm:$0xff] }
  0x44   :  { %585 = vmatprep.mubr.f32.mxu1 %v149_v61  ;;  %3358 = vmatprep.subr.bf16.mxu0 %v3770_v3  ;;  %v171_v61 = vld [vmem:[%s5497_s0 + $0xe8] sm:$0xff] }
  0x45   :  { %481 = vmatmul.mubr.f32.vlgmr.msra.gmra.mrb[16].mxu0 %v146_v1  ;;  %3390 = vmatprep.subr.bf16.mxu1 %v3781_v7  ;;  %v173_v1 = vld [vmem:[%s5497_s0 + $0xf8] sm:$0xff] }
  0x46   :  { %586 = vmatmul.mubr.f32.vlgmr.msra.gmra.mrb[16].mxu1 %v148_v10  ;;  %3360 = vmatpush3.bf16.msra.mxu0 %v3783_v8  ;;  %v170_v10 = vld [vmem:[%s5497_s0 + $0xe0] sm:$0xff] }
  0x47   :  { %3392 = vmatpush3.bf16.msra.mxu1 %v3795_v12  ;;  %485 = vmatprep.mubr.f32.mxu0 %v155_v15  ;;  %v172_v15 = vld [vmem:[%s5497_s0 + $0xf0] sm:$0xff] }
  0x48   :  { %590 = vmatprep.mubr.f32.mxu1 %v157_v18  ;;  %3362 = vmatprep.subr.bf16.mxu0 %v3808_v16  ;;  %v179_v18 = vld [vmem:[%s5497_s0 + $0x128] sm:$0xff] }
  0x49   :  { %486 = vmatmul.mubr.f32.gmra.mrb[18].mxu0 %v154_v28  ;;  %3394 = vmatprep.subr.bf16.mxu1 %v3810_v17  ;;  %v181_v28 = vld [vmem:[%s5497_s0 + $0x138] sm:$0xff] }
  0x4a   :  { %591 = vmatmul.mubr.f32.gmra.mrb[18].mxu1 %v156_v29  ;;  %3364 = vmatpush3.bf16.msra.mxu0 %v3822_v21  ;;  %v178_v29 = vld [vmem:[%s5497_s0 + $0x120] sm:$0xff] }
  0x4b   :  { %3396 = vmatpush3.bf16.msra.mxu1 %v3835_v25  ;;  %490 = vmatprep.mubr.f32.mxu0 %v163_v32  ;;  %v180_v32 = vld [vmem:[%s5497_s0 + $0x130] sm:$0xff] }
  0x4c   :  { %595 = vmatprep.mubr.f32.mxu1 %v165_v42  ;;  %3366 = vmatprep.subr.bf16.mxu0 %v3837_v26  ;;  %v187_v42 = vld [vmem:[%s5497_s0 + $0x168] sm:$0xff] }
  0x4d   :  { %491 = vmatmul.mubr.f32.gmra.mrb[20].mxu0 %v162_v48  ;;  %3398 = vmatprep.subr.bf16.mxu1 %v3848_v30  ;;  %v189_v48 = vld [vmem:[%s5497_s0 + $0x178] sm:$0xff] }
  0x4e   :  { %596 = vmatmul.mubr.f32.gmra.mrb[20].mxu1 %v164_v57  ;;  %3368 = vmatpush3.bf16.msra.mxu0 %v3860_v34  ;;  %v186_v57 = vld [vmem:[%s5497_s0 + $0x160] sm:$0xff] }
  0x4f   :  { %3400 = vmatpush3.bf16.msra.mxu1 %v3873_v38  ;;  %495 = vmatprep.mubr.f32.mxu0 %v171_v61  ;;  %v188_v61 = vld [vmem:[%s5497_s0 + $0x170] sm:$0xff] }
  0x50   :  { %600 = vmatprep.mubr.f32.mxu1 %v173_v1  ;;  %3370 = vmatprep.subr.bf16.mxu0 %v3875_v39  ;;  %v195_v1 = vld [vmem:[%s5497_s0 + $0x1a8] sm:$0xff] }
  0x51   :  { %496 = vmatmul.mubr.f32.gmra.mrb[22].mxu0 %v170_v10  ;;  %3402 = vmatprep.subr.bf16.mxu1 %v3887_v43  ;;  %v197_v10 = vld [vmem:[%s5497_s0 + $0x1b8] sm:$0xff] }
  0x52   :  { %601 = vmatmul.mubr.f32.gmra.mrb[22].mxu1 %v172_v15  ;;  %3372 = vmatpush3.bf16.msra.mxu0 %v3908_v50  ;;  %v194_v15 = vld [vmem:[%s5497_s0 + $0x1a0] sm:$0xff] }
  0x53   :  { %3404 = vmatpush3.bf16.msra.mxu1 %v3912_v51  ;;  %500 = vmatprep.mubr.f32.mxu0 %v179_v18  ;;  %v196_v18 = vld [vmem:[%s5497_s0 + $0x1b0] sm:$0xff] }
  0x54   :  { %605 = vmatprep.mubr.f32.mxu1 %v181_v28  ;;  %3374 = vmatprep.subr.bf16.mxu0 %v3914_v52  ;;  %v203_v28 = vld [vmem:[%s5497_s0 + $0x1e8] sm:$0xff] }
  0x55   :  { %501 = vmatmul.mubr.f32.gmra.mrb[24].mxu0 %v178_v29  ;;  %3406 = vmatprep.subr.bf16.mxu1 %v3926_v56  ;;  %v205_v29 = vld [vmem:[%s5497_s0 + $0x1f8] sm:$0xff] }
  0x56   :  { %606 = vmatmul.mubr.f32.gmra.mrb[24].mxu1 %v180_v32  ;;  %3376 = vmatpush3.bf16.msra.mxu0 %v3944_v62  ;;  %v202_v32 = vld [vmem:[%s5497_s0 + $0x1e0] sm:$0xff] }
  0x57   :  { %3408 = vmatpush3.bf16.msra.mxu1 %v3948_v63  ;;  %505 = vmatprep.mubr.f32.mxu0 %v187_v42  ;;  %v204_v42 = vld [vmem:[%s5497_s0 + $0x1f0] sm:$0xff] }
  0x58   :  { %610 = vmatprep.mubr.f32.mxu1 %v189_v48  ;;  %3378 = vmatprep.subr.bf16.mxu0 %v3950_v0  ;;  %v2141_v48 = vld [vmem:[%s5497_s0 + $0x208] sm:$0xff] }
  0x59   :  { %506 = vmatmul.mubr.f32.gmra.mrb[26].mxu0 %v186_v57  ;;  %3410 = vmatprep.subr.bf16.mxu1 %v3962_v5  ;;  %v2143_v57 = vld [vmem:[%s5497_s0 + $0x218] sm:$0xff] }
  0x5a   :  { %611 = vmatmul.mubr.f32.gmra.mrb[26].mxu1 %v188_v61  ;;  %3380 = vmatpush3.bf16.msra.mxu0 %v3980_v14  ;;  %v2140_v61 = vld [vmem:[%s5497_s0 + $0x200] sm:$0xff] }
  0x5b   :  { %3412 = vmatpush3.bf16.msra.mxu1 %v3990_v19  ;;  %510 = vmatprep.mubr.f32.mxu0 %v195_v1  ;;  %v2142_v1 = vld [vmem:[%s5497_s0 + $0x210] sm:$0xff] }
  0x5c   :  { %615 = vmatprep.mubr.f32.mxu1 %v197_v10  ;;  %3382 = vmatprep.subr.bf16.mxu0 %v3992_v20  ;;  %v2149_v10 = vld [vmem:[%s5497_s0 + $0x248] sm:$0xff] }
  0x5d   :  { %511 = vmatmul.mubr.f32.gmra.mrb[28].mxu0 %v194_v15  ;;  %3414 = vmatprep.subr.bf16.mxu1 %v4004_v27  ;;  %v2151_v15 = vld [vmem:[%s5497_s0 + $0x258] sm:$0xff] }
  0x5e   :  { %616 = vmatmul.mubr.f32.gmra.mrb[28].mxu1 %v196_v18  ;;  %3384 = vmatpush3.bf16.msra.mxu0 %v4022_v35  ;;  %v2148_v18 = vld [vmem:[%s5497_s0 + $0x240] sm:$0xff] }
  0x5f   :  { %3416 = vmatpush3.bf16.msra.mxu1 %v4026_v36  ;;  %515 = vmatprep.mubr.f32.mxu0 %v203_v28  ;;  %v2150_v28 = vld [vmem:[%s5497_s0 + $0x250] sm:$0xff] }
  0x60   :  { %620 = vmatprep.mubr.f32.mxu1 %v205_v29  ;;  %3386 = vmatprep.subr.bf16.mxu0 %v4028_v37  ;;  %v2157_v29 = vld [vmem:[%s5497_s0 + $0x288] sm:$0xff] }
  0x61   :  { %516 = vmatmul.mubr.f32.gmra.mrb[30].mxu0 %v202_v32  ;;  %3418 = vmatprep.subr.bf16.mxu1 %v4040_v44  ;;  %v2159_v32 = vld [vmem:[%s5497_s0 + $0x298] sm:$0xff] }
  0x62   :  { %621 = vmatmul.mubr.f32.gmra.mrb[30].mxu1 %v204_v42  ;;  %3388 = vmatpush3.bf16.msra.mxu0 %v4058_v53  ;;  %v2156_v42 = vld [vmem:[%s5497_s0 + $0x280] sm:$0xff] }
  0x63   :  { %3420 = vmatpush3.bf16.msra.mxu1 %v4062_v54  ;;  %755 = vmatprep.mubr.f32.mxu0 %v2141_v48  ;;  %v2158_v48 = vld [vmem:[%s5497_s0 + $0x290] sm:$0xff] }
  0x64   :  { %860 = vmatprep.mubr.f32.mxu1 %v2143_v57  ;;  %3422 = vmatprep.subr.bf16.mxu0 %v4064_v55  ;;  %v2165_v57 = vld [vmem:[%s5497_s0 + $0x2c8] sm:$0xff] }
  0x65   :  { %756 = vmatmul.mubr.f32.vlgmr.msra.gmra.mrb[32].mxu0 %v2140_v61  ;;  %3454 = vmatprep.subr.bf16.mxu1 %v4073_v59  ;;  %v2167_v61 = vld [vmem:[%s5497_s0 + $0x2d8] sm:$0xff] }
  0x66   :  { %861 = vmatmul.mubr.f32.vlgmr.msra.gmra.mrb[32].mxu1 %v2142_v1  ;;  %3424 = vmatpush3.bf16.msra.mxu0 %v4091_v6  ;;  %v2164_v1 = vld [vmem:[%s5497_s0 + $0x2c0] sm:$0xff] }
  0x67   :  { %3456 = vmatpush3.bf16.msra.mxu1 %v4104_v13  ;;  %760 = vmatprep.mubr.f32.mxu0 %v2149_v10  ;;  %v2166_v10 = vld [vmem:[%s5497_s0 + $0x2d0] sm:$0xff] }
  0x68   :  { %865 = vmatprep.mubr.f32.mxu1 %v2151_v15  ;;  %3426 = vmatprep.subr.bf16.mxu0 %v4116_v23  ;;  %v2173_v15 = vld [vmem:[%s5497_s0 + $0x308] sm:$0xff] }
  0x69   :  { %761 = vmatmul.mubr.f32.gmra.mrb[34].mxu0 %v2148_v18  ;;  %3458 = vmatprep.subr.bf16.mxu1 %v4127_v31  ;;  %v2175_v18 = vld [vmem:[%s5497_s0 + $0x318] sm:$0xff] }
  0x6a   :  { %866 = vmatmul.mubr.f32.gmra.mrb[34].mxu1 %v2150_v28  ;;  %3428 = vmatpush3.bf16.msra.mxu0 %v4139_v41  ;;  %v2172_v28 = vld [vmem:[%s5497_s0 + $0x300] sm:$0xff] }
  0x6b   :  { %3460 = vmatpush3.bf16.msra.mxu1 %v4151_v47  ;;  %765 = vmatprep.mubr.f32.mxu0 %v2157_v29  ;;  %v5537_v29 = vld [vmem:[#allocation3_spill] sm:$0xff] }
  0x6c   :  { %870 = vmatprep.mubr.f32.mxu1 %v2159_v32  ;;  %3430 = vmatprep.subr.bf16.mxu0 %v4163_v58  ;;  %v2174_v32 = vld [vmem:[%s5497_s0 + $0x310] sm:$0xff] }
  0x6d   :  { %766 = vmatmul.mubr.f32.gmra.mrb[36].mxu0 %v2156_v42  ;;  %3462 = vmatprep.subr.bf16.mxu1 %v4175_v2  ;;  %v5538_v42 = vld [vmem:[#allocation4_spill] sm:$0xff] }
  0x6e   :  { %871 = vmatmul.mubr.f32.gmra.mrb[36].mxu1 %v2158_v48  ;;  %3432 = vmatpush3.bf16.msra.mxu0 %v4187_v11  ;;  %v2181_v48 = vld [vmem:[%s5497_s0 + $0x348] sm:$0xff] }
  0x6f   :  { %3464 = vmatpush3.bf16.msra.mxu1 %v4199_v24  ;;  %770 = vmatprep.mubr.f32.mxu0 %v2165_v57  ;;  %v5539_v57 = vld [vmem:[#allocation5_spill] sm:$0xff] }
  0x70   :  { %875 = vmatprep.mubr.f32.mxu1 %v2167_v61  ;;  %3434 = vmatprep.subr.bf16.mxu0 %v4211_v33  ;;  %v2183_v61 = vld [vmem:[%s5497_s0 + $0x358] sm:$0xff] }
  0x71   :  { %771 = vmatmul.mubr.f32.gmra.mrb[38].mxu0 %v2164_v1  ;;  %3466 = vmatprep.subr.bf16.mxu1 %v4223_v46  ;;  %v5540_v1 = vld [vmem:[#allocation6_spill] sm:$0xff] }
  0x72   :  { %876 = vmatmul.mubr.f32.gmra.mrb[38].mxu1 %v2166_v10  ;;  %3436 = vmatpush3.bf16.msra.mxu0 %v4235_v60  ;;  %v2180_v10 = vld [vmem:[%s5497_s0 + $0x340] sm:$0xff] }
  0x73   :  { %3468 = vmatpush3.bf16.msra.mxu1 %v5537_v29  ;;  %775 = vmatprep.mubr.f32.mxu0 %v2173_v15  ;;  %v5541_v15 = vld [vmem:[#allocation7_spill] sm:$0xff] }
  0x74   :  { %880 = vmatprep.mubr.f32.mxu1 %v2175_v18  ;;  %3438 = vmatprep.subr.bf16.mxu0 %v5538_v42  ;;  %v2182_v18 = vld [vmem:[%s5497_s0 + $0x350] sm:$0xff] }
  0x75   :  { %776 = vmatmul.mubr.f32.gmra.mrb[40].mxu0 %v2172_v28  ;;  %3470 = vmatprep.subr.bf16.mxu1 %v5539_v57  ;;  %v5542_v28 = vld [vmem:[#allocation8_spill] sm:$0xff]  ;;  %v2191_v57 = vld [vmem:[%s5497_s0 + $0x398] sm:$0xff] }
  0x76   :  { %881 = vmatmul.mubr.f32.gmra.mrb[40].mxu1 %v2174_v32  ;;  %3440 = vmatpush3.bf16.msra.mxu0 %v5540_v1  ;;  %v2189_v32 = vld [vmem:[%s5497_s0 + $0x388] sm:$0xff]  ;;  %v5543_v1 = vld [vmem:[#allocation9_spill] sm:$0xff] }
  0x77   :  { %3472 = vmatpush3.bf16.msra.mxu1 %v5541_v15  ;;  %780 = vmatprep.mubr.f32.mxu0 %v2181_v48  ;;  %v5544_v48 = vld [vmem:[#allocation10_spill] sm:$0xff]  ;;  %v5545_v15 = vld [vmem:[#allocation11_spill] sm:$0xff] }
  0x78   :  { %885 = vmatprep.mubr.f32.mxu1 %v2183_v61  ;;  %3442 = vmatprep.subr.bf16.mxu0 %v5542_v28  ;;  %v2188_v61 = vld [vmem:[%s5497_s0 + $0x380] sm:$0xff]  ;;  %v2199_v28 = vld [vmem:[%s5497_s0 + $0x3d8] sm:$0xff] }
  0x79   :  { %781 = vmatmul.mubr.f32.gmra.mrb[42].mxu0 %v2180_v10  ;;  %3474 = vmatprep.subr.bf16.mxu1 %v5543_v1  ;;  %v2190_v10 = vld [vmem:[%s5497_s0 + $0x390] sm:$0xff] }
  0x7a   :  { %886 = vmatmul.mubr.f32.gmra.mrb[42].mxu1 %v2182_v18  ;;  %3444 = vmatpush3.bf16.msra.mxu0 %v5544_v48  ;;  %v5546_v1 = vld [vmem:[#allocation12_spill] sm:$0xff]  ;;  %v2197_v18 = vld [vmem:[%s5497_s0 + $0x3c8] sm:$0xff]  ;;  %v5547_v48 = vld [vmem:[#allocation13_spill] sm:$0xff] }
  0x7b   :  { %3476 = vmatpush3.bf16.msra.mxu1 %v5545_v15  ;;  %785 = vmatprep.mubr.f32.mxu0 %v2189_v32  ;;  %v2198_v32 = vld [vmem:[%s5497_s0 + $0x3d0] sm:$0xff] }
  0x7c   :  { %890 = vmatprep.mubr.f32.mxu1 %v2191_v57  ;;  %3446 = vmatprep.subr.bf16.mxu0 %v5546_v1  ;;  %v2196_v57 = vld [vmem:[%s5497_s0 + $0x3c0] sm:$0xff] }
  0x7d   :  { %786 = vmatmul.mubr.f32.gmra.mrb[44].mxu0 %v2188_v61  ;;  %3478 = vmatprep.subr.bf16.mxu1 %v5547_v48  ;;  %v2145_v61 = vld [vmem:[%s5497_s0 + $0x228] sm:$0xff] }
  0x7e   :  { %891 = vmatmul.mubr.f32.gmra.mrb[44].mxu1 %v2190_v10  ;;  %3448 = vmatpush3.bf16.msra.mxu0 %v4379_v22  ;;  %v2147_v10 = vld [vmem:[%s5497_s0 + $0x238] sm:$0xff] }
  0x7f   :  { %3480 = vmatpush3.bf16.msra.mxu1 %v4391_v40  ;;  %790 = vmatprep.mubr.f32.mxu0 %v2197_v18  ;;  %v2146_v18 = vld [vmem:[%s5497_s0 + $0x230] sm:$0xff] }
  0x80   :  { %895 = vmatprep.mubr.f32.mxu1 %v2199_v28  ;;  %3450 = vmatprep.subr.bf16.mxu0 %v4403_v49  ;;  %v2144_v28 = vld [vmem:[%s5497_s0 + $0x220] sm:$0xff] }
  0x81   :  { %791 = vmatmul.mubr.f32.gmra.mrb[46].mxu0 %v2196_v57  ;;  %3482 = vmatprep.subr.bf16.mxu1 %v4415_v4  ;;  %v2153_v57 = vld [vmem:[%s5497_s0 + $0x268] sm:$0xff] }
  0x82   :  { %896 = vmatmul.mubr.f32.gmra.mrb[46].mxu1 %v2198_v32  ;;  %3452 = vmatpush3.bf16.msra.mxu0 %v4421_v45  ;;  %v2155_v32 = vld [vmem:[%s5497_s0 + $0x278] sm:$0xff] }
  0x83   :  { %3484 = vmatpush3.bf16.msra.mxu1 %v4427_v9  ;;  %965 = vmatprep.mubr.f32.mxu0 %v2145_v61  ;;  %v2152_v61 = vld [vmem:[%s5497_s0 + $0x260] sm:$0xff] }
  0x84   :  { %1070 = vmatprep.mubr.f32.mxu1 %v2147_v10  ;;  %3486 = vmatprep.subr.bf16.mxu0 %v3770_v3  ;;  %v2154_v10 = vld [vmem:[%s5497_s0 + $0x270] sm:$0xff] }
  0x85   :  { %966 = vmatmul.mubr.f32.vlgmr.msra.gmra.mrb[48].mxu0 %v2144_v28  ;;  %3518 = vmatprep.subr.bf16.mxu1 %v3781_v7  ;;  %v2161_v28 = vld [vmem:[%s5497_s0 + $0x2a8] sm:$0xff] }
  0x86   :  { %1071 = vmatmul.mubr.f32.vlgmr.msra.gmra.mrb[48].mxu1 %v2146_v18  ;;  %3488 = vmatpush3.bf16.msra.mxu0 %v3783_v8  ;;  %v2163_v18 = vld [vmem:[%s5497_s0 + $0x2b8] sm:$0xff] }
  0x87   :  { %3520 = vmatpush3.bf16.msra.mxu1 %v3795_v12  ;;  %970 = vmatprep.mubr.f32.mxu0 %v2153_v57  ;;  %v2160_v57 = vld [vmem:[%s5497_s0 + $0x2a0] sm:$0xff] }
  0x88   :  { %1075 = vmatprep.mubr.f32.mxu1 %v2155_v32  ;;  %3490 = vmatprep.subr.bf16.mxu0 %v3808_v16  ;;  %v2162_v32 = vld [vmem:[%s5497_s0 + $0x2b0] sm:$0xff] }
  0x89   :  { %971 = vmatmul.mubr.f32.gmra.mrb[50].mxu0 %v2152_v61  ;;  %3522 = vmatprep.subr.bf16.mxu1 %v3810_v17  ;;  %v2169_v61 = vld [vmem:[%s5497_s0 + $0x2e8] sm:$0xff] }
  0x8a   :  { %1076 = vmatmul.mubr.f32.gmra.mrb[50].mxu1 %v2154_v10  ;;  %3492 = vmatpush3.bf16.msra.mxu0 %v3822_v21  ;;  %v2171_v10 = vld [vmem:[%s5497_s0 + $0x2f8] sm:$0xff] }
  0x8b   :  { %3524 = vmatpush3.bf16.msra.mxu1 %v3835_v25  ;;  %975 = vmatprep.mubr.f32.mxu0 %v2161_v28  ;;  %v2168_v28 = vld [vmem:[%s5497_s0 + $0x2e0] sm:$0xff] }
  0x8c   :  { %1080 = vmatprep.mubr.f32.mxu1 %v2163_v18  ;;  %3494 = vmatprep.subr.bf16.mxu0 %v3837_v26  ;;  %v2170_v18 = vld [vmem:[%s5497_s0 + $0x2f0] sm:$0xff] }
  0x8d   :  { %976 = vmatmul.mubr.f32.gmra.mrb[52].mxu0 %v2160_v57  ;;  %3526 = vmatprep.subr.bf16.mxu1 %v3848_v30  ;;  %v2177_v57 = vld [vmem:[%s5497_s0 + $0x328] sm:$0xff] }
  0x8e   :  { %1081 = vmatmul.mubr.f32.gmra.mrb[52].mxu1 %v2162_v32  ;;  %3496 = vmatpush3.bf16.msra.mxu0 %v3860_v34  ;;  %v2179_v32 = vld [vmem:[%s5497_s0 + $0x338] sm:$0xff] }
  0x8f   :  { %3528 = vmatpush3.bf16.msra.mxu1 %v3873_v38  ;;  %980 = vmatprep.mubr.f32.mxu0 %v2169_v61  ;;  %v2176_v61 = vld [vmem:[%s5497_s0 + $0x320] sm:$0xff] }
  0x90   :  { %1085 = vmatprep.mubr.f32.mxu1 %v2171_v10  ;;  %3498 = vmatprep.subr.bf16.mxu0 %v3875_v39  ;;  %v2178_v10 = vld [vmem:[%s5497_s0 + $0x330] sm:$0xff] }
  0x91   :  { %981 = vmatmul.mubr.f32.gmra.mrb[54].mxu0 %v2168_v28  ;;  %3530 = vmatprep.subr.bf16.mxu1 %v3887_v43  ;;  %v2185_v28 = vld [vmem:[%s5497_s0 + $0x368] sm:$0xff] }
  0x92   :  { %1086 = vmatmul.mubr.f32.gmra.mrb[54].mxu1 %v2170_v18  ;;  %3500 = vmatpush3.bf16.msra.mxu0 %v3908_v50  ;;  %v2187_v18 = vld [vmem:[%s5497_s0 + $0x378] sm:$0xff] }
  0x93   :  { %3532 = vmatpush3.bf16.msra.mxu1 %v3912_v51  ;;  %985 = vmatprep.mubr.f32.mxu0 %v2177_v57  ;;  %v2184_v57 = vld [vmem:[%s5497_s0 + $0x360] sm:$0xff] }
  0x94   :  { %1090 = vmatprep.mubr.f32.mxu1 %v2179_v32  ;;  %3502 = vmatprep.subr.bf16.mxu0 %v3914_v52  ;;  %v2186_v32 = vld [vmem:[%s5497_s0 + $0x370] sm:$0xff] }
  0x95   :  { %986 = vmatmul.mubr.f32.gmra.mrb[56].mxu0 %v2176_v61  ;;  %3534 = vmatprep.subr.bf16.mxu1 %v3926_v56  ;;  %v2193_v61 = vld [vmem:[%s5497_s0 + $0x3a8] sm:$0xff] }
  0x96   :  { %1091 = vmatmul.mubr.f32.gmra.mrb[56].mxu1 %v2178_v10  ;;  %3504 = vmatpush3.bf16.msra.mxu0 %v3944_v62  ;;  %v2195_v10 = vld [vmem:[%s5497_s0 + $0x3b8] sm:$0xff] }
  0x97   :  { %3536 = vmatpush3.bf16.msra.mxu1 %v3948_v63  ;;  %990 = vmatprep.mubr.f32.mxu0 %v2185_v28  ;;  %v2192_v28 = vld [vmem:[%s5497_s0 + $0x3a0] sm:$0xff] }
  0x98   :  { %1095 = vmatprep.mubr.f32.mxu1 %v2187_v18  ;;  %3506 = vmatprep.subr.bf16.mxu0 %v3950_v0  ;;  %v2194_v18 = vld [vmem:[%s5497_s0 + $0x3b0] sm:$0xff] }
  0x99   :  { %991 = vmatmul.mubr.f32.gmra.mrb[58].mxu0 %v2184_v57  ;;  %3538 = vmatprep.subr.bf16.mxu1 %v3962_v5  ;;  %v2201_v57 = vld [vmem:[%s5497_s0 + $0x3e8] sm:$0xff] }
  0x9a   :  { %1096 = vmatmul.mubr.f32.gmra.mrb[58].mxu1 %v2186_v32  ;;  %3508 = vmatpush3.bf16.msra.mxu0 %v3980_v14  ;;  %v2203_v32 = vld [vmem:[%s5497_s0 + $0x3f8] sm:$0xff] }
  0x9b   :  { %3540 = vmatpush3.bf16.msra.mxu1 %v3990_v19  ;;  %995 = vmatprep.mubr.f32.mxu0 %v2193_v61  ;;  %v2200_v61 = vld [vmem:[%s5497_s0 + $0x3e0] sm:$0xff] }
  0x9c   :  { %1100 = vmatprep.mubr.f32.mxu1 %v2195_v10  ;;  %3510 = vmatprep.subr.bf16.mxu0 %v3992_v20  ;;  %v2202_v10 = vld [vmem:[%s5497_s0 + $0x3f0] sm:$0xff] }
  0x9d   :  { %996 = vmatmul.mubr.f32.gmra.mrb[60].mxu0 %v2192_v28  ;;  %3542 = vmatprep.subr.bf16.mxu1 %v4004_v27  ;;  %v2205_v28 = vld [vmem:[%s5497_s0 + $0x408] sm:$0xff] }
  0x9e   :  { %1101 = vmatmul.mubr.f32.gmra.mrb[60].mxu1 %v2194_v18  ;;  %3512 = vmatpush3.bf16.msra.mxu0 %v4022_v35  ;;  %v2207_v18 = vld [vmem:[%s5497_s0 + $0x418] sm:$0xff] }
  0x9f   :  { %3544 = vmatpush3.bf16.msra.mxu1 %v4026_v36  ;;  %1000 = vmatprep.mubr.f32.mxu0 %v2201_v57  ;;  %v2204_v57 = vld [vmem:[%s5497_s0 + $0x400] sm:$0xff] }
  0xa0   :  { %1105 = vmatprep.mubr.f32.mxu1 %v2203_v32  ;;  %3514 = vmatprep.subr.bf16.mxu0 %v4028_v37  ;;  %v2206_v32 = vld [vmem:[%s5497_s0 + $0x410] sm:$0xff] }
  0xa1   :  { %1001 = vmatmul.mubr.f32.gmra.mrb[62].mxu0 %v2200_v61  ;;  %3546 = vmatprep.subr.bf16.mxu1 %v4040_v44  ;;  %v2213_v61 = vld [vmem:[%s5497_s0 + $0x448] sm:$0xff] }
  0xa2   :  { %1106 = vmatmul.mubr.f32.gmra.mrb[62].mxu1 %v2202_v10  ;;  %3516 = vmatpush3.bf16.msra.mxu0 %v4058_v53  ;;  %v2215_v10 = vld [vmem:[%s5497_s0 + $0x458] sm:$0xff] }
  0xa3   :  { %3548 = vmatpush3.bf16.msra.mxu1 %v4062_v54  ;;  %1248 = vmatprep.mubr.f32.mxu0 %v2205_v28  ;;  %v2212_v28 = vld [vmem:[%s5497_s0 + $0x440] sm:$0xff] }
  0xa4   :  { %1353 = vmatprep.mubr.f32.mxu1 %v2207_v18  ;;  %3550 = vmatprep.subr.bf16.mxu0 %v4064_v55  ;;  %v2214_v18 = vld [vmem:[%s5497_s0 + $0x450] sm:$0xff] }
  0xa5   :  { %1249 = vmatmul.mubr.f32.vlgmr.msra.gmra.mrb[64].mxu0 %v2204_v57  ;;  %3582 = vmatprep.subr.bf16.mxu1 %v4073_v59  ;;  %v2221_v57 = vld [vmem:[%s5497_s0 + $0x488] sm:$0xff] }
  0xa6   :  { %1354 = vmatmul.mubr.f32.vlgmr.msra.gmra.mrb[64].mxu1 %v2206_v32  ;;  %3552 = vmatpush3.bf16.msra.mxu0 %v4091_v6  ;;  %v2223_v32 = vld [vmem:[%s5497_s0 + $0x498] sm:$0xff] }
  0xa7   :  { %3584 = vmatpush3.bf16.msra.mxu1 %v4104_v13  ;;  %1253 = vmatprep.mubr.f32.mxu0 %v2213_v61  ;;  %v2220_v61 = vld [vmem:[%s5497_s0 + $0x480] sm:$0xff] }
  0xa8   :  { %1358 = vmatprep.mubr.f32.mxu1 %v2215_v10  ;;  %3554 = vmatprep.subr.bf16.mxu0 %v4116_v23  ;;  %v2222_v10 = vld [vmem:[%s5497_s0 + $0x490] sm:$0xff] }
  0xa9   :  { %1254 = vmatmul.mubr.f32.gmra.mrb[66].mxu0 %v2212_v28  ;;  %3586 = vmatprep.subr.bf16.mxu1 %v4127_v31  ;;  %v2229_v28 = vld [vmem:[%s5497_s0 + $0x4c8] sm:$0xff] }
  0xaa   :  { %1359 = vmatmul.mubr.f32.gmra.mrb[66].mxu1 %v2214_v18  ;;  %3556 = vmatpush3.bf16.msra.mxu0 %v4139_v41  ;;  %v2231_v18 = vld [vmem:[%s5497_s0 + $0x4d8] sm:$0xff] }
  0xab   :  { %3588 = vmatpush3.bf16.msra.mxu1 %v4151_v47  ;;  %1258 = vmatprep.mubr.f32.mxu0 %v2221_v57  ;;  %v2228_v57 = vld [vmem:[%s5497_s0 + $0x4c0] sm:$0xff] }
  0xac   :  { %1363 = vmatprep.mubr.f32.mxu1 %v2223_v32  ;;  %3558 = vmatprep.subr.bf16.mxu0 %v4163_v58  ;;  %v2230_v32 = vld [vmem:[%s5497_s0 + $0x4d0] sm:$0xff] }
  0xad   :  { %1259 = vmatmul.mubr.f32.gmra.mrb[68].mxu0 %v2220_v61  ;;  %3590 = vmatprep.subr.bf16.mxu1 %v4175_v2  ;;  %v2237_v61 = vld [vmem:[%s5497_s0 + $0x508] sm:$0xff] }
  0xae   :  { %1364 = vmatmul.mubr.f32.gmra.mrb[68].mxu1 %v2222_v10  ;;  %3560 = vmatpush3.bf16.msra.mxu0 %v4187_v11  ;;  %v2239_v10 = vld [vmem:[%s5497_s0 + $0x518] sm:$0xff] }
  0xaf   :  { %3592 = vmatpush3.bf16.msra.mxu1 %v4199_v24  ;;  %1263 = vmatprep.mubr.f32.mxu0 %v2229_v28  ;;  %v2236_v28 = vld [vmem:[%s5497_s0 + $0x500] sm:$0xff] }
  0xb0   :  { %1368 = vmatprep.mubr.f32.mxu1 %v2231_v18  ;;  %3562 = vmatprep.subr.bf16.mxu0 %v4211_v33  ;;  %v2238_v18 = vld [vmem:[%s5497_s0 + $0x510] sm:$0xff] }
  0xb1   :  { %1264 = vmatmul.mubr.f32.gmra.mrb[70].mxu0 %v2228_v57  ;;  %3594 = vmatprep.subr.bf16.mxu1 %v4223_v46  ;;  %v2245_v57 = vld [vmem:[%s5497_s0 + $0x548] sm:$0xff] }
  0xb2   :  { %1369 = vmatmul.mubr.f32.gmra.mrb[70].mxu1 %v2230_v32  ;;  %3564 = vmatpush3.bf16.msra.mxu0 %v4235_v60  ;;  %v5548_v32 = vld [vmem:[#allocation5_spill] sm:$0xff] }
  0xb3   :  { %3596 = vmatpush3.bf16.msra.mxu1 %v5537_v29  ;;  %1268 = vmatprep.mubr.f32.mxu0 %v2237_v61  ;;  %v2247_v60 = vld [vmem:[%s5497_s0 + $0x558] sm:$0xff]  ;;  %v5549_v61 = vld [vmem:[#allocation6_spill] sm:$0xff]  ;;  %v5550_v29 = vld [vmem:[#allocation7_spill] sm:$0xff] }
  0xb4   :  { %1373 = vmatprep.mubr.f32.mxu1 %v2239_v10  ;;  %3566 = vmatprep.subr.bf16.mxu0 %v5538_v42  ;;  %v2244_v10 = vld [vmem:[%s5497_s0 + $0x540] sm:$0xff]  ;;  %v2255_v42 = vld [vmem:[%s5497_s0 + $0x598] sm:$0xff] }
  0xb5   :  { %1269 = vmatmul.mubr.f32.gmra.mrb[72].mxu0 %v2236_v28  ;;  %3598 = vmatprep.subr.bf16.mxu1 %v5548_v32  ;;  %v2246_v28 = vld [vmem:[%s5497_s0 + $0x550] sm:$0xff] }
  0xb6   :  { %1374 = vmatmul.mubr.f32.gmra.mrb[72].mxu1 %v2238_v18  ;;  %3568 = vmatpush3.bf16.msra.mxu0 %v5549_v61  ;;  %v5551_v32 = vld [vmem:[#allocation8_spill] sm:$0xff]  ;;  %v2253_v18 = vld [vmem:[%s5497_s0 + $0x588] sm:$0xff]  ;;  %v5552_v61 = vld [vmem:[#allocation9_spill] sm:$0xff] }
  0xb7   :  { %3600 = vmatpush3.bf16.msra.mxu1 %v5550_v29  ;;  %1273 = vmatprep.mubr.f32.mxu0 %v2245_v57  ;;  %v5553_v57 = vld [vmem:[#allocation10_spill] sm:$0xff] }
  0xb8   :  { %1378 = vmatprep.mubr.f32.mxu1 %v2247_v60  ;;  %3570 = vmatprep.subr.bf16.mxu0 %v5551_v32  ;;  %v2252_v60 = vld [vmem:[%s5497_s0 + $0x580] sm:$0xff] }
  0xb9   :  { %1274 = vmatmul.mubr.f32.gmra.mrb[74].mxu0 %v2244_v10  ;;  %3602 = vmatprep.subr.bf16.mxu1 %v5552_v61  ;;  %v2254_v10 = vld [vmem:[%s5497_s0 + $0x590] sm:$0xff] }
  0xba   :  { %1379 = vmatmul.mubr.f32.gmra.mrb[74].mxu1 %v2246_v28  ;;  %3572 = vmatpush3.bf16.msra.mxu0 %v5553_v57  ;;  %v2261_v28 = vld [vmem:[%s5497_s0 + $0x5c8] sm:$0xff]  ;;  %v2263_v57 = vld [vmem:[%s5497_s0 + $0x5d8] sm:$0xff] }
  0xbb   :  { %3604 = vmatpush3.bf16.msra.mxu1 %v5545_v15  ;;  %1278 = vmatprep.mubr.f32.mxu0 %v2253_v18  ;;  %v2262_v18 = vld [vmem:[%s5497_s0 + $0x5d0] sm:$0xff] }
  0xbc   :  { %1383 = vmatprep.mubr.f32.mxu1 %v2255_v42  ;;  %3574 = vmatprep.subr.bf16.mxu0 %v5546_v1  ;;  %v2260_v42 = vld [vmem:[%s5497_s0 + $0x5c0] sm:$0xff] }
  0xbd   :  { %1279 = vmatmul.mubr.f32.gmra.mrb[76].mxu0 %v2252_v60  ;;  %3606 = vmatprep.subr.bf16.mxu1 %v5547_v48  ;;  %v2209_v60 = vld [vmem:[%s5497_s0 + $0x428] sm:$0xff] }
  0xbe   :  { %1384 = vmatmul.mubr.f32.gmra.mrb[76].mxu1 %v2254_v10  ;;  %3576 = vmatpush3.bf16.msra.mxu0 %v4379_v22  ;;  %v2211_v10 = vld [vmem:[%s5497_s0 + $0x438] sm:$0xff] }
  0xbf   :  { %3608 = vmatpush3.bf16.msra.mxu1 %v4391_v40  ;;  %1283 = vmatprep.mubr.f32.mxu0 %v2261_v28  ;;  %v2210_v28 = vld [vmem:[%s5497_s0 + $0x430] sm:$0xff] }
  0xc0   :  { %1388 = vmatprep.mubr.f32.mxu1 %v2263_v57  ;;  %3578 = vmatprep.subr.bf16.mxu0 %v4403_v49  ;;  %v2208_v57 = vld [vmem:[%s5497_s0 + $0x420] sm:$0xff] }
  0xc1   :  { %1284 = vmatmul.mubr.f32.gmra.mrb[78].mxu0 %v2260_v42  ;;  %3610 = vmatprep.subr.bf16.mxu1 %v4415_v4  ;;  %v2217_v42 = vld [vmem:[%s5497_s0 + $0x468] sm:$0xff] }
  0xc2   :  { %1389 = vmatmul.mubr.f32.gmra.mrb[78].mxu1 %v2262_v18  ;;  %3580 = vmatpush3.bf16.msra.mxu0 %v4421_v45  ;;  %v2219_v18 = vld [vmem:[%s5497_s0 + $0x478] sm:$0xff] }
  0xc3   :  { %3612 = vmatpush3.bf16.msra.mxu1 %v4427_v9  ;;  %1458 = vmatprep.mubr.f32.mxu0 %v2209_v60  ;;  %v2216_v60 = vld [vmem:[%s5497_s0 + $0x460] sm:$0xff] }
  0xc4   :  { %1563 = vmatprep.mubr.f32.mxu1 %v2211_v10  ;;  %3614 = vmatprep.subr.bf16.mxu0 %v3770_v3  ;;  %v2218_v3 = vld [vmem:[%s5497_s0 + $0x470] sm:$0xff]  ;;  %v5554_v10 = vld [vmem:[#allocation2_spill] sm:$0xff] }
  0xc5   :  { %1459 = vmatmul.mubr.f32.vlgmr.msra.gmra.mrb[80].mxu0 %v2208_v57  ;;  %3646 = vmatprep.subr.bf16.mxu1 %v3781_v7  ;;  %v2225_v7 = vld [vmem:[%s5497_s0 + $0x4a8] sm:$0xff] }
  0xc6   :  { %1564 = vmatmul.mubr.f32.vlgmr.msra.gmra.mrb[80].mxu1 %v2210_v28  ;;  %3616 = vmatpush3.bf16.msra.mxu0 %v3783_v8  ;;  %v2227_v8 = vld [vmem:[%s5497_s0 + $0x4b8] sm:$0xff]  ;;  %v5555_v57 = vld [vmem:[#allocation3_spill] sm:$0xff]  ;;  %v5556_v28 = vld [vmem:[#allocation4_spill] sm:$0xff] }
  0xc7   :  { %3648 = vmatpush3.bf16.msra.mxu1 %v3795_v12  ;;  %1463 = vmatprep.mubr.f32.mxu0 %v2217_v42  ;;  %v2224_v12 = vld [vmem:[%s5497_s0 + $0x4a0] sm:$0xff]  ;;  %v2311_v42 = vld [vmem:[%s5497_s0 + $0x758] sm:$0xff] }
  0xc8   :  { %1568 = vmatprep.mubr.f32.mxu1 %v2219_v18  ;;  %3618 = vmatprep.subr.bf16.mxu0 %v3808_v16  ;;  %v2226_v16 = vld [vmem:[%s5497_s0 + $0x4b0] sm:$0xff]  ;;  %v5557_v18 = vld [vmem:[#allocation5_spill] sm:$0xff] }
  0xc9   :  { %1464 = vmatmul.mubr.f32.gmra.mrb[82].mxu0 %v2216_v60  ;;  %3650 = vmatprep.subr.bf16.mxu1 %v3810_v17  ;;  %v2233_v17 = vld [vmem:[%s5497_s0 + $0x4e8] sm:$0xff]  ;;  %v5558_v60 = vld [vmem:[#allocation6_spill] sm:$0xff] }
  0xca   :  { %1569 = vmatmul.mubr.f32.gmra.mrb[82].mxu1 %v2218_v3  ;;  %3620 = vmatpush3.bf16.msra.mxu0 %v3822_v21  ;;  %v2235_v21 = vld [vmem:[%s5497_s0 + $0x4f8] sm:$0xff]  ;;  %v2308_v3 = vld [vmem:[%s5497_s0 + $0x740] sm:$0xff] }
  0xcb   :  { %3652 = vmatpush3.bf16.msra.mxu1 %v3835_v25  ;;  %1468 = vmatprep.mubr.f32.mxu0 %v2225_v7  ;;  %v2232_v25 = vld [vmem:[%s5497_s0 + $0x4e0] sm:$0xff]  ;;  %v2310_v7 = vld [vmem:[%s5497_s0 + $0x750] sm:$0xff] }
  0xcc   :  { %1573 = vmatprep.mubr.f32.mxu1 %v2227_v8  ;;  %3622 = vmatprep.subr.bf16.mxu0 %v3837_v26  ;;  %v2234_v26 = vld [vmem:[%s5497_s0 + $0x4f0] sm:$0xff] }
  0xcd   :  { %1469 = vmatmul.mubr.f32.gmra.mrb[84].mxu0 %v2224_v12  ;;  %3654 = vmatprep.subr.bf16.mxu1 %v3848_v30  ;;  %v2241_v30 = vld [vmem:[%s5497_s0 + $0x528] sm:$0xff] }
  0xce   :  { %1574 = vmatmul.mubr.f32.gmra.mrb[84].mxu1 %v2226_v16  ;;  %3624 = vmatpush3.bf16.msra.mxu0 %v3860_v34  ;;  %v2243_v34 = vld [vmem:[%s5497_s0 + $0x538] sm:$0xff]  ;;  %v2317_v12 = vld [vmem:[%s5497_s0 + $0x788] sm:$0xff] }
  0xcf   :  { %3656 = vmatpush3.bf16.msra.mxu1 %v3873_v38  ;;  %1473 = vmatprep.mubr.f32.mxu0 %v2233_v17  ;;  %v2240_v38 = vld [vmem:[%s5497_s0 + $0x520] sm:$0xff]  ;;  %v2319_v16 = vld [vmem:[%s5497_s0 + $0x798] sm:$0xff] }
  0xd0   :  { %1578 = vmatprep.mubr.f32.mxu1 %v2235_v21  ;;  %3626 = vmatprep.subr.bf16.mxu0 %v3875_v39  ;;  %v2242_v39 = vld [vmem:[%s5497_s0 + $0x530] sm:$0xff] }
  0xd1   :  { %1474 = vmatmul.mubr.f32.gmra.mrb[86].mxu0 %v2232_v25  ;;  %3658 = vmatprep.subr.bf16.mxu1 %v3887_v43  ;;  %v2249_v43 = vld [vmem:[%s5497_s0 + $0x568] sm:$0xff] }
  0xd2   :  { %1579 = vmatmul.mubr.f32.gmra.mrb[86].mxu1 %v2234_v26  ;;  %3628 = vmatpush3.bf16.msra.mxu0 %v3908_v50  ;;  %v2251_v50 = vld [vmem:[%s5497_s0 + $0x578] sm:$0xff] }
  0xd3   :  { %3660 = vmatpush3.bf16.msra.mxu1 %v3912_v51  ;;  %1478 = vmatprep.mubr.f32.mxu0 %v2241_v30  ;;  %v2248_v51 = vld [vmem:[%s5497_s0 + $0x560] sm:$0xff] }
  0xd4   :  { %1583 = vmatprep.mubr.f32.mxu1 %v2243_v34  ;;  %3630 = vmatprep.subr.bf16.mxu0 %v3914_v52  ;;  %v2250_v52 = vld [vmem:[%s5497_s0 + $0x570] sm:$0xff]  ;;  %v5559_v30 = vld [vmem:[#allocation10_spill] sm:$0xff] }
  0xd5   :  { %1479 = vmatmul.mubr.f32.gmra.mrb[88].mxu0 %v2240_v38  ;;  %3662 = vmatprep.subr.bf16.mxu1 %v3926_v56  ;;  %v2257_v56 = vld [vmem:[%s5497_s0 + $0x5a8] sm:$0xff]  ;;  %v2318_v34 = vld [vmem:[%s5497_s0 + $0x790] sm:$0xff] }
  0xd6   :  { %1584 = vmatmul.mubr.f32.gmra.mrb[88].mxu1 %v2242_v39  ;;  %3632 = vmatpush3.bf16.msra.mxu0 %v3944_v62  ;;  %v2259_v62 = vld [vmem:[%s5497_s0 + $0x5b8] sm:$0xff] }
  0xd7   :  { %3664 = vmatpush3.bf16.msra.mxu1 %v3948_v63  ;;  %1483 = vmatprep.mubr.f32.mxu0 %v2249_v43  ;;  %v2256_v63 = vld [vmem:[%s5497_s0 + $0x5a0] sm:$0xff]  ;;  %v2327_v39 = vld [vmem:[%s5497_s0 + $0x7d8] sm:$0xff] }
  0xd8   :  { %1588 = vmatprep.mubr.f32.mxu1 %v2251_v50  ;;  %3634 = vmatprep.subr.bf16.mxu0 %v3950_v0  ;;  %v2258_v0 = vld [vmem:[%s5497_s0 + $0x5b0] sm:$0xff] }
  0xd9   :  { %1484 = vmatmul.mubr.f32.gmra.mrb[90].mxu0 %v2248_v51  ;;  %3666 = vmatprep.subr.bf16.mxu1 %v3962_v5  ;;  %v2265_v5 = vld [vmem:[%s5497_s0 + $0x5e8] sm:$0xff] }
  0xda   :  { %1589 = vmatmul.mubr.f32.gmra.mrb[90].mxu1 %v2250_v52  ;;  %3636 = vmatpush3.bf16.msra.mxu0 %v3980_v14  ;;  %v2267_v14 = vld [vmem:[%s5497_s0 + $0x5f8] sm:$0xff] }
  0xdb   :  { %3668 = vmatpush3.bf16.msra.mxu1 %v3990_v19  ;;  %1488 = vmatprep.mubr.f32.mxu0 %v2257_v56  ;;  %v2264_v19 = vld [vmem:[%s5497_s0 + $0x5e0] sm:$0xff] }
  0xdc   :  { %1593 = vmatprep.mubr.f32.mxu1 %v2259_v62  ;;  %3638 = vmatprep.subr.bf16.mxu0 %v3992_v20  ;;  %v2266_v20 = vld [vmem:[%s5497_s0 + $0x5f0] sm:$0xff] }
  0xdd   :  { %1489 = vmatmul.mubr.f32.gmra.mrb[92].mxu0 %v2256_v63  ;;  %3670 = vmatprep.subr.bf16.mxu1 %v4004_v27  ;;  %v2269_v27 = vld [vmem:[%s5497_s0 + $0x608] sm:$0xff]  ;;  %v2326_v62 = vld [vmem:[%s5497_s0 + $0x7d0] sm:$0xff] }
  0xde   :  { %1594 = vmatmul.mubr.f32.gmra.mrb[92].mxu1 %v2258_v0  ;;  %3640 = vmatpush3.bf16.msra.mxu0 %v4022_v35  ;;  %v2271_v35 = vld [vmem:[%s5497_s0 + $0x618] sm:$0xff] }
  0xdf   :  { %3672 = vmatpush3.bf16.msra.mxu1 %v4026_v36  ;;  %1493 = vmatprep.mubr.f32.mxu0 %v2265_v5  ;;  %v2268_v36 = vld [vmem:[%s5497_s0 + $0x600] sm:$0xff] }
  0xe0   :  { %1598 = vmatprep.mubr.f32.mxu1 %v2267_v14  ;;  %3642 = vmatprep.subr.bf16.mxu0 %v4028_v37  ;;  %v2270_v37 = vld [vmem:[%s5497_s0 + $0x610] sm:$0xff] }
  0xe1   :  { %1494 = vmatmul.mubr.f32.gmra.mrb[94].mxu0 %v2264_v19  ;;  %3674 = vmatprep.subr.bf16.mxu1 %v4040_v44  ;;  %v2277_v44 = vld [vmem:[%s5497_s0 + $0x648] sm:$0xff] }
  0xe2   :  { %1599 = vmatmul.mubr.f32.gmra.mrb[94].mxu1 %v2266_v20  ;;  %3644 = vmatpush3.bf16.msra.mxu0 %v4058_v53  ;;  %v2279_v53 = vld [vmem:[%s5497_s0 + $0x658] sm:$0xff] }
  0xe3   :  { %3676 = vmatpush3.bf16.msra.mxu1 %v4062_v54  ;;  %1741 = vmatprep.mubr.f32.mxu0 %v2269_v27  ;;  %v2276_v54 = vld [vmem:[%s5497_s0 + $0x640] sm:$0xff]  ;;  %v2281_v27 = vld [vmem:[%s5497_s0 + $0x668] sm:$0xff] }
  0xe4   :  { %1846 = vmatprep.mubr.f32.mxu1 %v2271_v35  ;;  %3678 = vmatprep.subr.bf16.mxu0 %v4064_v55  ;;  %v2278_v55 = vld [vmem:[%s5497_s0 + $0x650] sm:$0xff] }
  0xe5   :  { %1742 = vmatmul.mubr.f32.vlgmr.msra.gmra.mrb[96].mxu0 %v2268_v36  ;;  %3710 = vmatprep.subr.bf16.mxu1 %v4073_v59  ;;  %v2285_v59 = vld [vmem:[%s5497_s0 + $0x688] sm:$0xff] }
  0xe6   :  { %1847 = vmatmul.mubr.f32.vlgmr.msra.gmra.mrb[96].mxu1 %v2270_v37  ;;  %3680 = vmatpush3.bf16.msra.mxu0 %v4091_v6  ;;  %v2287_v6 = vld [vmem:[%s5497_s0 + $0x698] sm:$0xff] }
  0xe7   :  { %1746 = vmatprep.mubr.f32.mxu0 %v2277_v44  ;;  %1851 = vmatprep.mubr.f32.mxu1 %v2279_v53  ;;  %v2283_v44 = vld [vmem:[%s5497_s0 + $0x678] sm:$0xff] }
  0xe8   :  { %3712 = vmatpush3.bf16.msra.mxu1 %v4104_v13  ;;  %3682 = vmatprep.subr.bf16.mxu0 %v4116_v23  ;;  %v2284_v13 = vld [vmem:[%s5497_s0 + $0x680] sm:$0xff]  ;;  %v2286_v23 = vld [vmem:[%s5497_s0 + $0x690] sm:$0xff] }
  0xe9   :  { %1747 = vmatmul.mubr.f32.gmra.mrb[98].mxu0 %v2276_v54  ;;  %3714 = vmatprep.subr.bf16.mxu1 %v4127_v31  ;;  %v2293_v31 = vld [vmem:[%s5497_s0 + $0x6c8] sm:$0xff] }
  0xea   :  { %1852 = vmatmul.mubr.f32.gmra.mrb[98].mxu1 %v2278_v55  ;;  %3684 = vmatpush3.bf16.msra.mxu0 %v4139_v41  ;;  %v2295_v41 = vld [vmem:[%s5497_s0 + $0x6d8] sm:$0xff] }
  0xeb   :  { %1751 = vmatprep.mubr.f32.mxu0 %v2285_v59  ;;  %1856 = vmatprep.mubr.f32.mxu1 %v2287_v6  ;;  %v2289_v59 = vld [vmem:[%s5497_s0 + $0x6a8] sm:$0xff] }
  0xec   :  { %3716 = vmatpush3.bf16.msra.mxu1 %v4151_v47  ;;  %3686 = vmatprep.subr.bf16.mxu0 %v4163_v58  ;;  %v2292_v47 = vld [vmem:[%s5497_s0 + $0x6c0] sm:$0xff]  ;;  %v2294_v58 = vld [vmem:[%s5497_s0 + $0x6d0] sm:$0xff] }
  0xed   :  { %1752 = vmatmul.mubr.f32.gmra.mrb[100].mxu0 %v2284_v13  ;;  %3718 = vmatprep.subr.bf16.mxu1 %v4175_v2  ;;  %v2301_v2 = vld [vmem:[%s5497_s0 + $0x708] sm:$0xff]  ;;  %v2282_v13 = vld [vmem:[%s5497_s0 + $0x670] sm:$0xff] }
  0xee   :  { %1857 = vmatmul.mubr.f32.gmra.mrb[100].mxu1 %v2286_v23  ;;  %3688 = vmatpush3.bf16.msra.mxu0 %v4187_v11  ;;  %v2303_v11 = vld [vmem:[%s5497_s0 + $0x718] sm:$0xff] }
  0xef   :  { %1756 = vmatprep.mubr.f32.mxu0 %v2293_v31  ;;  %1861 = vmatprep.mubr.f32.mxu1 %v2295_v41 }
  0xf0   :  { %3720 = vmatpush3.bf16.msra.mxu1 %v4199_v24  ;;  %3690 = vmatprep.subr.bf16.mxu0 %v4211_v33  ;;  %v2300_v24 = vld [vmem:[%s5497_s0 + $0x700] sm:$0xff]  ;;  %v2302_v33 = vld [vmem:[%s5497_s0 + $0x710] sm:$0xff] }
  0xf1   :  { %1757 = vmatmul.mubr.f32.gmra.mrb[102].mxu0 %v2292_v47  ;;  %3722 = vmatprep.subr.bf16.mxu1 %v4223_v46  ;;  %v2309_v46 = vld [vmem:[%s5497_s0 + $0x748] sm:$0xff]  ;;  %v2291_v47 = vld [vmem:[%s5497_s0 + $0x6b8] sm:$0xff] }
  0xf2   :  { %1862 = vmatmul.mubr.f32.gmra.mrb[102].mxu1 %v2294_v58  ;;  %3692 = vmatpush3.bf16.msra.mxu0 %v5554_v10 }
  0xf3   :  { %1761 = vmatprep.mubr.f32.mxu0 %v2301_v2  ;;  %1866 = vmatprep.mubr.f32.mxu1 %v2303_v11  ;;  %v2288_v11 = vld [vmem:[%s5497_s0 + $0x6a0] sm:$0xff] }
  0xf4   :  { %3724 = vmatpush3.bf16.msra.mxu1 %v5555_v57  ;;  %3694 = vmatprep.subr.bf16.mxu0 %v5556_v28  ;;  %v2290_v57 = vld [vmem:[%s5497_s0 + $0x6b0] sm:$0xff] }
  0xf5   :  { %1762 = vmatmul.mubr.f32.gmra.mrb[104].mxu0 %v2300_v24  ;;  %3726 = vmatprep.subr.bf16.mxu1 %v5557_v18  ;;  %v2297_v24 = vld [vmem:[%s5497_s0 + $0x6e8] sm:$0xff]  ;;  %v2299_v18 = vld [vmem:[%s5497_s0 + $0x6f8] sm:$0xff] }
  0xf6   :  { %1867 = vmatmul.mubr.f32.gmra.mrb[104].mxu1 %v2302_v33  ;;  %3696 = vmatpush3.bf16.msra.mxu0 %v5558_v60 }
  0xf7   :  { %1766 = vmatprep.mubr.f32.mxu0 %v2309_v46  ;;  %1871 = vmatprep.mubr.f32.mxu1 %v2311_v42 }
  0xf8   :  { %v2365_v8 = vpop.f32.mrb[0].mxu0  ;;  %3728 = vmatpush3.bf16.msra.mxu1 %v5550_v29  ;;  %3698 = vmatprep.subr.bf16.mxu0 %v5551_v32  ;;  %v2316_v29 = vld [vmem:[%s5497_s0 + $0x780] sm:$0xff] }
  0xf9   :  { %v2421_v17 = vpop.f32.mrb[0].mxu1  ;;  %v2366_v21 = vpop.f32.mrb[1].mxu0  ;;  %1767 = vmatmul.mubr.f32.gmra.mrb[106].mxu0 %v2308_v3  ;;  %3730 = vmatprep.subr.bf16.mxu1 %v5552_v61  ;;  %v2325_v61 = vld [vmem:[%s5497_s0 + $0x7c8] sm:$0xff] }
  0xfa   :  { %v2367_v25 = vadd.f32 %v2366_v21, %v2365_v8  ;;  %v2422_v26 = vpop.f32.mrb[1].mxu1  ;;  %1872 = vmatmul.mubr.f32.gmra.mrb[106].mxu1 %v2310_v7  ;;  %3700 = vmatpush3.bf16.msra.mxu0 %v5559_v30  ;;  %v2296_v7 = vld [vmem:[%s5497_s0 + $0x6e0] sm:$0xff]  ;;  %v2307_v30 = vld [vmem:[%s5497_s0 + $0x738] sm:$0xff] }
  0xfb   :  { %v2423_v32 = vadd.f32 %v2422_v26, %v2421_v17  ;;  %1771 = vmatprep.mubr.f32.mxu0 %v2317_v12  ;;  %1876 = vmatprep.mubr.f32.mxu1 %v2319_v16  ;;  %v2305_v12 = vld [vmem:[%s5497_s0 + $0x728] sm:$0xff]  ;;  %v2298_v17 = vld [vmem:[%s5497_s0 + $0x6f0] sm:$0xff] }
  0xfc   :  { %v2368_v38 = vpop.f32.mrb[2].mxu0  ;;  %3732 = vmatpush3.bf16.msra.mxu1 %v5545_v15  ;;  %3702 = vmatprep.subr.bf16.mxu0 %v5546_v1  ;;  %v2324_v1 = vld [vmem:[%s5497_s0 + $0x7c0] sm:$0xff] }
  0xfd   :  { %v5188_v43 = vadd.f32 %v2423_v32, %v2367_v25  ;;  %v2424_v50 = vpop.f32.mrb[2].mxu1  ;;  %v2369_v51 = vpop.f32.mrb[3].mxu0  ;;  %1772 = vmatmul.mubr.f32.gmra.mrb[108].mxu0 %v2316_v29  ;;  %3734 = vmatprep.subr.bf16.mxu1 %v5547_v48  ;;  %v2275_v48 = vld [vmem:[%s5497_s0 + $0x638] sm:$0xff] }
  0xfe   :  { %v2370_v52 = vadd.f32 %v2369_v51, %v2368_v38  ;;  %v2425_v56 = vpop.f32.mrb[3].mxu1  ;;  %1877 = vmatmul.mubr.f32.gmra.mrb[108].mxu1 %v2318_v34  ;;  %3704 = vmatpush3.bf16.msra.mxu0 %v4379_v22  ;;  %v2273_v22 = vld [vmem:[%s5497_s0 + $0x628] sm:$0xff]  ;;  %v2304_v34 = vld [vmem:[%s5497_s0 + $0x720] sm:$0xff] }
  0xff   :  { %v2426_v15 = vadd.f32 %v2425_v56, %v2424_v50  ;;  %1776 = vmatprep.mubr.f32.mxu0 %v2325_v61  ;;  %1881 = vmatprep.mubr.f32.mxu1 %v2327_v39  ;;  %v2313_v61 = vld [vmem:[%s5497_s0 + $0x768] sm:$0xff]  ;;  %v2306_v50 = vld [vmem:[%s5497_s0 + $0x730] sm:$0xff] }
 0x100   :  { %v2371_v63 = vpop.f32.mrb[4].mxu0  ;;  %3736 = vmatpush3.bf16.msra.mxu1 %v4391_v40  ;;  %3706 = vmatprep.subr.bf16.mxu0 %v4403_v49  ;;  %v2272_v40 = vld [vmem:[%s5497_s0 + $0x620] sm:$0xff] }
 0x101   :  { %v5206_v0 = vadd.f32 %v2426_v15, %v2370_v52  ;;  %v2427_v5 = vpop.f32.mrb[4].mxu1  ;;  %v2372_v14 = vpop.f32.mrb[5].mxu0  ;;  %1777 = vmatmul.mubr.f32.gmra.mrb[110].mxu0 %v2324_v1  ;;  %3738 = vmatprep.subr.bf16.mxu1 %v4415_v4  ;;  %v2274_v4 = vld [vmem:[%s5497_s0 + $0x630] sm:$0xff]  ;;  %v2315_v1 = vld [vmem:[%s5497_s0 + $0x778] sm:$0xff] }
 0x102   :  { %v2373_v19 = vadd.f32 %v2372_v14, %v2371_v63  ;;  %v2428_v20 = vpop.f32.mrb[5].mxu1  ;;  %1882 = vmatmul.mubr.f32.gmra.mrb[110].mxu1 %v2326_v62  ;;  %3708 = vmatpush3.bf16.msra.mxu0 %v4421_v45  ;;  %v2312_v63 = vld [vmem:[%s5497_s0 + $0x760] sm:$0xff]  ;;  %v2314_v14 = vld [vmem:[%s5497_s0 + $0x770] sm:$0xff] }
 0x103   :  { %v2429_v49 = vadd.f32 %v2428_v20, %v2427_v5  ;;  %1951 = vmatprep.mubr.f32.mxu0 %v2273_v22  ;;  %2056 = vmatprep.mubr.f32.mxu1 %v2275_v48  ;;  %v2321_v48 = vld [vmem:[%s5497_s0 + $0x7a8] sm:$0xff] }
 0x104   :  { %v2374_v35 = vpop.f32.mrb[6].mxu0  ;;  %3740 = vmatpush3.bf16.msra.mxu1 %v4427_v9  ;;  %v2280_v9 = vld [vmem:[%s5497_s0 + $0x660] sm:$0xff] }
 0x105   :  { %v5220_v36 = vadd.f32 %v2429_v49, %v2373_v19  ;;  %v2430_v45 = vpop.f32.mrb[6].mxu1  ;;  %v2375_v37 = vpop.f32.mrb[7].mxu0  ;;  %1952 = vmatmul.mubr.f32.vlgmr.msra.gmra.mrb[112].mxu0 %v2272_v40  ;;  %v2323_v49 = vld [vmem:[%s5497_s0 + $0x7b8] sm:$0xff] }
 0x106   :  { %v2376_v53 = vadd.f32 %v2375_v37, %v2374_v35  ;;  %v2431_v54 = vpop.f32.mrb[7].mxu1  ;;  %1956 = vmatprep.mubr.f32.mxu0 %v2281_v27  ;;  %v2329_v37 = vld [vmem:[%s5497_s0 + $0x7e8] sm:$0xff] }
 0x107   :  { %v2432_v55 = vadd.f32 %v2431_v54, %v2430_v45  ;;  %2057 = vmatmul.mubr.f32.vlgmr.msra.gmra.mrb[112].mxu1 %v2274_v4  ;;  %v2320_v4 = vld [vmem:[%s5497_s0 + $0x7a0] sm:$0xff]  ;;  %v2322_v54 = vld [vmem:[%s5497_s0 + $0x7b0] sm:$0xff] }
 0x108   :  { %v2377_v6 = vpop.f32.mrb[8].mxu0  ;;  %2061 = vmatprep.mubr.f32.mxu1 %v2283_v44 }
 0x109   :  { %v5234_v23 = vadd.f32 %v2432_v55, %v2376_v53  ;;  %v2433_v31 = vpop.f32.mrb[8].mxu1  ;;  %v2378_v41 = vpop.f32.mrb[9].mxu0  ;;  %1957 = vmatmul.mubr.f32.gmra.mrb[114].mxu0 %v2280_v9 }
 0x10a   :  { %v2379_v58 = vadd.f32 %v2378_v41, %v2377_v6  ;;  %v2434_v2 = vpop.f32.mrb[9].mxu1  ;;  %1961 = vmatprep.mubr.f32.mxu0 %v2289_v59  ;;  %v2331_v59 = vld [vmem:[%s5497_s0 + $0x7f8] sm:$0xff] }
 0x10b   :  { %v2435_v10 = vadd.f32 %v2434_v2, %v2433_v31  ;;  %2062 = vmatmul.mubr.f32.gmra.mrb[114].mxu1 %v2282_v13  ;;  %v2330_v2 = vld [vmem:[%s5497_s0 + $0x7f0] sm:$0xff] }
 0x10c   :  { %v2380_v33 = vpop.f32.mrb[10].mxu0  ;;  %2066 = vmatprep.mubr.f32.mxu1 %v2291_v47 }
 0x10d   :  { %v5248_v28 = vadd.f32 %v2435_v10, %v2379_v58  ;;  %v2436_v46 = vpop.f32.mrb[10].mxu1  ;;  %v2381_v42 = vpop.f32.mrb[11].mxu0  ;;  %1962 = vmatmul.mubr.f32.gmra.mrb[116].mxu0 %v2288_v11 }
 0x10e   :  { %v2382_v60 = vadd.f32 %v2381_v42, %v2380_v33  ;;  %v2437_v3 = vpop.f32.mrb[11].mxu1  ;;  %1966 = vmatprep.mubr.f32.mxu0 %v2297_v24 }
 0x10f   :  { %v2438_v8 = vadd.f32 %v2437_v3, %v2436_v46  ;;  %2067 = vmatmul.mubr.f32.gmra.mrb[116].mxu1 %v2290_v57 }
 0x110   :  { %v2383_v16 = vpop.f32.mrb[12].mxu0  ;;  %2071 = vmatprep.mubr.f32.mxu1 %v2299_v18 }
 0x111   :  { %v5262_v21 = vadd.f32 %v2438_v8, %v2382_v60  ;;  %v2439_v25 = vpop.f32.mrb[12].mxu1  ;;  %v2384_v26 = vpop.f32.mrb[13].mxu0  ;;  %1967 = vmatmul.mubr.f32.gmra.mrb[118].mxu0 %v2296_v7 }
 0x112   :  { %v2385_v29 = vadd.f32 %v2384_v26, %v2383_v16  ;;  %v2440_v32 = vpop.f32.mrb[13].mxu1  ;;  %1971 = vmatprep.mubr.f32.mxu0 %v2305_v12 }
 0x113   :  { %v2441_v38 = vadd.f32 %v2440_v32, %v2439_v25  ;;  %2072 = vmatmul.mubr.f32.gmra.mrb[118].mxu1 %v2298_v17 }
 0x114   :  { %v2386_v39 = vpop.f32.mrb[14].mxu0  ;;  %2076 = vmatprep.mubr.f32.mxu1 %v2307_v30 }
 0x115   :  { %v5276_v51 = vadd.f32 %v2441_v38, %v2385_v29  ;;  %v2442_v52 = vpop.f32.mrb[14].mxu1  ;;  %v2387_v56 = vpop.f32.mrb[15].mxu0  ;;  %1972 = vmatmul.mubr.f32.gmra.mrb[120].mxu0 %v2304_v34 }
 0x116   :  { %v2388_v15 = vadd.f32 %v2387_v56, %v2386_v39  ;;  %v2443_v62 = vpop.f32.mrb[15].mxu1  ;;  %1976 = vmatprep.mubr.f32.mxu0 %v2313_v61 }
 0x117   :  { %v2444_v22 = vadd.f32 %v2443_v62, %v2442_v52  ;;  %2077 = vmatmul.mubr.f32.gmra.mrb[120].mxu1 %v2306_v50 }
 0x118   :  { %v2477_v5 = vpop.f32.mrb[16].mxu0  ;;  %2081 = vmatprep.mubr.f32.mxu1 %v2315_v1 }
 0x119   :  { %v5290_v19 = vadd.f32 %v2444_v22, %v2388_v15  ;;  %v2478_v20 = vpop.f32.mrb[17].mxu0  ;;  %1977 = vmatmul.mubr.f32.gmra.mrb[122].mxu0 %v2312_v63  ;;  %v2533_v40 = vpop.f32.mrb[16].mxu1 }
 0x11a   :  { %v2479_v27 = vadd.f32 %v2478_v20, %v2477_v5  ;;  %v2534_v35 = vpop.f32.mrb[17].mxu1  ;;  %1981 = vmatprep.mubr.f32.mxu0 %v2321_v48 }
 0x11b   :  { %v2535_v45 = vadd.f32 %v2534_v35, %v2533_v40  ;;  %2082 = vmatmul.mubr.f32.gmra.mrb[122].mxu1 %v2314_v14 }
 0x11c   :  { %v483_v44 = vadd.f32 %v2479_v27, %v5188_v43  ;;  %v2480_v53 = vpop.f32.mrb[18].mxu0  ;;  %2086 = vmatprep.mubr.f32.mxu1 %v2323_v49  ;;  %v2328_v43 = vld [vmem:[%s5497_s0 + $0x7e0] sm:$0xff] }
 0x11d   :  { %v2481_v9 = vpop.f32.mrb[19].mxu0  ;;  %1982 = vmatmul.mubr.f32.gmra.mrb[124].mxu0 %v2320_v4  ;;  %v2536_v55 = vpop.f32.mrb[18].mxu1 }
 0x11e   :  { %v5308_v6 = vadd.f32 %v2535_v45, %v483_v44  ;;  %v2482_v13 = vadd.f32 %v2481_v9, %v2480_v53  ;;  %v2537_v31 = vpop.f32.mrb[19].mxu1  ;;  %1986 = vmatprep.mubr.f32.mxu0 %v2329_v37 }
 0x11f   :  { %v2538_v41 = vadd.f32 %v2537_v31, %v2536_v55  ;;  %2087 = vmatmul.mubr.f32.gmra.mrb[124].mxu1 %v2322_v54 }
 0x120   :  { %v488_v47 = vadd.f32 %v2482_v13, %v5206_v0  ;;  %v2483_v58 = vpop.f32.mrb[20].mxu0  ;;  %2091 = vmatprep.mubr.f32.mxu1 %v2331_v59 }
 0x121   :  { %v2484_v11 = vpop.f32.mrb[21].mxu0  ;;  %1987 = vmatmul.mubr.f32.gmra.mrb[126].mxu0 %v2328_v43  ;;  %v2539_v10 = vpop.f32.mrb[20].mxu1 }
 0x122   :  { %v5317_v24 = vadd.f32 %v2538_v41, %v488_v47  ;;  %v2485_v33 = vadd.f32 %v2484_v11, %v2483_v58  ;;  %v2540_v57 = vpop.f32.mrb[21].mxu1 }
 0x123   :  { %v2541_v46 = vadd.f32 %v2540_v57, %v2539_v10  ;;  %2092 = vmatmul.mubr.f32.gmra.mrb[126].mxu1 %v2330_v2 }
 0x124   :  { %v493_v42 = vadd.f32 %v2485_v33, %v5220_v36  ;;  %v2486_v18 = vpop.f32.mrb[22].mxu0 }
 0x125   :  { %v2487_v60 = vpop.f32.mrb[23].mxu0  ;;  %v2542_v0 = vpop.f32.mrb[22].mxu1 }
 0x126   :  { %v5320_v3 = vadd.f32 %v2541_v46, %v493_v42  ;;  %v2488_v7 = vadd.f32 %v2487_v60, %v2486_v18  ;;  %v2543_v8 = vpop.f32.mrb[23].mxu1 }
 0x127   :  { %v2544_v12 = vadd.f32 %v2543_v8, %v2542_v0 }
 0x128   :  { %v498_v16 = vadd.f32 %v2488_v7, %v5234_v23  ;;  %v2489_v17 = vpop.f32.mrb[24].mxu0 }
 0x129   :  { %v2490_v25 = vpop.f32.mrb[25].mxu0  ;;  %v2545_v26 = vpop.f32.mrb[24].mxu1 }
 0x12a   :  { %v5323_v30 = vadd.f32 %v2544_v12, %v498_v16  ;;  %v2491_v29 = vadd.f32 %v2490_v25, %v2489_v17  ;;  %v2546_v32 = vpop.f32.mrb[25].mxu1 }
 0x12b   :  { %v2547_v34 = vadd.f32 %v2546_v32, %v2545_v26 }
 0x12c   :  { %v503_v36 = vadd.f32 %v2491_v29, %v5248_v28  ;;  %v2492_v38 = vpop.f32.mrb[26].mxu0 }
 0x12d   :  { %v2493_v61 = vpop.f32.mrb[27].mxu0  ;;  %v2548_v39 = vpop.f32.mrb[26].mxu1 }
 0x12e   :  { %v5326_v50 = vadd.f32 %v2547_v34, %v503_v36  ;;  %v2494_v52 = vadd.f32 %v2493_v61, %v2492_v38  ;;  %v2549_v56 = vpop.f32.mrb[27].mxu1 }
 0x12f   :  { %v2550_v1 = vadd.f32 %v2549_v56, %v2548_v39 }
 0x130   :  { %v508_v23 = vadd.f32 %v2494_v52, %v5262_v21  ;;  %v2495_v15 = vpop.f32.mrb[28].mxu0 }
 0x131   :  { %v2496_v62 = vpop.f32.mrb[29].mxu0  ;;  %v2551_v63 = vpop.f32.mrb[28].mxu1 }
 0x132   :  { %v5329_v22 = vadd.f32 %v2550_v1, %v508_v23  ;;  %v2497_v48 = vadd.f32 %v2496_v62, %v2495_v15  ;;  %v2552_v5 = vpop.f32.mrb[29].mxu1 }
 0x133   :  { %v2553_v14 = vadd.f32 %v2552_v5, %v2551_v63 }
 0x134   :  { %v513_v28 = vadd.f32 %v2497_v48, %v5276_v51  ;;  %v2498_v20 = vpop.f32.mrb[30].mxu0 }
 0x135   :  { %v2499_v40 = vpop.f32.mrb[31].mxu0  ;;  %v2554_v49 = vpop.f32.mrb[30].mxu1 }
 0x136   :  { %v5332_v27 = vadd.f32 %v2553_v14, %v513_v28  ;;  %v2500_v35 = vadd.f32 %v2499_v40, %v2498_v20  ;;  %v2555_v4 = vpop.f32.mrb[31].mxu1 }
 0x137   :  { %v2556_v45 = vadd.f32 %v2555_v4, %v2554_v49 }
 0x138   :  { %v518_v21 = vadd.f32 %v2500_v35, %v5290_v19  ;;  %v2589_v37 = vpop.f32.mrb[32].mxu0 }
 0x139   :  { %v2645_v44 = vpop.f32.mrb[32].mxu1  ;;  %v2590_v53 = vpop.f32.mrb[33].mxu0 }
 0x13a   :  { %v5335_v54 = vadd.f32 %v2556_v45, %v518_v21  ;;  %v2591_v9 = vadd.f32 %v2590_v53, %v2589_v37  ;;  %v2646_v55 = vpop.f32.mrb[33].mxu1 }
 0x13b   :  { %v2647_v59 = vadd.f32 %v2646_v55, %v2645_v44 }
 0x13c   :  { %v2592_v13 = vpop.f32.mrb[34].mxu0 }
 0x13d   :  { %v863_v51 = vadd.f32 %v2647_v59, %v2591_v9  ;;  %v2648_v31 = vpop.f32.mrb[34].mxu1  ;;  %v2593_v43 = vpop.f32.mrb[35].mxu0 }
 0x13e   :  { %v2594_v41 = vadd.f32 %v2593_v43, %v2592_v13  ;;  %v2649_v47 = vpop.f32.mrb[35].mxu1 }
 0x13f   :  { %v2650_v58 = vadd.f32 %v2649_v47, %v2648_v31 }
 0x140   :  { %v2595_v2 = vpop.f32.mrb[36].mxu0 }
 0x141   :  { %v868_v11 = vadd.f32 %v2650_v58, %v2594_v41  ;;  %v2651_v10 = vpop.f32.mrb[36].mxu1  ;;  %v2596_v33 = vpop.f32.mrb[37].mxu0 }
 0x142   :  { %v2597_v19 = vadd.f32 %v2596_v33, %v2595_v2  ;;  %v2652_v57 = vpop.f32.mrb[37].mxu1 }
 0x143   :  { %v2653_v46 = vadd.f32 %v2652_v57, %v2651_v10 }
 0x144   :  { %v2598_v42 = vpop.f32.mrb[38].mxu0 }
 0x145   :  { %v873_v18 = vadd.f32 %v2653_v46, %v2597_v19  ;;  %v2654_v60 = vpop.f32.mrb[38].mxu1  ;;  %v2599_v0 = vpop.f32.mrb[39].mxu0 }
 0x146   :  { %v2600_v7 = vadd.f32 %v2599_v0, %v2598_v42  ;;  %v2655_v8 = vpop.f32.mrb[39].mxu1 }
 0x147   :  { %v2656_v12 = vadd.f32 %v2655_v8, %v2654_v60 }
 0x148   :  { %v2601_v16 = vpop.f32.mrb[40].mxu0 }
 0x149   :  { %v878_v17 = vadd.f32 %v2656_v12, %v2600_v7  ;;  %v2657_v25 = vpop.f32.mrb[40].mxu1  ;;  %v2602_v26 = vpop.f32.mrb[41].mxu0 }
 0x14a   :  { %v2603_v29 = vadd.f32 %v2602_v26, %v2601_v16  ;;  %v2658_v32 = vpop.f32.mrb[41].mxu1 }
 0x14b   :  { %v2659_v34 = vadd.f32 %v2658_v32, %v2657_v25 }
 0x14c   :  { %v2604_v36 = vpop.f32.mrb[42].mxu0 }
 0x14d   :  { %v5337_v38 = vadd.f32 %v2659_v34, %v2603_v29  ;;  %v2660_v61 = vpop.f32.mrb[42].mxu1  ;;  %v2605_v39 = vpop.f32.mrb[43].mxu0 }
 0x14e   :  { %v2606_v52 = vadd.f32 %v2605_v39, %v2604_v36  ;;  %v2661_v56 = vpop.f32.mrb[43].mxu1 }
 0x14f   :  { %v2662_v1 = vadd.f32 %v2661_v56, %v2660_v61 }
 0x150   :  { %v2607_v23 = vpop.f32.mrb[44].mxu0 }
 0x151   :  { %v5339_v15 = vadd.f32 %v2662_v1, %v2606_v52  ;;  %v2663_v62 = vpop.f32.mrb[44].mxu1  ;;  %v2608_v63 = vpop.f32.mrb[45].mxu0 }
 0x152   :  { %v2609_v48 = vadd.f32 %v2608_v63, %v2607_v23  ;;  %v2664_v5 = vpop.f32.mrb[45].mxu1 }
 0x153   :  { %v2665_v14 = vadd.f32 %v2664_v5, %v2663_v62 }
 0x154   :  { %v2610_v28 = vpop.f32.mrb[46].mxu0 }
 0x155   :  { %v5341_v20 = vadd.f32 %v2665_v14, %v2609_v48  ;;  %v2666_v40 = vpop.f32.mrb[46].mxu1  ;;  %v2611_v49 = vpop.f32.mrb[47].mxu0 }
 0x156   :  { %v2612_v35 = vadd.f32 %v2611_v49, %v2610_v28  ;;  %v2667_v4 = vpop.f32.mrb[47].mxu1 }
 0x157   :  { %v2668_v45 = vadd.f32 %v2667_v4, %v2666_v40 }
 0x158   :  { %v2701_v21 = vpop.f32.mrb[48].mxu0 }
 0x159   :  { %v5343_v37 = vadd.f32 %v2668_v45, %v2612_v35  ;;  %v2702_v44 = vpop.f32.mrb[49].mxu0  ;;  %v2757_v53 = vpop.f32.mrb[48].mxu1 }
 0x15a   :  { %v2703_v9 = vadd.f32 %v2702_v44, %v2701_v21  ;;  %v2758_v55 = vpop.f32.mrb[49].mxu1 }
 0x15b   :  { %v2759_v59 = vadd.f32 %v2758_v55, %v2757_v53 }
 0x15c   :  { %v968_v13 = vadd.f32 %v2703_v9, %v863_v51  ;;  %v2704_v31 = vpop.f32.mrb[50].mxu0 }
 0x15d   :  { %v2705_v43 = vpop.f32.mrb[51].mxu0  ;;  %v2760_v41 = vpop.f32.mrb[50].mxu1 }
 0x15e   :  { %v5345_v47 = vadd.f32 %v2759_v59, %v968_v13  ;;  %v2706_v58 = vadd.f32 %v2705_v43, %v2704_v31  ;;  %v2761_v2 = vpop.f32.mrb[51].mxu1 }
 0x15f   :  { %v2762_v10 = vadd.f32 %v2761_v2, %v2760_v41 }
 0x160   :  { %v1111_v33 = vmax.f32 %v5308_v6, %v5345_v47  ;;  %v973_v19 = vadd.f32 %v2706_v58, %v868_v11  ;;  %v2707_v57 = vpop.f32.mrb[52].mxu0 }
 0x161   :  { %v2708_v46 = vpop.f32.mrb[53].mxu0  ;;  %v2763_v42 = vpop.f32.mrb[52].mxu1 }
 0x162   :  { %v5349_v60 = vadd.f32 %v2762_v10, %v973_v19  ;;  %v2709_v0 = vadd.f32 %v2708_v46, %v2707_v57  ;;  %v2764_v7 = vpop.f32.mrb[53].mxu1 }
 0x163   :  { %v2765_v51 = vadd.f32 %v2764_v7, %v2763_v42 }
 0x164   :  { %v1112_v8 = vmax.f32 %v5317_v24, %v5349_v60  ;;  %v978_v12 = vadd.f32 %v2709_v0, %v873_v18  ;;  %v2710_v16 = vpop.f32.mrb[54].mxu0 }
 0x165   :  { %v2711_v25 = vpop.f32.mrb[55].mxu0  ;;  %v2766_v26 = vpop.f32.mrb[54].mxu1 }
 0x166   :  { %v5353_v29 = vadd.f32 %v2765_v51, %v978_v12  ;;  %v2712_v32 = vadd.f32 %v2711_v25, %v2710_v16  ;;  %v2767_v34 = vpop.f32.mrb[55].mxu1 }
 0x167   :  { %v2768_v11 = vadd.f32 %v2767_v34, %v2766_v26 }
 0x168   :  { %v1113_v36 = vmax.f32 %v5320_v3, %v5353_v29  ;;  %v983_v61 = vadd.f32 %v2712_v32, %v878_v17  ;;  %v2713_v39 = vpop.f32.mrb[56].mxu0 }
 0x169   :  { %v2714_v52 = vpop.f32.mrb[57].mxu0  ;;  %v2769_v56 = vpop.f32.mrb[56].mxu1 }
 0x16a   :  { %v5357_v1 = vadd.f32 %v2768_v11, %v983_v61  ;;  %v2715_v23 = vadd.f32 %v2714_v52, %v2713_v39  ;;  %v2770_v62 = vpop.f32.mrb[57].mxu1 }
 0x16b   :  { %v2771_v18 = vadd.f32 %v2770_v62, %v2769_v56 }
 0x16c   :  { %v1114_v63 = vmax.f32 %v5323_v30, %v5357_v1  ;;  %v988_v48 = vadd.f32 %v2715_v23, %v5337_v38  ;;  %v2716_v5 = vpop.f32.mrb[58].mxu0 }
 0x16d   :  { %v2717_v14 = vpop.f32.mrb[59].mxu0  ;;  %v2772_v28 = vpop.f32.mrb[58].mxu1 }
 0x16e   :  { %v5362_v40 = vadd.f32 %v2771_v18, %v988_v48  ;;  %v2718_v49 = vadd.f32 %v2717_v14, %v2716_v5  ;;  %v2773_v17 = vpop.f32.mrb[59].mxu1 }
 0x16f   :  { %v2774_v35 = vadd.f32 %v2773_v17, %v2772_v28 }
 0x170   :  { %v1115_v4 = vmax.f32 %v5326_v50, %v5362_v40  ;;  %v993_v45 = vadd.f32 %v2718_v49, %v5339_v15  ;;  %v2719_v21 = vpop.f32.mrb[60].mxu0 }
 0x171   :  { %v2720_v44 = vpop.f32.mrb[61].mxu0  ;;  %v2775_v53 = vpop.f32.mrb[60].mxu1 }
 0x172   :  { %v5367_v9 = vadd.f32 %v2774_v35, %v993_v45  ;;  %v2721_v55 = vadd.f32 %v2720_v44, %v2719_v21  ;;  %v2776_v38 = vpop.f32.mrb[61].mxu1 }
 0x173   :  { %v2777_v59 = vadd.f32 %v2776_v38, %v2775_v53 }
 0x174   :  { %v1116_v13 = vmax.f32 %v5329_v22, %v5367_v9  ;;  %v998_v31 = vadd.f32 %v2721_v55, %v5341_v20  ;;  %v2722_v43 = vpop.f32.mrb[62].mxu0 }
 0x175   :  { %v2723_v41 = vpop.f32.mrb[63].mxu0  ;;  %v2778_v58 = vpop.f32.mrb[62].mxu1 }
 0x176   :  { %v5372_v2 = vadd.f32 %v2777_v59, %v998_v31  ;;  %v2724_v10 = vadd.f32 %v2723_v41, %v2722_v43  ;;  %v2779_v15 = vpop.f32.mrb[63].mxu1 }
 0x177   :  { %v2780_v19 = vadd.f32 %v2779_v15, %v2778_v58 }
 0x178   :  { %v1117_v57 = vmax.f32 %v5332_v27, %v5372_v2  ;;  %v1003_v46 = vadd.f32 %v2724_v10, %v5343_v37  ;;  %v2813_v42 = vpop.f32.mrb[64].mxu0 }
 0x179   :  { %v2869_v0 = vpop.f32.mrb[64].mxu1  ;;  %v2814_v7 = vpop.f32.mrb[65].mxu0 }
 0x17a   :  { %v5377_v51 = vadd.f32 %v2780_v19, %v1003_v46  ;;  %v2815_v12 = vadd.f32 %v2814_v7, %v2813_v42  ;;  %v2870_v20 = vpop.f32.mrb[65].mxu1 }
 0x17b   :  { %v2871_v16 = vadd.f32 %v2870_v20, %v2869_v0 }
 0x17c   :  { %v1118_v25 = vmax.f32 %v5335_v54, %v5377_v51  ;;  %v2816_v26 = vpop.f32.mrb[66].mxu0 }
 0x17d   :  { %v1356_v32 = vadd.f32 %v2871_v16, %v2815_v12  ;;  %v2872_v34 = vpop.f32.mrb[66].mxu1  ;;  %v2817_v11 = vpop.f32.mrb[67].mxu0 }
 0x17e   :  { %v2818_v61 = vadd.f32 %v2817_v11, %v2816_v26  ;;  %v2873_v39 = vpop.f32.mrb[67].mxu1 }
 0x17f   :  { %v2874_v52 = vadd.f32 %v2873_v39, %v2872_v34 }
 0x180   :  { %v2819_v56 = vpop.f32.mrb[68].mxu0 }
 0x181   :  { %v1361_v37 = vadd.f32 %v2874_v52, %v2818_v61  ;;  %v2875_v23 = vpop.f32.mrb[68].mxu1  ;;  %v2820_v62 = vpop.f32.mrb[69].mxu0 }
 0x182   :  { %v2821_v18 = vadd.f32 %v2820_v62, %v2819_v56  ;;  %v2876_v48 = vpop.f32.mrb[69].mxu1 }
 0x183   :  { %v2877_v5 = vadd.f32 %v2876_v48, %v2875_v23 }
 0x184   :  { %v2822_v14 = vpop.f32.mrb[70].mxu0 }
 0x185   :  { %v1366_v28 = vadd.f32 %v2877_v5, %v2821_v18  ;;  %v2878_v49 = vpop.f32.mrb[70].mxu1  ;;  %v2823_v17 = vpop.f32.mrb[71].mxu0 }
 0x186   :  { %v2824_v35 = vadd.f32 %v2823_v17, %v2822_v14  ;;  %v2879_v45 = vpop.f32.mrb[71].mxu1 }
 0x187   :  { %v2880_v21 = vadd.f32 %v2879_v45, %v2878_v49 }
 0x188   :  { %v2825_v44 = vpop.f32.mrb[72].mxu0 }
 0x189   :  { %v1371_v53 = vadd.f32 %v2880_v21, %v2824_v35  ;;  %v2881_v55 = vpop.f32.mrb[72].mxu1  ;;  %v2826_v38 = vpop.f32.mrb[73].mxu0 }
 0x18a   :  { %v2827_v59 = vadd.f32 %v2826_v38, %v2825_v44  ;;  %v2882_v31 = vpop.f32.mrb[73].mxu1 }
 0x18b   :  { %v2883_v43 = vadd.f32 %v2882_v31, %v2881_v55 }
 0x18c   :  { %v2828_v41 = vpop.f32.mrb[74].mxu0 }
 0x18d   :  { %v5381_v58 = vadd.f32 %v2883_v43, %v2827_v59  ;;  %v2884_v10 = vpop.f32.mrb[74].mxu1  ;;  %v2829_v15 = vpop.f32.mrb[75].mxu0 }
 0x18e   :  { %v2830_v19 = vadd.f32 %v2829_v15, %v2828_v41  ;;  %v2885_v46 = vpop.f32.mrb[75].mxu1 }
 0x18f   :  { %v2886_v42 = vadd.f32 %v2885_v46, %v2884_v10 }
 0x190   :  { %v2831_v0 = vpop.f32.mrb[76].mxu0 }
 0x191   :  { %v5383_v7 = vadd.f32 %v2886_v42, %v2830_v19  ;;  %v2887_v12 = vpop.f32.mrb[76].mxu1  ;;  %v2832_v20 = vpop.f32.mrb[77].mxu0 }
 0x192   :  { %v2833_v16 = vadd.f32 %v2832_v20, %v2831_v0  ;;  %v2888_v26 = vpop.f32.mrb[77].mxu1 }
 0x193   :  { %v2889_v34 = vadd.f32 %v2888_v26, %v2887_v12 }
 0x194   :  { %v2834_v11 = vpop.f32.mrb[78].mxu0 }
 0x195   :  { %v5385_v61 = vadd.f32 %v2889_v34, %v2833_v16  ;;  %v2890_v39 = vpop.f32.mrb[78].mxu1  ;;  %v2835_v52 = vpop.f32.mrb[79].mxu0 }
 0x196   :  { %v2836_v56 = vadd.f32 %v2835_v52, %v2834_v11  ;;  %v2891_v23 = vpop.f32.mrb[79].mxu1 }
 0x197   :  { %v2892_v62 = vadd.f32 %v2891_v23, %v2890_v39 }
 0x198   :  { %v2925_v18 = vpop.f32.mrb[80].mxu0 }
 0x199   :  { %v5387_v48 = vadd.f32 %v2892_v62, %v2836_v56  ;;  %v2926_v5 = vpop.f32.mrb[81].mxu0  ;;  %v2981_v14 = vpop.f32.mrb[80].mxu1 }
 0x19a   :  { %v2927_v49 = vadd.f32 %v2926_v5, %v2925_v18  ;;  %v2982_v17 = vpop.f32.mrb[81].mxu1 }
 0x19b   :  { %v2983_v35 = vadd.f32 %v2982_v17, %v2981_v14 }
 0x19c   :  { %v1461_v45 = vadd.f32 %v2927_v49, %v1356_v32  ;;  %v2928_v21 = vpop.f32.mrb[82].mxu0 }
 0x19d   :  { %v2929_v44 = vpop.f32.mrb[83].mxu0  ;;  %v2984_v55 = vpop.f32.mrb[82].mxu1 }
 0x19e   :  { %v1566_v38 = vadd.f32 %v2983_v35, %v1461_v45  ;;  %v2930_v59 = vadd.f32 %v2929_v44, %v2928_v21  ;;  %v2985_v31 = vpop.f32.mrb[83].mxu1 }
 0x19f   :  { %v2986_v43 = vadd.f32 %v2985_v31, %v2984_v55 }
 0x1a0   :  { %v5392_v41 = vmax.f32 %v1111_v33, %v1566_v38  ;;  %v1466_v10 = vadd.f32 %v2930_v59, %v1361_v37  ;;  %v2931_v15 = vpop.f32.mrb[84].mxu0 }
 0x1a1   :  { %v2932_v19 = vpop.f32.mrb[85].mxu0  ;;  %v2987_v46 = vpop.f32.mrb[84].mxu1 }
 0x1a2   :  { %v1571_v42 = vadd.f32 %v2986_v43, %v1466_v10  ;;  %v2933_v0 = vadd.f32 %v2932_v19, %v2931_v15  ;;  %v2988_v12 = vpop.f32.mrb[85].mxu1 }
 0x1a3   :  { %v2989_v32 = vadd.f32 %v2988_v12, %v2987_v46 }
 0x1a4   :  { %v5397_v20 = vmax.f32 %v1112_v8, %v1571_v42  ;;  %v1471_v16 = vadd.f32 %v2933_v0, %v1366_v28  ;;  %v2934_v26 = vpop.f32.mrb[86].mxu0 }
 0x1a5   :  { %v2935_v34 = vpop.f32.mrb[87].mxu0  ;;  %v2990_v11 = vpop.f32.mrb[86].mxu1 }
 0x1a6   :  { %v1576_v6 = vadd.f32 %v2989_v32, %v1471_v16  ;;  %v2936_v47 = vadd.f32 %v2935_v34, %v2934_v26  ;;  %v2991_v33 = vpop.f32.mrb[87].mxu1 }
 0x1a7   :  { %v2992_v37 = vadd.f32 %v2991_v33, %v2990_v11 }
 0x1a8   :  { %v5402_v39 = vmax.f32 %v1113_v36, %v1576_v6  ;;  %v1476_v52 = vadd.f32 %v2936_v47, %v1371_v53  ;;  %v2937_v56 = vpop.f32.mrb[88].mxu0 }
 0x1a9   :  { %v2938_v23 = vpop.f32.mrb[89].mxu0  ;;  %v2993_v62 = vpop.f32.mrb[88].mxu1 }
 0x1aa   :  { %v1581_v24 = vadd.f32 %v2992_v37, %v1476_v52  ;;  %v2939_v60 = vadd.f32 %v2938_v23, %v2937_v56  ;;  %v2994_v8 = vpop.f32.mrb[89].mxu1 }
 0x1ab   :  { %v2995_v28 = vadd.f32 %v2994_v8, %v2993_v62 }
 0x1ac   :  { %v5407_v18 = vmax.f32 %v1114_v63, %v1581_v24  ;;  %v1481_v5 = vadd.f32 %v2939_v60, %v5381_v58  ;;  %v2940_v14 = vpop.f32.mrb[90].mxu0 }
 0x1ad   :  { %v2941_v49 = vpop.f32.mrb[91].mxu0  ;;  %v2996_v3 = vpop.f32.mrb[90].mxu1 }
 0x1ae   :  { %v1586_v29 = vadd.f32 %v2995_v28, %v1481_v5  ;;  %v2942_v36 = vadd.f32 %v2941_v49, %v2940_v14  ;;  %v2997_v53 = vpop.f32.mrb[91].mxu1 }
 0x1af   :  { %v2998_v17 = vadd.f32 %v2997_v53, %v2996_v3 }
 0x1b0   :  { %v5413_v35 = vmax.f32 %v1115_v4, %v1586_v29  ;;  %v1486_v45 = vadd.f32 %v2942_v36, %v5383_v7  ;;  %v2943_v21 = vpop.f32.mrb[92].mxu0 }
 0x1b1   :  { %v2944_v30 = vpop.f32.mrb[93].mxu0  ;;  %v2999_v1 = vpop.f32.mrb[92].mxu1 }
 0x1b2   :  { %v1591_v63 = vadd.f32 %v2998_v17, %v1486_v45  ;;  %v2945_v44 = vadd.f32 %v2944_v30, %v2943_v21  ;;  %v3000_v58 = vpop.f32.mrb[93].mxu1 }
 0x1b3   :  { %v3001_v55 = vadd.f32 %v3000_v58, %v2999_v1 }
 0x1b4   :  { %v5419_v38 = vmax.f32 %v1116_v13, %v1591_v63  ;;  %v1491_v59 = vadd.f32 %v2945_v44, %v5385_v61  ;;  %v2946_v31 = vpop.f32.mrb[94].mxu0 }
 0x1b5   :  { %v2947_v50 = vpop.f32.mrb[95].mxu0  ;;  %v3002_v40 = vpop.f32.mrb[94].mxu1 }
 0x1b6   :  { %v1596_v4 = vadd.f32 %v3001_v55, %v1491_v59  ;;  %v2948_v43 = vadd.f32 %v2947_v50, %v2946_v31  ;;  %v3003_v7 = vpop.f32.mrb[95].mxu1 }
 0x1b7   :  { %v3004_v10 = vadd.f32 %v3003_v7, %v3002_v40 }
 0x1b8   :  { %v5425_v15 = vmax.f32 %v1117_v57, %v1596_v4  ;;  %v1496_v19 = vadd.f32 %v2948_v43, %v5387_v48  ;;  %v3037_v46 = vpop.f32.mrb[96].mxu0 }
 0x1b9   :  { %v3093_v22 = vpop.f32.mrb[96].mxu1  ;;  %v3038_v9 = vpop.f32.mrb[97].mxu0 }
 0x1ba   :  { %v1601_v13 = vadd.f32 %v3004_v10, %v1496_v19  ;;  %v3039_v42 = vadd.f32 %v3038_v9, %v3037_v46  ;;  %v3094_v61 = vpop.f32.mrb[97].mxu1 }
 0x1bb   :  { %v3095_v0 = vadd.f32 %v3094_v61, %v3093_v22 }
 0x1bc   :  { %v5431_v12 = vmax.f32 %v1118_v25, %v1601_v13  ;;  %v3040_v32 = vpop.f32.mrb[98].mxu0 }
 0x1bd   :  { %v1849_v16 = vadd.f32 %v3095_v0, %v3039_v42  ;;  %v3096_v26 = vpop.f32.mrb[98].mxu1  ;;  %v3041_v27 = vpop.f32.mrb[99].mxu0 }
 0x1be   :  { %v3042_v2 = vadd.f32 %v3041_v27, %v3040_v32  ;;  %v3097_v57 = vpop.f32.mrb[99].mxu1 }
 0x1bf   :  { %v3098_v34 = vadd.f32 %v3097_v57, %v3096_v26 }
 0x1c0   :  { %v3043_v48 = vpop.f32.mrb[100].mxu0 }
 0x1c1   :  { %v1854_v11 = vadd.f32 %v3098_v34, %v3042_v2  ;;  %v3099_v6 = vpop.f32.mrb[100].mxu1  ;;  %v3044_v47 = vpop.f32.mrb[101].mxu0 }
 0x1c2   :  { %v3045_v33 = vadd.f32 %v3044_v47, %v3043_v48  ;;  %v3100_v37 = vpop.f32.mrb[101].mxu1  ;;  %v5448_v48 = vld [vmem:[%s5498_s2] ss:$0 sm:$0xff] }
 0x1c3   :  { %v3101_v52 = vadd.f32 %v3100_v37, %v3099_v6 }
 0x1c4   :  { %v3046_v56 = vpop.f32.mrb[102].mxu0 }
 0x1c5   :  { %v5433_v23 = vadd.f32 %v3101_v52, %v3045_v33  ;;  %v3102_v54 = vpop.f32.mrb[102].mxu1  ;;  %v3047_v51 = vpop.f32.mrb[103].mxu0 }
 0x1c6   :  { %v3048_v25 = vadd.f32 %v3047_v51, %v3046_v56  ;;  %v3103_v62 = vpop.f32.mrb[103].mxu1 }
 0x1c7   :  { %v3104_v24 = vadd.f32 %v3103_v62, %v3102_v54 }
 0x1c8   :  { %v3049_v60 = vpop.f32.mrb[104].mxu0 }
 0x1c9   :  { %v5435_v8 = vadd.f32 %v3104_v24, %v3048_v25  ;;  %v3105_v28 = vpop.f32.mrb[104].mxu1  ;;  %v3050_v5 = vpop.f32.mrb[105].mxu0 }
 0x1ca   :  { %v3051_v14 = vadd.f32 %v3050_v5, %v3049_v60  ;;  %v3106_v49 = vpop.f32.mrb[105].mxu1 }
 0x1cb   :  { %v3107_v3 = vadd.f32 %v3106_v49, %v3105_v28 }
 0x1cc   :  { %v3052_v29 = vpop.f32.mrb[106].mxu0 }
 0x1cd   :  { %v5437_v36 = vadd.f32 %v3107_v3, %v3051_v14  ;;  %v3108_v53 = vpop.f32.mrb[106].mxu1  ;;  %v3053_v17 = vpop.f32.mrb[107].mxu0 }
 0x1ce   :  { %v3054_v45 = vadd.f32 %v3053_v17, %v3052_v29  ;;  %v3109_v21 = vpop.f32.mrb[107].mxu1 }
 0x1cf   :  { %v3110_v30 = vadd.f32 %v3109_v21, %v3108_v53 }
 0x1d0   :  { %v3055_v1 = vpop.f32.mrb[108].mxu0 }
 0x1d1   :  { %v5439_v63 = vadd.f32 %v3110_v30, %v3054_v45  ;;  %v3111_v44 = vpop.f32.mrb[108].mxu1  ;;  %v3056_v58 = vpop.f32.mrb[109].mxu0 }
 0x1d2   :  { %v3057_v55 = vadd.f32 %v3056_v58, %v3055_v1  ;;  %v3112_v59 = vpop.f32.mrb[109].mxu1 }
 0x1d3   :  { %v3113_v31 = vadd.f32 %v3112_v59, %v3111_v44 }
 0x1d4   :  { %v3058_v50 = vpop.f32.mrb[110].mxu0 }
 0x1d5   :  { %v5441_v40 = vadd.f32 %v3113_v31, %v3057_v55  ;;  %v3114_v4 = vpop.f32.mrb[110].mxu1  ;;  %v3059_v43 = vpop.f32.mrb[111].mxu0 }
 0x1d6   :  { %v3060_v7 = vadd.f32 %v3059_v43, %v3058_v50  ;;  %v3115_v10 = vpop.f32.mrb[111].mxu1 }
 0x1d7   :  { %v3116_v19 = vadd.f32 %v3115_v10, %v3114_v4 }
 0x1d8   :  { %v3149_v46 = vpop.f32.mrb[112].mxu0 }
 0x1d9   :  { %v5443_v22 = vadd.f32 %v3116_v19, %v3060_v7  ;;  %v3150_v9 = vpop.f32.mrb[113].mxu0 }
 0x1da   :  { %v3151_v13 = vadd.f32 %v3150_v9, %v3149_v46  ;;  %v3205_v42 = vpop.f32.mrb[112].mxu1 }
 0x1db   :  { %v3206_v61 = vpop.f32.mrb[113].mxu1 }
 0x1dc   :  { %v1954_v0 = vadd.f32 %v3151_v13, %v1849_v16  ;;  %v3207_v32 = vadd.f32 %v3206_v61, %v3205_v42  ;;  %v3152_v26 = vpop.f32.mrb[114].mxu0 }
 0x1dd   :  { %v3153_v27 = vpop.f32.mrb[115].mxu0 }
 0x1de   :  { %v2059_v2 = vadd.f32 %v3207_v32, %v1954_v0  ;;  %v3154_v57 = vadd.f32 %v3153_v27, %v3152_v26  ;;  %v3208_v34 = vpop.f32.mrb[114].mxu1 }
 0x1df   :  { %v3209_v6 = vpop.f32.mrb[115].mxu1 }
 0x1e0   :  { %v2097_v47 = vmax.f32 %v5392_v41, %v2059_v2  ;;  %v1959_v33 = vadd.f32 %v3154_v57, %v1854_v11  ;;  %v3210_v37 = vadd.f32 %v3209_v6, %v3208_v34  ;;  %v3155_v52 = vpop.f32.mrb[116].mxu0 }
 0x1e1   :  { %v3156_v56 = vpop.f32.mrb[117].mxu0 }
 0x1e2   :  { %v2112_v16 = vadd.f32 %v5448_v48, %v2097_v47  ;;  %v2064_v54 = vadd.f32 %v3210_v37, %v1959_v33  ;;  %v3157_v51 = vadd.f32 %v3156_v56, %v3155_v52  ;;  %v3211_v25 = vpop.f32.mrb[116].mxu1 }
 0x1e3   :  { %v3212_v62 = vpop.f32.mrb[117].mxu1 }
 0x1e4   :  { %v2120_v24 = vmax.f32 %v2112_v16, 0.0  ;;  %v2098_v60 = vmax.f32 %v5397_v20, %v2064_v54  ;;  %v1964_v28 = vadd.f32 %v3157_v51, %v5433_v23  ;;  %v3213_v5 = vadd.f32 %v3212_v62, %v3211_v25  ;;  %v3158_v14 = vpop.f32.mrb[118].mxu0 }
 0x1e5   :  { %v3159_v49 = vpop.f32.mrb[119].mxu0 }
 0x1e6   :  { %2128 = vst [vmem:[%s5499_s3] sm:$0xff] %v2120_v24  ;;  %v2113_v41 = vadd.f32 %v5448_v48, %v2098_v60  ;;  %v2069_v11 = vadd.f32 %v3213_v5, %v1964_v28  ;;  %v3160_v3 = vadd.f32 %v3159_v49, %v3158_v14  ;;  %v3214_v29 = vpop.f32.mrb[118].mxu1 }
 0x1e7   :  { %v3215_v53 = vpop.f32.mrb[119].mxu1 }
 0x1e8   :  { %v2121_v17 = vmax.f32 %v2113_v41, 0.0  ;;  %v2099_v45 = vmax.f32 %v5402_v39, %v2069_v11  ;;  %v1969_v20 = vadd.f32 %v3160_v3, %v5435_v8  ;;  %v3216_v21 = vadd.f32 %v3215_v53, %v3214_v29  ;;  %v3161_v23 = vpop.f32.mrb[120].mxu0 }
 0x1e9   :  { %v3162_v30 = vpop.f32.mrb[121].mxu0 }
 0x1ea   :  { %2129 = vst [vmem:[%s5499_s3 + $0x8] sm:$0xff] %v2121_v17  ;;  %v2114_v1 = vadd.f32 %v5448_v48, %v2099_v45  ;;  %v2074_v44 = vadd.f32 %v3216_v21, %v1969_v20  ;;  %v3163_v58 = vadd.f32 %v3162_v30, %v3161_v23  ;;  %v3217_v55 = vpop.f32.mrb[120].mxu1 }
 0x1eb   :  { %v3218_v59 = vpop.f32.mrb[121].mxu1 }
 0x1ec   :  { %v2122_v31 = vmax.f32 %v2114_v1, 0.0  ;;  %v2100_v50 = vmax.f32 %v5407_v18, %v2074_v44  ;;  %v1974_v39 = vadd.f32 %v3163_v58, %v5437_v36  ;;  %v3219_v4 = vadd.f32 %v3218_v59, %v3217_v55  ;;  %v3164_v8 = vpop.f32.mrb[122].mxu0 }
 0x1ed   :  { %v3165_v43 = vpop.f32.mrb[123].mxu0 }
 0x1ee   :  { %2130 = vst [vmem:[%s5499_s3 + $0x10] sm:$0xff] %v2122_v31  ;;  %v2115_v7 = vadd.f32 %v5448_v48, %v2100_v50  ;;  %v2079_v10 = vadd.f32 %v3219_v4, %v1974_v39  ;;  %v3166_v19 = vadd.f32 %v3165_v43, %v3164_v8  ;;  %v3220_v46 = vpop.f32.mrb[122].mxu1 }
 0x1ef   :  { %v3221_v9 = vpop.f32.mrb[123].mxu1 }
 0x1f0   :  { %v2123_v13 = vmax.f32 %v2115_v7, 0.0  ;;  %v2101_v42 = vmax.f32 %v5413_v35, %v2079_v10  ;;  %v1979_v18 = vadd.f32 %v3166_v19, %v5439_v63  ;;  %v3222_v61 = vadd.f32 %v3221_v9, %v3220_v46  ;;  %v3167_v36 = vpop.f32.mrb[124].mxu0 }
 0x1f1   :  { %v3168_v0 = vpop.f32.mrb[125].mxu0 }
 0x1f2   :  { %2131 = vst [vmem:[%s5499_s3 + $0x18] sm:$0xff] %v2123_v13  ;;  %v2116_v32 = vadd.f32 %v5448_v48, %v2101_v42  ;;  %v2084_v26 = vadd.f32 %v3222_v61, %v1979_v18  ;;  %v3169_v27 = vadd.f32 %v3168_v0, %v3167_v36  ;;  %v3223_v2 = vpop.f32.mrb[124].mxu1 }
 0x1f3   :  { %v3224_v57 = vpop.f32.mrb[125].mxu1 }
 0x1f4   :  { %v2124_v34 = vmax.f32 %v2116_v32, 0.0  ;;  %v2102_v6 = vmax.f32 %v5419_v38, %v2084_v26  ;;  %v1984_v35 = vadd.f32 %v3169_v27, %v5441_v40  ;;  %v3225_v47 = vadd.f32 %v3224_v57, %v3223_v2  ;;  %v3170_v63 = vpop.f32.mrb[126].mxu0 }
 0x1f5   :  { %v3171_v33 = vpop.f32.mrb[127].mxu0 }
 0x1f6   :  { %2132 = vst [vmem:[%s5499_s3 + $0x20] sm:$0xff] %v2124_v34  ;;  %v2117_v37 = vadd.f32 %v5448_v48, %v2102_v6  ;;  %v2089_v52 = vadd.f32 %v3225_v47, %v1984_v35  ;;  %v3172_v56 = vadd.f32 %v3171_v33, %v3170_v63  ;;  %v3226_v16 = vpop.f32.mrb[126].mxu1 }
 0x1f7   :  { %v3227_v54 = vpop.f32.mrb[127].mxu1 }
 0x1f8   :  { %v2125_v51 = vmax.f32 %v2117_v37, 0.0  ;;  %v2103_v25 = vmax.f32 %v5425_v15, %v2089_v52  ;;  %v1989_v38 = vadd.f32 %v3172_v56, %v5443_v22  ;;  %v3228_v62 = vadd.f32 %v3227_v54, %v3226_v16 }
 0x1fa   :  { %2133 = vst [vmem:[%s5499_s3 + $0x28] sm:$0xff] %v2125_v51  ;;  %v2118_v40 = vadd.f32 %v5448_v48, %v2103_v25  ;;  %v2094_v24 = vadd.f32 %v3228_v62, %v1989_v38 }
 0x1fc   :  { %v2126_v60 = vmax.f32 %v2118_v40, 0.0  ;;  %v2104_v28 = vmax.f32 %v5431_v12, %v2094_v24 }
 0x1fe   :  { %2134 = vst [vmem:[%s5499_s3 + $0x30] sm:$0xff] %v2126_v60  ;;  %v2119_v5 = vadd.f32 %v5448_v48, %v2104_v28 }
 0x200   :  { %v2127_v15 = vmax.f32 %v2119_v5, 0.0 }
 0x202   :  { %2135 = vst [vmem:[%s5499_s3 + $0x38] sm:$0xff] %v2127_v15 }

// kernel: cnn_to_lstm_forward.3
= control target key start
LH: loop header
LB: loop body
LE: loop exit
PB: predicated region body
PF: predicated region fallthrough
CT: control target
= control target key end

     0   :  { %vm7837_vm0 = vmmov 0   ;;  %s7839_s19 = smov 64   ;;  %vm3013_vm1 = vcmask 253952   ;;  %vm2910_vm2 = vcmask 261120   ;;  %vm3122_vm3 = vcmask 254977   ;;  %s10178_s1 = inlined_call_operand.vmem [shape: f32[2048,128], index: 1, kind: input, shape index: {}]   ;;  %s10179_s0 = inlined_call_operand.vmem [shape: f32[4,8,2048], index: 0, kind: input, shape index: {}]   ;;  %s10180_s3 = inlined_call_operand.vmem [shape: f32[128,128], index: 3, kind: input, shape index: {}]   ;;  %s10181_s5 = inlined_call_operand.vmem [shape: f32[128,128], index: 5, kind: input, shape index: {}]   ;;  %s10182_s2 = inlined_call_operand.vmem [shape: f32[1,128], index: 2, kind: input, shape index: {}]   ;;  %s10183_s7 = inlined_call_operand.vmem [shape: f32[128,128], index: 7, kind: input, shape index: {}]   ;;  %s10184_s4 = inlined_call_operand.vmem [shape: f32[1,128], index: 4, kind: input, shape index: {}]   ;;  %s10185_s8 = inlined_call_operand.vmem [shape: f32[32,128], index: 8, kind: input, shape index: {}]   ;;  %s10186_s6 = inlined_call_operand.vmem [shape: f32[1,128], index: 6, kind: input, shape index: {}]   ;;  %s10187_s9 = inlined_call_operand.vmem [shape: f32[1,128], index: 9, kind: input, shape index: {}]   ;;  %s10188_s10 = inlined_call_operand.vmem [shape: f32[32,128], index: 10, kind: input, shape index: {}]   ;;  %s10189_s11 = inlined_call_operand.vmem [shape: f32[32,128], index: 11, kind: input, shape index: {}]   ;;  %s10190_s12 = inlined_call_operand.vmem [shape: f32[1,128], index: 12, kind: input, shape index: {}]   ;;  %s10191_s13 = inlined_call_operand.vmem [shape: f32[32,128], index: 13, kind: input, shape index: {}]   ;;  %s10192_s14 = inlined_call_operand.vmem [shape: f32[1,128], index: 14, kind: input, shape index: {}]   ;;  %s10193_s15 = inlined_call_operand.vmem [shape: f32[8,128], index: 15, kind: output, shape index: {}]  }
   0x1   :  { %v66_v0 = vld [vmem:[%s10178_s1 + $0x80] sm:$0xff]  ;;  %v67_v1 = vld [vmem:[%s10178_s1 + $0x88] sm:$0xff]  ;;  %v68_v11 = vld [vmem:[%s10178_s1 + $0x90] sm:$0xff]  ;;  %vm3346_vm4 = vcmask 257027   ;;  %vm3570_vm5 = vcmask 259077   ;;  %vm3234_vm6 = vcmask 256002  }
   0x2   :  { %v98_v2 = vld [vmem:[%s10178_s1 + $0x180] sm:$0xff]  ;;  %v7930_v3 = vpack.c.bf16 %v67_v1, %v66_v0  ;;  %v99_v4 = vld [vmem:[%s10178_s1 + $0x188] sm:$0xff]  ;;  %v69_v13 = vld [vmem:[%s10178_s1 + $0x98] sm:$0xff]  ;;  %vm3458_vm7 = vcmask 258052   ;;  %vm3682_vm8 = vcmask 260102   ;;  %vm3794_vm9 = vcmask 261127  }
   0x3   :  { %v50_v5 = vld [vmem:[%s10178_s1] sm:$0xff]  ;;  %v51_v6 = vld [vmem:[%s10178_s1 + $0x8] sm:$0xff]  ;;  %v7941_v7 = vpack.c.bf16 %v99_v4, %v98_v2  ;;  %v100_v14 = vld [vmem:[%s10178_s1 + $0x190] sm:$0xff]  ;;  %v7968_v16 = vpack.c.bf16 %v69_v13, %v68_v11 }
   0x4   :  { %v7943_v8 = vpack.c.bf16 %v51_v6, %v50_v5  ;;  %v82_v9 = vld [vmem:[%s10178_s1 + $0x100] sm:$0xff]  ;;  %v83_v10 = vld [vmem:[%s10178_s1 + $0x108] sm:$0xff]  ;;  %6500 = vmatprep.subr.bf16.mxu0 %v7930_v3  ;;  %v101_v15 = vld [vmem:[%s10178_s1 + $0x198] sm:$0xff] }
   0x5   :  { %v7955_v12 = vpack.c.bf16 %v83_v10, %v82_v9  ;;  %6532 = vmatprep.subr.bf16.mxu1 %v7941_v7  ;;  %v7970_v17 = vpack.c.bf16 %v101_v15, %v100_v14  ;;  %v52_v18 = vld [vmem:[%s10178_s1 + $0x10] sm:$0xff]  ;;  %v53_v19 = vld [vmem:[%s10178_s1 + $0x18] sm:$0xff]  ;;  %v70_v23 = vld [vmem:[%s10178_s1 + $0xa0] sm:$0xff] }
   0x6   :  { %6502 = vmatpush3.bf16.msra.mxu0 %v7943_v8  ;;  %v84_v20 = vld [vmem:[%s10178_s1 + $0x110] sm:$0xff]  ;;  %v7982_v21 = vpack.c.bf16 %v53_v19, %v52_v18  ;;  %v85_v22 = vld [vmem:[%s10178_s1 + $0x118] sm:$0xff]  ;;  %v71_v24 = vld [vmem:[%s10178_s1 + $0xa8] sm:$0xff] }
   0x7   :  { %6534 = vmatpush3.bf16.msra.mxu1 %v7955_v12  ;;  %6504 = vmatprep.subr.bf16.mxu0 %v7968_v16  ;;  %v7995_v25 = vpack.c.bf16 %v85_v22, %v84_v20  ;;  %v7997_v26 = vpack.c.bf16 %v71_v24, %v70_v23  ;;  %v102_v27 = vld [vmem:[%s10178_s1 + $0x1a0] sm:$0xff]  ;;  %v103_v28 = vld [vmem:[%s10178_s1 + $0x1a8] sm:$0xff]  ;;  %v72_v35 = vld [vmem:[%s10178_s1 + $0xb0] sm:$0xff] }
   0x8   :  { %6536 = vmatprep.subr.bf16.mxu1 %v7970_v17  ;;  %v54_v29 = vld [vmem:[%s10178_s1 + $0x20] sm:$0xff]  ;;  %v8008_v30 = vpack.c.bf16 %v103_v28, %v102_v27  ;;  %v55_v31 = vld [vmem:[%s10178_s1 + $0x28] sm:$0xff]  ;;  %v73_v36 = vld [vmem:[%s10178_s1 + $0xb8] sm:$0xff] }
   0x9   :  { %v86_v32 = vld [vmem:[%s10178_s1 + $0x120] sm:$0xff]  ;;  %v87_v33 = vld [vmem:[%s10178_s1 + $0x128] sm:$0xff]  ;;  %v8020_v34 = vpack.c.bf16 %v55_v31, %v54_v29  ;;  %v104_v37 = vld [vmem:[%s10178_s1 + $0x1b0] sm:$0xff]  ;;  %v8035_v39 = vpack.c.bf16 %v73_v36, %v72_v35 }
   0xa   :  { %6506 = vmatpush3.bf16.msra.mxu0 %v7982_v21  ;;  %v8033_v38 = vpack.c.bf16 %v87_v33, %v86_v32  ;;  %v105_v40 = vld [vmem:[%s10178_s1 + $0x1b8] sm:$0xff]  ;;  %v56_v41 = vld [vmem:[%s10178_s1 + $0x30] sm:$0xff]  ;;  %v74_v46 = vld [vmem:[%s10178_s1 + $0xc0] sm:$0xff] }
   0xb   :  { %6538 = vmatpush3.bf16.msra.mxu1 %v7995_v25  ;;  %6508 = vmatprep.subr.bf16.mxu0 %v7997_v26  ;;  %v57_v42 = vld [vmem:[%s10178_s1 + $0x38] sm:$0xff]  ;;  %v8047_v43 = vpack.c.bf16 %v105_v40, %v104_v37  ;;  %v88_v44 = vld [vmem:[%s10178_s1 + $0x130] sm:$0xff]  ;;  %v75_v47 = vld [vmem:[%s10178_s1 + $0xc8] sm:$0xff] }
   0xc   :  { %6540 = vmatprep.subr.bf16.mxu1 %v8008_v30  ;;  %v89_v45 = vld [vmem:[%s10178_s1 + $0x138] sm:$0xff]  ;;  %v106_v48 = vld [vmem:[%s10178_s1 + $0x1c0] sm:$0xff]  ;;  %v107_v49 = vld [vmem:[%s10178_s1 + $0x1c8] sm:$0xff]  ;;  %v8068_v50 = vpack.c.bf16 %v57_v42, %v56_v41  ;;  %v8074_v52 = vpack.c.bf16 %v75_v47, %v74_v46 }
   0xd   :  { %v8072_v51 = vpack.c.bf16 %v89_v45, %v88_v44  ;;  %v58_v53 = vld [vmem:[%s10178_s1 + $0x40] sm:$0xff]  ;;  %v59_v54 = vld [vmem:[%s10178_s1 + $0x48] sm:$0xff]  ;;  %v8086_v56 = vpack.c.bf16 %v107_v49, %v106_v48  ;;  %v76_v58 = vld [vmem:[%s10178_s1 + $0xd0] sm:$0xff] }
   0xe   :  { %6510 = vmatpush3.bf16.msra.mxu0 %v8020_v34  ;;  %v90_v55 = vld [vmem:[%s10178_s1 + $0x140] sm:$0xff]  ;;  %v91_v57 = vld [vmem:[%s10178_s1 + $0x148] sm:$0xff]  ;;  %v77_v59 = vld [vmem:[%s10178_s1 + $0xd8] sm:$0xff]  ;;  %v8104_v62 = vpack.c.bf16 %v59_v54, %v58_v53 }
   0xf   :  { %6542 = vmatpush3.bf16.msra.mxu1 %v8033_v38  ;;  %6512 = vmatprep.subr.bf16.mxu0 %v8035_v39  ;;  %10359 = vst [vmem:[#allocation3_spill] sm:$0xff] %v8086_v56  ;;  %v108_v60 = vld [vmem:[%s10178_s1 + $0x1d0] sm:$0xff]  ;;  %v109_v61 = vld [vmem:[%s10178_s1 + $0x1d8] sm:$0xff]  ;;  %v8108_v63 = vpack.c.bf16 %v91_v57, %v90_v55  ;;  %v8110_v0 = vpack.c.bf16 %v77_v59, %v76_v58  ;;  %v78_v9 = vld [vmem:[%s10178_s1 + $0xe0] sm:$0xff] }
  0x10   :  { %6544 = vmatprep.subr.bf16.mxu1 %v8047_v43  ;;  %v60_v1 = vld [vmem:[%s10178_s1 + $0x50] sm:$0xff]  ;;  %v61_v2 = vld [vmem:[%s10178_s1 + $0x58] sm:$0xff]  ;;  %v8122_v5 = vpack.c.bf16 %v109_v61, %v108_v60  ;;  %v79_v10 = vld [vmem:[%s10178_s1 + $0xe8] sm:$0xff] }
  0x11   :  { %10360 = vst [vmem:[#allocation4_spill] sm:$0xff] %v8108_v63  ;;  %v92_v4 = vld [vmem:[%s10178_s1 + $0x150] sm:$0xff]  ;;  %v93_v6 = vld [vmem:[%s10178_s1 + $0x158] sm:$0xff]  ;;  %v110_v11 = vld [vmem:[%s10178_s1 + $0x1e0] sm:$0xff]  ;;  %v8140_v14 = vpack.c.bf16 %v61_v2, %v60_v1  ;;  %v8152_v20 = vpack.c.bf16 %v79_v10, %v78_v9 }
  0x12   :  { %6514 = vmatpush3.bf16.msra.mxu0 %v8068_v50  ;;  %v111_v13 = vld [vmem:[%s10178_s1 + $0x1e8] sm:$0xff]  ;;  %v62_v15 = vld [vmem:[%s10178_s1 + $0x60] sm:$0xff]  ;;  %v8150_v19 = vpack.c.bf16 %v93_v6, %v92_v4  ;;  %v309_v24 = vld [vmem:[%s10179_s0 + $0x18] sm:$0xff] }
  0x13   :  { %6546 = vmatpush3.bf16.msra.mxu1 %v8072_v51  ;;  %6516 = vmatprep.subr.bf16.mxu0 %v8074_v52  ;;  %v63_v18 = vld [vmem:[%s10178_s1 + $0x68] sm:$0xff]  ;;  %v94_v22 = vld [vmem:[%s10178_s1 + $0x160] sm:$0xff]  ;;  %v8164_v27 = vpack.c.bf16 %v111_v13, %v110_v11  ;;  %v80_v29 = vld [vmem:[%s10178_s1 + $0xf0] sm:$0xff] }
  0x14   :  { %6548 = vmatprep.subr.bf16.mxu1 %v8086_v56  ;;  %v307_v23 = vld [vmem:[%s10179_s0 + $0x8] sm:$0xff]  ;;  %v81_v31 = vld [vmem:[%s10178_s1 + $0xf8] sm:$0xff]  ;;  %v112_v32 = vld [vmem:[%s10178_s1 + $0x1f0] sm:$0xff]  ;;  %456 = vmatprep.mubr.f32.mxu1 %v309_v24  ;;  %v8182_v35 = vpack.c.bf16 %v63_v18, %v62_v15 }
  0x15   :  { %v95_v28 = vld [vmem:[%s10178_s1 + $0x168] sm:$0xff]  ;;  %386 = vmatprep.mubr.f32.mxu0 %v307_v23  ;;  %v113_v33 = vld [vmem:[%s10178_s1 + $0x1f8] sm:$0xff]  ;;  %v8188_v37 = vpack.c.bf16 %v81_v31, %v80_v29  ;;  %v64_v40 = vld [vmem:[%s10178_s1 + $0x70] sm:$0xff] }
  0x16   :  { %6518 = vmatpush3.bf16.msra.mxu0 %v8104_v62  ;;  %v8186_v36 = vpack.c.bf16 %v95_v28, %v94_v22  ;;  %v65_v41 = vld [vmem:[%s10178_s1 + $0x78] sm:$0xff]  ;;  %v96_v42 = vld [vmem:[%s10178_s1 + $0x170] sm:$0xff]  ;;  %v8200_v44 = vpack.c.bf16 %v113_v33, %v112_v32  ;;  %v130_v46 = vld [vmem:[%s10178_s1 + $0x280] sm:$0xff] }
  0x17   :  { %6550 = vmatpush3.bf16.msra.mxu1 %v8108_v63  ;;  %6520 = vmatprep.subr.bf16.mxu0 %v8110_v0  ;;  %v97_v45 = vld [vmem:[%s10178_s1 + $0x178] sm:$0xff]  ;;  %v131_v47 = vld [vmem:[%s10178_s1 + $0x288] sm:$0xff]  ;;  %v162_v48 = vld [vmem:[%s10178_s1 + $0x380] sm:$0xff]  ;;  %v8218_v53 = vpack.c.bf16 %v65_v41, %v64_v40 }
  0x18   :  { %6552 = vmatprep.subr.bf16.mxu1 %v8122_v5  ;;  %v163_v49 = vld [vmem:[%s10178_s1 + $0x388] sm:$0xff]  ;;  %v8222_v54 = vpack.c.bf16 %v97_v45, %v96_v42  ;;  %v8224_v55 = vpack.c.bf16 %v131_v47, %v130_v46  ;;  %v114_v57 = vld [vmem:[%s10178_s1 + $0x200] sm:$0xff]  ;;  %v132_v1 = vld [vmem:[%s10178_s1 + $0x290] sm:$0xff] }
  0x19   :  { %v115_v58 = vld [vmem:[%s10178_s1 + $0x208] sm:$0xff]  ;;  %v146_v59 = vld [vmem:[%s10178_s1 + $0x300] sm:$0xff]  ;;  %v8236_v60 = vpack.c.bf16 %v163_v49, %v162_v48  ;;  %v133_v2 = vld [vmem:[%s10178_s1 + $0x298] sm:$0xff] }
  0x1a   :  { %6522 = vmatpush3.bf16.msra.mxu0 %v8140_v14  ;;  %v147_v61 = vld [vmem:[%s10178_s1 + $0x308] sm:$0xff]  ;;  %v164_v4 = vld [vmem:[%s10178_s1 + $0x390] sm:$0xff]  ;;  %v165_v6 = vld [vmem:[%s10178_s1 + $0x398] sm:$0xff]  ;;  %v8260_v11 = vpack.c.bf16 %v115_v58, %v114_v57  ;;  %v8266_v15 = vpack.c.bf16 %v133_v2, %v132_v1 }
  0x1b   :  { %6554 = vmatpush3.bf16.msra.mxu1 %v8150_v19  ;;  %6524 = vmatprep.subr.bf16.mxu0 %v8152_v20  ;;  %10361 = vst [vmem:[#allocation5_spill] sm:$0xff] %v8236_v60  ;;  %v306_v9 = vld [vmem:[%s10179_s0] sm:$0xff]  ;;  %v308_v10 = vld [vmem:[%s10179_s0 + $0x10] sm:$0xff]  ;;  %v8264_v13 = vpack.c.bf16 %v147_v61, %v146_v59  ;;  %v117_v22 = vld [vmem:[%s10178_s1 + $0x218] sm:$0xff]  ;;  %v8278_v24 = vpack.c.bf16 %v165_v6, %v164_v4 }
  0x1c   :  { %6556 = vmatprep.subr.bf16.mxu1 %v8164_v27  ;;  %10362 = vst [vmem:[#allocation6_spill] sm:$0xff] %v8260_v11  ;;  %10364 = vst [vmem:[#allocation8_spill] sm:$0xff] %v8266_v15  ;;  %v116_v18 = vld [vmem:[%s10178_s1 + $0x210] sm:$0xff]  ;;  %v149_v28 = vld [vmem:[%s10178_s1 + $0x318] sm:$0xff] }
  0x1d   :  { %10363 = vst [vmem:[#allocation7_spill] sm:$0xff] %v8264_v13  ;;  %v148_v23 = vld [vmem:[%s10178_s1 + $0x310] sm:$0xff]  ;;  %10365 = vst [vmem:[#allocation9_spill] sm:$0xff] %v8278_v24  ;;  %v134_v29 = vld [vmem:[%s10178_s1 + $0x2a0] sm:$0xff]  ;;  %v8296_v40 = vpack.c.bf16 %v117_v22, %v116_v18 }
  0x1e   :  { %6526 = vmatpush3.bf16.msra.mxu0 %v8182_v35  ;;  %v135_v31 = vld [vmem:[%s10178_s1 + $0x2a8] sm:$0xff]  ;;  %v166_v32 = vld [vmem:[%s10178_s1 + $0x3a0] sm:$0xff]  ;;  %v8300_v41 = vpack.c.bf16 %v149_v28, %v148_v23  ;;  %v136_v57 = vld [vmem:[%s10178_s1 + $0x2b0] sm:$0xff] }
  0x1f   :  { %6558 = vmatpush3.bf16.msra.mxu1 %v8186_v36  ;;  %6528 = vmatprep.subr.bf16.mxu0 %v8188_v37  ;;  %v167_v33 = vld [vmem:[%s10178_s1 + $0x3a8] sm:$0xff]  ;;  %10366 = vst [vmem:[#allocation10_spill] sm:$0xff] %v8296_v40  ;;  %v8302_v42 = vpack.c.bf16 %v135_v31, %v134_v29  ;;  %v118_v45 = vld [vmem:[%s10178_s1 + $0x220] sm:$0xff]  ;;  %v137_v58 = vld [vmem:[%s10178_s1 + $0x2b8] sm:$0xff] }
  0x20   :  { %6560 = vmatprep.subr.bf16.mxu1 %v8200_v44  ;;  %10367 = vst [vmem:[#allocation11_spill] sm:$0xff] %v8300_v41  ;;  %v119_v46 = vld [vmem:[%s10178_s1 + $0x228] sm:$0xff]  ;;  %v150_v47 = vld [vmem:[%s10178_s1 + $0x320] sm:$0xff]  ;;  %v8314_v48 = vpack.c.bf16 %v167_v33, %v166_v32  ;;  %v168_v59 = vld [vmem:[%s10178_s1 + $0x3b0] sm:$0xff]  ;;  %v8338_v4 = vpack.c.bf16 %v137_v58, %v136_v57 }
  0x21   :  { %10368 = vst [vmem:[#allocation12_spill] sm:$0xff] %v8302_v42  ;;  %v151_v49 = vld [vmem:[%s10178_s1 + $0x328] sm:$0xff]  ;;  %v169_v61 = vld [vmem:[%s10178_s1 + $0x3b8] sm:$0xff]  ;;  %v8332_v1 = vpack.c.bf16 %v119_v46, %v118_v45  ;;  %v120_v6 = vld [vmem:[%s10178_s1 + $0x230] sm:$0xff] }
  0x22   :  { %6530 = vmatpush3.bf16.msra.mxu0 %v8218_v53  ;;  %10369 = vst [vmem:[#allocation13_spill] sm:$0xff] %v8314_v48  ;;  %v8336_v2 = vpack.c.bf16 %v151_v49, %v150_v47  ;;  %10372 = vst [vmem:[#allocation16_spill] sm:$0xff] %v8338_v4  ;;  %v8350_v18 = vpack.c.bf16 %v169_v61, %v168_v59  ;;  %v153_v22 = vld [vmem:[%s10178_s1 + $0x338] sm:$0xff]  ;;  %v138_v23 = vld [vmem:[%s10178_s1 + $0x2c0] sm:$0xff] }
  0x23   :  { %6562 = vmatpush3.bf16.msra.mxu1 %v8222_v54  ;;  %6564 = vmatprep.subr.bf16.mxu0 %v8224_v55  ;;  %10370 = vst [vmem:[#allocation14_spill] sm:$0xff] %v8332_v1  ;;  %v139_v28 = vld [vmem:[%s10178_s1 + $0x2c8] sm:$0xff]  ;;  %v170_v29 = vld [vmem:[%s10178_s1 + $0x3c0] sm:$0xff]  ;;  %v313_v45 = vld [vmem:[%s10179_s0 + $0x38] sm:$0xff] }
  0x24   :  { %6596 = vmatprep.subr.bf16.mxu1 %v8236_v60  ;;  %10371 = vst [vmem:[#allocation15_spill] sm:$0xff] %v8336_v2  ;;  %10373 = vst [vmem:[#allocation17_spill] sm:$0xff] %v8350_v18  ;;  %v171_v31 = vld [vmem:[%s10178_s1 + $0x3c8] sm:$0xff]  ;;  %v8380_v47 = vpack.c.bf16 %v139_v28, %v138_v23  ;;  %v122_v49 = vld [vmem:[%s10178_s1 + $0x240] sm:$0xff] }
  0x25   :  { %387 = vmatmul.mubr.f32.vlgmr.msra.gmra.mrb[0].mxu0 %v306_v9  ;;  %v121_v9 = vld [vmem:[%s10178_s1 + $0x238] sm:$0xff]  ;;  %v311_v33 = vld [vmem:[%s10179_s0 + $0x28] sm:$0xff]  ;;  %v154_v58 = vld [vmem:[%s10178_s1 + $0x340] sm:$0xff]  ;;  %v8392_v59 = vpack.c.bf16 %v171_v31, %v170_v29 }
  0x26   :  { %457 = vmatmul.mubr.f32.vlgmr.msra.gmra.mrb[0].mxu1 %v308_v10  ;;  %6566 = vmatpush3.bf16.msra.mxu0 %v8260_v11  ;;  %v152_v10 = vld [vmem:[%s10178_s1 + $0x330] sm:$0xff]  ;;  %v8368_v32 = vpack.c.bf16 %v121_v9, %v120_v6  ;;  %10376 = vst [vmem:[#allocation20_spill] sm:$0xff] %v8380_v47  ;;  %v123_v57 = vld [vmem:[%s10178_s1 + $0x248] sm:$0xff]  ;;  %v141_v9 = vld [vmem:[%s10178_s1 + $0x2d8] sm:$0xff] }
  0x27   :  { %6598 = vmatpush3.bf16.msra.mxu1 %v8264_v13  ;;  %6568 = vmatprep.subr.bf16.mxu0 %v8266_v15  ;;  %v8378_v46 = vpack.c.bf16 %v153_v22, %v152_v10  ;;  %10377 = vst [vmem:[#allocation21_spill] sm:$0xff] %v8392_v59  ;;  %v155_v61 = vld [vmem:[%s10178_s1 + $0x348] sm:$0xff]  ;;  %v140_v6 = vld [vmem:[%s10178_s1 + $0x2d0] sm:$0xff]  ;;  %v173_v22 = vld [vmem:[%s10178_s1 + $0x3d8] sm:$0xff]  ;;  %v8410_v23 = vpack.c.bf16 %v123_v57, %v122_v49 }
  0x28   :  { %6600 = vmatprep.subr.bf16.mxu1 %v8278_v24  ;;  %10374 = vst [vmem:[#allocation18_spill] sm:$0xff] %v8368_v32  ;;  %526 = vmatprep.mubr.f32.mxu0 %v311_v33  ;;  %v172_v10 = vld [vmem:[%s10178_s1 + $0x3d0] sm:$0xff]  ;;  %v8414_v28 = vpack.c.bf16 %v155_v61, %v154_v58  ;;  %v8416_v29 = vpack.c.bf16 %v141_v9, %v140_v6  ;;  %v125_v33 = vld [vmem:[%s10178_s1 + $0x258] sm:$0xff]  ;;  %v142_v58 = vld [vmem:[%s10178_s1 + $0x2e0] sm:$0xff] }
  0x29   :  { %10375 = vst [vmem:[#allocation19_spill] sm:$0xff] %v8378_v46  ;;  %596 = vmatprep.mubr.f32.mxu1 %v313_v45  ;;  %10378 = vst [vmem:[#allocation22_spill] sm:$0xff] %v8410_v23  ;;  %v124_v31 = vld [vmem:[%s10178_s1 + $0x250] sm:$0xff]  ;;  %v8428_v49 = vpack.c.bf16 %v173_v22, %v172_v10  ;;  %v157_v57 = vld [vmem:[%s10178_s1 + $0x358] sm:$0xff] }
  0x2a   :  { %6570 = vmatpush3.bf16.msra.mxu0 %v8296_v40  ;;  %10379 = vst [vmem:[#allocation23_spill] sm:$0xff] %v8414_v28  ;;  %10380 = vst [vmem:[#allocation24_spill] sm:$0xff] %v8416_v29  ;;  %v156_v45 = vld [vmem:[%s10178_s1 + $0x350] sm:$0xff]  ;;  %v143_v61 = vld [vmem:[%s10178_s1 + $0x2e8] sm:$0xff]  ;;  %v8446_v10 = vpack.c.bf16 %v125_v33, %v124_v31 }
  0x2b   :  { %6602 = vmatpush3.bf16.msra.mxu1 %v8300_v41  ;;  %6572 = vmatprep.subr.bf16.mxu0 %v8302_v42  ;;  %10381 = vst [vmem:[#allocation25_spill] sm:$0xff] %v8428_v49  ;;  %v174_v6 = vld [vmem:[%s10178_s1 + $0x3e0] sm:$0xff]  ;;  %v175_v9 = vld [vmem:[%s10178_s1 + $0x3e8] sm:$0xff]  ;;  %v8450_v22 = vpack.c.bf16 %v157_v57, %v156_v45  ;;  %v144_v57 = vld [vmem:[%s10178_s1 + $0x2f0] sm:$0xff] }
  0x2c   :  { %6604 = vmatprep.subr.bf16.mxu1 %v8314_v48  ;;  %10382 = vst [vmem:[#allocation26_spill] sm:$0xff] %v8446_v10  ;;  %v158_v31 = vld [vmem:[%s10178_s1 + $0x360] sm:$0xff]  ;;  %v8464_v33 = vpack.c.bf16 %v175_v9, %v174_v6  ;;  %v159_v45 = vld [vmem:[%s10178_s1 + $0x368] sm:$0xff]  ;;  %v177_v6 = vld [vmem:[%s10178_s1 + $0x3f8] sm:$0xff] }
  0x2d   :  { %10383 = vst [vmem:[#allocation27_spill] sm:$0xff] %v8450_v22 }
  0x2e   :  { %6574 = vmatpush3.bf16.msra.mxu0 %v8332_v1  ;;  %10385 = vst [vmem:[#allocation29_spill] sm:$0xff] %v8464_v33 }
  0x2f   :  { %6606 = vmatpush3.bf16.msra.mxu1 %v8336_v2  ;;  %6576 = vmatprep.subr.bf16.mxu0 %v8338_v4 }
  0x30   :  { %6608 = vmatprep.subr.bf16.mxu1 %v8350_v18 }
  0x32   :  { %6578 = vmatpush3.bf16.msra.mxu0 %v8368_v32  ;;  %v181_v32 = vld [vmem:[%s10178_s1 + $0x418] sm:$0xff] }
  0x33   :  { %6610 = vmatpush3.bf16.msra.mxu1 %v8378_v46  ;;  %6580 = vmatprep.subr.bf16.mxu0 %v8380_v47  ;;  %v126_v47 = vld [vmem:[%s10178_s1 + $0x260] sm:$0xff]  ;;  %v127_v46 = vld [vmem:[%s10178_s1 + $0x268] sm:$0xff] }
  0x34   :  { %6612 = vmatprep.subr.bf16.mxu1 %v8392_v59  ;;  %v8452_v59 = vpack.c.bf16 %v143_v61, %v142_v58  ;;  %v145_v58 = vld [vmem:[%s10178_s1 + $0x2f8] sm:$0xff]  ;;  %v176_v61 = vld [vmem:[%s10178_s1 + $0x3f0] sm:$0xff]  ;;  %v8482_v9 = vpack.c.bf16 %v127_v46, %v126_v47 }
  0x35   :  { %v160_v46 = vld [vmem:[%s10178_s1 + $0x370] sm:$0xff]  ;;  %v8500_v47 = vpack.c.bf16 %v177_v6, %v176_v61  ;;  %v227_v61 = vld [vmem:[%s10178_s1 + $0x588] sm:$0xff] }
  0x36   :  { %6582 = vmatpush3.bf16.msra.mxu0 %v8410_v23  ;;  %10384 = vst [vmem:[#allocation28_spill] sm:$0xff] %v8452_v59  ;;  %10386 = vst [vmem:[#allocation30_spill] sm:$0xff] %v8482_v9  ;;  %v129_v23 = vld [vmem:[%s10178_s1 + $0x278] sm:$0xff] }
  0x37   :  { %6614 = vmatpush3.bf16.msra.mxu1 %v8414_v28  ;;  %6584 = vmatprep.subr.bf16.mxu0 %v8416_v29  ;;  %v8488_v29 = vpack.c.bf16 %v145_v58, %v144_v57  ;;  %v128_v28 = vld [vmem:[%s10178_s1 + $0x270] sm:$0xff]  ;;  %10389 = vst [vmem:[#allocation33_spill] sm:$0xff] %v8500_v47  ;;  %v195_v57 = vld [vmem:[%s10178_s1 + $0x488] sm:$0xff]  ;;  %v226_v58 = vld [vmem:[%s10178_s1 + $0x580] sm:$0xff] }
  0x38   :  { %6616 = vmatprep.subr.bf16.mxu1 %v8428_v49  ;;  %v8486_v49 = vpack.c.bf16 %v159_v45, %v158_v31  ;;  %v161_v31 = vld [vmem:[%s10178_s1 + $0x378] sm:$0xff]  ;;  %v194_v45 = vld [vmem:[%s10178_s1 + $0x480] sm:$0xff]  ;;  %v8518_v6 = vpack.c.bf16 %v129_v23, %v128_v28  ;;  %v8536_v28 = vpack.c.bf16 %v227_v61, %v226_v58 }
  0x39   :  { %10388 = vst [vmem:[#allocation32_spill] sm:$0xff] %v8488_v29  ;;  %v210_v23 = vld [vmem:[%s10178_s1 + $0x500] sm:$0xff]  ;;  %v229_v58 = vld [vmem:[%s10178_s1 + $0x598] sm:$0xff] }
  0x3a   :  { %6586 = vmatpush3.bf16.msra.mxu0 %v8446_v10  ;;  %10387 = vst [vmem:[#allocation31_spill] sm:$0xff] %v8486_v49  ;;  %10390 = vst [vmem:[#allocation34_spill] sm:$0xff] %v8518_v6  ;;  %v179_v10 = vld [vmem:[%s10178_s1 + $0x408] sm:$0xff]  ;;  %v310_v61 = vld [vmem:[%s10179_s0 + $0x20] sm:$0xff] }
  0x3b   :  { %6618 = vmatpush3.bf16.msra.mxu1 %v8450_v22  ;;  %6588 = vmatprep.subr.bf16.mxu0 %v8452_v59  ;;  %v8524_v59 = vpack.c.bf16 %v195_v57, %v194_v45  ;;  %v178_v22 = vld [vmem:[%s10178_s1 + $0x400] sm:$0xff]  ;;  %10393 = vst [vmem:[#allocation37_spill] sm:$0xff] %v8536_v28  ;;  %v197_v45 = vld [vmem:[%s10178_s1 + $0x498] sm:$0xff]  ;;  %v228_v57 = vld [vmem:[%s10178_s1 + $0x590] sm:$0xff] }
  0x3c   :  { %6620 = vmatprep.subr.bf16.mxu1 %v8464_v33  ;;  %v8522_v33 = vpack.c.bf16 %v161_v31, %v160_v46  ;;  %v211_v46 = vld [vmem:[%s10178_s1 + $0x508] sm:$0xff]  ;;  %v196_v31 = vld [vmem:[%s10178_s1 + $0x490] sm:$0xff] }
  0x3d   :  { %10392 = vst [vmem:[#allocation36_spill] sm:$0xff] %v8524_v59 }
  0x3e   :  { %6590 = vmatpush3.bf16.msra.mxu0 %v8482_v9  ;;  %10391 = vst [vmem:[#allocation35_spill] sm:$0xff] %v8522_v33  ;;  %v8566_v9 = vpack.c.bf16 %v197_v45, %v196_v31  ;;  %v199_v31 = vld [vmem:[%s10178_s1 + $0x4a8] sm:$0xff]  ;;  %v230_v45 = vld [vmem:[%s10178_s1 + $0x5a0] sm:$0xff] }
  0x3f   :  { %6622 = vmatpush3.bf16.msra.mxu1 %v8486_v49  ;;  %6592 = vmatprep.subr.bf16.mxu0 %v8488_v29  ;;  %v8560_v29 = vpack.c.bf16 %v179_v10, %v178_v22  ;;  %v8564_v49 = vpack.c.bf16 %v211_v46, %v210_v23  ;;  %v212_v10 = vld [vmem:[%s10178_s1 + $0x510] sm:$0xff]  ;;  %v8578_v22 = vpack.c.bf16 %v229_v58, %v228_v57  ;;  %v213_v23 = vld [vmem:[%s10178_s1 + $0x518] sm:$0xff]  ;;  %v198_v46 = vld [vmem:[%s10178_s1 + $0x4a0] sm:$0xff] }
  0x40   :  { %6624 = vmatprep.subr.bf16.mxu1 %v8500_v47  ;;  %v312_v47 = vld [vmem:[%s10179_s0 + $0x30] sm:$0xff]  ;;  %10396 = vst [vmem:[#allocation40_spill] sm:$0xff] %v8566_v9  ;;  %v231_v57 = vld [vmem:[%s10178_s1 + $0x5a8] sm:$0xff] }
  0x41   :  { %10394 = vst [vmem:[#allocation38_spill] sm:$0xff] %v8560_v29  ;;  %10395 = vst [vmem:[#allocation39_spill] sm:$0xff] %v8564_v49  ;;  %v315_v58 = vld [vmem:[%s10179_s0 + $0x48] sm:$0xff] }
  0x42   :  { %6594 = vmatpush3.bf16.msra.mxu0 %v8518_v6  ;;  %v180_v6 = vld [vmem:[%s10178_s1 + $0x410] sm:$0xff]  ;;  %10397 = vst [vmem:[#allocation41_spill] sm:$0xff] %v8578_v22 }
  0x43   :  { %6626 = vmatpush3.bf16.msra.mxu1 %v8522_v33  ;;  %6628 = vmatprep.subr.bf16.mxu0 %v8524_v59  ;;  %v8606_v59 = vpack.c.bf16 %v213_v23, %v212_v10  ;;  %v8608_v33 = vpack.c.bf16 %v199_v31, %v198_v46  ;;  %v215_v10 = vld [vmem:[%s10178_s1 + $0x528] sm:$0xff]  ;;  %v200_v23 = vld [vmem:[%s10178_s1 + $0x4b0] sm:$0xff]  ;;  %v201_v46 = vld [vmem:[%s10178_s1 + $0x4b8] sm:$0xff] }
  0x44   :  { %6660 = vmatprep.subr.bf16.mxu1 %v8536_v28  ;;  %v8599_v28 = vpack.c.bf16 %v181_v32, %v180_v6  ;;  %v183_v32 = vld [vmem:[%s10178_s1 + $0x428] sm:$0xff]  ;;  %v214_v6 = vld [vmem:[%s10178_s1 + $0x520] sm:$0xff]  ;;  %v232_v31 = vld [vmem:[%s10178_s1 + $0x5b0] sm:$0xff] }
  0x45   :  { %527 = vmatmul.mubr.f32.vlgmr.msra.gmra.mrb[2].mxu0 %v310_v61  ;;  %v317_v61 = vld [vmem:[%s10179_s0 + $0x58] sm:$0xff]  ;;  %10399 = vst [vmem:[#allocation43_spill] sm:$0xff] %v8606_v59  ;;  %10400 = vst [vmem:[#allocation44_spill] sm:$0xff] %v8608_v33 }
  0x46   :  { %597 = vmatmul.mubr.f32.vlgmr.msra.gmra.mrb[2].mxu1 %v312_v47  ;;  %6630 = vmatpush3.bf16.msra.mxu0 %v8560_v29  ;;  %10398 = vst [vmem:[#allocation42_spill] sm:$0xff] %v8599_v28  ;;  %v182_v47 = vld [vmem:[%s10178_s1 + $0x420] sm:$0xff]  ;;  %v245_v29 = vld [vmem:[%s10178_s1 + $0x618] sm:$0xff] }
  0x47   :  { %6662 = vmatpush3.bf16.msra.mxu1 %v8564_v49  ;;  %6632 = vmatprep.subr.bf16.mxu0 %v8566_v9  ;;  %v8620_v49 = vpack.c.bf16 %v231_v57, %v230_v45  ;;  %v233_v45 = vld [vmem:[%s10178_s1 + $0x5b8] sm:$0xff]  ;;  %v8638_v57 = vpack.c.bf16 %v183_v32, %v182_v47  ;;  %v184_v9 = vld [vmem:[%s10178_s1 + $0x430] sm:$0xff] }
  0x48   :  { %6664 = vmatprep.subr.bf16.mxu1 %v8578_v22  ;;  %666 = vmatprep.mubr.f32.mxu0 %v315_v58  ;;  %v8642_v22 = vpack.c.bf16 %v215_v10, %v214_v6  ;;  %v8644_v58 = vpack.c.bf16 %v201_v46, %v200_v23  ;;  %v216_v47 = vld [vmem:[%s10178_s1 + $0x530] sm:$0xff]  ;;  %v8656_v32 = vpack.c.bf16 %v233_v45, %v232_v31  ;;  %v217_v6 = vld [vmem:[%s10178_s1 + $0x538] sm:$0xff]  ;;  %v202_v10 = vld [vmem:[%s10178_s1 + $0x4c0] sm:$0xff] }
  0x49   :  { %10401 = vst [vmem:[#allocation45_spill] sm:$0xff] %v8620_v49  ;;  %736 = vmatprep.mubr.f32.mxu1 %v317_v61  ;;  %10402 = vst [vmem:[#allocation46_spill] sm:$0xff] %v8638_v57  ;;  %v185_v61 = vld [vmem:[%s10178_s1 + $0x438] sm:$0xff]  ;;  %v203_v23 = vld [vmem:[%s10178_s1 + $0x4c8] sm:$0xff] }
  0x4a   :  { %6634 = vmatpush3.bf16.msra.mxu0 %v8599_v28  ;;  %10403 = vst [vmem:[#allocation47_spill] sm:$0xff] %v8642_v22  ;;  %10404 = vst [vmem:[#allocation48_spill] sm:$0xff] %v8644_v58  ;;  %v234_v46 = vld [vmem:[%s10178_s1 + $0x5c0] sm:$0xff]  ;;  %v235_v31 = vld [vmem:[%s10178_s1 + $0x5c8] sm:$0xff]  ;;  %v8674_v45 = vpack.c.bf16 %v185_v61, %v184_v9 }
  0x4b   :  { %6666 = vmatpush3.bf16.msra.mxu1 %v8606_v59  ;;  %6636 = vmatprep.subr.bf16.mxu0 %v8608_v33  ;;  %10405 = vst [vmem:[#allocation49_spill] sm:$0xff] %v8656_v32  ;;  %v8680_v33 = vpack.c.bf16 %v203_v23, %v202_v10  ;;  %v186_v59 = vld [vmem:[%s10178_s1 + $0x440] sm:$0xff]  ;;  %v187_v28 = vld [vmem:[%s10178_s1 + $0x448] sm:$0xff]  ;;  %v8692_v61 = vpack.c.bf16 %v235_v31, %v234_v46  ;;  %v205_v10 = vld [vmem:[%s10178_s1 + $0x4d8] sm:$0xff] }
  0x4c   :  { %6668 = vmatprep.subr.bf16.mxu1 %v8620_v49  ;;  %10406 = vst [vmem:[#allocation50_spill] sm:$0xff] %v8674_v45  ;;  %v8678_v49 = vpack.c.bf16 %v217_v6, %v216_v47  ;;  %v218_v9 = vld [vmem:[%s10178_s1 + $0x540] sm:$0xff]  ;;  %v219_v47 = vld [vmem:[%s10178_s1 + $0x548] sm:$0xff]  ;;  %v204_v6 = vld [vmem:[%s10178_s1 + $0x4d0] sm:$0xff]  ;;  %v8710_v31 = vpack.c.bf16 %v187_v28, %v186_v59 }
  0x4d   :  { %10408 = vst [vmem:[#allocation52_spill] sm:$0xff] %v8680_v33  ;;  %10409 = vst [vmem:[#allocation53_spill] sm:$0xff] %v8692_v61  ;;  %v236_v23 = vld [vmem:[%s10178_s1 + $0x5d0] sm:$0xff]  ;;  %v237_v46 = vld [vmem:[%s10178_s1 + $0x5d8] sm:$0xff] }
  0x4e   :  { %6638 = vmatpush3.bf16.msra.mxu0 %v8638_v57  ;;  %10407 = vst [vmem:[#allocation51_spill] sm:$0xff] %v8678_v49  ;;  %10410 = vst [vmem:[#allocation54_spill] sm:$0xff] %v8710_v31  ;;  %v189_v57 = vld [vmem:[%s10178_s1 + $0x458] sm:$0xff]  ;;  %v220_v59 = vld [vmem:[%s10178_s1 + $0x550] sm:$0xff]  ;;  %v8728_v28 = vpack.c.bf16 %v237_v46, %v236_v23 }
  0x4f   :  { %6670 = vmatpush3.bf16.msra.mxu1 %v8642_v22  ;;  %6640 = vmatprep.subr.bf16.mxu0 %v8644_v58  ;;  %v8716_v58 = vpack.c.bf16 %v205_v10, %v204_v6  ;;  %v188_v22 = vld [vmem:[%s10178_s1 + $0x450] sm:$0xff]  ;;  %v207_v6 = vld [vmem:[%s10178_s1 + $0x4e8] sm:$0xff]  ;;  %v238_v10 = vld [vmem:[%s10178_s1 + $0x5e0] sm:$0xff] }
  0x50   :  { %6672 = vmatprep.subr.bf16.mxu1 %v8656_v32  ;;  %v8714_v32 = vpack.c.bf16 %v219_v47, %v218_v9  ;;  %10413 = vst [vmem:[#allocation57_spill] sm:$0xff] %v8728_v28  ;;  %v221_v9 = vld [vmem:[%s10178_s1 + $0x558] sm:$0xff]  ;;  %v206_v47 = vld [vmem:[%s10178_s1 + $0x4e0] sm:$0xff]  ;;  %v239_v23 = vld [vmem:[%s10178_s1 + $0x5e8] sm:$0xff]  ;;  %v8746_v46 = vpack.c.bf16 %v189_v57, %v188_v22 }
  0x51   :  { %10412 = vst [vmem:[#allocation56_spill] sm:$0xff] %v8716_v58  ;;  %v222_v22 = vld [vmem:[%s10178_s1 + $0x560] sm:$0xff]  ;;  %v8764_v57 = vpack.c.bf16 %v239_v23, %v238_v10  ;;  %v241_v10 = vld [vmem:[%s10178_s1 + $0x5f8] sm:$0xff] }
  0x52   :  { %6642 = vmatpush3.bf16.msra.mxu0 %v8674_v45  ;;  %10411 = vst [vmem:[#allocation55_spill] sm:$0xff] %v8714_v32  ;;  %10414 = vst [vmem:[#allocation58_spill] sm:$0xff] %v8746_v46  ;;  %v191_v45 = vld [vmem:[%s10178_s1 + $0x468] sm:$0xff] }
  0x53   :  { %6674 = vmatpush3.bf16.msra.mxu1 %v8678_v49  ;;  %6644 = vmatprep.subr.bf16.mxu0 %v8680_v33  ;;  %v8752_v33 = vpack.c.bf16 %v207_v6, %v206_v47  ;;  %v190_v49 = vld [vmem:[%s10178_s1 + $0x460] sm:$0xff]  ;;  %10417 = vst [vmem:[#allocation61_spill] sm:$0xff] %v8764_v57  ;;  %v209_v47 = vld [vmem:[%s10178_s1 + $0x4f8] sm:$0xff]  ;;  %v240_v6 = vld [vmem:[%s10178_s1 + $0x5f0] sm:$0xff] }
  0x54   :  { %6676 = vmatprep.subr.bf16.mxu1 %v8692_v61  ;;  %v8750_v61 = vpack.c.bf16 %v221_v9, %v220_v59  ;;  %v223_v59 = vld [vmem:[%s10178_s1 + $0x568] sm:$0xff]  ;;  %v208_v9 = vld [vmem:[%s10178_s1 + $0x4f0] sm:$0xff]  ;;  %v8782_v23 = vpack.c.bf16 %v191_v45, %v190_v49  ;;  %v8800_v45 = vpack.c.bf16 %v241_v10, %v240_v6 }
  0x55   :  { %10416 = vst [vmem:[#allocation60_spill] sm:$0xff] %v8752_v33  ;;  %v224_v49 = vld [vmem:[%s10178_s1 + $0x570] sm:$0xff]  ;;  %v291_v6 = vld [vmem:[%s10178_s1 + $0x788] sm:$0xff] }
  0x56   :  { %6646 = vmatpush3.bf16.msra.mxu0 %v8710_v31  ;;  %10415 = vst [vmem:[#allocation59_spill] sm:$0xff] %v8750_v61  ;;  %10418 = vst [vmem:[#allocation62_spill] sm:$0xff] %v8782_v23  ;;  %v193_v31 = vld [vmem:[%s10178_s1 + $0x478] sm:$0xff] }
  0x57   :  { %6678 = vmatpush3.bf16.msra.mxu1 %v8714_v32  ;;  %6648 = vmatprep.subr.bf16.mxu0 %v8716_v58  ;;  %v8788_v58 = vpack.c.bf16 %v209_v47, %v208_v9  ;;  %v192_v32 = vld [vmem:[%s10178_s1 + $0x470] sm:$0xff]  ;;  %10421 = vst [vmem:[#allocation65_spill] sm:$0xff] %v8800_v45  ;;  %v259_v9 = vld [vmem:[%s10178_s1 + $0x688] sm:$0xff]  ;;  %v290_v47 = vld [vmem:[%s10178_s1 + $0x780] sm:$0xff] }
  0x58   :  { %6680 = vmatprep.subr.bf16.mxu1 %v8728_v28  ;;  %v8786_v28 = vpack.c.bf16 %v223_v59, %v222_v22  ;;  %v225_v22 = vld [vmem:[%s10178_s1 + $0x578] sm:$0xff]  ;;  %v258_v59 = vld [vmem:[%s10178_s1 + $0x680] sm:$0xff]  ;;  %v8818_v10 = vpack.c.bf16 %v193_v31, %v192_v32  ;;  %v8836_v31 = vpack.c.bf16 %v291_v6, %v290_v47 }
  0x59   :  { %10420 = vst [vmem:[#allocation64_spill] sm:$0xff] %v8788_v58  ;;  %v274_v32 = vld [vmem:[%s10178_s1 + $0x700] sm:$0xff]  ;;  %v293_v47 = vld [vmem:[%s10178_s1 + $0x798] sm:$0xff] }
  0x5a   :  { %6650 = vmatpush3.bf16.msra.mxu0 %v8746_v46  ;;  %10419 = vst [vmem:[#allocation63_spill] sm:$0xff] %v8786_v28  ;;  %10422 = vst [vmem:[#allocation66_spill] sm:$0xff] %v8818_v10  ;;  %v243_v46 = vld [vmem:[%s10178_s1 + $0x608] sm:$0xff]  ;;  %v314_v6 = vld [vmem:[%s10179_s0 + $0x40] sm:$0xff] }
  0x5b   :  { %6682 = vmatpush3.bf16.msra.mxu1 %v8750_v61  ;;  %6652 = vmatprep.subr.bf16.mxu0 %v8752_v33  ;;  %v8824_v33 = vpack.c.bf16 %v259_v9, %v258_v59  ;;  %v242_v61 = vld [vmem:[%s10178_s1 + $0x600] sm:$0xff]  ;;  %10425 = vst [vmem:[#allocation69_spill] sm:$0xff] %v8836_v31  ;;  %v261_v59 = vld [vmem:[%s10178_s1 + $0x698] sm:$0xff]  ;;  %v292_v9 = vld [vmem:[%s10178_s1 + $0x790] sm:$0xff] }
  0x5c   :  { %6684 = vmatprep.subr.bf16.mxu1 %v8764_v57  ;;  %v8822_v57 = vpack.c.bf16 %v225_v22, %v224_v49  ;;  %v275_v49 = vld [vmem:[%s10178_s1 + $0x708] sm:$0xff]  ;;  %v260_v22 = vld [vmem:[%s10178_s1 + $0x690] sm:$0xff] }
  0x5d   :  { %10424 = vst [vmem:[#allocation68_spill] sm:$0xff] %v8824_v33 }
  0x5e   :  { %6654 = vmatpush3.bf16.msra.mxu0 %v8782_v23  ;;  %10423 = vst [vmem:[#allocation67_spill] sm:$0xff] %v8822_v57  ;;  %v8866_v23 = vpack.c.bf16 %v261_v59, %v260_v22  ;;  %v263_v22 = vld [vmem:[%s10178_s1 + $0x6a8] sm:$0xff]  ;;  %v294_v59 = vld [vmem:[%s10178_s1 + $0x7a0] sm:$0xff] }
  0x5f   :  { %6686 = vmatpush3.bf16.msra.mxu1 %v8786_v28  ;;  %6656 = vmatprep.subr.bf16.mxu0 %v8788_v58  ;;  %v8860_v58 = vpack.c.bf16 %v243_v46, %v242_v61  ;;  %v8864_v28 = vpack.c.bf16 %v275_v49, %v274_v32  ;;  %v276_v61 = vld [vmem:[%s10178_s1 + $0x710] sm:$0xff]  ;;  %v8878_v46 = vpack.c.bf16 %v293_v47, %v292_v9  ;;  %v277_v32 = vld [vmem:[%s10178_s1 + $0x718] sm:$0xff]  ;;  %v262_v49 = vld [vmem:[%s10178_s1 + $0x6a0] sm:$0xff] }
  0x60   :  { %6688 = vmatprep.subr.bf16.mxu1 %v8800_v45  ;;  %v316_v45 = vld [vmem:[%s10179_s0 + $0x50] sm:$0xff]  ;;  %10428 = vst [vmem:[#allocation72_spill] sm:$0xff] %v8866_v23  ;;  %v295_v9 = vld [vmem:[%s10178_s1 + $0x7a8] sm:$0xff] }
  0x61   :  { %10426 = vst [vmem:[#allocation70_spill] sm:$0xff] %v8860_v58  ;;  %10427 = vst [vmem:[#allocation71_spill] sm:$0xff] %v8864_v28  ;;  %v319_v47 = vld [vmem:[%s10179_s0 + $0x68] sm:$0xff] }
  0x62   :  { %6658 = vmatpush3.bf16.msra.mxu0 %v8818_v10  ;;  %v244_v10 = vld [vmem:[%s10178_s1 + $0x610] sm:$0xff]  ;;  %10429 = vst [vmem:[#allocation73_spill] sm:$0xff] %v8878_v46 }
  0x63   :  { %6690 = vmatpush3.bf16.msra.mxu1 %v8822_v57  ;;  %6692 = vmatprep.subr.bf16.mxu0 %v8824_v33  ;;  %v8906_v33 = vpack.c.bf16 %v277_v32, %v276_v61  ;;  %v8908_v57 = vpack.c.bf16 %v263_v22, %v262_v49  ;;  %v279_v61 = vld [vmem:[%s10178_s1 + $0x728] sm:$0xff]  ;;  %v264_v32 = vld [vmem:[%s10178_s1 + $0x6b0] sm:$0xff]  ;;  %v265_v49 = vld [vmem:[%s10178_s1 + $0x6b8] sm:$0xff] }
  0x64   :  { %6724 = vmatprep.subr.bf16.mxu1 %v8836_v31  ;;  %v8899_v31 = vpack.c.bf16 %v245_v29, %v244_v10  ;;  %v247_v29 = vld [vmem:[%s10178_s1 + $0x628] sm:$0xff]  ;;  %v278_v10 = vld [vmem:[%s10178_s1 + $0x720] sm:$0xff]  ;;  %v296_v22 = vld [vmem:[%s10178_s1 + $0x7b0] sm:$0xff] }
  0x65   :  { %667 = vmatmul.mubr.f32.vlgmr.msra.gmra.mrb[4].mxu0 %v314_v6  ;;  %v321_v6 = vld [vmem:[%s10179_s0 + $0x78] sm:$0xff]  ;;  %10431 = vst [vmem:[#allocation75_spill] sm:$0xff] %v8906_v33  ;;  %10432 = vst [vmem:[#allocation76_spill] sm:$0xff] %v8908_v57 }
  0x66   :  { %737 = vmatmul.mubr.f32.vlgmr.msra.gmra.mrb[4].mxu1 %v316_v45  ;;  %6694 = vmatpush3.bf16.msra.mxu0 %v8860_v58  ;;  %10430 = vst [vmem:[#allocation74_spill] sm:$0xff] %v8899_v31  ;;  %v246_v45 = vld [vmem:[%s10178_s1 + $0x620] sm:$0xff] }
  0x67   :  { %6726 = vmatpush3.bf16.msra.mxu1 %v8864_v28  ;;  %6696 = vmatprep.subr.bf16.mxu0 %v8866_v23  ;;  %v8920_v28 = vpack.c.bf16 %v295_v9, %v294_v59  ;;  %v297_v59 = vld [vmem:[%s10178_s1 + $0x7b8] sm:$0xff]  ;;  %v8938_v9 = vpack.c.bf16 %v247_v29, %v246_v45  ;;  %v248_v23 = vld [vmem:[%s10178_s1 + $0x630] sm:$0xff] }
  0x68   :  { %6728 = vmatprep.subr.bf16.mxu1 %v8878_v46  ;;  %806 = vmatprep.mubr.f32.mxu0 %v319_v47  ;;  %v8942_v46 = vpack.c.bf16 %v279_v61, %v278_v10  ;;  %v8944_v47 = vpack.c.bf16 %v265_v49, %v264_v32  ;;  %v280_v45 = vld [vmem:[%s10178_s1 + $0x730] sm:$0xff]  ;;  %v8956_v29 = vpack.c.bf16 %v297_v59, %v296_v22  ;;  %v281_v10 = vld [vmem:[%s10178_s1 + $0x738] sm:$0xff]  ;;  %v266_v61 = vld [vmem:[%s10178_s1 + $0x6c0] sm:$0xff] }
  0x69   :  { %10433 = vst [vmem:[#allocation77_spill] sm:$0xff] %v8920_v28  ;;  %876 = vmatprep.mubr.f32.mxu1 %v321_v6  ;;  %10434 = vst [vmem:[#allocation78_spill] sm:$0xff] %v8938_v9  ;;  %v249_v6 = vld [vmem:[%s10178_s1 + $0x638] sm:$0xff]  ;;  %v267_v32 = vld [vmem:[%s10178_s1 + $0x6c8] sm:$0xff] }
  0x6a   :  { %6698 = vmatpush3.bf16.msra.mxu0 %v8899_v31  ;;  %10435 = vst [vmem:[#allocation79_spill] sm:$0xff] %v8942_v46  ;;  %10436 = vst [vmem:[#allocation80_spill] sm:$0xff] %v8944_v47  ;;  %v298_v49 = vld [vmem:[%s10178_s1 + $0x7c0] sm:$0xff]  ;;  %v299_v22 = vld [vmem:[%s10178_s1 + $0x7c8] sm:$0xff]  ;;  %v8974_v59 = vpack.c.bf16 %v249_v6, %v248_v23 }
  0x6b   :  { %6730 = vmatpush3.bf16.msra.mxu1 %v8906_v33  ;;  %6700 = vmatprep.subr.bf16.mxu0 %v8908_v57  ;;  %10437 = vst [vmem:[#allocation81_spill] sm:$0xff] %v8956_v29  ;;  %v8980_v57 = vpack.c.bf16 %v267_v32, %v266_v61  ;;  %v250_v33 = vld [vmem:[%s10178_s1 + $0x640] sm:$0xff]  ;;  %v251_v31 = vld [vmem:[%s10178_s1 + $0x648] sm:$0xff]  ;;  %v8992_v6 = vpack.c.bf16 %v299_v22, %v298_v49  ;;  %v269_v61 = vld [vmem:[%s10178_s1 + $0x6d8] sm:$0xff] }
  0x6c   :  { %6732 = vmatprep.subr.bf16.mxu1 %v8920_v28  ;;  %10438 = vst [vmem:[#allocation82_spill] sm:$0xff] %v8974_v59  ;;  %v8978_v28 = vpack.c.bf16 %v281_v10, %v280_v45  ;;  %v282_v23 = vld [vmem:[%s10178_s1 + $0x740] sm:$0xff]  ;;  %v283_v45 = vld [vmem:[%s10178_s1 + $0x748] sm:$0xff]  ;;  %v268_v10 = vld [vmem:[%s10178_s1 + $0x6d0] sm:$0xff]  ;;  %v9010_v22 = vpack.c.bf16 %v251_v31, %v250_v33 }
  0x6d   :  { %10440 = vst [vmem:[#allocation84_spill] sm:$0xff] %v8980_v57  ;;  %10441 = vst [vmem:[#allocation85_spill] sm:$0xff] %v8992_v6  ;;  %v300_v32 = vld [vmem:[%s10178_s1 + $0x7d0] sm:$0xff]  ;;  %v301_v49 = vld [vmem:[%s10178_s1 + $0x7d8] sm:$0xff] }
  0x6e   :  { %6702 = vmatpush3.bf16.msra.mxu0 %v8938_v9  ;;  %10439 = vst [vmem:[#allocation83_spill] sm:$0xff] %v8978_v28  ;;  %10442 = vst [vmem:[#allocation86_spill] sm:$0xff] %v9010_v22  ;;  %v253_v9 = vld [vmem:[%s10178_s1 + $0x658] sm:$0xff]  ;;  %v284_v33 = vld [vmem:[%s10178_s1 + $0x750] sm:$0xff]  ;;  %v9028_v31 = vpack.c.bf16 %v301_v49, %v300_v32 }
  0x6f   :  { %6734 = vmatpush3.bf16.msra.mxu1 %v8942_v46  ;;  %6704 = vmatprep.subr.bf16.mxu0 %v8944_v47  ;;  %v9016_v47 = vpack.c.bf16 %v269_v61, %v268_v10  ;;  %v252_v46 = vld [vmem:[%s10178_s1 + $0x650] sm:$0xff]  ;;  %v271_v10 = vld [vmem:[%s10178_s1 + $0x6e8] sm:$0xff]  ;;  %v302_v61 = vld [vmem:[%s10178_s1 + $0x7e0] sm:$0xff] }
  0x70   :  { %6736 = vmatprep.subr.bf16.mxu1 %v8956_v29  ;;  %v9014_v29 = vpack.c.bf16 %v283_v45, %v282_v23  ;;  %10445 = vst [vmem:[#allocation89_spill] sm:$0xff] %v9028_v31  ;;  %v285_v23 = vld [vmem:[%s10178_s1 + $0x758] sm:$0xff]  ;;  %v270_v45 = vld [vmem:[%s10178_s1 + $0x6e0] sm:$0xff]  ;;  %v303_v32 = vld [vmem:[%s10178_s1 + $0x7e8] sm:$0xff]  ;;  %v9046_v49 = vpack.c.bf16 %v253_v9, %v252_v46 }
  0x71   :  { %10444 = vst [vmem:[#allocation88_spill] sm:$0xff] %v9016_v47  ;;  %v286_v46 = vld [vmem:[%s10178_s1 + $0x760] sm:$0xff]  ;;  %v9064_v9 = vpack.c.bf16 %v303_v32, %v302_v61  ;;  %v305_v61 = vld [vmem:[%s10178_s1 + $0x7f8] sm:$0xff] }
  0x72   :  { %6706 = vmatpush3.bf16.msra.mxu0 %v8974_v59  ;;  %10443 = vst [vmem:[#allocation87_spill] sm:$0xff] %v9014_v29  ;;  %v255_v59 = vld [vmem:[%s10178_s1 + $0x668] sm:$0xff] }
  0x73   :  { %6738 = vmatpush3.bf16.msra.mxu1 %v8978_v28  ;;  %6708 = vmatprep.subr.bf16.mxu0 %v8980_v57  ;;  %v9052_v57 = vpack.c.bf16 %v271_v10, %v270_v45  ;;  %v254_v28 = vld [vmem:[%s10178_s1 + $0x660] sm:$0xff]  ;;  %v273_v45 = vld [vmem:[%s10178_s1 + $0x6f8] sm:$0xff]  ;;  %v304_v10 = vld [vmem:[%s10178_s1 + $0x7f0] sm:$0xff] }
  0x74   :  { %6740 = vmatprep.subr.bf16.mxu1 %v8992_v6  ;;  %v9050_v6 = vpack.c.bf16 %v285_v23, %v284_v33  ;;  %v287_v33 = vld [vmem:[%s10178_s1 + $0x768] sm:$0xff]  ;;  %v272_v23 = vld [vmem:[%s10178_s1 + $0x6f0] sm:$0xff]  ;;  %v9082_v32 = vpack.c.bf16 %v255_v59, %v254_v28  ;;  %v9097_v28 = vpack.c.bf16 %v305_v61, %v304_v10  ;;  %v4852_v10 = vld [vmem:[%s10179_s0 + $0x98] sm:$0xff] }
  0x75   :  { %v288_v59 = vld [vmem:[%s10178_s1 + $0x770] sm:$0xff]  ;;  %v4849_v61 = vld [vmem:[%s10179_s0 + $0x80] sm:$0xff] }
  0x76   :  { %6710 = vmatpush3.bf16.msra.mxu0 %v9010_v22  ;;  %v257_v22 = vld [vmem:[%s10178_s1 + $0x678] sm:$0xff] }
  0x77   :  { %6742 = vmatpush3.bf16.msra.mxu1 %v9014_v29  ;;  %6712 = vmatprep.subr.bf16.mxu0 %v9016_v47  ;;  %v9088_v47 = vpack.c.bf16 %v273_v45, %v272_v23  ;;  %v256_v29 = vld [vmem:[%s10178_s1 + $0x670] sm:$0xff]  ;;  %v318_v45 = vld [vmem:[%s10179_s0 + $0x60] sm:$0xff] }
  0x78   :  { %6744 = vmatprep.subr.bf16.mxu1 %v9028_v31  ;;  %v9086_v31 = vpack.c.bf16 %v287_v33, %v286_v46  ;;  %v289_v46 = vld [vmem:[%s10178_s1 + $0x778] sm:$0xff]  ;;  %v9106_v33 = vpack.c.bf16 %v257_v22, %v256_v29  ;;  %v320_v29 = vld [vmem:[%s10179_s0 + $0x70] sm:$0xff]  ;;  %v4850_v22 = vld [vmem:[%s10179_s0 + $0x88] sm:$0xff] }
  0x79   :  { %v9110_v23 = vpack.c.bf16 %v289_v46, %v288_v59  ;;  %v4851_v59 = vld [vmem:[%s10179_s0 + $0x90] sm:$0xff]  ;;  %v4854_v46 = vld [vmem:[%s10179_s0 + $0xa8] sm:$0xff] }
  0x7a   :  { %6714 = vmatpush3.bf16.msra.mxu0 %v9046_v49 }
  0x7b   :  { %6746 = vmatpush3.bf16.msra.mxu1 %v9050_v6  ;;  %6716 = vmatprep.subr.bf16.mxu0 %v9052_v57 }
  0x7c   :  { %6748 = vmatprep.subr.bf16.mxu1 %v9064_v9 }
  0x7e   :  { %6718 = vmatpush3.bf16.msra.mxu0 %v9082_v32 }
  0x7f   :  { %6750 = vmatpush3.bf16.msra.mxu1 %v9086_v31  ;;  %6720 = vmatprep.subr.bf16.mxu0 %v9088_v47 }
  0x80   :  { %6752 = vmatprep.subr.bf16.mxu1 %v9097_v28 }
  0x82   :  { %6722 = vmatpush3.bf16.msra.mxu0 %v9106_v33 }
  0x83   :  { %6754 = vmatpush3.bf16.msra.mxu1 %v9110_v23  ;;  %6756 = vmatprep.subr.bf16.mxu0 %v7930_v3 }
  0x84   :  { %6788 = vmatprep.subr.bf16.mxu1 %v7941_v7 }
  0x85   :  { %807 = vmatmul.mubr.f32.vlgmr.msra.gmra.mrb[6].mxu0 %v318_v45  ;;  %v4856_v45 = vld [vmem:[%s10179_s0 + $0xb8] sm:$0xff] }
  0x86   :  { %877 = vmatmul.mubr.f32.vlgmr.msra.gmra.mrb[6].mxu1 %v320_v29  ;;  %6758 = vmatpush3.bf16.msra.mxu0 %v7943_v8  ;;  %v10446_v29 = vld [vmem:[#allocation18_spill] sm:$0xff] }
  0x87   :  { %6790 = vmatpush3.bf16.msra.mxu1 %v7955_v12  ;;  %6760 = vmatprep.subr.bf16.mxu0 %v7968_v16 }
  0x88   :  { %6792 = vmatprep.subr.bf16.mxu1 %v7970_v17  ;;  %963 = vmatprep.mubr.f32.mxu0 %v4850_v22  ;;  %v10447_v22 = vld [vmem:[#allocation19_spill] sm:$0xff] }
  0x89   :  { %1033 = vmatprep.mubr.f32.mxu1 %v4852_v10  ;;  %v10448_v10 = vld [vmem:[#allocation20_spill] sm:$0xff] }
  0x8a   :  { %6762 = vmatpush3.bf16.msra.mxu0 %v7982_v21 }
  0x8b   :  { %6794 = vmatpush3.bf16.msra.mxu1 %v7995_v25  ;;  %6764 = vmatprep.subr.bf16.mxu0 %v7997_v26 }
  0x8c   :  { %6796 = vmatprep.subr.bf16.mxu1 %v8008_v30 }
  0x8e   :  { %6766 = vmatpush3.bf16.msra.mxu0 %v8020_v34 }
  0x8f   :  { %6798 = vmatpush3.bf16.msra.mxu1 %v8033_v38  ;;  %6768 = vmatprep.subr.bf16.mxu0 %v8035_v39 }
  0x90   :  { %6800 = vmatprep.subr.bf16.mxu1 %v8047_v43 }
  0x92   :  { %6770 = vmatpush3.bf16.msra.mxu0 %v8068_v50 }
  0x93   :  { %6802 = vmatpush3.bf16.msra.mxu1 %v8072_v51  ;;  %6772 = vmatprep.subr.bf16.mxu0 %v8074_v52 }
  0x94   :  { %6804 = vmatprep.subr.bf16.mxu1 %v8086_v56 }
  0x96   :  { %6774 = vmatpush3.bf16.msra.mxu0 %v8104_v62 }
  0x97   :  { %6806 = vmatpush3.bf16.msra.mxu1 %v8108_v63  ;;  %6776 = vmatprep.subr.bf16.mxu0 %v8110_v0 }
  0x98   :  { %6808 = vmatprep.subr.bf16.mxu1 %v8122_v5 }
  0x9a   :  { %6778 = vmatpush3.bf16.msra.mxu0 %v8140_v14 }
  0x9b   :  { %6810 = vmatpush3.bf16.msra.mxu1 %v8150_v19  ;;  %6780 = vmatprep.subr.bf16.mxu0 %v8152_v20 }
  0x9c   :  { %6812 = vmatprep.subr.bf16.mxu1 %v8164_v27 }
  0x9e   :  { %6782 = vmatpush3.bf16.msra.mxu0 %v8182_v35 }
  0x9f   :  { %6814 = vmatpush3.bf16.msra.mxu1 %v8186_v36  ;;  %6784 = vmatprep.subr.bf16.mxu0 %v8188_v37 }
  0xa0   :  { %6816 = vmatprep.subr.bf16.mxu1 %v8200_v44 }
  0xa2   :  { %6786 = vmatpush3.bf16.msra.mxu0 %v8218_v53 }
  0xa3   :  { %6818 = vmatpush3.bf16.msra.mxu1 %v8222_v54  ;;  %6820 = vmatprep.subr.bf16.mxu0 %v8224_v55 }
  0xa4   :  { %6852 = vmatprep.subr.bf16.mxu1 %v8236_v60 }
  0xa5   :  { %964 = vmatmul.mubr.f32.vlgmr.msra.gmra.mrb[8].mxu0 %v4849_v61  ;;  %v10449_v61 = vld [vmem:[#allocation21_spill] sm:$0xff] }
  0xa6   :  { %1034 = vmatmul.mubr.f32.vlgmr.msra.gmra.mrb[8].mxu1 %v4851_v59  ;;  %6822 = vmatpush3.bf16.msra.mxu0 %v8260_v11  ;;  %v10450_v59 = vld [vmem:[#allocation22_spill] sm:$0xff] }
  0xa7   :  { %6854 = vmatpush3.bf16.msra.mxu1 %v8264_v13  ;;  %6824 = vmatprep.subr.bf16.mxu0 %v8266_v15 }
  0xa8   :  { %6856 = vmatprep.subr.bf16.mxu1 %v8278_v24  ;;  %1103 = vmatprep.mubr.f32.mxu0 %v4854_v46  ;;  %v10451_v46 = vld [vmem:[#allocation23_spill] sm:$0xff] }
  0xa9   :  { %1173 = vmatprep.mubr.f32.mxu1 %v4856_v45  ;;  %v10452_v45 = vld [vmem:[#allocation24_spill] sm:$0xff] }
  0xaa   :  { %6826 = vmatpush3.bf16.msra.mxu0 %v8296_v40 }
  0xab   :  { %6858 = vmatpush3.bf16.msra.mxu1 %v8300_v41  ;;  %6828 = vmatprep.subr.bf16.mxu0 %v8302_v42 }
  0xac   :  { %6860 = vmatprep.subr.bf16.mxu1 %v8314_v48  ;;  %v10476_v48 = vld [vmem:[#allocation48_spill] sm:$0xff] }
  0xae   :  { %6830 = vmatpush3.bf16.msra.mxu0 %v8332_v1  ;;  %v10453_v1 = vld [vmem:[#allocation25_spill] sm:$0xff] }
  0xaf   :  { %6862 = vmatpush3.bf16.msra.mxu1 %v8336_v2  ;;  %6832 = vmatprep.subr.bf16.mxu0 %v8338_v4  ;;  %v10454_v2 = vld [vmem:[#allocation26_spill] sm:$0xff]  ;;  %v10455_v4 = vld [vmem:[#allocation27_spill] sm:$0xff] }
  0xb0   :  { %6864 = vmatprep.subr.bf16.mxu1 %v8350_v18  ;;  %v10456_v18 = vld [vmem:[#allocation28_spill] sm:$0xff] }
  0xb2   :  { %6834 = vmatpush3.bf16.msra.mxu0 %v10446_v29  ;;  %v10457_v29 = vld [vmem:[#allocation29_spill] sm:$0xff] }
  0xb3   :  { %6866 = vmatpush3.bf16.msra.mxu1 %v10447_v22  ;;  %6836 = vmatprep.subr.bf16.mxu0 %v10448_v10  ;;  %v10458_v22 = vld [vmem:[#allocation30_spill] sm:$0xff]  ;;  %v10459_v10 = vld [vmem:[#allocation31_spill] sm:$0xff] }
  0xb4   :  { %6868 = vmatprep.subr.bf16.mxu1 %v10449_v61  ;;  %v10460_v61 = vld [vmem:[#allocation32_spill] sm:$0xff] }
  0xb6   :  { %6838 = vmatpush3.bf16.msra.mxu0 %v10450_v59  ;;  %v10461_v59 = vld [vmem:[#allocation33_spill] sm:$0xff] }
  0xb7   :  { %6870 = vmatpush3.bf16.msra.mxu1 %v10451_v46  ;;  %6840 = vmatprep.subr.bf16.mxu0 %v10452_v45  ;;  %v10462_v46 = vld [vmem:[#allocation34_spill] sm:$0xff]  ;;  %v10475_v45 = vld [vmem:[#allocation47_spill] sm:$0xff] }
  0xb8   :  { %6872 = vmatprep.subr.bf16.mxu1 %v10453_v1  ;;  %v10463_v1 = vld [vmem:[#allocation35_spill] sm:$0xff] }
  0xba   :  { %6842 = vmatpush3.bf16.msra.mxu0 %v10454_v2  ;;  %v4853_v2 = vld [vmem:[%s10179_s0 + $0xa0] sm:$0xff] }
  0xbb   :  { %6874 = vmatpush3.bf16.msra.mxu1 %v10455_v4  ;;  %6844 = vmatprep.subr.bf16.mxu0 %v10456_v18  ;;  %v10464_v4 = vld [vmem:[#allocation36_spill] sm:$0xff] }
  0xbc   :  { %6876 = vmatprep.subr.bf16.mxu1 %v10457_v29  ;;  %v10465_v29 = vld [vmem:[#allocation37_spill] sm:$0xff]  ;;  %v10472_v18 = vld [vmem:[#allocation44_spill] sm:$0xff] }
  0xbe   :  { %6846 = vmatpush3.bf16.msra.mxu0 %v10458_v22  ;;  %v4855_v22 = vld [vmem:[%s10179_s0 + $0xb0] sm:$0xff] }
  0xbf   :  { %6878 = vmatpush3.bf16.msra.mxu1 %v10459_v10  ;;  %6848 = vmatprep.subr.bf16.mxu0 %v10460_v61  ;;  %v10467_v61 = vld [vmem:[#allocation39_spill] sm:$0xff]  ;;  %v10469_v10 = vld [vmem:[#allocation41_spill] sm:$0xff] }
  0xc0   :  { %6880 = vmatprep.subr.bf16.mxu1 %v10461_v59  ;;  %v4858_v59 = vld [vmem:[%s10179_s0 + $0xc8] sm:$0xff] }
  0xc2   :  { %6850 = vmatpush3.bf16.msra.mxu0 %v10462_v46  ;;  %v10466_v46 = vld [vmem:[#allocation38_spill] sm:$0xff] }
  0xc3   :  { %6882 = vmatpush3.bf16.msra.mxu1 %v10463_v1  ;;  %6884 = vmatprep.subr.bf16.mxu0 %v10464_v4  ;;  %v4860_v1 = vld [vmem:[%s10179_s0 + $0xd8] sm:$0xff]  ;;  %v10468_v4 = vld [vmem:[#allocation40_spill] sm:$0xff] }
  0xc4   :  { %6916 = vmatprep.subr.bf16.mxu1 %v10465_v29  ;;  %v10471_v29 = vld [vmem:[#allocation43_spill] sm:$0xff] }
  0xc5   :  { %1104 = vmatmul.mubr.f32.vlgmr.msra.gmra.mrb[10].mxu0 %v4853_v2  ;;  %v10470_v2 = vld [vmem:[#allocation42_spill] sm:$0xff] }
  0xc6   :  { %1174 = vmatmul.mubr.f32.vlgmr.msra.gmra.mrb[10].mxu1 %v4855_v22  ;;  %6886 = vmatpush3.bf16.msra.mxu0 %v10466_v46  ;;  %v10473_v22 = vld [vmem:[#allocation45_spill] sm:$0xff]  ;;  %v10474_v46 = vld [vmem:[#allocation46_spill] sm:$0xff] }
  0xc7   :  { %6918 = vmatpush3.bf16.msra.mxu1 %v10467_v61  ;;  %6888 = vmatprep.subr.bf16.mxu0 %v10468_v4  ;;  %v10477_v61 = vld [vmem:[#allocation49_spill] sm:$0xff]  ;;  %v10478_v4 = vld [vmem:[#allocation50_spill] sm:$0xff] }
  0xc8   :  { %6920 = vmatprep.subr.bf16.mxu1 %v10469_v10  ;;  %1243 = vmatprep.mubr.f32.mxu0 %v4858_v59  ;;  %v10479_v59 = vld [vmem:[#allocation51_spill] sm:$0xff] }
  0xc9   :  { %1313 = vmatprep.mubr.f32.mxu1 %v4860_v1  ;;  %v10480_v1 = vld [vmem:[#allocation52_spill] sm:$0xff] }
  0xca   :  { %6890 = vmatpush3.bf16.msra.mxu0 %v10470_v2  ;;  %v10481_v2 = vld [vmem:[#allocation53_spill] sm:$0xff] }
  0xcb   :  { %6922 = vmatpush3.bf16.msra.mxu1 %v10471_v29  ;;  %6892 = vmatprep.subr.bf16.mxu0 %v10472_v18  ;;  %v10482_v29 = vld [vmem:[#allocation54_spill] sm:$0xff]  ;;  %v10483_v18 = vld [vmem:[#allocation55_spill] sm:$0xff] }
  0xcc   :  { %6924 = vmatprep.subr.bf16.mxu1 %v10473_v22  ;;  %v10484_v22 = vld [vmem:[#allocation56_spill] sm:$0xff] }
  0xce   :  { %6894 = vmatpush3.bf16.msra.mxu0 %v10474_v46  ;;  %v10485_v46 = vld [vmem:[#allocation57_spill] sm:$0xff] }
  0xcf   :  { %6926 = vmatpush3.bf16.msra.mxu1 %v10475_v45  ;;  %6896 = vmatprep.subr.bf16.mxu0 %v10476_v48  ;;  %v10486_v45 = vld [vmem:[#allocation58_spill] sm:$0xff]  ;;  %v10487_v48 = vld [vmem:[#allocation59_spill] sm:$0xff] }
  0xd0   :  { %6928 = vmatprep.subr.bf16.mxu1 %v10477_v61  ;;  %v10488_v61 = vld [vmem:[#allocation60_spill] sm:$0xff] }
  0xd2   :  { %6898 = vmatpush3.bf16.msra.mxu0 %v10478_v4  ;;  %v10489_v4 = vld [vmem:[#allocation61_spill] sm:$0xff] }
  0xd3   :  { %6930 = vmatpush3.bf16.msra.mxu1 %v10479_v59  ;;  %6900 = vmatprep.subr.bf16.mxu0 %v10480_v1  ;;  %v10490_v59 = vld [vmem:[#allocation62_spill] sm:$0xff]  ;;  %v10491_v1 = vld [vmem:[#allocation63_spill] sm:$0xff] }
  0xd4   :  { %6932 = vmatprep.subr.bf16.mxu1 %v10481_v2  ;;  %v10492_v2 = vld [vmem:[#allocation64_spill] sm:$0xff] }
  0xd6   :  { %6902 = vmatpush3.bf16.msra.mxu0 %v10482_v29  ;;  %v10493_v29 = vld [vmem:[#allocation65_spill] sm:$0xff] }
  0xd7   :  { %6934 = vmatpush3.bf16.msra.mxu1 %v10483_v18  ;;  %6904 = vmatprep.subr.bf16.mxu0 %v10484_v22  ;;  %v10494_v18 = vld [vmem:[#allocation66_spill] sm:$0xff]  ;;  %v10507_v22 = vld [vmem:[#allocation80_spill] sm:$0xff] }
  0xd8   :  { %6936 = vmatprep.subr.bf16.mxu1 %v10485_v46  ;;  %v10495_v46 = vld [vmem:[#allocation67_spill] sm:$0xff] }
  0xda   :  { %6906 = vmatpush3.bf16.msra.mxu0 %v10486_v45  ;;  %v4857_v45 = vld [vmem:[%s10179_s0 + $0xc0] sm:$0xff] }
  0xdb   :  { %6938 = vmatpush3.bf16.msra.mxu1 %v10487_v48  ;;  %6908 = vmatprep.subr.bf16.mxu0 %v10488_v61  ;;  %v10496_v48 = vld [vmem:[#allocation68_spill] sm:$0xff]  ;;  %v10506_v61 = vld [vmem:[#allocation79_spill] sm:$0xff] }
  0xdc   :  { %6940 = vmatprep.subr.bf16.mxu1 %v10489_v4  ;;  %v10497_v4 = vld [vmem:[#allocation69_spill] sm:$0xff] }
  0xde   :  { %6910 = vmatpush3.bf16.msra.mxu0 %v10490_v59  ;;  %v4859_v59 = vld [vmem:[%s10179_s0 + $0xd0] sm:$0xff] }
  0xdf   :  { %6942 = vmatpush3.bf16.msra.mxu1 %v10491_v1  ;;  %6912 = vmatprep.subr.bf16.mxu0 %v10492_v2  ;;  %v10500_v2 = vld [vmem:[#allocation73_spill] sm:$0xff]  ;;  %v10503_v1 = vld [vmem:[#allocation76_spill] sm:$0xff] }
  0xe0   :  { %6944 = vmatprep.subr.bf16.mxu1 %v10493_v29  ;;  %v4862_v29 = vld [vmem:[%s10179_s0 + $0xe8] sm:$0xff] }
  0xe2   :  { %6914 = vmatpush3.bf16.msra.mxu0 %v10494_v18  ;;  %v10498_v18 = vld [vmem:[#allocation71_spill] sm:$0xff] }
  0xe3   :  { %6946 = vmatpush3.bf16.msra.mxu1 %v10495_v46  ;;  %6948 = vmatprep.subr.bf16.mxu0 %v10496_v48  ;;  %v4864_v46 = vld [vmem:[%s10179_s0 + $0xf8] sm:$0xff]  ;;  %v10499_v48 = vld [vmem:[#allocation72_spill] sm:$0xff] }
  0xe4   :  { %6980 = vmatprep.subr.bf16.mxu1 %v10497_v4  ;;  %v10502_v4 = vld [vmem:[#allocation75_spill] sm:$0xff] }
  0xe5   :  { %1244 = vmatmul.mubr.f32.vlgmr.msra.gmra.mrb[12].mxu0 %v4857_v45  ;;  %v10501_v45 = vld [vmem:[#allocation74_spill] sm:$0xff] }
  0xe6   :  { %1314 = vmatmul.mubr.f32.vlgmr.msra.gmra.mrb[12].mxu1 %v4859_v59  ;;  %6950 = vmatpush3.bf16.msra.mxu0 %v8860_v58  ;;  %v10504_v59 = vld [vmem:[#allocation77_spill] sm:$0xff]  ;;  %v10505_v58 = vld [vmem:[#allocation78_spill] sm:$0xff] }
  0xe7   :  { %6982 = vmatpush3.bf16.msra.mxu1 %v10498_v18  ;;  %6952 = vmatprep.subr.bf16.mxu0 %v10499_v48  ;;  %v10508_v18 = vld [vmem:[#allocation81_spill] sm:$0xff]  ;;  %v10509_v48 = vld [vmem:[#allocation82_spill] sm:$0xff] }
  0xe8   :  { %6984 = vmatprep.subr.bf16.mxu1 %v10500_v2  ;;  %1383 = vmatprep.mubr.f32.mxu0 %v4862_v29  ;;  %v10510_v29 = vld [vmem:[#allocation83_spill] sm:$0xff] }
  0xe9   :  { %1453 = vmatprep.mubr.f32.mxu1 %v4864_v46  ;;  %v10511_v46 = vld [vmem:[#allocation84_spill] sm:$0xff] }
  0xea   :  { %6954 = vmatpush3.bf16.msra.mxu0 %v10501_v45  ;;  %v10512_v45 = vld [vmem:[#allocation85_spill] sm:$0xff] }
  0xeb   :  { %6986 = vmatpush3.bf16.msra.mxu1 %v10502_v4  ;;  %6956 = vmatprep.subr.bf16.mxu0 %v10503_v1  ;;  %v10513_v4 = vld [vmem:[#allocation86_spill] sm:$0xff]  ;;  %v10514_v1 = vld [vmem:[#allocation87_spill] sm:$0xff] }
  0xec   :  { %6988 = vmatprep.subr.bf16.mxu1 %v10504_v59  ;;  %v10515_v59 = vld [vmem:[#allocation88_spill] sm:$0xff] }
  0xee   :  { %6958 = vmatpush3.bf16.msra.mxu0 %v10505_v58 }
  0xef   :  { %6990 = vmatpush3.bf16.msra.mxu1 %v10506_v61  ;;  %6960 = vmatprep.subr.bf16.mxu0 %v10507_v22  ;;  %v10516_v61 = vld [vmem:[#allocation89_spill] sm:$0xff] }
  0xf0   :  { %6992 = vmatprep.subr.bf16.mxu1 %v10508_v18 }
  0xf2   :  { %6962 = vmatpush3.bf16.msra.mxu0 %v10509_v48 }
  0xf3   :  { %6994 = vmatpush3.bf16.msra.mxu1 %v10510_v29  ;;  %6964 = vmatprep.subr.bf16.mxu0 %v10511_v46 }
  0xf4   :  { %6996 = vmatprep.subr.bf16.mxu1 %v10512_v45 }
  0xf6   :  { %6966 = vmatpush3.bf16.msra.mxu0 %v10513_v4 }
  0xf7   :  { %6998 = vmatpush3.bf16.msra.mxu1 %v10514_v1  ;;  %6968 = vmatprep.subr.bf16.mxu0 %v10515_v59 }
  0xf8   :  { %v4967_v58 = vpop.f32.mrb[0].mxu0  ;;  %7000 = vmatprep.subr.bf16.mxu1 %v10516_v61 }
  0xf9   :  { %v5002_v22 = vpop.f32.mrb[0].mxu1  ;;  %v4968_v2 = vpop.f32.mrb[1].mxu0 }
  0xfa   :  { %v4969_v18 = vadd.f32 %v4968_v2, %v4967_v58  ;;  %v5003_v10 = vpop.f32.mrb[1].mxu1  ;;  %6970 = vmatpush3.bf16.msra.mxu0 %v9046_v49  ;;  %v4861_v58 = vld [vmem:[%s10179_s0 + $0xe0] sm:$0xff]  ;;  %v4868_v2 = vld [vmem:[%s10179_s0 + $0x118] sm:$0xff] }
  0xfb   :  { %v5004_v29 = vadd.f32 %v5003_v10, %v5002_v22  ;;  %7002 = vmatpush3.bf16.msra.mxu1 %v9050_v6  ;;  %6972 = vmatprep.subr.bf16.mxu0 %v9052_v57  ;;  %v4866_v10 = vld [vmem:[%s10179_s0 + $0x108] sm:$0xff] }
  0xfc   :  { %7004 = vmatprep.subr.bf16.mxu1 %v9064_v9 }
  0xfd   :  { %v459_v4 = vadd.f32 %v5004_v29, %v4969_v18  ;;  %v4863_v18 = vld [vmem:[%s10179_s0 + $0xf0] sm:$0xff] }
  0xfe   :  { %6974 = vmatpush3.bf16.msra.mxu0 %v9082_v32 }
  0xff   :  { %7006 = vmatpush3.bf16.msra.mxu1 %v9086_v31  ;;  %6976 = vmatprep.subr.bf16.mxu0 %v9088_v47 }
 0x100   :  { %7008 = vmatprep.subr.bf16.mxu1 %v9097_v28 }
 0x102   :  { %6978 = vmatpush3.bf16.msra.mxu0 %v9106_v33 }
 0x103   :  { %7010 = vmatpush3.bf16.msra.mxu1 %v9110_v23  ;;  %7012 = vmatprep.subr.bf16.mxu0 %v7930_v3 }
 0x104   :  { %7044 = vmatprep.subr.bf16.mxu1 %v7941_v7 }
 0x105   :  { %1384 = vmatmul.mubr.f32.vlgmr.msra.gmra.mrb[14].mxu0 %v4861_v58 }
 0x106   :  { %1454 = vmatmul.mubr.f32.vlgmr.msra.gmra.mrb[14].mxu1 %v4863_v18  ;;  %7014 = vmatpush3.bf16.msra.mxu0 %v7943_v8 }
 0x107   :  { %7046 = vmatpush3.bf16.msra.mxu1 %v7955_v12  ;;  %7016 = vmatprep.subr.bf16.mxu0 %v7968_v16 }
 0x108   :  { %7048 = vmatprep.subr.bf16.mxu1 %v7970_v17  ;;  %1541 = vmatprep.mubr.f32.mxu0 %v4866_v10 }
 0x109   :  { %1611 = vmatprep.mubr.f32.mxu1 %v4868_v2 }
 0x10a   :  { %7018 = vmatpush3.bf16.msra.mxu0 %v7982_v21 }
 0x10b   :  { %7050 = vmatpush3.bf16.msra.mxu1 %v7995_v25  ;;  %7020 = vmatprep.subr.bf16.mxu0 %v7997_v26 }
 0x10c   :  { %7052 = vmatprep.subr.bf16.mxu1 %v8008_v30 }
 0x10e   :  { %7022 = vmatpush3.bf16.msra.mxu0 %v8020_v34 }
 0x10f   :  { %7054 = vmatpush3.bf16.msra.mxu1 %v8033_v38  ;;  %7024 = vmatprep.subr.bf16.mxu0 %v8035_v39 }
 0x110   :  { %7056 = vmatprep.subr.bf16.mxu1 %v8047_v43 }
 0x112   :  { %7026 = vmatpush3.bf16.msra.mxu0 %v8068_v50 }
 0x113   :  { %7058 = vmatpush3.bf16.msra.mxu1 %v8072_v51  ;;  %7028 = vmatprep.subr.bf16.mxu0 %v8074_v52 }
 0x114   :  { %7060 = vmatprep.subr.bf16.mxu1 %v8086_v56 }
 0x116   :  { %7030 = vmatpush3.bf16.msra.mxu0 %v8104_v62 }
 0x117   :  { %7062 = vmatpush3.bf16.msra.mxu1 %v8108_v63  ;;  %7032 = vmatprep.subr.bf16.mxu0 %v8110_v0 }
 0x118   :  { %v5037_v22 = vpop.f32.mrb[2].mxu0  ;;  %7064 = vmatprep.subr.bf16.mxu1 %v8122_v5 }
 0x119   :  { %v5038_v29 = vpop.f32.mrb[3].mxu0  ;;  %v5072_v58 = vpop.f32.mrb[2].mxu1 }
 0x11a   :  { %v5039_v18 = vadd.f32 %v5038_v29, %v5037_v22  ;;  %7034 = vmatpush3.bf16.msra.mxu0 %v8140_v14  ;;  %v5073_v10 = vpop.f32.mrb[3].mxu1  ;;  %v4865_v22 = vld [vmem:[%s10179_s0 + $0x100] sm:$0xff]  ;;  %v4872_v29 = vld [vmem:[%s10179_s0 + $0x138] sm:$0xff] }
 0x11b   :  { %7066 = vmatpush3.bf16.msra.mxu1 %v8150_v19  ;;  %v5074_v2 = vadd.f32 %v5073_v10, %v5072_v58  ;;  %7036 = vmatprep.subr.bf16.mxu0 %v8152_v20  ;;  %v10517_v58 = vld [vmem:[#allocation13_spill] sm:$0xff]  ;;  %v10519_v10 = vld [vmem:[#allocation15_spill] sm:$0xff] }
 0x11c   :  { %v529_v56 = vadd.f32 %v5039_v18, %v459_v4  ;;  %7068 = vmatprep.subr.bf16.mxu1 %v8164_v27  ;;  %v4870_v4 = vld [vmem:[%s10179_s0 + $0x128] sm:$0xff]  ;;  %v10518_v18 = vld [vmem:[#allocation14_spill] sm:$0xff] }
 0x11e   :  { %v599_v63 = vadd.f32 %v5074_v2, %v529_v56  ;;  %7038 = vmatpush3.bf16.msra.mxu0 %v8182_v35  ;;  %v4867_v56 = vld [vmem:[%s10179_s0 + $0x110] sm:$0xff] }
 0x11f   :  { %7070 = vmatpush3.bf16.msra.mxu1 %v8186_v36  ;;  %7040 = vmatprep.subr.bf16.mxu0 %v8188_v37  ;;  %v10520_v2 = vld [vmem:[#allocation16_spill] sm:$0xff] }
 0x120   :  { %7072 = vmatprep.subr.bf16.mxu1 %v8200_v44 }
 0x122   :  { %7042 = vmatpush3.bf16.msra.mxu0 %v8218_v53 }
 0x123   :  { %7074 = vmatpush3.bf16.msra.mxu1 %v8222_v54  ;;  %7076 = vmatprep.subr.bf16.mxu0 %v8224_v55 }
 0x124   :  { %7108 = vmatprep.subr.bf16.mxu1 %v8236_v60  ;;  %v10537_v60 = vld [vmem:[#allocation33_spill] sm:$0xff] }
 0x125   :  { %1542 = vmatmul.mubr.f32.vlgmr.msra.gmra.mrb[16].mxu0 %v4865_v22  ;;  %v10521_v22 = vld [vmem:[#allocation17_spill] sm:$0xff] }
 0x126   :  { %1612 = vmatmul.mubr.f32.vlgmr.msra.gmra.mrb[16].mxu1 %v4867_v56  ;;  %7078 = vmatpush3.bf16.msra.mxu0 %v8260_v11  ;;  %v10522_v56 = vld [vmem:[#allocation18_spill] sm:$0xff] }
 0x127   :  { %7110 = vmatpush3.bf16.msra.mxu1 %v8264_v13  ;;  %7080 = vmatprep.subr.bf16.mxu0 %v8266_v15  ;;  %v10530_v15 = vld [vmem:[#allocation26_spill] sm:$0xff]  ;;  %v10532_v13 = vld [vmem:[#allocation28_spill] sm:$0xff] }
 0x128   :  { %7112 = vmatprep.subr.bf16.mxu1 %v8278_v24  ;;  %1681 = vmatprep.mubr.f32.mxu0 %v4870_v4  ;;  %v10523_v4 = vld [vmem:[#allocation19_spill] sm:$0xff]  ;;  %v10534_v11 = vld [vmem:[#allocation30_spill] sm:$0xff] }
 0x129   :  { %1751 = vmatprep.mubr.f32.mxu1 %v4872_v29  ;;  %v10524_v29 = vld [vmem:[#allocation20_spill] sm:$0xff] }
 0x12a   :  { %7082 = vmatpush3.bf16.msra.mxu0 %v8296_v40  ;;  %v10525_v40 = vld [vmem:[#allocation21_spill] sm:$0xff] }
 0x12b   :  { %7114 = vmatpush3.bf16.msra.mxu1 %v8300_v41  ;;  %7084 = vmatprep.subr.bf16.mxu0 %v8302_v42  ;;  %v10526_v41 = vld [vmem:[#allocation22_spill] sm:$0xff]  ;;  %v10527_v42 = vld [vmem:[#allocation23_spill] sm:$0xff] }
 0x12c   :  { %7116 = vmatprep.subr.bf16.mxu1 %v10517_v58  ;;  %v10528_v58 = vld [vmem:[#allocation24_spill] sm:$0xff] }
 0x12e   :  { %7086 = vmatpush3.bf16.msra.mxu0 %v10518_v18 }
 0x12f   :  { %7118 = vmatpush3.bf16.msra.mxu1 %v10519_v10  ;;  %7088 = vmatprep.subr.bf16.mxu0 %v10520_v2  ;;  %v10529_v10 = vld [vmem:[#allocation25_spill] sm:$0xff] }
 0x130   :  { %7120 = vmatprep.subr.bf16.mxu1 %v10521_v22 }
 0x132   :  { %7090 = vmatpush3.bf16.msra.mxu0 %v10522_v56 }
 0x133   :  { %7122 = vmatpush3.bf16.msra.mxu1 %v10523_v4  ;;  %7092 = vmatprep.subr.bf16.mxu0 %v10524_v29  ;;  %v10531_v4 = vld [vmem:[#allocation27_spill] sm:$0xff] }
 0x134   :  { %7124 = vmatprep.subr.bf16.mxu1 %v10525_v40 }
 0x136   :  { %7094 = vmatpush3.bf16.msra.mxu0 %v10526_v41  ;;  %v10533_v41 = vld [vmem:[#allocation29_spill] sm:$0xff] }
 0x137   :  { %7126 = vmatpush3.bf16.msra.mxu1 %v10527_v42  ;;  %7096 = vmatprep.subr.bf16.mxu0 %v10528_v58  ;;  %v10535_v58 = vld [vmem:[#allocation31_spill] sm:$0xff] }
 0x138   :  { %v5107_v18 = vpop.f32.mrb[4].mxu0  ;;  %7128 = vmatprep.subr.bf16.mxu1 %v10529_v10  ;;  %v10536_v10 = vld [vmem:[#allocation32_spill] sm:$0xff] }
 0x139   :  { %v5108_v2 = vpop.f32.mrb[5].mxu0  ;;  %v5142_v24 = vpop.f32.mrb[4].mxu1 }
 0x13a   :  { %v5109_v22 = vadd.f32 %v5108_v2, %v5107_v18  ;;  %7098 = vmatpush3.bf16.msra.mxu0 %v10530_v15  ;;  %v5143_v56 = vpop.f32.mrb[5].mxu1  ;;  %v10538_v18 = vld [vmem:[#allocation34_spill] sm:$0xff]  ;;  %v10539_v2 = vld [vmem:[#allocation35_spill] sm:$0xff] }
 0x13b   :  { %7130 = vmatpush3.bf16.msra.mxu1 %v10531_v4  ;;  %v5144_v29 = vadd.f32 %v5143_v56, %v5142_v24  ;;  %7100 = vmatprep.subr.bf16.mxu0 %v10532_v13  ;;  %v4869_v24 = vld [vmem:[%s10179_s0 + $0x120] sm:$0xff]  ;;  %v4874_v56 = vld [vmem:[%s10179_s0 + $0x148] sm:$0xff]  ;;  %v10564_v13 = vld [vmem:[#allocation60_spill] sm:$0xff] }
 0x13c   :  { %v669_v40 = vadd.f32 %v5109_v22, %v599_v63  ;;  %7132 = vmatprep.subr.bf16.mxu1 %v10533_v41  ;;  %v10540_v63 = vld [vmem:[#allocation36_spill] sm:$0xff]  ;;  %v10541_v22 = vld [vmem:[#allocation37_spill] sm:$0xff]  ;;  %v10562_v41 = vld [vmem:[#allocation58_spill] sm:$0xff] }
 0x13d   :  { %v10568_v4 = vld [vmem:[#allocation63_spill] sm:$0xff] }
 0x13e   :  { %v739_v42 = vadd.f32 %v5144_v29, %v669_v40  ;;  %7102 = vmatpush3.bf16.msra.mxu0 %v10534_v11  ;;  %v4871_v40 = vld [vmem:[%s10179_s0 + $0x130] sm:$0xff]  ;;  %v10542_v29 = vld [vmem:[#allocation38_spill] sm:$0xff] }
 0x13f   :  { %7134 = vmatpush3.bf16.msra.mxu1 %v10535_v58  ;;  %7104 = vmatprep.subr.bf16.mxu0 %v10536_v10  ;;  %v10548_v10 = vld [vmem:[#allocation44_spill] sm:$0xff]  ;;  %v10551_v58 = vld [vmem:[#allocation47_spill] sm:$0xff] }
 0x140   :  { %7136 = vmatprep.subr.bf16.mxu1 %v10537_v60  ;;  %v10545_v60 = vld [vmem:[#allocation41_spill] sm:$0xff]  ;;  %v10552_v11 = vld [vmem:[#allocation48_spill] sm:$0xff] }
 0x142   :  { %7106 = vmatpush3.bf16.msra.mxu0 %v10538_v18  ;;  %v10543_v18 = vld [vmem:[#allocation39_spill] sm:$0xff] }
 0x143   :  { %7138 = vmatpush3.bf16.msra.mxu1 %v10539_v2  ;;  %7140 = vmatprep.subr.bf16.mxu0 %v10540_v63  ;;  %v4876_v2 = vld [vmem:[%s10179_s0 + $0x158] sm:$0xff]  ;;  %v10544_v63 = vld [vmem:[#allocation40_spill] sm:$0xff] }
 0x144   :  { %7172 = vmatprep.subr.bf16.mxu1 %v10541_v22  ;;  %v10547_v22 = vld [vmem:[#allocation43_spill] sm:$0xff] }
 0x145   :  { %1682 = vmatmul.mubr.f32.vlgmr.msra.gmra.mrb[18].mxu0 %v4869_v24  ;;  %v10546_v24 = vld [vmem:[#allocation42_spill] sm:$0xff] }
 0x146   :  { %1752 = vmatmul.mubr.f32.vlgmr.msra.gmra.mrb[18].mxu1 %v4871_v40  ;;  %7142 = vmatpush3.bf16.msra.mxu0 %v10542_v29  ;;  %v10549_v40 = vld [vmem:[#allocation45_spill] sm:$0xff]  ;;  %v10550_v29 = vld [vmem:[#allocation46_spill] sm:$0xff] }
 0x147   :  { %7174 = vmatpush3.bf16.msra.mxu1 %v10543_v18  ;;  %7144 = vmatprep.subr.bf16.mxu0 %v10544_v63  ;;  %v10553_v18 = vld [vmem:[#allocation49_spill] sm:$0xff]  ;;  %v10554_v63 = vld [vmem:[#allocation50_spill] sm:$0xff] }
 0x148   :  { %7176 = vmatprep.subr.bf16.mxu1 %v10545_v60  ;;  %1821 = vmatprep.mubr.f32.mxu0 %v4874_v56  ;;  %v10555_v56 = vld [vmem:[#allocation51_spill] sm:$0xff] }
 0x149   :  { %1891 = vmatprep.mubr.f32.mxu1 %v4876_v2  ;;  %v10556_v2 = vld [vmem:[#allocation52_spill] sm:$0xff] }
 0x14a   :  { %7146 = vmatpush3.bf16.msra.mxu0 %v10546_v24  ;;  %v10557_v24 = vld [vmem:[#allocation53_spill] sm:$0xff] }
 0x14b   :  { %7178 = vmatpush3.bf16.msra.mxu1 %v10547_v22  ;;  %7148 = vmatprep.subr.bf16.mxu0 %v10548_v10  ;;  %v10558_v22 = vld [vmem:[#allocation54_spill] sm:$0xff]  ;;  %v10559_v10 = vld [vmem:[#allocation55_spill] sm:$0xff] }
 0x14c   :  { %7180 = vmatprep.subr.bf16.mxu1 %v10549_v40  ;;  %v10560_v40 = vld [vmem:[#allocation56_spill] sm:$0xff] }
 0x14e   :  { %7150 = vmatpush3.bf16.msra.mxu0 %v10550_v29 }
 0x14f   :  { %7182 = vmatpush3.bf16.msra.mxu1 %v10551_v58  ;;  %7152 = vmatprep.subr.bf16.mxu0 %v10552_v11  ;;  %v10561_v58 = vld [vmem:[#allocation57_spill] sm:$0xff] }
 0x150   :  { %7184 = vmatprep.subr.bf16.mxu1 %v10553_v18 }
 0x152   :  { %7154 = vmatpush3.bf16.msra.mxu0 %v10554_v63 }
 0x153   :  { %7186 = vmatpush3.bf16.msra.mxu1 %v10555_v56  ;;  %7156 = vmatprep.subr.bf16.mxu0 %v10556_v2  ;;  %v10563_v56 = vld [vmem:[#allocation59_spill] sm:$0xff] }
 0x154   :  { %7188 = vmatprep.subr.bf16.mxu1 %v10557_v24 }
 0x156   :  { %7158 = vmatpush3.bf16.msra.mxu0 %v10558_v22  ;;  %v10565_v22 = vld [vmem:[#allocation61_spill] sm:$0xff] }
 0x157   :  { %7190 = vmatpush3.bf16.msra.mxu1 %v10559_v10  ;;  %7160 = vmatprep.subr.bf16.mxu0 %v10560_v40  ;;  %v10567_v40 = vld [vmem:[#allocation62_spill] sm:$0xff] }
 0x158   :  { %v5177_v29 = vpop.f32.mrb[6].mxu0  ;;  %7192 = vmatprep.subr.bf16.mxu1 %v10561_v58  ;;  %v10569_v58 = vld [vmem:[#allocation64_spill] sm:$0xff] }
 0x159   :  { %v5178_v11 = vpop.f32.mrb[7].mxu0  ;;  %v5212_v60 = vpop.f32.mrb[6].mxu1 }
 0x15a   :  { %v5179_v18 = vadd.f32 %v5178_v11, %v5177_v29  ;;  %7162 = vmatpush3.bf16.msra.mxu0 %v10562_v41  ;;  %v5213_v63 = vpop.f32.mrb[7].mxu1  ;;  %v10570_v11 = vld [vmem:[#allocation65_spill] sm:$0xff]  ;;  %v10571_v29 = vld [vmem:[#allocation66_spill] sm:$0xff] }
 0x15b   :  { %7194 = vmatpush3.bf16.msra.mxu1 %v10563_v56  ;;  %v5214_v2 = vadd.f32 %v5213_v63, %v5212_v60  ;;  %7164 = vmatprep.subr.bf16.mxu0 %v10564_v13  ;;  %v4873_v60 = vld [vmem:[%s10179_s0 + $0x140] sm:$0xff]  ;;  %v10572_v63 = vld [vmem:[#allocation67_spill] sm:$0xff] }
 0x15c   :  { %v809_v24 = vadd.f32 %v5179_v18, %v739_v42  ;;  %7196 = vmatprep.subr.bf16.mxu1 %v10565_v22  ;;  %v10573_v42 = vld [vmem:[#allocation68_spill] sm:$0xff] }
 0x15d   :  { %v4875_v18 = vld [vmem:[%s10179_s0 + $0x150] sm:$0xff] }
 0x15e   :  { %v9417_v10 = vadd.f32 %v5214_v2, %v809_v24  ;;  %7166 = vmatpush3.bf16.msra.mxu0 %v10567_v40  ;;  %v10574_v24 = vld [vmem:[#allocation69_spill] sm:$0xff]  ;;  %v4878_v2 = vld [vmem:[%s10179_s0 + $0x168] sm:$0xff]  ;;  %v10585_v40 = vld [vmem:[#allocation80_spill] sm:$0xff] }
 0x15f   :  { %7198 = vmatpush3.bf16.msra.mxu1 %v10568_v4  ;;  %7168 = vmatprep.subr.bf16.mxu0 %v10569_v58  ;;  %v10581_v58 = vld [vmem:[#allocation76_spill] sm:$0xff]  ;;  %v10584_v4 = vld [vmem:[#allocation79_spill] sm:$0xff] }
 0x160   :  { %10566 = vst [vmem:[#allocation82_spill] sm:$0xff] %v9417_v10  ;;  %7200 = vmatprep.subr.bf16.mxu1 %v10570_v11  ;;  %v10576_v11 = vld [vmem:[#allocation71_spill] sm:$0xff]  ;;  %v10578_v10 = vld [vmem:[#allocation73_spill] sm:$0xff] }
 0x162   :  { %7170 = vmatpush3.bf16.msra.mxu0 %v10571_v29  ;;  %v10575_v29 = vld [vmem:[#allocation70_spill] sm:$0xff] }
 0x163   :  { %7202 = vmatpush3.bf16.msra.mxu1 %v10572_v63  ;;  %7204 = vmatprep.subr.bf16.mxu0 %v10573_v42  ;;  %v4880_v63 = vld [vmem:[%s10179_s0 + $0x178] sm:$0xff]  ;;  %v10577_v42 = vld [vmem:[#allocation72_spill] sm:$0xff] }
 0x164   :  { %7236 = vmatprep.subr.bf16.mxu1 %v10574_v24  ;;  %v10580_v24 = vld [vmem:[#allocation75_spill] sm:$0xff] }
 0x165   :  { %1822 = vmatmul.mubr.f32.vlgmr.msra.gmra.mrb[20].mxu0 %v4873_v60  ;;  %v10579_v60 = vld [vmem:[#allocation74_spill] sm:$0xff] }
 0x166   :  { %1892 = vmatmul.mubr.f32.vlgmr.msra.gmra.mrb[20].mxu1 %v4875_v18  ;;  %7206 = vmatpush3.bf16.msra.mxu0 %v10575_v29  ;;  %v10582_v18 = vld [vmem:[#allocation77_spill] sm:$0xff]  ;;  %v10583_v29 = vld [vmem:[#allocation78_spill] sm:$0xff] }
 0x167   :  { %7238 = vmatpush3.bf16.msra.mxu1 %v10576_v11  ;;  %7208 = vmatprep.subr.bf16.mxu0 %v10577_v42  ;;  %v10586_v11 = vld [vmem:[#allocation81_spill] sm:$0xff] }
 0x168   :  { %7240 = vmatprep.subr.bf16.mxu1 %v10578_v10  ;;  %1961 = vmatprep.mubr.f32.mxu0 %v4878_v2  ;;  %v10587_v2 = vld [vmem:[#allocation83_spill] sm:$0xff] }
 0x169   :  { %2031 = vmatprep.mubr.f32.mxu1 %v4880_v63  ;;  %v10588_v63 = vld [vmem:[#allocation86_spill] sm:$0xff] }
 0x16a   :  { %7210 = vmatpush3.bf16.msra.mxu0 %v10579_v60 }
 0x16b   :  { %7242 = vmatpush3.bf16.msra.mxu1 %v10580_v24  ;;  %7212 = vmatprep.subr.bf16.mxu0 %v10581_v58 }
 0x16c   :  { %7244 = vmatprep.subr.bf16.mxu1 %v10582_v18 }
 0x16e   :  { %7214 = vmatpush3.bf16.msra.mxu0 %v10583_v29 }
 0x16f   :  { %7246 = vmatpush3.bf16.msra.mxu1 %v10584_v4  ;;  %7216 = vmatprep.subr.bf16.mxu0 %v10585_v40 }
 0x170   :  { %7248 = vmatprep.subr.bf16.mxu1 %v10586_v11 }
 0x172   :  { %7218 = vmatpush3.bf16.msra.mxu0 %v10509_v48 }
 0x173   :  { %7250 = vmatpush3.bf16.msra.mxu1 %v10587_v2  ;;  %7220 = vmatprep.subr.bf16.mxu0 %v10511_v46 }
 0x174   :  { %7252 = vmatprep.subr.bf16.mxu1 %v10512_v45 }
 0x176   :  { %7222 = vmatpush3.bf16.msra.mxu0 %v10588_v63 }
 0x177   :  { %7254 = vmatpush3.bf16.msra.mxu1 %v10514_v1  ;;  %7224 = vmatprep.subr.bf16.mxu0 %v10515_v59 }
 0x178   :  { %v5247_v29 = vpop.f32.mrb[8].mxu0  ;;  %7256 = vmatprep.subr.bf16.mxu1 %v10516_v61 }
 0x179   :  { %v5282_v40 = vpop.f32.mrb[8].mxu1  ;;  %v5248_v4 = vpop.f32.mrb[9].mxu0 }
 0x17a   :  { %v5249_v11 = vadd.f32 %v5248_v4, %v5247_v29  ;;  %v5283_v18 = vpop.f32.mrb[9].mxu1  ;;  %7226 = vmatpush3.bf16.msra.mxu0 %v9046_v49  ;;  %v4877_v4 = vld [vmem:[%s10179_s0 + $0x160] sm:$0xff]  ;;  %v4884_v29 = vld [vmem:[%s10179_s0 + $0x198] sm:$0xff] }
 0x17b   :  { %v5284_v2 = vadd.f32 %v5283_v18, %v5282_v40  ;;  %7258 = vmatpush3.bf16.msra.mxu1 %v9050_v6  ;;  %7228 = vmatprep.subr.bf16.mxu0 %v9052_v57  ;;  %v4879_v40 = vld [vmem:[%s10179_s0 + $0x170] sm:$0xff]  ;;  %v10608_v18 = vld [vmem:[#allocation22_spill] sm:$0xff] }
 0x17c   :  { %7260 = vmatprep.subr.bf16.mxu1 %v9064_v9 }
 0x17d   :  { %v1036_v63 = vadd.f32 %v5284_v2, %v5249_v11  ;;  %v4882_v11 = vld [vmem:[%s10179_s0 + $0x188] sm:$0xff] }
 0x17e   :  { %7230 = vmatpush3.bf16.msra.mxu0 %v9082_v32  ;;  %v10609_v2 = vld [vmem:[#allocation23_spill] sm:$0xff] }
 0x17f   :  { %7262 = vmatpush3.bf16.msra.mxu1 %v9086_v31  ;;  %7232 = vmatprep.subr.bf16.mxu0 %v9088_v47 }
 0x180   :  { %7264 = vmatprep.subr.bf16.mxu1 %v9097_v28 }
 0x182   :  { %7234 = vmatpush3.bf16.msra.mxu0 %v9106_v33 }
 0x183   :  { %7266 = vmatpush3.bf16.msra.mxu1 %v9110_v23  ;;  %7268 = vmatprep.subr.bf16.mxu0 %v7930_v3  ;;  %v10589_v3 = vld [vmem:[#allocation3_spill] sm:$0xff] }
 0x184   :  { %7300 = vmatprep.subr.bf16.mxu1 %v7941_v7  ;;  %v10590_v7 = vld [vmem:[#allocation4_spill] sm:$0xff] }
 0x185   :  { %1962 = vmatmul.mubr.f32.vlgmr.msra.gmra.mrb[22].mxu0 %v4877_v4 }
 0x186   :  { %2032 = vmatmul.mubr.f32.vlgmr.msra.gmra.mrb[22].mxu1 %v4879_v40  ;;  %7270 = vmatpush3.bf16.msra.mxu0 %v7943_v8  ;;  %v10611_v40 = vld [vmem:[#allocation25_spill] sm:$0xff] }
 0x187   :  { %7302 = vmatpush3.bf16.msra.mxu1 %v7955_v12  ;;  %7272 = vmatprep.subr.bf16.mxu0 %v7968_v16 }
 0x188   :  { %7304 = vmatprep.subr.bf16.mxu1 %v7970_v17  ;;  %2119 = vmatprep.mubr.f32.mxu0 %v4882_v11 }
 0x189   :  { %2189 = vmatprep.mubr.f32.mxu1 %v4884_v29 }
 0x18a   :  { %7274 = vmatpush3.bf16.msra.mxu0 %v7982_v21 }
 0x18b   :  { %7306 = vmatpush3.bf16.msra.mxu1 %v7995_v25  ;;  %7276 = vmatprep.subr.bf16.mxu0 %v7997_v26 }
 0x18c   :  { %7308 = vmatprep.subr.bf16.mxu1 %v8008_v30 }
 0x18e   :  { %7278 = vmatpush3.bf16.msra.mxu0 %v8020_v34  ;;  %v4881_v34 = vld [vmem:[%s10179_s0 + $0x180] sm:$0xff] }
 0x18f   :  { %7310 = vmatpush3.bf16.msra.mxu1 %v8033_v38  ;;  %7280 = vmatprep.subr.bf16.mxu0 %v8035_v39  ;;  %v4883_v38 = vld [vmem:[%s10179_s0 + $0x190] sm:$0xff]  ;;  %v10591_v39 = vld [vmem:[#allocation5_spill] sm:$0xff] }
 0x190   :  { %7312 = vmatprep.subr.bf16.mxu1 %v8047_v43  ;;  %v4886_v43 = vld [vmem:[%s10179_s0 + $0x1a8] sm:$0xff] }
 0x192   :  { %7282 = vmatpush3.bf16.msra.mxu0 %v8068_v50  ;;  %v10592_v50 = vld [vmem:[#allocation6_spill] sm:$0xff] }
 0x193   :  { %7314 = vmatpush3.bf16.msra.mxu1 %v8072_v51  ;;  %7284 = vmatprep.subr.bf16.mxu0 %v8074_v52  ;;  %v4888_v51 = vld [vmem:[%s10179_s0 + $0x1b8] sm:$0xff]  ;;  %v10593_v52 = vld [vmem:[#allocation7_spill] sm:$0xff] }
 0x194   :  { %7316 = vmatprep.subr.bf16.mxu1 %v10589_v3 }
 0x196   :  { %7286 = vmatpush3.bf16.msra.mxu0 %v8104_v62  ;;  %v10594_v62 = vld [vmem:[#allocation8_spill] sm:$0xff] }
 0x197   :  { %7318 = vmatpush3.bf16.msra.mxu1 %v10590_v7  ;;  %7288 = vmatprep.subr.bf16.mxu0 %v8110_v0  ;;  %v10595_v0 = vld [vmem:[#allocation9_spill] sm:$0xff] }
 0x198   :  { %v5317_v8 = vpop.f32.mrb[10].mxu0  ;;  %7320 = vmatprep.subr.bf16.mxu1 %v8122_v5  ;;  %v10596_v5 = vld [vmem:[#allocation10_spill] sm:$0xff] }
 0x199   :  { %v5318_v12 = vpop.f32.mrb[11].mxu0  ;;  %v5352_v16 = vpop.f32.mrb[10].mxu1 }
 0x19a   :  { %v5319_v17 = vadd.f32 %v5318_v12, %v5317_v8  ;;  %7290 = vmatpush3.bf16.msra.mxu0 %v8140_v14  ;;  %v5353_v21 = vpop.f32.mrb[11].mxu1  ;;  %v10597_v14 = vld [vmem:[#allocation11_spill] sm:$0xff] }
 0x19b   :  { %7322 = vmatpush3.bf16.msra.mxu1 %v8150_v19  ;;  %v5354_v25 = vadd.f32 %v5353_v21, %v5352_v16  ;;  %7292 = vmatprep.subr.bf16.mxu0 %v8152_v20  ;;  %v10598_v19 = vld [vmem:[#allocation12_spill] sm:$0xff]  ;;  %v10599_v20 = vld [vmem:[#allocation13_spill] sm:$0xff]  ;;  %v10612_v12 = vld [vmem:[#allocation27_spill] sm:$0xff] }
 0x19c   :  { %v1106_v26 = vadd.f32 %v5319_v17, %v1036_v63  ;;  %7324 = vmatprep.subr.bf16.mxu1 %v8164_v27  ;;  %v10600_v27 = vld [vmem:[#allocation14_spill] sm:$0xff]  ;;  %v10610_v63 = vld [vmem:[#allocation24_spill] sm:$0xff]  ;;  %v10614_v21 = vld [vmem:[#allocation29_spill] sm:$0xff] }
 0x19d   :  { %v10613_v16 = vld [vmem:[#allocation28_spill] sm:$0xff] }
 0x19e   :  { %v1176_v30 = vadd.f32 %v5354_v25, %v1106_v26  ;;  %7294 = vmatpush3.bf16.msra.mxu0 %v8182_v35  ;;  %v10601_v35 = vld [vmem:[#allocation15_spill] sm:$0xff]  ;;  %v10615_v26 = vld [vmem:[#allocation30_spill] sm:$0xff] }
 0x19f   :  { %7326 = vmatpush3.bf16.msra.mxu1 %v8186_v36  ;;  %7296 = vmatprep.subr.bf16.mxu0 %v8188_v37  ;;  %v10602_v36 = vld [vmem:[#allocation16_spill] sm:$0xff]  ;;  %v10603_v37 = vld [vmem:[#allocation17_spill] sm:$0xff] }
 0x1a0   :  { %7328 = vmatprep.subr.bf16.mxu1 %v8200_v44  ;;  %v10604_v44 = vld [vmem:[#allocation18_spill] sm:$0xff] }
 0x1a2   :  { %7298 = vmatpush3.bf16.msra.mxu0 %v8218_v53  ;;  %v10605_v53 = vld [vmem:[#allocation19_spill] sm:$0xff] }
 0x1a3   :  { %7330 = vmatpush3.bf16.msra.mxu1 %v8222_v54  ;;  %7332 = vmatprep.subr.bf16.mxu0 %v8224_v55  ;;  %v10606_v54 = vld [vmem:[#allocation20_spill] sm:$0xff]  ;;  %v10607_v55 = vld [vmem:[#allocation21_spill] sm:$0xff] }
 0x1a4   :  { %7364 = vmatprep.subr.bf16.mxu1 %v10591_v39  ;;  %v10618_v39 = vld [vmem:[#allocation33_spill] sm:$0xff] }
 0x1a5   :  { %2120 = vmatmul.mubr.f32.vlgmr.msra.gmra.mrb[24].mxu0 %v4881_v34  ;;  %v10616_v34 = vld [vmem:[#allocation31_spill] sm:$0xff] }
 0x1a6   :  { %2190 = vmatmul.mubr.f32.vlgmr.msra.gmra.mrb[24].mxu1 %v4883_v38  ;;  %7334 = vmatpush3.bf16.msra.mxu0 %v10592_v50  ;;  %v10617_v38 = vld [vmem:[#allocation32_spill] sm:$0xff]  ;;  %v10620_v50 = vld [vmem:[#allocation35_spill] sm:$0xff] }
 0x1a7   :  { %7366 = vmatpush3.bf16.msra.mxu1 %v10593_v52  ;;  %7336 = vmatprep.subr.bf16.mxu0 %v10594_v62  ;;  %v10622_v52 = vld [vmem:[#allocation37_spill] sm:$0xff]  ;;  %v4890_v62 = vld [vmem:[%s10179_s0 + $0x1c8] sm:$0xff] }
 0x1a8   :  { %7368 = vmatprep.subr.bf16.mxu1 %v10595_v0  ;;  %2259 = vmatprep.mubr.f32.mxu0 %v4886_v43  ;;  %v10619_v43 = vld [vmem:[#allocation34_spill] sm:$0xff] }
 0x1a9   :  { %2329 = vmatprep.mubr.f32.mxu1 %v4888_v51  ;;  %v4887_v51 = vld [vmem:[%s10179_s0 + $0x1b0] sm:$0xff]  ;;  %v10623_v0 = vld [vmem:[#allocation38_spill] sm:$0xff] }
 0x1aa   :  { %7338 = vmatpush3.bf16.msra.mxu0 %v10596_v5  ;;  %v4892_v5 = vld [vmem:[%s10179_s0 + $0x1d8] sm:$0xff] }
 0x1ab   :  { %7370 = vmatpush3.bf16.msra.mxu1 %v10597_v14  ;;  %7340 = vmatprep.subr.bf16.mxu0 %v10598_v19  ;;  %v10624_v14 = vld [vmem:[#allocation39_spill] sm:$0xff]  ;;  %v10625_v19 = vld [vmem:[#allocation40_spill] sm:$0xff] }
 0x1ac   :  { %7372 = vmatprep.subr.bf16.mxu1 %v10599_v20  ;;  %v10626_v20 = vld [vmem:[#allocation41_spill] sm:$0xff] }
 0x1ae   :  { %7342 = vmatpush3.bf16.msra.mxu0 %v10600_v27  ;;  %v10627_v27 = vld [vmem:[#allocation42_spill] sm:$0xff] }
 0x1af   :  { %7374 = vmatpush3.bf16.msra.mxu1 %v10601_v35  ;;  %7344 = vmatprep.subr.bf16.mxu0 %v10602_v36  ;;  %v10628_v35 = vld [vmem:[#allocation43_spill] sm:$0xff]  ;;  %v10629_v36 = vld [vmem:[#allocation44_spill] sm:$0xff] }
 0x1b0   :  { %7376 = vmatprep.subr.bf16.mxu1 %v10603_v37  ;;  %v10630_v37 = vld [vmem:[#allocation45_spill] sm:$0xff] }
 0x1b2   :  { %7346 = vmatpush3.bf16.msra.mxu0 %v10604_v44  ;;  %v10631_v44 = vld [vmem:[#allocation46_spill] sm:$0xff] }
 0x1b3   :  { %7378 = vmatpush3.bf16.msra.mxu1 %v10605_v53  ;;  %7348 = vmatprep.subr.bf16.mxu0 %v10606_v54  ;;  %v10632_v53 = vld [vmem:[#allocation47_spill] sm:$0xff]  ;;  %v10633_v54 = vld [vmem:[#allocation48_spill] sm:$0xff] }
 0x1b4   :  { %7380 = vmatprep.subr.bf16.mxu1 %v10607_v55  ;;  %v10634_v55 = vld [vmem:[#allocation49_spill] sm:$0xff] }
 0x1b6   :  { %7350 = vmatpush3.bf16.msra.mxu0 %v10608_v18  ;;  %v10635_v18 = vld [vmem:[#allocation50_spill] sm:$0xff] }
 0x1b7   :  { %7382 = vmatpush3.bf16.msra.mxu1 %v10609_v2  ;;  %7352 = vmatprep.subr.bf16.mxu0 %v10610_v63  ;;  %v10636_v2 = vld [vmem:[#allocation51_spill] sm:$0xff]  ;;  %v10637_v63 = vld [vmem:[#allocation52_spill] sm:$0xff] }
 0x1b8   :  { %v5387_v4 = vpop.f32.mrb[12].mxu0  ;;  %7384 = vmatprep.subr.bf16.mxu1 %v10611_v40  ;;  %v10639_v40 = vld [vmem:[#allocation54_spill] sm:$0xff] }
 0x1b9   :  { %v5388_v11 = vpop.f32.mrb[13].mxu0  ;;  %v5422_v29 = vpop.f32.mrb[12].mxu1 }
 0x1ba   :  { %v5389_v3 = vadd.f32 %v5388_v11, %v5387_v4  ;;  %7354 = vmatpush3.bf16.msra.mxu0 %v10530_v15  ;;  %v5423_v7 = vpop.f32.mrb[13].mxu1  ;;  %v4885_v15 = vld [vmem:[%s10179_s0 + $0x1a0] sm:$0xff]  ;;  %v10638_v4 = vld [vmem:[#allocation53_spill] sm:$0xff]  ;;  %v10640_v11 = vld [vmem:[#allocation55_spill] sm:$0xff] }
 0x1bb   :  { %v5424_v8 = vadd.f32 %v5423_v7, %v5422_v29  ;;  %7386 = vmatpush3.bf16.msra.mxu1 %v10612_v12  ;;  %7356 = vmatprep.subr.bf16.mxu0 %v10613_v16  ;;  %v10641_v29 = vld [vmem:[#allocation56_spill] sm:$0xff]  ;;  %v10642_v7 = vld [vmem:[#allocation57_spill] sm:$0xff] }
 0x1bc   :  { %v1246_v17 = vadd.f32 %v5389_v3, %v1176_v30  ;;  %7388 = vmatprep.subr.bf16.mxu1 %v10614_v21  ;;  %v10621_v30 = vld [vmem:[#allocation36_spill] sm:$0xff] }
 0x1be   :  { %v1316_v25 = vadd.f32 %v5424_v8, %v1246_v17  ;;  %7358 = vmatpush3.bf16.msra.mxu0 %v10615_v26 }
 0x1bf   :  { %7390 = vmatpush3.bf16.msra.mxu1 %v10616_v34  ;;  %7360 = vmatprep.subr.bf16.mxu0 %v10617_v38  ;;  %v10643_v38 = vld [vmem:[#allocation62_spill] sm:$0xff] }
 0x1c0   :  { %7392 = vmatprep.subr.bf16.mxu1 %v10618_v39  ;;  %v10644_v39 = vld [vmem:[#allocation63_spill] sm:$0xff] }
 0x1c2   :  { %7362 = vmatpush3.bf16.msra.mxu0 %v10619_v43  ;;  %v10645_v43 = vld [vmem:[#allocation64_spill] sm:$0xff] }
 0x1c3   :  { %7394 = vmatpush3.bf16.msra.mxu1 %v10620_v50  ;;  %7396 = vmatprep.subr.bf16.mxu0 %v10621_v30  ;;  %v10647_v50 = vld [vmem:[#allocation65_spill] sm:$0xff]  ;;  %v10648_v30 = vld [vmem:[#allocation66_spill] sm:$0xff] }
 0x1c4   :  { %7428 = vmatprep.subr.bf16.mxu1 %v10622_v52  ;;  %v4894_v52 = vld [vmem:[%s10179_s0 + $0x1e8] sm:$0xff] }
 0x1c5   :  { %2260 = vmatmul.mubr.f32.vlgmr.msra.gmra.mrb[26].mxu0 %v4885_v15  ;;  %v10646_v15 = vld [vmem:[#allocation82_spill] sm:$0xff] }
 0x1c6   :  { %7398 = vmatpush3.bf16.msra.mxu0 %v10623_v0  ;;  %2330 = vmatmul.mubr.f32.vlgmr.msra.gmra.mrb[26].mxu1 %v4887_v51  ;;  %v10651_v51 = vld [vmem:[#allocation69_spill] sm:$0xff] }
 0x1c7   :  { %7430 = vmatpush3.bf16.msra.mxu1 %v10624_v14  ;;  %7400 = vmatprep.subr.bf16.mxu0 %v10625_v19  ;;  %v4896_v0 = vld [vmem:[%s10179_s0 + $0x1f8] sm:$0xff]  ;;  %v10655_v19 = vld [vmem:[#allocation78_spill] sm:$0xff] }
 0x1c8   :  { %7432 = vmatprep.subr.bf16.mxu1 %v10626_v20  ;;  %2399 = vmatprep.mubr.f32.mxu0 %v4890_v62  ;;  %v10652_v62 = vld [vmem:[#allocation70_spill] sm:$0xff]  ;;  %v10654_v14 = vld [vmem:[#allocation77_spill] sm:$0xff]  ;;  %v10656_v20 = vld [vmem:[#allocation79_spill] sm:$0xff] }
 0x1c9   :  { %2469 = vmatprep.mubr.f32.mxu1 %v4892_v5  ;;  %v10653_v5 = vld [vmem:[#allocation71_spill] sm:$0xff] }
 0x1ca   :  { %7402 = vmatpush3.bf16.msra.mxu0 %v10627_v27  ;;  %v10657_v27 = vld [vmem:[#allocation80_spill] sm:$0xff] }
 0x1cb   :  { %7434 = vmatpush3.bf16.msra.mxu1 %v10628_v35  ;;  %7404 = vmatprep.subr.bf16.mxu0 %v10629_v36  ;;  %v10658_v35 = vld [vmem:[#allocation81_spill] sm:$0xff] }
 0x1cc   :  { %7436 = vmatprep.subr.bf16.mxu1 %v10630_v37 }
 0x1ce   :  { %7406 = vmatpush3.bf16.msra.mxu0 %v10631_v44 }
 0x1cf   :  { %7438 = vmatpush3.bf16.msra.mxu1 %v10632_v53  ;;  %7408 = vmatprep.subr.bf16.mxu0 %v10633_v54 }
 0x1d0   :  { %7440 = vmatprep.subr.bf16.mxu1 %v10634_v55 }
 0x1d2   :  { %7410 = vmatpush3.bf16.msra.mxu0 %v10635_v18  ;;  %v7836_v18 = vmov 0.0|0.0  }
 0x1d3   :  { %7442 = vmatpush3.bf16.msra.mxu1 %v10636_v2  ;;  %7412 = vmatprep.subr.bf16.mxu0 %v10637_v63  ;;  %v2625_v2 = vld [vmem:[%s10180_s3] sm:$0xff]  ;;  %v2626_v63 = vld [vmem:[%s10180_s3 + $0x8] sm:$0xff] }
 0x1d4   :  { %7444 = vmatprep.subr.bf16.mxu1 %v10638_v4  ;;  %v2627_v4 = vld [vmem:[%s10180_s3 + $0x10] sm:$0xff] }
 0x1d6   :  { %7414 = vmatpush3.bf16.msra.mxu0 %v10639_v40  ;;  %v7524_v40 = vpack.c.bf16 %v2626_v63, %v2625_v2 }
 0x1d7   :  { %7446 = vmatpush3.bf16.msra.mxu1 %v10640_v11  ;;  %7416 = vmatprep.subr.bf16.mxu0 %v10641_v29  ;;  %v2628_v11 = vld [vmem:[%s10180_s3 + $0x18] sm:$0xff] }
 0x1d8   :  { %v5457_v3 = vpop.f32.mrb[14].mxu0  ;;  %7448 = vmatprep.subr.bf16.mxu1 %v10642_v7  ;;  %v7527_v29 = vpack.c.bf16 %v2628_v11, %v2627_v4  ;;  %v2630_v7 = vld [vmem:[%s10180_s3 + $0x28] sm:$0xff] }
 0x1d9   :  { %v5458_v8 = vpop.f32.mrb[15].mxu0  ;;  %v5492_v12 = vpop.f32.mrb[14].mxu1 }
 0x1da   :  { %v5459_v16 = vadd.f32 %v5458_v8, %v5457_v3  ;;  %7418 = vmatpush3.bf16.msra.mxu0 %v10562_v41  ;;  %v5493_v17 = vpop.f32.mrb[15].mxu1  ;;  %v2629_v3 = vld [vmem:[%s10180_s3 + $0x20] sm:$0xff] }
 0x1db   :  { %v5494_v21 = vadd.f32 %v5493_v17, %v5492_v12  ;;  %7450 = vmatpush3.bf16.msra.mxu1 %v10563_v56  ;;  %7420 = vmatprep.subr.bf16.mxu0 %v10564_v13  ;;  %v4889_v13 = vld [vmem:[%s10179_s0 + $0x1c0] sm:$0xff]  ;;  %v10650_v56 = vld [vmem:[#allocation68_spill] sm:$0xff]  ;;  %v7530_v8 = vpack.c.bf16 %v2630_v7, %v2629_v3 }
 0x1dc   :  { %v1386_v26 = vadd.f32 %v5459_v16, %v1316_v25  ;;  %7452 = vmatprep.subr.bf16.mxu1 %v10565_v22  ;;  %v10649_v22 = vld [vmem:[#allocation67_spill] sm:$0xff]  ;;  %v4891_v25 = vld [vmem:[%s10179_s0 + $0x1d0] sm:$0xff]  ;;  %v2632_v16 = vld [vmem:[%s10180_s3 + $0x38] sm:$0xff] }
 0x1dd   :  { %v2631_v12 = vld [vmem:[%s10180_s3 + $0x30] sm:$0xff] }
 0x1de   :  { %v9595_v34 = vadd.f32 %v5494_v21, %v1386_v26  ;;  %7422 = vmatpush3.bf16.msra.mxu0 %v10643_v38  ;;  %v7533_v17 = vpack.c.bf16 %v2632_v16, %v2631_v12  ;;  %v2633_v21 = vld [vmem:[%s10180_s3 + $0x40] sm:$0xff]  ;;  %v2634_v26 = vld [vmem:[%s10180_s3 + $0x48] sm:$0xff] }
 0x1df   :  { %7454 = vmatpush3.bf16.msra.mxu1 %v10644_v39  ;;  %7424 = vmatprep.subr.bf16.mxu0 %v10645_v43  ;;  %v7536_v38 = vpack.c.bf16 %v2634_v26, %v2633_v21 }
 0x1e0   :  { %v1459_v41 = vmax.f32 %v10646_v15, %v9595_v34  ;;  %7456 = vmatprep.subr.bf16.mxu1 %v10647_v50  ;;  %v2719_v34 = vld [vmem:[%s10181_s5] sm:$0xff]  ;;  %v2720_v15 = vld [vmem:[%s10181_s5 + $0x8] sm:$0xff] }
 0x1e2   :  { %7426 = vmatpush3.bf16.msra.mxu0 %v10648_v30  ;;  %v2635_v30 = vld [vmem:[%s10180_s3 + $0x50] sm:$0xff] }
 0x1e3   :  { %7458 = vmatpush3.bf16.msra.mxu1 %v10649_v22  ;;  %7460 = vmatprep.subr.bf16.mxu0 %v10650_v56 }
 0x1e4   :  { %7492 = vmatprep.subr.bf16.mxu1 %v10651_v51 }
 0x1e5   :  { %2400 = vmatmul.mubr.f32.vlgmr.msra.gmra.mrb[28].mxu0 %v4889_v13  ;;  %v2636_v13 = vld [vmem:[%s10180_s3 + $0x58] sm:$0xff] }
 0x1e6   :  { %7462 = vmatpush3.bf16.msra.mxu0 %v10652_v62  ;;  %2470 = vmatmul.mubr.f32.vlgmr.msra.gmra.mrb[28].mxu1 %v4891_v25  ;;  %v7539_v25 = vpack.c.bf16 %v2636_v13, %v2635_v30  ;;  %v2637_v62 = vld [vmem:[%s10180_s3 + $0x60] sm:$0xff] }
 0x1e7   :  { %7494 = vmatpush3.bf16.msra.mxu1 %v10653_v5  ;;  %7464 = vmatprep.subr.bf16.mxu0 %v10577_v42  ;;  %v10660_v42 = vld [vmem:[#allocation86_spill] sm:$0xff] }
 0x1e8   :  { %7496 = vmatprep.subr.bf16.mxu1 %v10578_v10  ;;  %2539 = vmatprep.mubr.f32.mxu0 %v4894_v52  ;;  %v10659_v10 = vld [vmem:[#allocation83_spill] sm:$0xff] }
 0x1e9   :  { %2609 = vmatprep.mubr.f32.mxu1 %v4896_v0  ;;  %v2638_v0 = vld [vmem:[%s10180_s3 + $0x68] sm:$0xff] }
 0x1ea   :  { %7466 = vmatpush3.bf16.msra.mxu0 %v10579_v60 }
 0x1eb   :  { %7498 = vmatpush3.bf16.msra.mxu1 %v10580_v24  ;;  %7468 = vmatprep.subr.bf16.mxu0 %v10581_v58 }
 0x1ec   :  { %7500 = vmatprep.subr.bf16.mxu1 %v10654_v14  ;;  %v7542_v14 = vpack.c.bf16 %v2638_v0, %v2637_v62 }
 0x1ee   :  { %7470 = vmatpush3.bf16.msra.mxu0 %v10655_v19 }
 0x1ef   :  { %7502 = vmatpush3.bf16.msra.mxu1 %v10656_v20  ;;  %7472 = vmatprep.subr.bf16.mxu0 %v10657_v27  ;;  %v2639_v20 = vld [vmem:[%s10180_s3 + $0x70] sm:$0xff]  ;;  %v2640_v27 = vld [vmem:[%s10180_s3 + $0x78] sm:$0xff] }
 0x1f0   :  { %7504 = vmatprep.subr.bf16.mxu1 %v10658_v35  ;;  %v7545_v35 = vpack.c.bf16 %v2640_v27, %v2639_v20  ;;  %v2814_v27 = vld [vmem:[%s10183_s7 + $0x8] sm:$0xff] }
 0x1f2   :  { %7474 = vmatpush3.bf16.msra.mxu0 %v10509_v48 }
 0x1f3   :  { %7506 = vmatpush3.bf16.msra.mxu1 %v10659_v10  ;;  %7476 = vmatprep.subr.bf16.mxu0 %v10511_v46  ;;  %v7838_v10 = vmov 0.0  }
 0x1f4   :  { %7508 = vmatprep.subr.bf16.mxu1 %v10512_v45 }
 0x1f6   :  { %7478 = vmatpush3.bf16.msra.mxu0 %v10660_v42  ;;  %v7548_v42 = vpack.c.bf16 %v2720_v15, %v2719_v34  ;;  %v2816_v15 = vld [vmem:[%s10183_s7 + $0x18] sm:$0xff] }
 0x1f7   :  { %7510 = vmatpush3.bf16.msra.mxu1 %v10514_v1  ;;  %7480 = vmatprep.subr.bf16.mxu0 %v10515_v59 }
 0x1f8   :  { %v5527_v58 = vpop.f32.mrb[16].mxu0  ;;  %7512 = vmatprep.subr.bf16.mxu1 %v10516_v61 }
 0x1f9   :  { %v5562_v24 = vpop.f32.mrb[16].mxu1  ;;  %v5528_v60 = vpop.f32.mrb[17].mxu0 }
 0x1fa   :  { %v5529_v36 = vadd.f32 %v5528_v60, %v5527_v58  ;;  %v5563_v37 = vpop.f32.mrb[17].mxu1  ;;  %7482 = vmatpush3.bf16.msra.mxu0 %v9046_v49  ;;  %v4893_v49 = vld [vmem:[%s10179_s0 + $0x1e0] sm:$0xff]  ;;  %v2722_v58 = vld [vmem:[%s10181_s5 + $0x18] sm:$0xff] }
 0x1fb   :  { %v5564_v48 = vadd.f32 %v5563_v37, %v5562_v24  ;;  %7514 = vmatpush3.bf16.msra.mxu1 %v9050_v6  ;;  %7484 = vmatprep.subr.bf16.mxu0 %v9052_v57  ;;  %v4895_v57 = vld [vmem:[%s10179_s0 + $0x1f0] sm:$0xff]  ;;  %v2723_v60 = vld [vmem:[%s10181_s5 + $0x20] sm:$0xff] }
 0x1fc   :  { %7516 = vmatprep.subr.bf16.mxu1 %v9064_v9 }
 0x1fd   :  { %v1614_v45 = vadd.f32 %v5564_v48, %v5529_v36  ;;  %v2724_v36 = vld [vmem:[%s10181_s5 + $0x28] sm:$0xff]  ;;  %v2725_v48 = vld [vmem:[%s10181_s5 + $0x30] sm:$0xff] }
 0x1fe   :  { %7486 = vmatpush3.bf16.msra.mxu0 %v9082_v32  ;;  %v7554_v37 = vpack.c.bf16 %v2724_v36, %v2723_v60  ;;  %v2819_v60 = vld [vmem:[%s10183_s7 + $0x30] sm:$0xff]  ;;  %v2820_v36 = vld [vmem:[%s10183_s7 + $0x38] sm:$0xff] }
 0x1ff   :  { %7518 = vmatpush3.bf16.msra.mxu1 %v9086_v31  ;;  %7488 = vmatprep.subr.bf16.mxu0 %v9088_v47 }
 0x200   :  { %7520 = vmatprep.subr.bf16.mxu1 %v9097_v28 }
 0x202   :  { %7490 = vmatpush3.bf16.msra.mxu0 %v9106_v33 }
 0x203   :  { %7522 = vmatpush3.bf16.msra.mxu1 %v9110_v23  ;;  %7523 = vmatprep.subr.bf16.mxu0 %v7836_v18 }
 0x204   :  { %7547 = vmatprep.subr.bf16.mxu1 %v7836_v18 }
 0x205   :  { %2540 = vmatmul.mubr.f32.vlgmr.msra.gmra.mrb[30].mxu0 %v4893_v49 }
 0x206   :  { %2610 = vmatmul.mubr.f32.vlgmr.msra.gmra.mrb[30].mxu1 %v4895_v57  ;;  %7525 = vmatpush3.bf16.msra.mxu0 %v7524_v40  ;;  %v2727_v57 = vld [vmem:[%s10181_s5 + $0x40] sm:$0xff] }
 0x207   :  { %7526 = vmatprep.subr.bf16.mxu0 %v7836_v18  ;;  %6228 = vmatprep.mubr.msk.f32.mxu0 %vm7837_vm0, %v7838_v10 }
 0x208   :  { %6263 = vmatprep.mubr.msk.f32.mxu1 %vm7837_vm0, %v7838_v10  ;;  %7549 = vmatpush3.bf16.msra.mxu1 %v7548_v42  ;;  %v2817_v42 = vld [vmem:[%s10183_s7 + $0x20] sm:$0xff] }
 0x209   :  { %7550 = vmatprep.subr.bf16.mxu1 %v7836_v18 }
 0x20a   :  { %7528 = vmatpush3.bf16.msra.mxu0 %v7527_v29 }
 0x20b   :  { %7529 = vmatprep.subr.bf16.mxu0 %v7836_v18 }
 0x20e   :  { %7531 = vmatpush3.bf16.msra.mxu0 %v7530_v8 }
 0x20f   :  { %7532 = vmatprep.subr.bf16.mxu0 %v7836_v18 }
 0x212   :  { %7534 = vmatpush3.bf16.msra.mxu0 %v7533_v17 }
 0x213   :  { %7535 = vmatprep.subr.bf16.mxu0 %v7836_v18 }
 0x216   :  { %7537 = vmatpush3.bf16.msra.mxu0 %v7536_v38 }
 0x217   :  { %7538 = vmatprep.subr.bf16.mxu0 %v7836_v18 }
 0x218   :  { %v5597_v6 = vpop.f32.mrb[18].mxu0 }
 0x219   :  { %v5598_v31 = vpop.f32.mrb[19].mxu0  ;;  %v5632_v9 = vpop.f32.mrb[18].mxu1 }
 0x21a   :  { %v5599_v47 = vadd.f32 %v5598_v31, %v5597_v6  ;;  %v5633_v32 = vpop.f32.mrb[19].mxu1  ;;  %7540 = vmatpush3.bf16.msra.mxu0 %v7539_v25  ;;  %v2728_v6 = vld [vmem:[%s10181_s5 + $0x48] sm:$0xff] }
 0x21b   :  { %v5634_v28 = vadd.f32 %v5633_v32, %v5632_v9  ;;  %7541 = vmatprep.subr.bf16.mxu0 %v7836_v18  ;;  %v7560_v31 = vpack.c.bf16 %v2728_v6, %v2727_v57  ;;  %v2729_v9 = vld [vmem:[%s10181_s5 + $0x50] sm:$0xff]  ;;  %v2824_v6 = vld [vmem:[%s10183_s7 + $0x58] sm:$0xff] }
 0x21c   :  { %v1684_v61 = vadd.f32 %v5599_v47, %v1614_v45  ;;  %v2726_v45 = vld [vmem:[%s10181_s5 + $0x38] sm:$0xff]  ;;  %v2823_v57 = vld [vmem:[%s10183_s7 + $0x50] sm:$0xff] }
 0x21d   :  { %v7557_v49 = vpack.c.bf16 %v2726_v45, %v2725_v48  ;;  %v2730_v47 = vld [vmem:[%s10181_s5 + $0x58] sm:$0xff]  ;;  %v2821_v48 = vld [vmem:[%s10183_s7 + $0x40] sm:$0xff]  ;;  %v2822_v45 = vld [vmem:[%s10183_s7 + $0x48] sm:$0xff] }
 0x21e   :  { %v1754_v33 = vadd.f32 %v5634_v28, %v1684_v61  ;;  %7543 = vmatpush3.bf16.msra.mxu0 %v7542_v14  ;;  %v2734_v14 = vld [vmem:[%s10181_s5 + $0x78] sm:$0xff] }
 0x21f   :  { %7544 = vmatprep.subr.bf16.mxu0 %v7836_v18 }
 0x222   :  { %7546 = vmatpush3.bf16.msra.mxu0 %v7545_v35  ;;  %v2815_v35 = vld [vmem:[%s10183_s7 + $0x10] sm:$0xff] }
 0x223   :  { %7571 = vmatprep.subr.bf16.mxu0 %v7836_v18 }
 0x238   :  { %v5667_v1 = vpop.f32.mrb[20].mxu0 }
 0x239   :  { %v5668_v59 = vpop.f32.mrb[21].mxu0  ;;  %v5702_v46 = vpop.f32.mrb[20].mxu1 }
 0x23a   :  { %v5669_v44 = vadd.f32 %v5668_v59, %v5667_v1  ;;  %v5703_v53 = vpop.f32.mrb[21].mxu1  ;;  %v7563_v59 = vpack.c.bf16 %v2730_v47, %v2729_v9  ;;  %v2825_v9 = vld [vmem:[%s10183_s7 + $0x60] sm:$0xff]  ;;  %v2826_v47 = vld [vmem:[%s10183_s7 + $0x68] sm:$0xff] }
 0x23b   :  { %v5704_v23 = vadd.f32 %v5703_v53, %v5702_v46  ;;  %v2732_v53 = vld [vmem:[%s10181_s5 + $0x68] sm:$0xff] }
 0x23c   :  { %v1824_v54 = vadd.f32 %v5669_v44, %v1754_v33  ;;  %v2731_v44 = vld [vmem:[%s10181_s5 + $0x60] sm:$0xff] }
 0x23e   :  { %v1894_v55 = vadd.f32 %v5704_v23, %v1824_v54  ;;  %v7566_v54 = vpack.c.bf16 %v2732_v53, %v2731_v44 }
 0x258   :  { %v5737_v39 = vpop.f32.mrb[22].mxu0 }
 0x259   :  { %v5738_v43 = vpop.f32.mrb[23].mxu0  ;;  %v5772_v50 = vpop.f32.mrb[22].mxu1 }
 0x25a   :  { %v5739_v22 = vadd.f32 %v5738_v43, %v5737_v39  ;;  %v5773_v56 = vpop.f32.mrb[23].mxu1 }
 0x25b   :  { %v5774_v51 = vadd.f32 %v5773_v56, %v5772_v50 }
 0x25c   :  { %v1964_v52 = vadd.f32 %v5739_v22, %v1894_v55 }
 0x25e   :  { %v2034_v5 = vadd.f32 %v5774_v51, %v1964_v52  ;;  %v4897_v51 = vld [vmem:[%s10182_s2] ss:$0 sm:$0xff] }
 0x260   :  { %v9708_v19 = vmax.f32 %v1459_v41, %v2034_v5  ;;  %v2721_v41 = vld [vmem:[%s10181_s5 + $0x10] sm:$0xff] }
 0x261   :  { %v7551_v24 = vpack.c.bf16 %v2722_v58, %v2721_v41  ;;  %v2733_v5 = vld [vmem:[%s10181_s5 + $0x70] sm:$0xff]  ;;  %v7575_v41 = vpack.c.bf16 %v2816_v15, %v2815_v35  ;;  %v2818_v58 = vld [vmem:[%s10183_s7 + $0x28] sm:$0xff] }
 0x262   :  { %v7569_v20 = vpack.c.bf16 %v2734_v14, %v2733_v5 }
 0x263   :  { %7552 = vmatpush3.bf16.msra.mxu1 %v7551_v24  ;;  %v7578_v24 = vpack.c.bf16 %v2818_v58, %v2817_v42 }
 0x264   :  { %7553 = vmatprep.subr.bf16.mxu1 %v7836_v18 }
 0x267   :  { %7555 = vmatpush3.bf16.msra.mxu1 %v7554_v37  ;;  %v7581_v37 = vpack.c.bf16 %v2820_v36, %v2819_v60 }
 0x268   :  { %7556 = vmatprep.subr.bf16.mxu1 %v7836_v18 }
 0x26b   :  { %7558 = vmatpush3.bf16.msra.mxu1 %v7557_v49  ;;  %v7584_v49 = vpack.c.bf16 %v2822_v45, %v2821_v48 }
 0x26c   :  { %7559 = vmatprep.subr.bf16.mxu1 %v7836_v18 }
 0x26f   :  { %7561 = vmatpush3.bf16.msra.mxu1 %v7560_v31  ;;  %v7587_v31 = vpack.c.bf16 %v2824_v6, %v2823_v57 }
 0x270   :  { %7562 = vmatprep.subr.bf16.mxu1 %v7836_v18 }
 0x273   :  { %7564 = vmatpush3.bf16.msra.mxu1 %v7563_v59 }
 0x274   :  { %7565 = vmatprep.subr.bf16.mxu1 %v7836_v18 }
 0x277   :  { %7567 = vmatpush3.bf16.msra.mxu1 %v7566_v54  ;;  %v2828_v54 = vld [vmem:[%s10183_s7 + $0x78] sm:$0xff] }
 0x278   :  { %v5807_v32 = vpop.f32.mrb[24].mxu0  ;;  %7568 = vmatprep.subr.bf16.mxu1 %v7836_v18 }
 0x279   :  { %v5842_v28 = vpop.f32.mrb[24].mxu1  ;;  %v5808_v61 = vpop.f32.mrb[25].mxu0 }
 0x27a   :  { %v5809_v33 = vadd.f32 %v5808_v61, %v5807_v32  ;;  %v5843_v1 = vpop.f32.mrb[25].mxu1  ;;  %v7590_v32 = vpack.c.bf16 %v2826_v47, %v2825_v9  ;;  %v2906_v61 = vld [vmem:[%s10185_s8] sm:$0xff] }
 0x27b   :  { %v5844_v46 = vadd.f32 %v5843_v1, %v5842_v28  ;;  %7570 = vmatpush3.bf16.msra.mxu1 %v7569_v20  ;;  %v4898_v28 = vld [vmem:[%s10184_s4] ss:$0 sm:$0xff] }
 0x27c   :  { %7595 = vmatprep.subr.bf16.mxu1 %v7836_v18 }
 0x27d   :  { %v2192_v23 = vadd.f32 %v5844_v46, %v5809_v33  ;;  %v2907_v33 = vld [vmem:[%s10185_s8 + $0x8] sm:$0xff] }
 0x27e   :  { %v9842_v44 = vpack.c.bf16 %v2907_v33, %v2906_v61 }
 0x298   :  { %v5877_v55 = vpop.f32.mrb[26].mxu0 }
 0x299   :  { %v5878_v2 = vpop.f32.mrb[27].mxu0  ;;  %v5912_v63 = vpop.f32.mrb[26].mxu1 }
 0x29a   :  { %v5879_v4 = vadd.f32 %v5878_v2, %v5877_v55  ;;  %v5913_v40 = vpop.f32.mrb[27].mxu1  ;;  %v2908_v2 = vld [vmem:[%s10185_s8 + $0x10] sm:$0xff] }
 0x29b   :  { %v5914_v11 = vadd.f32 %v5913_v40, %v5912_v63  ;;  %v2909_v63 = vld [vmem:[%s10185_s8 + $0x18] sm:$0xff]  ;;  %v4899_v40 = vld [vmem:[%s10186_s6] ss:$0 sm:$0xff] }
 0x29c   :  { %v2262_v29 = vadd.f32 %v5879_v4, %v2192_v23  ;;  %v2827_v23 = vld [vmem:[%s10183_s7 + $0x70] sm:$0xff]  ;;  %v9860_v4 = vpack.c.bf16 %v2909_v63, %v2908_v2 }
 0x29d   :  { %v7593_v55 = vpack.c.bf16 %v2828_v54, %v2827_v23 }
 0x29e   :  { %v2332_v3 = vadd.f32 %v5914_v11, %v2262_v29 }
 0x2b8   :  { %v5947_v7 = vpop.f32.mrb[28].mxu0 }
 0x2b9   :  { %v5948_v8 = vpop.f32.mrb[29].mxu0  ;;  %v5982_v12 = vpop.f32.mrb[28].mxu1 }
 0x2ba   :  { %v5949_v16 = vadd.f32 %v5948_v8, %v5947_v7  ;;  %v5983_v17 = vpop.f32.mrb[29].mxu1 }
 0x2bb   :  { %v5984_v21 = vadd.f32 %v5983_v17, %v5982_v12 }
 0x2bc   :  { %v2402_v26 = vadd.f32 %v5949_v16, %v2332_v3  ;;  %v4900_v16 = vld [vmem:[%s10187_s9] ss:$0 sm:$0xff]  ;;  %s7840_s9 = smov 32  }
 0x2be   :  { %v2472_v38 = vadd.f32 %v5984_v21, %v2402_v26 }
 0x2d8   :  { %v6017_v39 = vpop.f32.mrb[30].mxu0 }
 0x2d9   :  { %v6018_v43 = vpop.f32.mrb[31].mxu0  ;;  %v6052_v50 = vpop.f32.mrb[30].mxu1 }
 0x2da   :  { %v6019_v30 = vadd.f32 %v6018_v43, %v6017_v39  ;;  %v6053_v13 = vpop.f32.mrb[31].mxu1 }
 0x2db   :  { %v6054_v22 = vadd.f32 %v6053_v13, %v6052_v50 }
 0x2dc   :  { %v2542_v56 = vadd.f32 %v6019_v30, %v2472_v38 }
 0x2de   :  { %v2612_v25 = vadd.f32 %v6054_v22, %v2542_v56 }
 0x2e0   :  { %v2615_v52 = vmax.f32 %v9708_v19, %v2612_v25  ;;  %v2813_v19 = vld [vmem:[%s10183_s7] sm:$0xff] }
 0x2e1   :  { %v7572_v34 = vpack.c.bf16 %v2814_v27, %v2813_v19 }
 0x2e2   :  { %v2623_v62 = vadd.f32 %v4897_v51, %v2615_v52 }
 0x2e4   :  { %v2624_v0 = vmax.f32 %v2623_v62, 0.0 }
 0x2e6   :  { %6229 = vmatmul.mubr.f32.vlgmr.msra.gmra.mrb[32].mxu0 %v2624_v0 }
 0x2e7   :  { %6298 = vmatprep.mubr.msk.f32.mxu0 %vm7837_vm0, %v7838_v10  ;;  %7573 = vmatpush3.bf16.msra.mxu0 %v7572_v34 }
 0x2e8   :  { %7574 = vmatprep.subr.bf16.mxu0 %v7836_v18 }
 0x2eb   :  { %7576 = vmatpush3.bf16.msra.mxu0 %v7575_v41 }
 0x2ec   :  { %7577 = vmatprep.subr.bf16.mxu0 %v7836_v18 }
 0x2ef   :  { %7579 = vmatpush3.bf16.msra.mxu0 %v7578_v24 }
 0x2f0   :  { %7580 = vmatprep.subr.bf16.mxu0 %v7836_v18 }
 0x2f3   :  { %7582 = vmatpush3.bf16.msra.mxu0 %v7581_v37 }
 0x2f4   :  { %7583 = vmatprep.subr.bf16.mxu0 %v7836_v18 }
 0x2f7   :  { %7585 = vmatpush3.bf16.msra.mxu0 %v7584_v49 }
 0x2f8   :  { %7586 = vmatprep.subr.bf16.mxu0 %v7836_v18 }
 0x2fb   :  { %7588 = vmatpush3.bf16.msra.mxu0 %v7587_v31 }
 0x2fc   :  { %7589 = vmatprep.subr.bf16.mxu0 %v7836_v18 }
 0x2ff   :  { %7591 = vmatpush3.bf16.msra.mxu0 %v7590_v32 }
 0x300   :  { %7592 = vmatprep.subr.bf16.mxu0 %v7836_v18 }
 0x303   :  { %7594 = vmatpush3.bf16.msra.mxu0 %v7593_v55 }
 0x304   :  { %7619 = vmatprep.subr.bf16.mxu0 %v7836_v18 }
 0x3b9   :  { %v2714_v1 = vpop.f32.mrb[32].mxu0 }
 0x3ba   :  { %v2715_v59 = vadd.f32 %v4898_v28, %v2714_v1  ;;  %v6230_v46 = vpop.f32.mrb[33].mxu0 }
 0x3bc   :  { %v2718_v53 = vmax.f32 %v2715_v59, 0.0 }
 0x3be   :  { %6264 = vmatmul.mubr.f32.vlgmr.msra.gmra.mrb[32].mxu1 %v2718_v53 }
 0x3bf   :  { %7597 = vmatpush3.bf16.msra.mxu1 %v9842_v44  ;;  %6309 = vmatprep.mubr.msk.f32.mxu1 %vm7837_vm0, %v7838_v10 }
 0x3c0   :  { %7598 = vmatprep.subr.bf16.mxu1 %v7836_v18 }
 0x3c3   :  { %7600 = vmatpush3.bf16.msra.mxu1 %v9860_v4 }
 0x3c4   :  { %7601 = vmatprep.subr.bf16.mxu1 %v7836_v18 }
 0x3c6   :  { %6310 = vmatmul.mubr.f32.vlgmr.msra.gmra.mrb[34].mxu1 %v7838_v10 }
 0x3c7   :  { %7603 = vmatpush3.bf16.msra.mxu1 %v9842_v44  ;;  %6320 = vmatprep.mubr.msk.f32.mxu1 %vm7837_vm0, %v7838_v10 }
 0x3c8   :  { %7604 = vmatprep.subr.bf16.mxu1 %v7836_v18 }
 0x3cb   :  { %7606 = vmatpush3.bf16.msra.mxu1 %v9860_v4 }
 0x3cc   :  { %7607 = vmatprep.subr.bf16.mxu1 %v7836_v18 }
 0x491   :  { %v2808_v11 = vpop.f32.mrb[32].mxu1 }
 0x492   :  { %v2809_v29 = vadd.f32 %v4899_v40, %v2808_v11  ;;  %v6265_v3 = vpop.f32.mrb[33].mxu1 }
 0x494   :  { %v2812_v7 = vmax.f32 %v2809_v29, 0.0 }
 0x496   :  { %6299 = vmatmul.mubr.f32.vlgmr.msra.gmra.mrb[34].mxu0 %v2812_v7 }
 0x497   :  { %7621 = vmatpush3.bf16.msra.mxu0 %v9842_v44  ;;  %6353 = vmatprep.mubr.msk.f32.mxu0 %vm7837_vm0, %v7838_v10 }
 0x498   :  { %7622 = vmatprep.subr.bf16.mxu0 %v7836_v18 }
 0x499   :  { %v2980_v8 = vpop.f32.mrb[34].mxu1 }
 0x49a   :  { %v6311_v12 = vpop.f32.mrb[35].mxu1 }
 0x49b   :  { %7624 = vmatpush3.bf16.msra.mxu0 %v9860_v4 }
 0x49c   :  { %7631 = vmatprep.subr.bf16.mxu0 %v7836_v18 }
 0x569   :  { %v2902_v17 = vpop.f32.mrb[34].mxu0 }
 0x56a   :  { %v9884_v21 = vadd.f32 %v4900_v16, %v2902_v17  ;;  %v6300_v26 = vpop.f32.mrb[35].mxu0 }
 0x56c   :  { %v2984_v38 = vadd.f32 %v2980_v8, %v9884_v21 }
 0x56e   :  { %7708 = vtanh.f32 %v2984_v38  ;;  %v4901_v43 = vmul.f32 -1.442695, %v2984_v38 }
 0x570   :  { %7710 = vpow2.f32 %v4901_v43 }
 0x578   :  { %v7709_v39 = vpop.eup %7708 }
 0x579   :  { %2994 = vrot.lane.b32.xlu0 %v7709_v39, %s7839_s19 }
 0x57a   :  { %v7711_v50 = vpop.eup %7710 }
 0x57b   :  { %v2988_v30 = vadd.f32 1.0, %v7711_v50 }
 0x57d   :  { %7712 = vrcp.f32 %v2988_v30 }
 0x587   :  { %v7713_v13 = vpop.eup %7712 }
 0x588   :  { %v2992_v25 = vmul.f32 0.0, %v7713_v13 }
 0x5eb   :  { %v2995_v22 = vpop.permute.xlu0 %2994 }
 0x5ec   :  { %v2997_v56 = vmul.f32 %v7713_v13, %v2995_v22 }
 0x5ee   :  { %2999 = vrot.lane.b32.xlu0 %v2997_v56, %s7840_s9 }
 0x660   :  { %v3000_v51 = vpop.permute.xlu0 %2999 }
 0x661   :  { %v3002_v52 = vadd.f32 %v3000_v51, %v2992_v25 }
 0x663   :  { %7714 = vtanh.f32 %v3002_v52  ;;  %v3099_v36 = vrot.slane %v3002_v52, 7 }
 0x66d   :  { %v7715_v62 = vpop.eup %7714 }
 0x66e   :  { %3005 = vrot.lane.b32.xlu1 %v7715_v62, %s7839_s19 }
 0x6e0   :  { %v3006_v0 = vpop.permute.xlu1 %3005 }
 0x6e1   :  { %v3008_v5 = vmul.f32 %v7713_v13, %v3006_v0 }
 0x6e3   :  { %3010 = vrot.lane.b32.xlu1 %v3008_v5, %s7840_s9 }
 0x755   :  { %v3011_v14 = vpop.permute.xlu1 %3010 }
 0x756   :  { %3014 = vst.msk [vmem:[#allocation2] sm:$0x1] %vm3013_vm1, %v3011_v14  ;;  %6321 = vmatmul.mubr.msk.f32.vlgmr.msra.gmra.mrb[36].mxu1 %vm2910_vm2, %v3011_v14 }
 0x757   :  { %7609 = vmatpush3.bf16.msra.mxu1 %v9842_v44  ;;  %6331 = vmatprep.mubr.msk.f32.mxu1 %vm7837_vm0, %v7838_v10 }
 0x758   :  { %7610 = vmatprep.subr.bf16.mxu1 %v7836_v18 }
 0x75b   :  { %7612 = vmatpush3.bf16.msra.mxu1 %v9860_v4 }
 0x75c   :  { %7613 = vmatprep.subr.bf16.mxu1 %v7836_v18 }
 0x829   :  { %v3083_v20 = vpop.f32.mrb[36].mxu1 }
 0x82a   :  { %v3088_v19 = vrot.slane %v3083_v20, 7  ;;  %v6322_v27 = vpop.f32.mrb[37].mxu1 }
 0x82c   :  { %v3090_v35 = vadd.f32 %v3088_v19, %v9884_v21 }
 0x82e   :  { %7716 = vtanh.f32 %v3090_v35  ;;  %v4903_v15 = vmul.f32 -1.442695, %v3090_v35 }
 0x830   :  { %7718 = vpow2.f32 %v4903_v15 }
 0x838   :  { %v7717_v34 = vpop.eup %7716 }
 0x839   :  { %3103 = vrot.lane.b32.xlu0 %v7717_v34, %s7839_s19 }
 0x83a   :  { %v7719_v41 = vpop.eup %7718 }
 0x83b   :  { %v3094_v42 = vadd.f32 1.0, %v7719_v41 }
 0x83d   :  { %7720 = vrcp.f32 %v3094_v42 }
 0x847   :  { %v7721_v58 = vpop.eup %7720 }
 0x848   :  { %v3101_v37 = vmul.f32 %v7721_v58, %v3099_v36 }
 0x8ab   :  { %v3104_v24 = vpop.permute.xlu0 %3103 }
 0x8ac   :  { %v3106_v60 = vmul.f32 %v7721_v58, %v3104_v24 }
 0x8ae   :  { %3108 = vrot.lane.b32.xlu1 %v3106_v60, %s7840_s9 }
 0x920   :  { %v3109_v48 = vpop.permute.xlu1 %3108 }
 0x921   :  { %v3111_v45 = vadd.f32 %v3109_v48, %v3101_v37 }
 0x923   :  { %7722 = vtanh.f32 %v3111_v45  ;;  %v3211_v55 = vrot.slane %v3111_v45, 7 }
 0x92d   :  { %v7723_v49 = vpop.eup %7722 }
 0x92e   :  { %3114 = vrot.lane.b32.xlu0 %v7723_v49, %s7839_s19 }
 0x9a0   :  { %v3115_v57 = vpop.permute.xlu0 %3114 }
 0x9a1   :  { %v9903_v6 = vmul.f32 %v7721_v58, %v3115_v57 }
 0x9a3   :  { %v3124_v31 = vrot.slane %v9903_v6, 1 }
 0x9a5   :  { %3125 = vrot.lane.b32.xlu1 %v3124_v31, %s7840_s9 }
 0xa17   :  { %v3126_v9 = vpop.permute.xlu1 %3125 }
 0xa18   :  { %6332 = vmatmul.mubr.msk.f32.vlgmr.msra.gmra.mrb[38].mxu1 %vm2910_vm2, %v3126_v9 }
 0xa19   :  { %7615 = vmatpush3.bf16.msra.mxu1 %v9842_v44  ;;  %6342 = vmatprep.mubr.msk.f32.mxu1 %vm7837_vm0, %v7838_v10 }
 0xa1a   :  { %7616 = vmatprep.subr.bf16.mxu1 %v7836_v18 }
 0xa1d   :  { %7618 = vmatpush3.bf16.msra.mxu1 %v9860_v4 }
 0xa1e   :  { %7625 = vmatprep.subr.bf16.mxu1 %v7836_v18 }
 0xaeb   :  { %v3195_v47 = vpop.f32.mrb[38].mxu1 }
 0xaec   :  { %v3200_v32 = vrot.slane %v3195_v47, 6  ;;  %v6333_v28 = vpop.f32.mrb[39].mxu1 }
 0xaee   :  { %v3202_v61 = vadd.f32 %v3200_v32, %v9884_v21 }
 0xaf0   :  { %7724 = vtanh.f32 %v3202_v61  ;;  %v4905_v1 = vmul.f32 -1.442695, %v3202_v61 }
 0xaf2   :  { %7726 = vpow2.f32 %v4905_v1 }
 0xafa   :  { %v7725_v33 = vpop.eup %7724 }
 0xafb   :  { %3215 = vrot.lane.b32.xlu0 %v7725_v33, %s7839_s19 }
 0xafc   :  { %v7727_v59 = vpop.eup %7726 }
 0xafd   :  { %v3206_v46 = vadd.f32 1.0, %v7727_v59 }
 0xaff   :  { %7728 = vrcp.f32 %v3206_v46 }
 0xb09   :  { %v7729_v53 = vpop.eup %7728 }
 0xb0a   :  { %v3213_v2 = vmul.f32 %v7729_v53, %v3211_v55 }
 0xb6d   :  { %v3216_v23 = vpop.permute.xlu0 %3215 }
 0xb6e   :  { %v3218_v54 = vmul.f32 %v7729_v53, %v3216_v23 }
 0xb70   :  { %3220 = vrot.lane.b32.xlu1 %v3218_v54, %s7840_s9 }
 0xbe2   :  { %v3221_v63 = vpop.permute.xlu1 %3220 }
 0xbe3   :  { %v3223_v40 = vadd.f32 %v3221_v63, %v3213_v2 }
 0xbe5   :  { %7730 = vtanh.f32 %v3223_v40  ;;  %v3323_v56 = vrot.slane %v3223_v40, 7 }
 0xbef   :  { %v7731_v11 = vpop.eup %7730 }
 0xbf0   :  { %3226 = vrot.lane.b32.xlu0 %v7731_v11, %s7839_s19 }
 0xc62   :  { %v3227_v29 = vpop.permute.xlu0 %3226 }
 0xc63   :  { %v9918_v3 = vmul.f32 %v7729_v53, %v3227_v29 }
 0xc65   :  { %v3236_v7 = vrot.slane %v9918_v3, 2 }
 0xc67   :  { %3237 = vrot.lane.b32.xlu1 %v3236_v7, %s7840_s9 }
 0xcd9   :  { %v3238_v8 = vpop.permute.xlu1 %3237 }
 0xcda   :  { %6343 = vmatmul.mubr.msk.f32.vlgmr.msra.gmra.mrb[40].mxu1 %vm2910_vm2, %v3238_v8 }
 0xcdb   :  { %7627 = vmatpush3.bf16.msra.mxu1 %v9842_v44  ;;  %6364 = vmatprep.mubr.msk.f32.mxu1 %vm7837_vm0, %v7838_v10 }
 0xcdc   :  { %7628 = vmatprep.subr.bf16.mxu1 %v7836_v18 }
 0xcdf   :  { %7630 = vmatpush3.bf16.msra.mxu1 %v9860_v4 }
 0xce0   :  { %7637 = vmatprep.subr.bf16.mxu1 %v7836_v18 }
 0xdad   :  { %v3307_v12 = vpop.f32.mrb[40].mxu1 }
 0xdae   :  { %v3312_v16 = vrot.slane %v3307_v12, 5  ;;  %v6344_v17 = vpop.f32.mrb[41].mxu1 }
 0xdb0   :  { %v3314_v26 = vadd.f32 %v3312_v16, %v9884_v21 }
 0xdb2   :  { %7732 = vtanh.f32 %v3314_v26  ;;  %v4907_v39 = vmul.f32 -1.442695, %v3314_v26 }
 0xdb4   :  { %7734 = vpow2.f32 %v4907_v39 }
 0xdbc   :  { %v7733_v38 = vpop.eup %7732 }
 0xdbd   :  { %3327 = vrot.lane.b32.xlu0 %v7733_v38, %s7839_s19 }
 0xdbe   :  { %v7735_v43 = vpop.eup %7734 }
 0xdbf   :  { %v3318_v50 = vadd.f32 1.0, %v7735_v43 }
 0xdc1   :  { %7736 = vrcp.f32 %v3318_v50 }
 0xdcb   :  { %v7737_v30 = vpop.eup %7736 }
 0xdcc   :  { %v3325_v25 = vmul.f32 %v7737_v30, %v3323_v56 }
 0xe2f   :  { %v3328_v13 = vpop.permute.xlu0 %3327 }
 0xe30   :  { %v3330_v22 = vmul.f32 %v7737_v30, %v3328_v13 }
 0xe32   :  { %3332 = vrot.lane.b32.xlu1 %v3330_v22, %s7840_s9 }
 0xea4   :  { %v3333_v51 = vpop.permute.xlu1 %3332 }
 0xea5   :  { %v3335_v52 = vadd.f32 %v3333_v51, %v3325_v25 }
 0xea7   :  { %7738 = vtanh.f32 %v3335_v52  ;;  %v3435_v37 = vrot.slane %v3335_v52, 7 }
 0xeb1   :  { %v7739_v62 = vpop.eup %7738 }
 0xeb2   :  { %3338 = vrot.lane.b32.xlu0 %v7739_v62, %s7839_s19 }
 0xf24   :  { %v3339_v0 = vpop.permute.xlu0 %3338 }
 0xf25   :  { %v9933_v5 = vmul.f32 %v7737_v30, %v3339_v0 }
 0xf27   :  { %v3348_v14 = vrot.slane %v9933_v5, 3 }
 0xf29   :  { %3349 = vrot.lane.b32.xlu1 %v3348_v14, %s7840_s9 }
 0xf9b   :  { %v3350_v20 = vpop.permute.xlu1 %3349 }
 0xf9c   :  { %6354 = vmatmul.mubr.msk.f32.vlgmr.msra.gmra.mrb[36].mxu0 %vm2910_vm2, %v3350_v20 }
 0xf9d   :  { %7633 = vmatpush3.bf16.msra.mxu0 %v9842_v44  ;;  %6375 = vmatprep.mubr.msk.f32.mxu0 %vm7837_vm0, %v7838_v10 }
 0xf9e   :  { %7634 = vmatprep.subr.bf16.mxu0 %v7836_v18 }
 0xfa1   :  { %7636 = vmatpush3.bf16.msra.mxu0 %v9860_v4 }
 0xfa2   :  { %7643 = vmatprep.subr.bf16.mxu0 %v7836_v18 }
0x106f   :  { %v3419_v19 = vpop.f32.mrb[36].mxu0 }
0x1070   :  { %v3424_v27 = vrot.slane %v3419_v19, 4  ;;  %v6355_v35 = vpop.f32.mrb[37].mxu0 }
0x1072   :  { %v3426_v34 = vadd.f32 %v3424_v27, %v9884_v21 }
0x1074   :  { %7740 = vtanh.f32 %v3426_v34  ;;  %v4909_v41 = vmul.f32 -1.442695, %v3426_v34 }
0x1076   :  { %7742 = vpow2.f32 %v4909_v41 }
0x107e   :  { %v7741_v15 = vpop.eup %7740 }
0x107f   :  { %3439 = vrot.lane.b32.xlu0 %v7741_v15, %s7839_s19 }
0x1080   :  { %v7743_v42 = vpop.eup %7742 }
0x1081   :  { %v3430_v58 = vadd.f32 1.0, %v7743_v42 }
0x1083   :  { %7744 = vrcp.f32 %v3430_v58 }
0x108d   :  { %v7745_v24 = vpop.eup %7744 }
0x108e   :  { %v3437_v48 = vmul.f32 %v7745_v24, %v3435_v37 }
0x10f1   :  { %v3440_v60 = vpop.permute.xlu0 %3439 }
0x10f2   :  { %v3442_v36 = vmul.f32 %v7745_v24, %v3440_v60 }
0x10f4   :  { %3444 = vrot.lane.b32.xlu1 %v3442_v36, %s7840_s9 }
0x1166   :  { %v3445_v45 = vpop.permute.xlu1 %3444 }
0x1167   :  { %v3447_v49 = vadd.f32 %v3445_v45, %v3437_v48 }
0x1169   :  { %7746 = vtanh.f32 %v3447_v49 }
0x1173   :  { %v7747_v57 = vpop.eup %7746 }
0x1174   :  { %3450 = vrot.lane.b32.xlu0 %v7747_v57, %s7839_s19 }
0x11e6   :  { %v3451_v31 = vpop.permute.xlu0 %3450 }
0x11e7   :  { %v9948_v9 = vmul.f32 %v7745_v24, %v3451_v31 }
0x11e9   :  { %v3460_v47 = vrot.slane %v9948_v9, 4 }
0x11eb   :  { %3461 = vrot.lane.b32.xlu1 %v3460_v47, %s7840_s9 }
0x125d   :  { %v3462_v32 = vpop.permute.xlu1 %3461 }
0x125e   :  { %6365 = vmatmul.mubr.msk.f32.vlgmr.msra.gmra.mrb[42].mxu1 %vm2910_vm2, %v3462_v32 }
0x125f   :  { %7639 = vmatpush3.bf16.msra.mxu1 %v9842_v44  ;;  %6386 = vmatprep.mubr.msk.f32.mxu1 %vm7837_vm0, %v7838_v10 }
0x1260   :  { %7640 = vmatprep.subr.bf16.mxu1 %v7836_v18 }
0x1263   :  { %7642 = vmatpush3.bf16.msra.mxu1 %v9860_v4  ;;  %v3547_v4 = vrot.slane %v3447_v49, 7 }
0x1264   :  { %7649 = vmatprep.subr.bf16.mxu1 %v7836_v18 }
0x1331   :  { %v3531_v28 = vpop.f32.mrb[42].mxu1 }
0x1332   :  { %v3536_v61 = vrot.slane %v3531_v28, 3  ;;  %v6366_v33 = vpop.f32.mrb[43].mxu1  ;;  %v3798_v28 = vld [vmem:[%s10188_s10 + $0x8] sm:$0xff] }
0x1333   :  { %v3881_v33 = vld [vmem:[%s10189_s11] sm:$0xff] }
0x1334   :  { %v3538_v1 = vadd.f32 %v3536_v61, %v9884_v21 }
0x1336   :  { %7748 = vtanh.f32 %v3538_v1  ;;  %v4911_v46 = vmul.f32 -1.442695, %v3538_v1 }
0x1338   :  { %7750 = vpow2.f32 %v4911_v46  ;;  %v3883_v46 = vld [vmem:[%s10189_s11 + $0x10] sm:$0xff] }
0x1340   :  { %v7749_v59 = vpop.eup %7748 }
0x1341   :  { %3551 = vrot.lane.b32.xlu0 %v7749_v59, %s7839_s19  ;;  %v3800_v59 = vld [vmem:[%s10188_s10 + $0x18] sm:$0xff] }
0x1342   :  { %v7751_v44 = vpop.eup %7750 }
0x1343   :  { %v3542_v53 = vadd.f32 1.0, %v7751_v44  ;;  %v3884_v44 = vld [vmem:[%s10189_s11 + $0x18] sm:$0xff] }
0x1345   :  { %7752 = vrcp.f32 %v3542_v53 }
0x134f   :  { %v7753_v23 = vpop.eup %7752 }
0x1350   :  { %v3549_v2 = vmul.f32 %v7753_v23, %v3547_v4 }
0x13b3   :  { %v3552_v54 = vpop.permute.xlu0 %3551 }
0x13b4   :  { %v3554_v55 = vmul.f32 %v7753_v23, %v3552_v54 }
0x13b6   :  { %3556 = vrot.lane.b32.xlu1 %v3554_v55, %s7840_s9 }
0x1428   :  { %v3557_v63 = vpop.permute.xlu1 %3556 }
0x1429   :  { %v3559_v40 = vadd.f32 %v3557_v63, %v3549_v2 }
0x142b   :  { %7754 = vtanh.f32 %v3559_v40  ;;  %v3659_v25 = vrot.slane %v3559_v40, 7 }
0x1435   :  { %v7755_v11 = vpop.eup %7754 }
0x1436   :  { %3562 = vrot.lane.b32.xlu0 %v7755_v11, %s7839_s19 }
0x14a8   :  { %v3563_v29 = vpop.permute.xlu0 %3562 }
0x14a9   :  { %v3565_v7 = vmul.f32 %v7753_v23, %v3563_v29  ;;  %v10020_v23 = vpack.c.bf16 %v3884_v44, %v3883_v46 }
0x14ab   :  { %v3572_v8 = vrot.slane %v3565_v7, 5 }
0x14ad   :  { %3573 = vrot.lane.b32.xlu1 %v3572_v8, %s7840_s9  ;;  %v4916_v8 = vld [vmem:[%s10190_s12] ss:$0 sm:$0xff] }
0x151f   :  { %v3574_v12 = vpop.permute.xlu1 %3573 }
0x1520   :  { %6376 = vmatmul.mubr.msk.f32.vlgmr.msra.gmra.mrb[38].mxu0 %vm2910_vm2, %v3574_v12 }
0x1521   :  { %6397 = vmatprep.mubr.msk.f32.mxu0 %vm7837_vm0, %v7838_v10 }
0x15f3   :  { %v3643_v16 = vpop.f32.mrb[38].mxu0 }
0x15f4   :  { %v3648_v17 = vrot.slane %v3643_v16, 2  ;;  %v6377_v26 = vpop.f32.mrb[39].mxu0 }
0x15f6   :  { %v3650_v38 = vadd.f32 %v3648_v17, %v9884_v21 }
0x15f8   :  { %7756 = vtanh.f32 %v3650_v38  ;;  %v4913_v43 = vmul.f32 -1.442695, %v3650_v38 }
0x15fa   :  { %7758 = vpow2.f32 %v4913_v43 }
0x1602   :  { %v7757_v39 = vpop.eup %7756 }
0x1603   :  { %3663 = vrot.lane.b32.xlu0 %v7757_v39, %s7839_s19 }
0x1604   :  { %v7759_v50 = vpop.eup %7758 }
0x1605   :  { %v3654_v30 = vadd.f32 1.0, %v7759_v50 }
0x1607   :  { %7760 = vrcp.f32 %v3654_v30 }
0x1611   :  { %v7761_v13 = vpop.eup %7760 }
0x1612   :  { %v3661_v51 = vmul.f32 %v7761_v13, %v3659_v25 }
0x1675   :  { %v3664_v22 = vpop.permute.xlu0 %3663 }
0x1676   :  { %v3666_v56 = vmul.f32 %v7761_v13, %v3664_v22 }
0x1678   :  { %3668 = vrot.lane.b32.xlu1 %v3666_v56, %s7840_s9 }
0x16ea   :  { %v3669_v52 = vpop.permute.xlu1 %3668 }
0x16eb   :  { %v3671_v62 = vadd.f32 %v3669_v52, %v3661_v51 }
0x16ed   :  { %7762 = vtanh.f32 %v3671_v62 }
0x16f7   :  { %v7763_v0 = vpop.eup %7762 }
0x16f8   :  { %3674 = vrot.lane.b32.xlu0 %v7763_v0, %s7839_s19 }
0x176a   :  { %v3675_v14 = vpop.permute.xlu0 %3674 }
0x176b   :  { %v3677_v20 = vmul.f32 %v7761_v13, %v3675_v14 }
0x176d   :  { %v3684_v19 = vrot.slane %v3677_v20, 6 }
0x176f   :  { %3685 = vrot.lane.b32.xlu1 %v3684_v19, %s7840_s9 }
0x17e1   :  { %v3686_v27 = vpop.permute.xlu1 %3685 }
0x17e2   :  { %6387 = vmatmul.mubr.msk.f32.vlgmr.msra.gmra.mrb[44].mxu1 %vm2910_vm2, %v3686_v27 }
0x17e3   :  { %6408 = vmatprep.mubr.msk.f32.mxu1 %vm7837_vm0, %v7838_v10 }
0x18b5   :  { %v3755_v35 = vpop.f32.mrb[44].mxu1 }
0x18b6   :  { %v3760_v34 = vrot.slane %v3755_v35, 1  ;;  %v6388_v15 = vpop.f32.mrb[45].mxu1 }
0x18b8   :  { %v3762_v41 = vadd.f32 %v3760_v34, %v9884_v21  ;;  %v3771_v21 = vrot.slane %v3671_v62, 7 }
0x18ba   :  { %7764 = vtanh.f32 %v3762_v41  ;;  %v4915_v58 = vmul.f32 -1.442695, %v3762_v41 }
0x18bc   :  { %7766 = vpow2.f32 %v4915_v58 }
0x18c4   :  { %v7765_v42 = vpop.eup %7764 }
0x18c5   :  { %3775 = vrot.lane.b32.xlu0 %v7765_v42, %s7839_s19 }
0x18c6   :  { %v7767_v24 = vpop.eup %7766 }
0x18c7   :  { %v3766_v60 = vadd.f32 1.0, %v7767_v24 }
0x18c9   :  { %7768 = vrcp.f32 %v3766_v60 }
0x18d3   :  { %v7769_v36 = vpop.eup %7768 }
0x18d4   :  { %v3773_v45 = vmul.f32 %v7769_v36, %v3771_v21 }
0x1937   :  { %v3776_v37 = vpop.permute.xlu0 %3775 }
0x1938   :  { %v3778_v48 = vmul.f32 %v7769_v36, %v3776_v37 }
0x193a   :  { %3780 = vrot.lane.b32.xlu1 %v3778_v48, %s7840_s9 }
0x193e   :  { %3119 = vrot.lane.b32.xlu1 %v9903_v6, %s7840_s9 }
0x1942   :  { %3343 = vrot.lane.b32.xlu1 %v9933_v5, %s7840_s9  ;;  %v3797_v5 = vld [vmem:[%s10188_s10] sm:$0xff] }
0x1943   :  { %v7644_v61 = vpack.c.bf16 %v3798_v28, %v3797_v5 }
0x1945   :  { %7645 = vmatpush3.bf16.msra.mxu0 %v7644_v61 }
0x1946   :  { %3567 = vrot.lane.b32.xlu1 %v3565_v7, %s7840_s9  ;;  %7646 = vmatprep.subr.bf16.mxu0 %v7836_v18 }
0x19ac   :  { %v3781_v49 = vpop.permute.xlu1 %3780 }
0x19ad   :  { %v3783_v57 = vadd.f32 %v3781_v49, %v3773_v45 }
0x19af   :  { %7770 = vtanh.f32 %v3783_v57 }
0x19b0   :  { %v3120_v31 = vpop.permute.xlu1 %3119 }
0x19b1   :  { %3123 = vst.msk [vmem:[#allocation2] sm:$0x2] %vm3122_vm3, %v3120_v31 }
0x19b4   :  { %v3344_v47 = vpop.permute.xlu1 %3343 }
0x19b5   :  { %3347 = vst.msk [vmem:[#allocation2] sm:$0x8] %vm3346_vm4, %v3344_v47 }
0x19b8   :  { %v3568_v6 = vpop.permute.xlu1 %3567 }
0x19b9   :  { %v7771_v32 = vpop.eup %7770  ;;  %3571 = vst.msk [vmem:[#allocation2] sm:$0x20] %vm3570_vm5, %v3568_v6 }
0x19ba   :  { %3786 = vrot.lane.b32.xlu0 %v7771_v32, %s7839_s19 }
0x19be   :  { %3231 = vrot.lane.b32.xlu0 %v9918_v3, %s7840_s9  ;;  %v3882_v3 = vld [vmem:[%s10189_s11 + $0x8] sm:$0xff] }
0x19bf   :  { %v10007_v1 = vpack.c.bf16 %v3882_v3, %v3881_v33 }
0x19c1   :  { %7651 = vmatpush3.bf16.msra.mxu1 %v10007_v1 }
0x19c2   :  { %3455 = vrot.lane.b32.xlu0 %v9948_v9, %s7840_s9  ;;  %v3799_v9 = vld [vmem:[%s10188_s10 + $0x10] sm:$0xff]  ;;  %7652 = vmatprep.subr.bf16.mxu1 %v7836_v18 }
0x19c3   :  { %v7647_v53 = vpack.c.bf16 %v3800_v59, %v3799_v9 }
0x19c5   :  { %7648 = vmatpush3.bf16.msra.mxu0 %v7647_v53  ;;  %7654 = vmatpush3.bf16.msra.mxu1 %v10020_v23 }
0x19c6   :  { %3679 = vrot.lane.b32.xlu0 %v3677_v20, %s7840_s9  ;;  %7655 = vmatprep.subr.bf16.mxu0 %v7836_v18 }
0x19c7   :  { %7661 = vmatprep.subr.bf16.mxu1 %v7836_v18 }
0x19c8   :  { %6409 = vmatmul.mubr.f32.vlgmr.msra.gmra.mrb[46].mxu1 %v7838_v10 }
0x19c9   :  { %7663 = vmatpush3.bf16.msra.mxu1 %v10007_v1  ;;  %6430 = vmatprep.mubr.msk.f32.mxu1 %vm7837_vm0, %v7838_v10 }
0x19ca   :  { %7664 = vmatprep.subr.bf16.mxu1 %v7836_v18 }
0x19cd   :  { %7666 = vmatpush3.bf16.msra.mxu1 %v10020_v23 }
0x19ce   :  { %7673 = vmatprep.subr.bf16.mxu1 %v7836_v18 }
0x1a2c   :  { %v3787_v54 = vpop.permute.xlu0 %3786 }
0x1a2d   :  { %v3789_v55 = vmul.f32 %v7769_v36, %v3787_v54 }
0x1a2f   :  { %3791 = vrot.lane.b32.xlu1 %v3789_v55, %s7840_s9 }
0x1a30   :  { %v3232_v4 = vpop.permute.xlu0 %3231 }
0x1a31   :  { %3235 = vst.msk [vmem:[#allocation2] sm:$0x4] %vm3234_vm6, %v3232_v4 }
0x1a34   :  { %v3456_v2 = vpop.permute.xlu0 %3455 }
0x1a35   :  { %3459 = vst.msk [vmem:[#allocation2] sm:$0x10] %vm3458_vm7, %v3456_v2 }
0x1a38   :  { %v3680_v63 = vpop.permute.xlu0 %3679 }
0x1a39   :  { %3683 = vst.msk [vmem:[#allocation2] sm:$0x40] %vm3682_vm8, %v3680_v63 }
0x1a9b   :  { %v3951_v29 = vpop.f32.mrb[46].mxu1 }
0x1a9c   :  { %v6410_v7 = vpop.f32.mrb[47].mxu1 }
0x1aa1   :  { %v3792_v40 = vpop.permute.xlu1 %3791 }
0x1aa2   :  { %3795 = vst.msk [vmem:[#allocation2] sm:$0x80] %vm3794_vm9, %v3792_v40 }
0x1aa9   :  { %v3796_v11 = vld [vmem:[#allocation2] sm:$0xff] }
0x1aaa   :  { %6398 = vmatmul.mubr.msk.f32.vlgmr.msra.gmra.mrb[40].mxu0 %vm2910_vm2, %v3796_v11 }
0x1aab   :  { %7657 = vmatpush3.bf16.msra.mxu0 %v10007_v1  ;;  %6419 = vmatprep.mubr.msk.f32.mxu0 %vm7837_vm0, %v7838_v10 }
0x1aac   :  { %7658 = vmatprep.subr.bf16.mxu0 %v7836_v18 }
0x1aaf   :  { %7660 = vmatpush3.bf16.msra.mxu0 %v10020_v23 }
0x1ab0   :  { %7667 = vmatprep.subr.bf16.mxu0 %v7836_v18 }
0x1b7d   :  { %v3877_v12 = vpop.f32.mrb[40].mxu0 }
0x1b7e   :  { %v10048_v16 = vadd.f32 %v4916_v8, %v3877_v12  ;;  %v6399_v17 = vpop.f32.mrb[41].mxu0 }
0x1b80   :  { %v3955_v26 = vadd.f32 %v3951_v29, %v10048_v16 }
0x1b82   :  { %7772 = vtanh.f32 %v3955_v26  ;;  %v4918_v39 = vmul.f32 -1.442695, %v3955_v26 }
0x1b84   :  { %7774 = vpow2.f32 %v4918_v39 }
0x1b8c   :  { %v7773_v38 = vpop.eup %7772 }
0x1b8d   :  { %3965 = vrot.lane.b32.xlu0 %v7773_v38, %s7839_s19 }
0x1b8e   :  { %v7775_v43 = vpop.eup %7774 }
0x1b8f   :  { %v3959_v50 = vadd.f32 1.0, %v7775_v43 }
0x1b91   :  { %7776 = vrcp.f32 %v3959_v50 }
0x1b9b   :  { %v7777_v30 = vpop.eup %7776 }
0x1b9c   :  { %v3963_v56 = vmul.f32 0.0, %v7777_v30 }
0x1bff   :  { %v3966_v13 = vpop.permute.xlu0 %3965 }
0x1c00   :  { %v3968_v22 = vmul.f32 %v7777_v30, %v3966_v13 }
0x1c02   :  { %3970 = vrot.lane.b32.xlu1 %v3968_v22, %s7840_s9 }
0x1c74   :  { %v3971_v25 = vpop.permute.xlu1 %3970 }
0x1c75   :  { %v3973_v51 = vadd.f32 %v3971_v25, %v3963_v56 }
0x1c77   :  { %7778 = vtanh.f32 %v3973_v51  ;;  %v4069_v36 = vrot.slane %v3973_v51, 7 }
0x1c81   :  { %v7779_v52 = vpop.eup %7778 }
0x1c82   :  { %3976 = vrot.lane.b32.xlu0 %v7779_v52, %s7839_s19 }
0x1cf4   :  { %v3977_v62 = vpop.permute.xlu0 %3976 }
0x1cf5   :  { %v3979_v0 = vmul.f32 %v7777_v30, %v3977_v62 }
0x1cf7   :  { %3981 = vrot.lane.b32.xlu1 %v3979_v0, %s7840_s9 }
0x1d69   :  { %v3982_v14 = vpop.permute.xlu1 %3981 }
0x1d6a   :  { %3984 = vst.msk [vmem:[#allocation2] sm:$0x1] %vm3013_vm1, %v3982_v14  ;;  %6420 = vmatmul.mubr.msk.f32.vlgmr.msra.gmra.mrb[42].mxu0 %vm2910_vm2, %v3982_v14 }
0x1d6b   :  { %7669 = vmatpush3.bf16.msra.mxu0 %v10007_v1  ;;  %6441 = vmatprep.mubr.msk.f32.mxu0 %vm7837_vm0, %v7838_v10 }
0x1d6c   :  { %7670 = vmatprep.subr.bf16.mxu0 %v7836_v18 }
0x1d6f   :  { %7672 = vmatpush3.bf16.msra.mxu0 %v10020_v23 }
0x1d70   :  { %7679 = vmatprep.subr.bf16.mxu0 %v7836_v18 }
0x1e3d   :  { %v4053_v20 = vpop.f32.mrb[42].mxu0 }
0x1e3e   :  { %v4058_v19 = vrot.slane %v4053_v20, 7  ;;  %v6421_v27 = vpop.f32.mrb[43].mxu0 }
0x1e40   :  { %v4060_v35 = vadd.f32 %v4058_v19, %v10048_v16 }
0x1e42   :  { %7780 = vtanh.f32 %v4060_v35  ;;  %v4920_v15 = vmul.f32 -1.442695, %v4060_v35 }
0x1e44   :  { %7782 = vpow2.f32 %v4920_v15 }
0x1e4c   :  { %v7781_v34 = vpop.eup %7780 }
0x1e4d   :  { %4073 = vrot.lane.b32.xlu0 %v7781_v34, %s7839_s19 }
0x1e4e   :  { %v7783_v41 = vpop.eup %7782 }
0x1e4f   :  { %v4064_v42 = vadd.f32 1.0, %v7783_v41 }
0x1e51   :  { %7784 = vrcp.f32 %v4064_v42 }
0x1e5b   :  { %v7785_v58 = vpop.eup %7784 }
0x1e5c   :  { %v4071_v37 = vmul.f32 %v7785_v58, %v4069_v36 }
0x1ebf   :  { %v4074_v24 = vpop.permute.xlu0 %4073 }
0x1ec0   :  { %v4076_v60 = vmul.f32 %v7785_v58, %v4074_v24 }
0x1ec2   :  { %4078 = vrot.lane.b32.xlu1 %v4076_v60, %s7840_s9 }
0x1f34   :  { %v4079_v48 = vpop.permute.xlu1 %4078 }
0x1f35   :  { %v4081_v21 = vadd.f32 %v4079_v48, %v4071_v37 }
0x1f37   :  { %7786 = vtanh.f32 %v4081_v21  ;;  %v4180_v53 = vrot.slane %v4081_v21, 7 }
0x1f41   :  { %v7787_v45 = vpop.eup %7786 }
0x1f42   :  { %4084 = vrot.lane.b32.xlu0 %v7787_v45, %s7839_s19 }
0x1fb4   :  { %v4085_v49 = vpop.permute.xlu0 %4084 }
0x1fb5   :  { %v10067_v57 = vmul.f32 %v7785_v58, %v4085_v49 }
0x1fb7   :  { %v4093_v31 = vrot.slane %v10067_v57, 1 }
0x1fb9   :  { %4094 = vrot.lane.b32.xlu1 %v4093_v31, %s7840_s9 }
0x202b   :  { %v4095_v47 = vpop.permute.xlu1 %4094 }
0x202c   :  { %6431 = vmatmul.mubr.msk.f32.vlgmr.msra.gmra.mrb[48].mxu1 %vm2910_vm2, %v4095_v47 }
0x202d   :  { %7675 = vmatpush3.bf16.msra.mxu1 %v10007_v1  ;;  %6452 = vmatprep.mubr.msk.f32.mxu1 %vm7837_vm0, %v7838_v10 }
0x202e   :  { %7676 = vmatprep.subr.bf16.mxu1 %v7836_v18 }
0x2031   :  { %7678 = vmatpush3.bf16.msra.mxu1 %v10020_v23 }
0x2032   :  { %7685 = vmatprep.subr.bf16.mxu1 %v7836_v18 }
0x20ff   :  { %v4164_v6 = vpop.f32.mrb[48].mxu1 }
0x2100   :  { %v4169_v32 = vrot.slane %v4164_v6, 6  ;;  %v6432_v5 = vpop.f32.mrb[49].mxu1 }
0x2102   :  { %v4171_v28 = vadd.f32 %v4169_v32, %v10048_v16 }
0x2104   :  { %7788 = vtanh.f32 %v4171_v28  ;;  %v4922_v33 = vmul.f32 -1.442695, %v4171_v28 }
0x2106   :  { %7790 = vpow2.f32 %v4922_v33 }
0x210e   :  { %v7789_v61 = vpop.eup %7788 }
0x210f   :  { %4184 = vrot.lane.b32.xlu0 %v7789_v61, %s7839_s19 }
0x2110   :  { %v7791_v3 = vpop.eup %7790 }
0x2111   :  { %v4175_v9 = vadd.f32 1.0, %v7791_v3 }
0x2113   :  { %7792 = vrcp.f32 %v4175_v9 }
0x211d   :  { %v7793_v59 = vpop.eup %7792 }
0x211e   :  { %v4182_v54 = vmul.f32 %v7793_v59, %v4180_v53 }
0x2181   :  { %v4185_v46 = vpop.permute.xlu0 %4184 }
0x2182   :  { %v4187_v44 = vmul.f32 %v7793_v59, %v4185_v46 }
0x2184   :  { %4189 = vrot.lane.b32.xlu1 %v4187_v44, %s7840_s9 }
0x21f6   :  { %v4190_v55 = vpop.permute.xlu1 %4189 }
0x21f7   :  { %v4192_v4 = vadd.f32 %v4190_v55, %v4182_v54 }
0x21f9   :  { %7794 = vtanh.f32 %v4192_v4  ;;  %v4291_v22 = vrot.slane %v4192_v4, 7 }
0x2203   :  { %v7795_v2 = vpop.eup %7794 }
0x2204   :  { %4195 = vrot.lane.b32.xlu0 %v7795_v2, %s7839_s19 }
0x2276   :  { %v4196_v63 = vpop.permute.xlu0 %4195 }
0x2277   :  { %v10082_v40 = vmul.f32 %v7793_v59, %v4196_v63 }
0x2279   :  { %v4204_v11 = vrot.slane %v10082_v40, 2 }
0x227b   :  { %4205 = vrot.lane.b32.xlu1 %v4204_v11, %s7840_s9 }
0x22ed   :  { %v4206_v29 = vpop.permute.xlu1 %4205 }
0x22ee   :  { %6442 = vmatmul.mubr.msk.f32.vlgmr.msra.gmra.mrb[44].mxu0 %vm2910_vm2, %v4206_v29 }
0x22ef   :  { %7681 = vmatpush3.bf16.msra.mxu0 %v10007_v1  ;;  %6463 = vmatprep.mubr.msk.f32.mxu0 %vm7837_vm0, %v7838_v10 }
0x22f0   :  { %7682 = vmatprep.subr.bf16.mxu0 %v7836_v18 }
0x22f3   :  { %7684 = vmatpush3.bf16.msra.mxu0 %v10020_v23 }
0x22f4   :  { %7691 = vmatprep.subr.bf16.mxu0 %v7836_v18 }
0x23c1   :  { %v4275_v7 = vpop.f32.mrb[44].mxu0 }
0x23c2   :  { %v4280_v8 = vrot.slane %v4275_v7, 5  ;;  %v6443_v12 = vpop.f32.mrb[45].mxu0 }
0x23c4   :  { %v4282_v17 = vadd.f32 %v4280_v8, %v10048_v16 }
0x23c6   :  { %7796 = vtanh.f32 %v4282_v17  ;;  %v4924_v38 = vmul.f32 -1.442695, %v4282_v17 }
0x23c8   :  { %7798 = vpow2.f32 %v4924_v38 }
0x23d0   :  { %v7797_v26 = vpop.eup %7796 }
0x23d1   :  { %4295 = vrot.lane.b32.xlu0 %v7797_v26, %s7839_s19 }
0x23d2   :  { %v7799_v39 = vpop.eup %7798 }
0x23d3   :  { %v4286_v43 = vadd.f32 1.0, %v7799_v39 }
0x23d5   :  { %7800 = vrcp.f32 %v4286_v43 }
0x23df   :  { %v7801_v50 = vpop.eup %7800 }
0x23e0   :  { %v4293_v56 = vmul.f32 %v7801_v50, %v4291_v22 }
0x2443   :  { %v4296_v30 = vpop.permute.xlu0 %4295 }
0x2444   :  { %v4298_v13 = vmul.f32 %v7801_v50, %v4296_v30 }
0x2446   :  { %4300 = vrot.lane.b32.xlu1 %v4298_v13, %s7840_s9 }
0x24b8   :  { %v4301_v25 = vpop.permute.xlu1 %4300 }
0x24b9   :  { %v4303_v51 = vadd.f32 %v4301_v25, %v4293_v56 }
0x24bb   :  { %7802 = vtanh.f32 %v4303_v51  ;;  %v4402_v37 = vrot.slane %v4303_v51, 7 }
0x24c5   :  { %v7803_v52 = vpop.eup %7802 }
0x24c6   :  { %4306 = vrot.lane.b32.xlu0 %v7803_v52, %s7839_s19 }
0x2538   :  { %v4307_v62 = vpop.permute.xlu0 %4306 }
0x2539   :  { %v10097_v0 = vmul.f32 %v7801_v50, %v4307_v62 }
0x253b   :  { %v4315_v14 = vrot.slane %v10097_v0, 3 }
0x253d   :  { %4316 = vrot.lane.b32.xlu1 %v4315_v14, %s7840_s9 }
0x25af   :  { %v4317_v20 = vpop.permute.xlu1 %4316 }
0x25b0   :  { %6453 = vmatmul.mubr.msk.f32.vlgmr.msra.gmra.mrb[50].mxu1 %vm2910_vm2, %v4317_v20 }
0x25b1   :  { %7687 = vmatpush3.bf16.msra.mxu1 %v10007_v1  ;;  %6474 = vmatprep.mubr.msk.f32.mxu1 %vm7837_vm0, %v7838_v10 }
0x25b2   :  { %7688 = vmatprep.subr.bf16.mxu1 %v7836_v18 }
0x25b5   :  { %7690 = vmatpush3.bf16.msra.mxu1 %v10020_v23 }
0x25b6   :  { %7697 = vmatprep.subr.bf16.mxu1 %v7836_v18 }
0x2683   :  { %v4386_v19 = vpop.f32.mrb[50].mxu1 }
0x2684   :  { %v4391_v27 = vrot.slane %v4386_v19, 4  ;;  %v6454_v35 = vpop.f32.mrb[51].mxu1 }
0x2686   :  { %v4393_v34 = vadd.f32 %v4391_v27, %v10048_v16 }
0x2688   :  { %7804 = vtanh.f32 %v4393_v34  ;;  %v4926_v41 = vmul.f32 -1.442695, %v4393_v34 }
0x268a   :  { %7806 = vpow2.f32 %v4926_v41 }
0x2692   :  { %v7805_v15 = vpop.eup %7804 }
0x2693   :  { %4406 = vrot.lane.b32.xlu0 %v7805_v15, %s7839_s19 }
0x2694   :  { %v7807_v42 = vpop.eup %7806 }
0x2695   :  { %v4397_v58 = vadd.f32 1.0, %v7807_v42 }
0x2697   :  { %7808 = vrcp.f32 %v4397_v58 }
0x26a1   :  { %v7809_v24 = vpop.eup %7808 }
0x26a2   :  { %v4404_v48 = vmul.f32 %v7809_v24, %v4402_v37 }
0x2705   :  { %v4407_v60 = vpop.permute.xlu0 %4406 }
0x2706   :  { %v4409_v36 = vmul.f32 %v7809_v24, %v4407_v60 }
0x2708   :  { %4411 = vrot.lane.b32.xlu1 %v4409_v36, %s7840_s9 }
0x277a   :  { %v4412_v21 = vpop.permute.xlu1 %4411 }
0x277b   :  { %v4414_v45 = vadd.f32 %v4412_v21, %v4404_v48 }
0x277d   :  { %7810 = vtanh.f32 %v4414_v45 }
0x2787   :  { %v7811_v49 = vpop.eup %7810 }
0x2788   :  { %4417 = vrot.lane.b32.xlu0 %v7811_v49, %s7839_s19 }
0x27fa   :  { %v4418_v31 = vpop.permute.xlu0 %4417 }
0x27fb   :  { %v10112_v47 = vmul.f32 %v7809_v24, %v4418_v31 }
0x27fd   :  { %v4426_v6 = vrot.slane %v10112_v47, 4 }
0x27ff   :  { %4427 = vrot.lane.b32.xlu1 %v4426_v6, %s7840_s9 }
0x2871   :  { %v4428_v32 = vpop.permute.xlu1 %4427 }
0x2872   :  { %6464 = vmatmul.mubr.msk.f32.vlgmr.msra.gmra.mrb[46].mxu0 %vm2910_vm2, %v4428_v32 }
0x2873   :  { %7693 = vmatpush3.bf16.msra.mxu0 %v10007_v1  ;;  %6485 = vmatprep.mubr.msk.f32.mxu0 %vm7837_vm0, %v7838_v10 }
0x2874   :  { %7694 = vmatprep.subr.bf16.mxu0 %v7836_v18 }
0x2877   :  { %7696 = vmatpush3.bf16.msra.mxu0 %v10020_v23  ;;  %v4513_v23 = vrot.slane %v4414_v45, 7 }
0x2945   :  { %v4497_v5 = vpop.f32.mrb[46].mxu0 }
0x2946   :  { %v4502_v28 = vrot.slane %v4497_v5, 3  ;;  %v6465_v61 = vpop.f32.mrb[47].mxu0 }
0x2948   :  { %v4504_v33 = vadd.f32 %v4502_v28, %v10048_v16  ;;  %v4762_v28 = vld [vmem:[%s10191_s13 + $0x10] sm:$0xff] }
0x294a   :  { %7812 = vtanh.f32 %v4504_v33  ;;  %v4928_v9 = vmul.f32 -1.442695, %v4504_v33 }
0x294c   :  { %7814 = vpow2.f32 %v4928_v9 }
0x2954   :  { %v7813_v3 = vpop.eup %7812 }
0x2955   :  { %4517 = vrot.lane.b32.xlu0 %v7813_v3, %s7839_s19 }
0x2956   :  { %v7815_v59 = vpop.eup %7814 }
0x2957   :  { %v4508_v1 = vadd.f32 1.0, %v7815_v59 }
0x2959   :  { %7816 = vrcp.f32 %v4508_v1 }
0x2963   :  { %v7817_v46 = vpop.eup %7816 }
0x2964   :  { %v4515_v54 = vmul.f32 %v7817_v46, %v4513_v23 }
0x29c7   :  { %v4518_v44 = vpop.permute.xlu0 %4517 }
0x29c8   :  { %v4520_v53 = vmul.f32 %v7817_v46, %v4518_v44 }
0x29ca   :  { %4522 = vrot.lane.b32.xlu1 %v4520_v53, %s7840_s9 }
0x2a3c   :  { %v4523_v55 = vpop.permute.xlu1 %4522 }
0x2a3d   :  { %v4525_v4 = vadd.f32 %v4523_v55, %v4515_v54 }
0x2a3f   :  { %7818 = vtanh.f32 %v4525_v4 }
0x2a49   :  { %v7819_v2 = vpop.eup %7818 }
0x2a4a   :  { %4528 = vrot.lane.b32.xlu0 %v7819_v2, %s7839_s19 }
0x2abc   :  { %v4529_v63 = vpop.permute.xlu0 %4528 }
0x2abd   :  { %v4531_v11 = vmul.f32 %v7817_v46, %v4529_v63 }
0x2abf   :  { %v4537_v29 = vrot.slane %v4531_v11, 5 }
0x2ac1   :  { %4538 = vrot.lane.b32.xlu1 %v4537_v29, %s7840_s9 }
0x2b33   :  { %v4539_v7 = vpop.permute.xlu1 %4538 }
0x2b34   :  { %6475 = vmatmul.mubr.msk.f32.vlgmr.msra.gmra.mrb[52].mxu1 %vm2910_vm2, %v4539_v7 }
0x2b35   :  { %6496 = vmatprep.mubr.msk.f32.mxu1 %vm7837_vm0, %v7838_v10  ;;  %v4624_v10 = vrot.slane %v4525_v4, 7 }
0x2c07   :  { %v4608_v8 = vpop.f32.mrb[52].mxu1 }
0x2c08   :  { %v4613_v12 = vrot.slane %v4608_v8, 2  ;;  %v6476_v17 = vpop.f32.mrb[53].mxu1 }
0x2c0a   :  { %v4615_v26 = vadd.f32 %v4613_v12, %v10048_v16 }
0x2c0c   :  { %7820 = vtanh.f32 %v4615_v26  ;;  %v4930_v39 = vmul.f32 -1.442695, %v4615_v26 }
0x2c0e   :  { %7822 = vpow2.f32 %v4930_v39 }
0x2c16   :  { %v7821_v38 = vpop.eup %7820 }
0x2c17   :  { %4628 = vrot.lane.b32.xlu0 %v7821_v38, %s7839_s19 }
0x2c18   :  { %v7823_v43 = vpop.eup %7822 }
0x2c19   :  { %v4619_v50 = vadd.f32 1.0, %v7823_v43 }
0x2c1b   :  { %7824 = vrcp.f32 %v4619_v50 }
0x2c25   :  { %v7825_v30 = vpop.eup %7824 }
0x2c26   :  { %v4626_v56 = vmul.f32 %v7825_v30, %v4624_v10 }
0x2c89   :  { %v4629_v13 = vpop.permute.xlu0 %4628 }
0x2c8a   :  { %v4631_v22 = vmul.f32 %v7825_v30, %v4629_v13 }
0x2c8c   :  { %4633 = vrot.lane.b32.xlu1 %v4631_v22, %s7840_s9 }
0x2cfe   :  { %v4634_v25 = vpop.permute.xlu1 %4633 }
0x2cff   :  { %v4636_v51 = vadd.f32 %v4634_v25, %v4626_v56 }
0x2d01   :  { %7826 = vtanh.f32 %v4636_v51 }
0x2d0b   :  { %v7827_v52 = vpop.eup %7826 }
0x2d0c   :  { %4639 = vrot.lane.b32.xlu0 %v7827_v52, %s7839_s19 }
0x2d7e   :  { %v4640_v62 = vpop.permute.xlu0 %4639 }
0x2d7f   :  { %v4642_v14 = vmul.f32 %v7825_v30, %v4640_v62 }
0x2d81   :  { %v4648_v20 = vrot.slane %v4642_v14, 6 }
0x2d83   :  { %4649 = vrot.lane.b32.xlu1 %v4648_v20, %s7840_s9 }
0x2df5   :  { %v4650_v19 = vpop.permute.xlu1 %4649 }
0x2df6   :  { %6486 = vmatmul.mubr.msk.f32.vlgmr.msra.gmra.mrb[48].mxu0 %vm2910_vm2, %v4650_v19 }
0x2ec9   :  { %v4719_v27 = vpop.f32.mrb[48].mxu0 }
0x2eca   :  { %v4724_v35 = vrot.slane %v4719_v27, 1  ;;  %v6487_v34 = vpop.f32.mrb[49].mxu0 }
0x2ecc   :  { %v4726_v15 = vadd.f32 %v4724_v35, %v10048_v16  ;;  %v4735_v16 = vrot.slane %v4636_v51, 7 }
0x2ece   :  { %7828 = vtanh.f32 %v4726_v15  ;;  %v4932_v42 = vmul.f32 -1.442695, %v4726_v15 }
0x2ed0   :  { %7830 = vpow2.f32 %v4932_v42 }
0x2ed8   :  { %v7829_v41 = vpop.eup %7828 }
0x2ed9   :  { %4739 = vrot.lane.b32.xlu0 %v7829_v41, %s7839_s19 }
0x2eda   :  { %v7831_v58 = vpop.eup %7830 }
0x2edb   :  { %v4730_v24 = vadd.f32 1.0, %v7831_v58 }
0x2edd   :  { %7832 = vrcp.f32 %v4730_v24 }
0x2ee7   :  { %v7833_v60 = vpop.eup %7832 }
0x2ee8   :  { %v4737_v48 = vmul.f32 %v7833_v60, %v4735_v16 }
0x2f4b   :  { %v4740_v36 = vpop.permute.xlu0 %4739 }
0x2f4c   :  { %v4742_v37 = vmul.f32 %v7833_v60, %v4740_v36 }
0x2f4e   :  { %4744 = vrot.lane.b32.xlu1 %v4742_v37, %s7840_s9 }
0x2f52   :  { %4089 = vrot.lane.b32.xlu1 %v10067_v57, %s7840_s9  ;;  %v4760_v57 = vld [vmem:[%s10191_s13] sm:$0xff] }
0x2f56   :  { %4311 = vrot.lane.b32.xlu1 %v10097_v0, %s7840_s9  ;;  %v4761_v0 = vld [vmem:[%s10191_s13 + $0x8] sm:$0xff] }
0x2f57   :  { %v7698_v5 = vpack.c.bf16 %v4761_v0, %v4760_v57 }
0x2f59   :  { %7699 = vmatpush3.bf16.msra.mxu1 %v7698_v5 }
0x2f5a   :  { %4533 = vrot.lane.b32.xlu1 %v4531_v11, %s7840_s9  ;;  %7700 = vmatprep.subr.bf16.mxu1 %v7836_v18  ;;  %v4933_v18 = vld [vmem:[%s10192_s14] ss:$0 sm:$0xff] }
0x2fc0   :  { %v4745_v21 = vpop.permute.xlu1 %4744 }
0x2fc1   :  { %v4747_v45 = vadd.f32 %v4745_v21, %v4737_v48 }
0x2fc3   :  { %7834 = vtanh.f32 %v4747_v45 }
0x2fc4   :  { %v4090_v49 = vpop.permute.xlu1 %4089 }
0x2fc5   :  { %4092 = vst.msk [vmem:[#allocation2] sm:$0x2] %vm3122_vm3, %v4090_v49 }
0x2fc8   :  { %v4312_v31 = vpop.permute.xlu1 %4311 }
0x2fc9   :  { %4314 = vst.msk [vmem:[#allocation2] sm:$0x8] %vm3346_vm4, %v4312_v31 }
0x2fcc   :  { %v4534_v6 = vpop.permute.xlu1 %4533 }
0x2fcd   :  { %v7835_v32 = vpop.eup %7834  ;;  %4536 = vst.msk [vmem:[#allocation2] sm:$0x20] %vm3570_vm5, %v4534_v6 }
0x2fce   :  { %4750 = vrot.lane.b32.xlu0 %v7835_v32, %s7839_s19 }
0x2fd2   :  { %4200 = vrot.lane.b32.xlu0 %v10082_v40, %s7840_s9  ;;  %v4763_v40 = vld [vmem:[%s10191_s13 + $0x18] sm:$0xff] }
0x2fd6   :  { %4422 = vrot.lane.b32.xlu0 %v10112_v47, %s7840_s9  ;;  %v7701_v47 = vpack.c.bf16 %v4763_v40, %v4762_v28 }
0x2fd8   :  { %7702 = vmatpush3.bf16.msra.mxu1 %v7701_v47 }
0x2fda   :  { %4644 = vrot.lane.b32.xlu0 %v4642_v14, %s7840_s9 }
0x3040   :  { %v4751_v61 = vpop.permute.xlu0 %4750 }
0x3041   :  { %v4753_v33 = vmul.f32 %v7833_v60, %v4751_v61 }
0x3043   :  { %4755 = vrot.lane.b32.xlu1 %v4753_v33, %s7840_s9 }
0x3044   :  { %v4201_v3 = vpop.permute.xlu0 %4200 }
0x3045   :  { %4203 = vst.msk [vmem:[#allocation2] sm:$0x4] %vm3234_vm6, %v4201_v3 }
0x3048   :  { %v4423_v9 = vpop.permute.xlu0 %4422 }
0x3049   :  { %4425 = vst.msk [vmem:[#allocation2] sm:$0x10] %vm3458_vm7, %v4423_v9 }
0x304c   :  { %v4645_v59 = vpop.permute.xlu0 %4644 }
0x304d   :  { %4647 = vst.msk [vmem:[#allocation2] sm:$0x40] %vm3682_vm8, %v4645_v59 }
0x30b5   :  { %v4756_v1 = vpop.permute.xlu1 %4755 }
0x30b6   :  { %4758 = vst.msk [vmem:[#allocation2] sm:$0x80] %vm3794_vm9, %v4756_v1 }
0x30bd   :  { %v4759_v46 = vld [vmem:[#allocation2] sm:$0xff] }
0x30be   :  { %6497 = vmatmul.mubr.msk.f32.vlgmr.msra.gmra.mrb[54].mxu1 %vm2910_vm2, %v4759_v46 }
0x3191   :  { %v4840_v44 = vpop.f32.mrb[54].mxu1 }
0x3192   :  { %v4841_v53 = vadd.f32 %v4933_v18, %v4840_v44  ;;  %v6498_v23 = vpop.f32.mrb[55].mxu1 }
0x3194   :  { %4844 = vst [vmem:[%s10193_s15] sm:$0xff] %v4841_v53 }

</bundles_post_ra>
